<compile_context>
chip_gen: v7x
topology: tpu7x:2x2x1
jax: 0.10.0
libtpu: 0.0.40
codegen_flags: <defaults>
</compile_context>

<pallas_src>
import jax
import jax.numpy as jnp
from jax import lax
from jax.experimental import pallas as pl
from jax.experimental.pallas import tpu as pltpu

# ----------------- synthetic bioclip config (small) -----------------
IMG = 16          # image height/width
PATCH = 8         # patch size -> 2x2 = 4 patches (+1 CLS token)
D = 32            # transformer width for both towers
HEADS = 4
DH = D // HEADS
LAYERS = 2
MLP = 4 * D
EMBED = 32        # shared CLIP embedding dim
VOCAB = 64
CTX = 8           # text context length
NEG_INF = -1e9

N_PATCHES = (IMG // PATCH) ** 2          # 4
PATCH_DIM = 3 * PATCH * PATCH            # 192
S_IMG = 1 + N_PATCHES                    # 5 real vision tokens (CLS + patches)
S_PAD = 8                                # vision sequence padded to a full sublane tile
B_TILE = 1                               # images per grid step (megacore batch sharding)

BLOCK_KEYS = ("ln1_g", "ln1_b", "w_q", "b_q", "w_k", "b_k", "w_v", "b_v",
              "w_o", "b_o", "ln2_g", "ln2_b", "w_fc", "b_fc", "w_proj", "b_proj")
_BIDX = {k: i for i, k in enumerate(BLOCK_KEYS)}
N_BLOCK = len(BLOCK_KEYS)
N_IMG = 4 + N_BLOCK + 3      # image-tower parameter refs
N_TXT = 2 + N_BLOCK + 3      # text-tower parameter refs


# ----------------- in-kernel building blocks (pure jnp, traced inside the kernel) -----------
def _ln(x2d, g, b):
    """LayerNorm over last dim, fp32 everywhere.  g/b: [1, D]."""
    x = x2d.astype(jnp.float32)
    mu = jnp.mean(x, axis=-1, keepdims=True)
    xc = x - mu
    var = jnp.mean(xc * xc, axis=-1, keepdims=True)
    return xc * lax.rsqrt(var + 1e-5) * g + b


def _gelu(y):
    # TODO(synk): open_clip's nn.GELU is exact-erf; tanh approximation used here (erf is not
    # guaranteed to lower on the Mosaic EUP) — tiny numeric drift vs the PyTorch reference.
    return 0.5 * y * (1.0 + jnp.tanh(0.7978845608028654 * (y + 0.044715 * y * y * y)))


def _attention(q, k, v, batch, seq, mask):
    """Head-batched MHA: heads go into the single batch axis, so scores and PV are each ONE
    batched matmul and the softmax is ONE reduce chain over the stacked [batch*H, S, S] scores.
    The 1/sqrt(DH) scale is pre-folded into w_q/b_q at build time; the additive mask (if any)
    is applied once to the stacked scores."""
    def split_heads(a):
        return (a.reshape(batch, seq, HEADS, DH)
                 .transpose(0, 2, 1, 3)
                 .reshape(batch * HEADS, seq, DH)
                 .astype(jnp.bfloat16))

    qh = split_heads(q)
    kh = split_heads(k)
    vh = split_heads(v)
    s = jnp.einsum("bqd,bkd->bqk", qh, kh, preferred_element_type=jnp.float32)
    if mask is not None:
        s = s + mask[None]                               # broadcast over batch*heads, added once
    s = s - jnp.max(s, axis=-1, keepdims=True)
    p = jnp.exp(s)                                       # f32 element-wise (v5e-safe)
    # NOTE: on Mosaic this divide maps to the EUP reciprocal path; kept as a plain divide
    # (instead of pl.reciprocal(approx=True)) for interpret-mode portability.
    p = p / jnp.sum(p, axis=-1, keepdims=True)
    o = jnp.einsum("bqk,bkd->bqd", p.astype(jnp.bfloat16), vh,
                   preferred_element_type=jnp.float32)
    return (o.reshape(batch, HEADS, seq, DH)
             .transpose(0, 2, 1, 3)
             .reshape(batch * seq, D))                   # one contiguous [rows, D] store


def _block(x, brefs, layer, batch, seq, mask):
    """Pre-LN transformer block on a 2-D [batch*seq, D] slab; brefs are stacked-over-layers
    parameter refs (weights bf16, biases/LN f32)."""
    h = _ln(x, brefs[_BIDX["ln1_g"]][layer],
            brefs[_BIDX["ln1_b"]][layer]).astype(jnp.bfloat16)       # cast once, reuse 3x
    q = jnp.dot(h, brefs[_BIDX["w_q"]][layer],
                preferred_element_type=jnp.float32) + brefs[_BIDX["b_q"]][layer]
    k = jnp.dot(h, brefs[_BIDX["w_k"]][layer],
                preferred_element_type=jnp.float32) + brefs[_BIDX["b_k"]][layer]
    v = jnp.dot(h, brefs[_BIDX["w_v"]][layer],
                preferred_element_type=jnp.float32) + brefs[_BIDX["b_v"]][layer]
    a = _attention(q, k, v, batch, seq, mask)
    x = x + jnp.dot(a.astype(jnp.bfloat16), brefs[_BIDX["w_o"]][layer],
                    preferred_element_type=jnp.float32) + brefs[_BIDX["b_o"]][layer]
    h2 = _ln(x, brefs[_BIDX["ln2_g"]][layer],
             brefs[_BIDX["ln2_b"]][layer]).astype(jnp.bfloat16)
    m = jnp.dot(h2, brefs[_BIDX["w_fc"]][layer],
                preferred_element_type=jnp.float32) + brefs[_BIDX["b_fc"]][layer]
    m = _gelu(m)
    m = jnp.dot(m.astype(jnp.bfloat16), brefs[_BIDX["w_proj"]][layer],
                preferred_element_type=jnp.float32) + brefs[_BIDX["b_proj"]][layer]
    return x + m


# ----------------- the fused forward kernel (one grid step = one batch tile) ----------------
def clip_forward_kernel(*refs):
    scale_ref, patches_ref, prompt_oh_ref, eot_mat_ref = refs[:4]
    img_refs = refs[4:4 + N_IMG]
    txt_refs = refs[4 + N_IMG:4 + N_IMG + N_TXT]
    out_ref = refs[4 + N_IMG + N_TXT]

    w_patch_ref, pos_img_ref, ln_pre_g_ref, ln_pre_b_ref = img_refs[:4]
    img_blk = img_refs[4:4 + N_BLOCK]
    ln_post_g_ref, ln_post_b_ref, img_proj_ref = img_refs[4 + N_BLOCK:]

    tok_emb_ref, pos_txt_ref = txt_refs[:2]
    txt_blk = txt_refs[2:2 + N_BLOCK]
    ln_final_g_ref, ln_final_b_ref, txt_proj_ref = txt_refs[2 + N_BLOCK:]

    b_tile, s_pad, pd1 = patches_ref.shape
    n_cls = prompt_oh_ref.shape[0] // CTX

    # ---------- image tower: this grid step's batch tile, kept as a 2-D [rows, D] slab -------
    tok = patches_ref[...].reshape(b_tile * s_pad, pd1)               # bf16 token rows
    # ONE matmul embeds CLS (indicator column -> last row of w_patch_aug) + patches + pad rows.
    x = jnp.dot(tok, w_patch_ref[...], preferred_element_type=jnp.float32)
    x = x + jnp.tile(pos_img_ref[...], (b_tile, 1))
    x = _ln(x, ln_pre_g_ref[...], ln_pre_b_ref[...])
    # key-padding additive mask built in-kernel (iota compare); pad rows 5..7 never attended to
    colp = lax.broadcasted_iota(jnp.int32, (s_pad, s_pad), 1)
    pad_mask = jnp.where(colp >= S_IMG, jnp.float32(NEG_INF), jnp.float32(0.0))
    for layer in range(LAYERS):
        x = _block(x, img_blk, layer, b_tile, s_pad, pad_mask)
    cls = x.reshape(b_tile, s_pad, D)[:, 0, :]                        # CLS row per image
    cls = _ln(cls, ln_post_g_ref[...], ln_post_b_ref[...])
    img_feat = jnp.dot(cls.astype(jnp.bfloat16), img_proj_ref[...],
                       preferred_element_type=jnp.float32)            # [b_tile, EMBED]

    # ---------- text tower (tiny; recomputed per grid step so steps stay independent under
    #            dimension_semantics=("parallel",) megacore sharding) --------------------------
    t = jnp.dot(prompt_oh_ref[...], tok_emb_ref[...],
                preferred_element_type=jnp.float32)                   # [C*CTX, D]
    t = t + jnp.tile(pos_txt_ref[...], (n_cls, 1))
    rowc = lax.broadcasted_iota(jnp.int32, (CTX, CTX), 0)
    colc = lax.broadcasted_iota(jnp.int32, (CTX, CTX), 1)
    causal = jnp.where(colc > rowc, jnp.float32(NEG_INF), jnp.float32(0.0))
    for layer in range(LAYERS):
        t = _block(t, txt_blk, layer, n_cls, CTX, causal)
    t = _ln(t, ln_final_g_ref[...], ln_final_b_ref[...])
    # x[arange(C), text.argmax(-1)] as ONE block-diagonal one-hot matmul
    sel = jnp.dot(eot_mat_ref[...], t.astype(jnp.bfloat16),
                  preferred_element_type=jnp.float32)                 # [C, D]
    txt_feat = jnp.dot(sel.astype(jnp.bfloat16), txt_proj_ref[...],
                       preferred_element_type=jnp.float32)            # [C, EMBED]

    # ---------- normalize + logits ----------
    img_n = img_feat * lax.rsqrt(jnp.maximum(
        jnp.sum(img_feat * img_feat, axis=-1, keepdims=True), 1e-24))
    txt_n = txt_feat * lax.rsqrt(jnp.maximum(
        jnp.sum(txt_feat * txt_feat, axis=-1, keepdims=True), 1e-24))
    logits = lax.dot_general(img_n, txt_n, (((1,), (1,)), ((), ())),
                             preferred_element_type=jnp.float32)      # contract last dims, no .T
    out_ref[:, 0, :] = jnp.exp(scale_ref[0, 0]) * logits              # scalar read from SMEM


# ----------------- wrapper (single pallas_call per forward, batch-parallel grid) ------------
def _full_spec(a):
    nd = a.ndim
    return pl.BlockSpec(a.shape, lambda i, _nd=nd: (0,) * _nd)        # full array every step


def _img_param_list(p):
    blk = p["img_blocks"]
    return ([p["w_patch_aug"], p["pos_emb_img"], p["ln_pre_g"], p["ln_pre_b"]]
            + [blk[k] for k in BLOCK_KEYS]
            + [p["ln_post_g"], p["ln_post_b"], p["img_projection"]])


def _txt_param_list(p):
    blk = p["text_blocks"]
    return ([p["token_embedding"], p["pos_emb_txt"]]
            + [blk[k] for k in BLOCK_KEYS]
            + [p["ln_final_g"], p["ln_final_b"], p["text_projection"]])


def _prep_patches(images):
    """NCHW -> per-image token rows [B, S_PAD, PATCH_DIM+1] bf16: row 0 is a CLS indicator
    (last column = 1, matched by the CLS embedding stored as the last row of w_patch_aug),
    rows 1..4 are patch pixels, rows 5..7 are zero padding.  Layout glue only."""
    B = images.shape[0]
    gh = gw = IMG // PATCH
    p = images.astype(jnp.float32).reshape(B, 3, gh, PATCH, gw, PATCH)
    p = p.transpose(0, 2, 4, 1, 3, 5).reshape(B, N_PATCHES, PATCH_DIM)
    p = jnp.concatenate([p, jnp.zeros((B, N_PATCHES, 1), jnp.float32)], axis=-1)
    cls_row = jnp.zeros((B, 1, PATCH_DIM + 1), jnp.float32).at[:, :, -1].set(1.0)
    pad_rows = jnp.zeros((B, S_PAD - 1 - N_PATCHES, PATCH_DIM + 1), jnp.float32)
    return jnp.concatenate([cls_row, p, pad_rows], axis=1).astype(jnp.bfloat16)


@jax.jit
def custom_clip_forward(params, prompts, images):
    # CustomCLIP.forward: whole forward = ONE fused Pallas kernel, grid over batch tiles
    # (weights replicated / VMEM-resident, activations per-tile; "parallel" -> megacore).
    B = images.shape[0]
    C = prompts["eot_mat"].shape[0]
    tok = _prep_patches(images)

    inputs = ([params["logit_scale"], tok, prompts["onehot"], prompts["eot_mat"]]
              + _img_param_list(params) + _txt_param_list(params))

    in_specs = (
        [pl.BlockSpec(memory_space=pltpu.MemorySpace.SMEM),                      # logit_scale
         pl.BlockSpec((B_TILE, S_PAD, PATCH_DIM + 1), lambda i: (i, 0, 0))]      # batch tile
        + [_full_spec(a) for a in inputs[2:]])

    out = pl.pallas_call(
        clip_forward_kernel,
        out_shape=jax.ShapeDtypeStruct((B, 1, C), jnp.float32),
        grid=(B // B_TILE,),
        in_specs=in_specs,
        out_specs=pl.BlockSpec((B_TILE, 1, C), lambda i: (i, 0, 0)),
        compiler_params=pltpu.CompilerParams(dimension_semantics=("parallel",)),
    )(*inputs)
    return out[:, 0, :]


# ----------------- deterministic parameter construction -----------------
def _dense(key, shape, scale=0.02):
    return scale * jax.random.normal(key, shape, jnp.float32)


def _init_block(key):
    ks = jax.random.split(key, 6)
    attn_scale = DH ** -0.5
    zf = lambda n: jnp.zeros((1, n), jnp.float32)
    return dict(
        ln1_g=jnp.ones((1, D), jnp.float32), ln1_b=zf(D),
        # attention scale folded into the Q projection (and its bias) at build time
        w_q=(_dense(ks[0], (D, D)) * attn_scale).astype(jnp.bfloat16), b_q=zf(D) * attn_scale,
        w_k=_dense(ks[1], (D, D)).astype(jnp.bfloat16), b_k=zf(D),
        w_v=_dense(ks[2], (D, D)).astype(jnp.bfloat16), b_v=zf(D),
        w_o=_dense(ks[3], (D, D)).astype(jnp.bfloat16), b_o=zf(D),
        ln2_g=jnp.ones((1, D), jnp.float32), ln2_b=zf(D),
        w_fc=_dense(ks[4], (D, MLP)).astype(jnp.bfloat16), b_fc=zf(MLP),
        w_proj=_dense(ks[5], (MLP, D)).astype(jnp.bfloat16), b_proj=zf(D),
    )


def _init_blocks(key, layers):
    per_layer = [_init_block(k) for k in jax.random.split(key, layers)]
    # stack over layers -> one array per parameter, indexed with a static layer id in-kernel
    return {k: jnp.stack([blk[k] for blk in per_layer], axis=0) for k in BLOCK_KEYS}


def tokenize_prompts(classnames):
    # TODO(synk): the real hf-hub:imageomics/bioclip BPE tokenizer is a host-side string op with
    # no Pallas equivalent; deterministic synthetic ids where EOT (VOCAB-1) is the max id so
    # `text.argmax(-1)` selects it exactly like CLIP.
    toks = []
    for i, _ in enumerate(classnames):
        t = [1, 10 + i, 20 + i, 30, VOCAB - 1, 0, 0, 0]
        toks.append(t[:CTX])
    tokens = jnp.asarray(toks, jnp.int32)
    C = tokens.shape[0]
    # Precomputed once (like torch __init__): token-embedding lookup and EOT selection become
    # in-kernel bf16 one-hot matmuls.
    onehot = jax.nn.one_hot(tokens, VOCAB, dtype=jnp.bfloat16).reshape(C * CTX, VOCAB)
    eot_flat = jnp.arange(C) * CTX + jnp.argmax(tokens, axis=-1)
    eot_mat = jax.nn.one_hot(eot_flat, C * CTX, dtype=jnp.bfloat16)        # [C, C*CTX]
    return dict(tokens=tokens, onehot=onehot, eot_mat=eot_mat)


def build_custom_clip(key, classnames):
    ks = iter(jax.random.split(key, 12))
    w_patch = _dense(next(ks), (PATCH_DIM, D))
    cls_token = _dense(next(ks), (1, D))
    # CLS embedding lives in the last row of the augmented patch projection, so the whole
    # [B, 8, D] token slab comes out of ONE matmul with no in-kernel concatenate.
    w_patch_aug = jnp.concatenate([w_patch, cls_token], axis=0).astype(jnp.bfloat16)
    pos_img = jnp.pad(_dense(next(ks), (S_IMG, D)), ((0, S_PAD - S_IMG), (0, 0)))

    params = dict(
        # vision tower
        w_patch_aug=w_patch_aug,
        pos_emb_img=pos_img,
        ln_pre_g=jnp.ones((1, D), jnp.float32), ln_pre_b=jnp.zeros((1, D), jnp.float32),
        img_blocks=_init_blocks(next(ks), LAYERS),
        ln_post_g=jnp.ones((1, D), jnp.float32), ln_post_b=jnp.zeros((1, D), jnp.float32),
        img_projection=_dense(next(ks), (D, EMBED)).astype(jnp.bfloat16),
        # text tower
        token_embedding=_dense(next(ks), (VOCAB, D)).astype(jnp.bfloat16),
        pos_emb_txt=_dense(next(ks), (CTX, D)),
        text_blocks=_init_blocks(next(ks), LAYERS),
        ln_final_g=jnp.ones((1, D), jnp.float32), ln_final_b=jnp.zeros((1, D), jnp.float32),
        text_projection=_dense(next(ks), (D, EMBED)).astype(jnp.bfloat16),
        logit_scale=jnp.full((1, 1), jnp.log(1.0 / 0.07), jnp.float32),
    )
    prompts = tokenize_prompts(classnames)
    return params, prompts


# ----------------- main -----------------
if __name__ == "__main__":
    key = jax.random.PRNGKey(0)
    classnames = ["cat", "dog", "bird"]
    params, prompts = build_custom_clip(key, classnames)

    images = jax.random.normal(jax.random.fold_in(key, 123), (2, 3, IMG, IMG), jnp.float32)

    logits = custom_clip_forward(params, prompts, images)
    logits = jax.block_until_ready(logits)

    assert logits.shape == (2, len(classnames)), logits.shape
    assert bool(jnp.all(jnp.isfinite(logits)))
    print("KERNEL_OK")
</pallas_src>

<mosaic_0001>
module attributes {stable_mosaic.version = 11 : i64} {
  func.func @clip_forward_kernel(%arg0: i32, %arg1: memref<1x1xf32, #tpu.memory_space<smem>>, %arg2: memref<1x8x193xbf16, #tpu.memory_space<vmem>>, %arg3: memref<24x64xbf16, #tpu.memory_space<vmem>>, %arg4: memref<3x24xbf16, #tpu.memory_space<vmem>>, %arg5: memref<193x32xbf16, #tpu.memory_space<vmem>>, %arg6: memref<8x32xf32, #tpu.memory_space<vmem>>, %arg7: memref<1x32xf32, #tpu.memory_space<vmem>>, %arg8: memref<1x32xf32, #tpu.memory_space<vmem>>, %arg9: memref<2x1x32xf32, #tpu.memory_space<vmem>>, %arg10: memref<2x1x32xf32, #tpu.memory_space<vmem>>, %arg11: memref<2x32x32xbf16, #tpu.memory_space<vmem>>, %arg12: memref<2x1x32xf32, #tpu.memory_space<vmem>>, %arg13: memref<2x32x32xbf16, #tpu.memory_space<vmem>>, %arg14: memref<2x1x32xf32, #tpu.memory_space<vmem>>, %arg15: memref<2x32x32xbf16, #tpu.memory_space<vmem>>, %arg16: memref<2x1x32xf32, #tpu.memory_space<vmem>>, %arg17: memref<2x32x32xbf16, #tpu.memory_space<vmem>>, %arg18: memref<2x1x32xf32, #tpu.memory_space<vmem>>, %arg19: memref<2x1x32xf32, #tpu.memory_space<vmem>>, %arg20: memref<2x1x32xf32, #tpu.memory_space<vmem>>, %arg21: memref<2x32x128xbf16, #tpu.memory_space<vmem>>, %arg22: memref<2x1x128xf32, #tpu.memory_space<vmem>>, %arg23: memref<2x128x32xbf16, #tpu.memory_space<vmem>>, %arg24: memref<2x1x32xf32, #tpu.memory_space<vmem>>, %arg25: memref<1x32xf32, #tpu.memory_space<vmem>>, %arg26: memref<1x32xf32, #tpu.memory_space<vmem>>, %arg27: memref<32x32xbf16, #tpu.memory_space<vmem>>, %arg28: memref<64x32xbf16, #tpu.memory_space<vmem>>, %arg29: memref<8x32xf32, #tpu.memory_space<vmem>>, %arg30: memref<2x1x32xf32, #tpu.memory_space<vmem>>, %arg31: memref<2x1x32xf32, #tpu.memory_space<vmem>>, %arg32: memref<2x32x32xbf16, #tpu.memory_space<vmem>>, %arg33: memref<2x1x32xf32, #tpu.memory_space<vmem>>, %arg34: memref<2x32x32xbf16, #tpu.memory_space<vmem>>, %arg35: memref<2x1x32xf32, #tpu.memory_space<vmem>>, %arg36: memref<2x32x32xbf16, #tpu.memory_space<vmem>>, %arg37: memref<2x1x32xf32, #tpu.memory_space<vmem>>, %arg38: memref<2x32x32xbf16, #tpu.memory_space<vmem>>, %arg39: memref<2x1x32xf32, #tpu.memory_space<vmem>>, %arg40: memref<2x1x32xf32, #tpu.memory_space<vmem>>, %arg41: memref<2x1x32xf32, #tpu.memory_space<vmem>>, %arg42: memref<2x32x128xbf16, #tpu.memory_space<vmem>>, %arg43: memref<2x1x128xf32, #tpu.memory_space<vmem>>, %arg44: memref<2x128x32xbf16, #tpu.memory_space<vmem>>, %arg45: memref<2x1x32xf32, #tpu.memory_space<vmem>>, %arg46: memref<1x32xf32, #tpu.memory_space<vmem>>, %arg47: memref<1x32xf32, #tpu.memory_space<vmem>>, %arg48: memref<32x32xbf16, #tpu.memory_space<vmem>>, %arg49: memref<1x1x3xf32, #tpu.memory_space<vmem>>) attributes {dimension_semantics = [#tpu.dimension_semantics<parallel>], iteration_bounds = array<i64: 2>, scalar_prefetch = 0 : i64, scratch_operands = 0 : i64, tpu.core_type = #tpu.core_type<tc>, window_params = [{transform_indices = @transform_0, window_bounds = array<i64: 1, 1>}, {transform_indices = @transform_1, window_bounds = array<i64: 1, 8, 193>}, {pipeline_mode = #tpu.pipeline_mode<synchronous>, transform_indices = @transform_2, window_bounds = array<i64: 24, 64>}, {pipeline_mode = #tpu.pipeline_mode<synchronous>, transform_indices = @transform_3, window_bounds = array<i64: 3, 24>}, {pipeline_mode = #tpu.pipeline_mode<synchronous>, transform_indices = @transform_4, window_bounds = array<i64: 193, 32>}, {pipeline_mode = #tpu.pipeline_mode<synchronous>, transform_indices = @transform_5, window_bounds = array<i64: 8, 32>}, {pipeline_mode = #tpu.pipeline_mode<synchronous>, transform_indices = @transform_6, window_bounds = array<i64: 1, 32>}, {pipeline_mode = #tpu.pipeline_mode<synchronous>, transform_indices = @transform_7, window_bounds = array<i64: 1, 32>}, {pipeline_mode = #tpu.pipeline_mode<synchronous>, transform_indices = @transform_8, window_bounds = array<i64: 2, 1, 32>}, {pipeline_mode = #tpu.pipeline_mode<synchronous>, transform_indices = @transform_9, window_bounds = array<i64: 2, 1, 32>}, {pipeline_mode = #tpu.pipeline_mode<synchronous>, transform_indices = @transform_10, window_bounds = array<i64: 2, 32, 32>}, {pipeline_mode = #tpu.pipeline_mode<synchronous>, transform_indices = @transform_11, window_bounds = array<i64: 2, 1, 32>}, {pipeline_mode = #tpu.pipeline_mode<synchronous>, transform_indices = @transform_12, window_bounds = array<i64: 2, 32, 32>}, {pipeline_mode = #tpu.pipeline_mode<synchronous>, transform_indices = @transform_13, window_bounds = array<i64: 2, 1, 32>}, {pipeline_mode = #tpu.pipeline_mode<synchronous>, transform_indices = @transform_14, window_bounds = array<i64: 2, 32, 32>}, {pipeline_mode = #tpu.pipeline_mode<synchronous>, transform_indices = @transform_15, window_bounds = array<i64: 2, 1, 32>}, {pipeline_mode = #tpu.pipeline_mode<synchronous>, transform_indices = @transform_16, window_bounds = array<i64: 2, 32, 32>}, {pipeline_mode = #tpu.pipeline_mode<synchronous>, transform_indices = @transform_17, window_bounds = array<i64: 2, 1, 32>}, {pipeline_mode = #tpu.pipeline_mode<synchronous>, transform_indices = @transform_18, window_bounds = array<i64: 2, 1, 32>}, {pipeline_mode = #tpu.pipeline_mode<synchronous>, transform_indices = @transform_19, window_bounds = array<i64: 2, 1, 32>}, {pipeline_mode = #tpu.pipeline_mode<synchronous>, transform_indices = @transform_20, window_bounds = array<i64: 2, 32, 128>}, {pipeline_mode = #tpu.pipeline_mode<synchronous>, transform_indices = @transform_21, window_bounds = array<i64: 2, 1, 128>}, {pipeline_mode = #tpu.pipeline_mode<synchronous>, transform_indices = @transform_22, window_bounds = array<i64: 2, 128, 32>}, {pipeline_mode = #tpu.pipeline_mode<synchronous>, transform_indices = @transform_23, window_bounds = array<i64: 2, 1, 32>}, {pipeline_mode = #tpu.pipeline_mode<synchronous>, transform_indices = @transform_24, window_bounds = array<i64: 1, 32>}, {pipeline_mode = #tpu.pipeline_mode<synchronous>, transform_indices = @transform_25, window_bounds = array<i64: 1, 32>}, {pipeline_mode = #tpu.pipeline_mode<synchronous>, transform_indices = @transform_26, window_bounds = array<i64: 32, 32>}, {pipeline_mode = #tpu.pipeline_mode<synchronous>, transform_indices = @transform_27, window_bounds = array<i64: 64, 32>}, {pipeline_mode = #tpu.pipeline_mode<synchronous>, transform_indices = @transform_28, window_bounds = array<i64: 8, 32>}, {pipeline_mode = #tpu.pipeline_mode<synchronous>, transform_indices = @transform_29, window_bounds = array<i64: 2, 1, 32>}, {pipeline_mode = #tpu.pipeline_mode<synchronous>, transform_indices = @transform_30, window_bounds = array<i64: 2, 1, 32>}, {pipeline_mode = #tpu.pipeline_mode<synchronous>, transform_indices = @transform_31, window_bounds = array<i64: 2, 32, 32>}, {pipeline_mode = #tpu.pipeline_mode<synchronous>, transform_indices = @transform_32, window_bounds = array<i64: 2, 1, 32>}, {pipeline_mode = #tpu.pipeline_mode<synchronous>, transform_indices = @transform_33, window_bounds = array<i64: 2, 32, 32>}, {pipeline_mode = #tpu.pipeline_mode<synchronous>, transform_indices = @transform_34, window_bounds = array<i64: 2, 1, 32>}, {pipeline_mode = #tpu.pipeline_mode<synchronous>, transform_indices = @transform_35, window_bounds = array<i64: 2, 32, 32>}, {pipeline_mode = #tpu.pipeline_mode<synchronous>, transform_indices = @transform_36, window_bounds = array<i64: 2, 1, 32>}, {pipeline_mode = #tpu.pipeline_mode<synchronous>, transform_indices = @transform_37, window_bounds = array<i64: 2, 32, 32>}, {pipeline_mode = #tpu.pipeline_mode<synchronous>, transform_indices = @transform_38, window_bounds = array<i64: 2, 1, 32>}, {pipeline_mode = #tpu.pipeline_mode<synchronous>, transform_indices = @transform_39, window_bounds = array<i64: 2, 1, 32>}, {pipeline_mode = #tpu.pipeline_mode<synchronous>, transform_indices = @transform_40, window_bounds = array<i64: 2, 1, 32>}, {pipeline_mode = #tpu.pipeline_mode<synchronous>, transform_indices = @transform_41, window_bounds = array<i64: 2, 32, 128>}, {pipeline_mode = #tpu.pipeline_mode<synchronous>, transform_indices = @transform_42, window_bounds = array<i64: 2, 1, 128>}, {pipeline_mode = #tpu.pipeline_mode<synchronous>, transform_indices = @transform_43, window_bounds = array<i64: 2, 128, 32>}, {pipeline_mode = #tpu.pipeline_mode<synchronous>, transform_indices = @transform_44, window_bounds = array<i64: 2, 1, 32>}, {pipeline_mode = #tpu.pipeline_mode<synchronous>, transform_indices = @transform_45, window_bounds = array<i64: 1, 32>}, {pipeline_mode = #tpu.pipeline_mode<synchronous>, transform_indices = @transform_46, window_bounds = array<i64: 1, 32>}, {pipeline_mode = #tpu.pipeline_mode<synchronous>, transform_indices = @transform_47, window_bounds = array<i64: 32, 32>}, {transform_indices = @transform_48, window_bounds = array<i64: 1, 1, 3>}]} {
    %c0 = arith.constant 0 : index
    %c0_0 = arith.constant 0 : index
    %c0_1 = arith.constant 0 : index
    %0 = vector.load %arg2[%c0, %c0_0, %c0_1] : memref<1x8x193xbf16, #tpu.memory_space<vmem>>, vector<1x8x193xbf16>
    %1 = vector.shape_cast %0 : vector<1x8x193xbf16> to vector<8x193xbf16>
    %c0_2 = arith.constant 0 : index
    %c0_3 = arith.constant 0 : index
    %2 = vector.load %arg5[%c0_2, %c0_3] : memref<193x32xbf16, #tpu.memory_space<vmem>>, vector<193x32xbf16>
    %cst = arith.constant dense<0.000000e+00> : vector<8x32xf32>
    %3 = tpu.matmul %1, %2, %cst {dimension_numbers = #tpu.dot_dimension_numbers<[1], [0], [0], [1], [0, 0, 1, 1], [], []>} : vector<8x193xbf16>, vector<193x32xbf16>, vector<8x32xf32> -> vector<8x32xf32>
    %c0_4 = arith.constant 0 : index
    %c0_5 = arith.constant 0 : index
    %4 = vector.load %arg6[%c0_4, %c0_5] : memref<8x32xf32, #tpu.memory_space<vmem>>, vector<8x32xf32>
    %5 = arith.addf %3, %4 : vector<8x32xf32>
    %c0_6 = arith.constant 0 : index
    %c0_7 = arith.constant 0 : index
    %6 = vector.load %arg7[%c0_6, %c0_7] : memref<1x32xf32, #tpu.memory_space<vmem>>, vector<1x32xf32>
    %c0_8 = arith.constant 0 : index
    %c0_9 = arith.constant 0 : index
    %7 = vector.load %arg8[%c0_8, %c0_9] : memref<1x32xf32, #tpu.memory_space<vmem>>, vector<1x32xf32>
    %cst_10 = arith.constant dense<0.000000e+00> : vector<8xf32>
    %8 = vector.multi_reduction <add>, %5, %cst_10 [1] : vector<8x32xf32> to vector<8xf32>
    %9 = vector.shape_cast %8 : vector<8xf32> to vector<8x1xf32>
    %cst_11 = arith.constant 3.200000e+01 : f32
    %10 = vector.broadcast %cst_11 : f32 to vector<8x1xf32>
    %11 = arith.divf %9, %10 : vector<8x1xf32>
    %12 = vector.broadcast %11 : vector<8x1xf32> to vector<8x32xf32>
    %13 = arith.subf %5, %12 : vector<8x32xf32>
    %14 = arith.mulf %13, %13 : vector<8x32xf32>
    %cst_12 = arith.constant dense<0.000000e+00> : vector<8xf32>
    %15 = vector.multi_reduction <add>, %14, %cst_12 [1] : vector<8x32xf32> to vector<8xf32>
    %16 = vector.shape_cast %15 : vector<8xf32> to vector<8x1xf32>
    %cst_13 = arith.constant 3.200000e+01 : f32
    %17 = vector.broadcast %cst_13 : f32 to vector<8x1xf32>
    %18 = arith.divf %16, %17 : vector<8x1xf32>
    %cst_14 = arith.constant 9.99999974E-6 : f32
    %19 = vector.broadcast %cst_14 : f32 to vector<8x1xf32>
    %20 = arith.addf %18, %19 : vector<8x1xf32>
    %21 = math.rsqrt %20 : vector<8x1xf32>
    %22 = vector.broadcast %21 : vector<8x1xf32> to vector<8x32xf32>
    %23 = arith.mulf %13, %22 : vector<8x32xf32>
    %24 = vector.broadcast %6 : vector<1x32xf32> to vector<8x32xf32>
    %25 = arith.mulf %23, %24 : vector<8x32xf32>
    %26 = vector.broadcast %7 : vector<1x32xf32> to vector<8x32xf32>
    %27 = arith.addf %25, %26 : vector<8x32xf32>
    %28 = tpu.iota {dimensions = array<i32: 1>} : vector<8x8xi32>
    %c5_i32 = arith.constant 5 : i32
    %29 = vector.broadcast %c5_i32 : i32 to vector<8x8xi32>
    %30 = arith.cmpi sge, %28, %29 : vector<8x8xi32>
    %cst_15 = arith.constant -1.000000e+09 : f32
    %cst_16 = arith.constant 0.000000e+00 : f32
    %31 = vector.broadcast %cst_15 : f32 to vector<8x8xf32>
    %32 = vector.broadcast %cst_16 : f32 to vector<8x8xf32>
    %33 = arith.select %30, %31, %32 : vector<8x8xi1>, vector<8x8xf32>
    %c0_17 = arith.constant 0 : index
    %c0_18 = arith.constant 0 : index
    %c0_19 = arith.constant 0 : index
    %34 = vector.load %arg9[%c0_17, %c0_18, %c0_19] : memref<2x1x32xf32, #tpu.memory_space<vmem>>, vector<1x1x32xf32>
    %35 = vector.shape_cast %34 : vector<1x1x32xf32> to vector<1x32xf32>
    %c0_20 = arith.constant 0 : index
    %c0_21 = arith.constant 0 : index
    %c0_22 = arith.constant 0 : index
    %36 = vector.load %arg10[%c0_20, %c0_21, %c0_22] : memref<2x1x32xf32, #tpu.memory_space<vmem>>, vector<1x1x32xf32>
    %37 = vector.shape_cast %36 : vector<1x1x32xf32> to vector<1x32xf32>
    %cst_23 = arith.constant dense<0.000000e+00> : vector<8xf32>
    %38 = vector.multi_reduction <add>, %27, %cst_23 [1] : vector<8x32xf32> to vector<8xf32>
    %39 = vector.shape_cast %38 : vector<8xf32> to vector<8x1xf32>
    %cst_24 = arith.constant 3.200000e+01 : f32
    %40 = vector.broadcast %cst_24 : f32 to vector<8x1xf32>
    %41 = arith.divf %39, %40 : vector<8x1xf32>
    %42 = vector.broadcast %41 : vector<8x1xf32> to vector<8x32xf32>
    %43 = arith.subf %27, %42 : vector<8x32xf32>
    %44 = arith.mulf %43, %43 : vector<8x32xf32>
    %cst_25 = arith.constant dense<0.000000e+00> : vector<8xf32>
    %45 = vector.multi_reduction <add>, %44, %cst_25 [1] : vector<8x32xf32> to vector<8xf32>
    %46 = vector.shape_cast %45 : vector<8xf32> to vector<8x1xf32>
    %cst_26 = arith.constant 3.200000e+01 : f32
    %47 = vector.broadcast %cst_26 : f32 to vector<8x1xf32>
    %48 = arith.divf %46, %47 : vector<8x1xf32>
    %cst_27 = arith.constant 9.99999974E-6 : f32
    %49 = vector.broadcast %cst_27 : f32 to vector<8x1xf32>
    %50 = arith.addf %48, %49 : vector<8x1xf32>
    %51 = math.rsqrt %50 : vector<8x1xf32>
    %52 = vector.broadcast %51 : vector<8x1xf32> to vector<8x32xf32>
    %53 = arith.mulf %43, %52 : vector<8x32xf32>
    %54 = vector.broadcast %35 : vector<1x32xf32> to vector<8x32xf32>
    %55 = arith.mulf %53, %54 : vector<8x32xf32>
    %56 = vector.broadcast %37 : vector<1x32xf32> to vector<8x32xf32>
    %57 = arith.addf %55, %56 : vector<8x32xf32>
    %58 = arith.truncf %57 : vector<8x32xf32> to vector<8x32xbf16>
    %c0_28 = arith.constant 0 : index
    %c0_29 = arith.constant 0 : index
    %c0_30 = arith.constant 0 : index
    %59 = vector.load %arg11[%c0_28, %c0_29, %c0_30] : memref<2x32x32xbf16, #tpu.memory_space<vmem>>, vector<1x32x32xbf16>
    %60 = vector.shape_cast %59 : vector<1x32x32xbf16> to vector<32x32xbf16>
    %cst_31 = arith.constant dense<0.000000e+00> : vector<8x32xf32>
    %61 = tpu.matmul %58, %60, %cst_31 {dimension_numbers = #tpu.dot_dimension_numbers<[1], [0], [0], [1], [0, 0, 1, 1], [], []>} : vector<8x32xbf16>, vector<32x32xbf16>, vector<8x32xf32> -> vector<8x32xf32>
    %c0_32 = arith.constant 0 : index
    %c0_33 = arith.constant 0 : index
    %c0_34 = arith.constant 0 : index
    %62 = vector.load %arg12[%c0_32, %c0_33, %c0_34] : memref<2x1x32xf32, #tpu.memory_space<vmem>>, vector<1x1x32xf32>
    %63 = vector.shape_cast %62 : vector<1x1x32xf32> to vector<1x32xf32>
    %64 = vector.broadcast %63 : vector<1x32xf32> to vector<8x32xf32>
    %65 = arith.addf %61, %64 : vector<8x32xf32>
    %c0_35 = arith.constant 0 : index
    %c0_36 = arith.constant 0 : index
    %c0_37 = arith.constant 0 : index
    %66 = vector.load %arg13[%c0_35, %c0_36, %c0_37] : memref<2x32x32xbf16, #tpu.memory_space<vmem>>, vector<1x32x32xbf16>
    %67 = vector.shape_cast %66 : vector<1x32x32xbf16> to vector<32x32xbf16>
    %cst_38 = arith.constant dense<0.000000e+00> : vector<8x32xf32>
    %68 = tpu.matmul %58, %67, %cst_38 {dimension_numbers = #tpu.dot_dimension_numbers<[1], [0], [0], [1], [0, 0, 1, 1], [], []>} : vector<8x32xbf16>, vector<32x32xbf16>, vector<8x32xf32> -> vector<8x32xf32>
    %c0_39 = arith.constant 0 : index
    %c0_40 = arith.constant 0 : index
    %c0_41 = arith.constant 0 : index
    %69 = vector.load %arg14[%c0_39, %c0_40, %c0_41] : memref<2x1x32xf32, #tpu.memory_space<vmem>>, vector<1x1x32xf32>
    %70 = vector.shape_cast %69 : vector<1x1x32xf32> to vector<1x32xf32>
    %71 = vector.broadcast %70 : vector<1x32xf32> to vector<8x32xf32>
    %72 = arith.addf %68, %71 : vector<8x32xf32>
    %c0_42 = arith.constant 0 : index
    %c0_43 = arith.constant 0 : index
    %c0_44 = arith.constant 0 : index
    %73 = vector.load %arg15[%c0_42, %c0_43, %c0_44] : memref<2x32x32xbf16, #tpu.memory_space<vmem>>, vector<1x32x32xbf16>
    %74 = vector.shape_cast %73 : vector<1x32x32xbf16> to vector<32x32xbf16>
    %cst_45 = arith.constant dense<0.000000e+00> : vector<8x32xf32>
    %75 = tpu.matmul %58, %74, %cst_45 {dimension_numbers = #tpu.dot_dimension_numbers<[1], [0], [0], [1], [0, 0, 1, 1], [], []>} : vector<8x32xbf16>, vector<32x32xbf16>, vector<8x32xf32> -> vector<8x32xf32>
    %c0_46 = arith.constant 0 : index
    %c0_47 = arith.constant 0 : index
    %c0_48 = arith.constant 0 : index
    %76 = vector.load %arg16[%c0_46, %c0_47, %c0_48] : memref<2x1x32xf32, #tpu.memory_space<vmem>>, vector<1x1x32xf32>
    %77 = vector.shape_cast %76 : vector<1x1x32xf32> to vector<1x32xf32>
    %78 = vector.broadcast %77 : vector<1x32xf32> to vector<8x32xf32>
    %79 = arith.addf %75, %78 : vector<8x32xf32>
    %80 = vector.shape_cast %65 : vector<8x32xf32> to vector<1x8x4x8xf32>
    %81 = tpu.transpose %80, [0, 2, 1, 3] : vector<1x8x4x8xf32> -> vector<1x4x8x8xf32>
    %82 = vector.shape_cast %81 : vector<1x4x8x8xf32> to vector<4x8x8xf32>
    %83 = arith.truncf %82 : vector<4x8x8xf32> to vector<4x8x8xbf16>
    %84 = vector.shape_cast %72 : vector<8x32xf32> to vector<1x8x4x8xf32>
    %85 = tpu.transpose %84, [0, 2, 1, 3] : vector<1x8x4x8xf32> -> vector<1x4x8x8xf32>
    %86 = vector.shape_cast %85 : vector<1x4x8x8xf32> to vector<4x8x8xf32>
    %87 = arith.truncf %86 : vector<4x8x8xf32> to vector<4x8x8xbf16>
    %88 = vector.shape_cast %79 : vector<8x32xf32> to vector<1x8x4x8xf32>
    %89 = tpu.transpose %88, [0, 2, 1, 3] : vector<1x8x4x8xf32> -> vector<1x4x8x8xf32>
    %90 = vector.shape_cast %89 : vector<1x4x8x8xf32> to vector<4x8x8xf32>
    %91 = arith.truncf %90 : vector<4x8x8xf32> to vector<4x8x8xbf16>
    "tpu.trace_start"() <{level = 10 : i32, message = "bqd,bkd->bqk"}> : () -> ()
    %cst_49 = arith.constant dense<0.000000e+00> : vector<4x8x8xf32>
    %92 = tpu.matmul %83, %87, %cst_49 {dimension_numbers = #tpu.dot_dimension_numbers<[2], [2], [1], [1], [0, 0, 0, 1, 1, 1], [0], [0]>} : vector<4x8x8xbf16>, vector<4x8x8xbf16>, vector<4x8x8xf32> -> vector<4x8x8xf32>
    "tpu.trace_stop"() : () -> ()
    %93 = vector.shape_cast %33 : vector<8x8xf32> to vector<1x8x8xf32>
    %94 = vector.broadcast %93 : vector<1x8x8xf32> to vector<4x8x8xf32>
    %95 = arith.addf %92, %94 : vector<4x8x8xf32>
    %cst_50 = arith.constant dense<0xFF800000> : vector<4x8xf32>
    %96 = vector.multi_reduction <maximumf>, %95, %cst_50 [2] : vector<4x8x8xf32> to vector<4x8xf32>
    %97 = vector.shape_cast %96 : vector<4x8xf32> to vector<4x8x1xf32>
    %98 = vector.broadcast %97 : vector<4x8x1xf32> to vector<4x8x8xf32>
    %99 = arith.subf %95, %98 : vector<4x8x8xf32>
    %100 = math.exp %99 : vector<4x8x8xf32>
    %cst_51 = arith.constant dense<0.000000e+00> : vector<4x8xf32>
    %101 = vector.multi_reduction <add>, %100, %cst_51 [2] : vector<4x8x8xf32> to vector<4x8xf32>
    %102 = vector.shape_cast %101 : vector<4x8xf32> to vector<4x8x1xf32>
    %103 = vector.broadcast %102 : vector<4x8x1xf32> to vector<4x8x8xf32>
    %104 = arith.divf %100, %103 : vector<4x8x8xf32>
    %105 = arith.truncf %104 : vector<4x8x8xf32> to vector<4x8x8xbf16>
    "tpu.trace_start"() <{level = 10 : i32, message = "bqk,bkd->bqd"}> : () -> ()
    %cst_52 = arith.constant dense<0.000000e+00> : vector<4x8x8xf32>
    %106 = tpu.matmul %105, %91, %cst_52 {dimension_numbers = #tpu.dot_dimension_numbers<[2], [1], [1], [2], [0, 0, 0, 1, 1, 2], [0], [0]>} : vector<4x8x8xbf16>, vector<4x8x8xbf16>, vector<4x8x8xf32> -> vector<4x8x8xf32>
    "tpu.trace_stop"() : () -> ()
    %107 = vector.shape_cast %106 : vector<4x8x8xf32> to vector<1x4x8x8xf32>
    %108 = tpu.transpose %107, [0, 2, 1, 3] : vector<1x4x8x8xf32> -> vector<1x8x4x8xf32>
    %109 = vector.shape_cast %108 : vector<1x8x4x8xf32> to vector<8x32xf32>
    %110 = arith.truncf %109 : vector<8x32xf32> to vector<8x32xbf16>
    %c0_53 = arith.constant 0 : index
    %c0_54 = arith.constant 0 : index
    %c0_55 = arith.constant 0 : index
    %111 = vector.load %arg17[%c0_53, %c0_54, %c0_55] : memref<2x32x32xbf16, #tpu.memory_space<vmem>>, vector<1x32x32xbf16>
    %112 = vector.shape_cast %111 : vector<1x32x32xbf16> to vector<32x32xbf16>
    %cst_56 = arith.constant dense<0.000000e+00> : vector<8x32xf32>
    %113 = tpu.matmul %110, %112, %cst_56 {dimension_numbers = #tpu.dot_dimension_numbers<[1], [0], [0], [1], [0, 0, 1, 1], [], []>} : vector<8x32xbf16>, vector<32x32xbf16>, vector<8x32xf32> -> vector<8x32xf32>
    %114 = arith.addf %27, %113 : vector<8x32xf32>
    %c0_57 = arith.constant 0 : index
    %c0_58 = arith.constant 0 : index
    %c0_59 = arith.constant 0 : index
    %115 = vector.load %arg18[%c0_57, %c0_58, %c0_59] : memref<2x1x32xf32, #tpu.memory_space<vmem>>, vector<1x1x32xf32>
    %116 = vector.shape_cast %115 : vector<1x1x32xf32> to vector<1x32xf32>
    %117 = vector.broadcast %116 : vector<1x32xf32> to vector<8x32xf32>
    %118 = arith.addf %114, %117 : vector<8x32xf32>
    %c0_60 = arith.constant 0 : index
    %c0_61 = arith.constant 0 : index
    %c0_62 = arith.constant 0 : index
    %119 = vector.load %arg19[%c0_60, %c0_61, %c0_62] : memref<2x1x32xf32, #tpu.memory_space<vmem>>, vector<1x1x32xf32>
    %120 = vector.shape_cast %119 : vector<1x1x32xf32> to vector<1x32xf32>
    %c0_63 = arith.constant 0 : index
    %c0_64 = arith.constant 0 : index
    %c0_65 = arith.constant 0 : index
    %121 = vector.load %arg20[%c0_63, %c0_64, %c0_65] : memref<2x1x32xf32, #tpu.memory_space<vmem>>, vector<1x1x32xf32>
    %122 = vector.shape_cast %121 : vector<1x1x32xf32> to vector<1x32xf32>
    %cst_66 = arith.constant dense<0.000000e+00> : vector<8xf32>
    %123 = vector.multi_reduction <add>, %118, %cst_66 [1] : vector<8x32xf32> to vector<8xf32>
    %124 = vector.shape_cast %123 : vector<8xf32> to vector<8x1xf32>
    %cst_67 = arith.constant 3.200000e+01 : f32
    %125 = vector.broadcast %cst_67 : f32 to vector<8x1xf32>
    %126 = arith.divf %124, %125 : vector<8x1xf32>
    %127 = vector.broadcast %126 : vector<8x1xf32> to vector<8x32xf32>
    %128 = arith.subf %118, %127 : vector<8x32xf32>
    %129 = arith.mulf %128, %128 : vector<8x32xf32>
    %cst_68 = arith.constant dense<0.000000e+00> : vector<8xf32>
    %130 = vector.multi_reduction <add>, %129, %cst_68 [1] : vector<8x32xf32> to vector<8xf32>
    %131 = vector.shape_cast %130 : vector<8xf32> to vector<8x1xf32>
    %cst_69 = arith.constant 3.200000e+01 : f32
    %132 = vector.broadcast %cst_69 : f32 to vector<8x1xf32>
    %133 = arith.divf %131, %132 : vector<8x1xf32>
    %cst_70 = arith.constant 9.99999974E-6 : f32
    %134 = vector.broadcast %cst_70 : f32 to vector<8x1xf32>
    %135 = arith.addf %133, %134 : vector<8x1xf32>
    %136 = math.rsqrt %135 : vector<8x1xf32>
    %137 = vector.broadcast %136 : vector<8x1xf32> to vector<8x32xf32>
    %138 = arith.mulf %128, %137 : vector<8x32xf32>
    %139 = vector.broadcast %120 : vector<1x32xf32> to vector<8x32xf32>
    %140 = arith.mulf %138, %139 : vector<8x32xf32>
    %141 = vector.broadcast %122 : vector<1x32xf32> to vector<8x32xf32>
    %142 = arith.addf %140, %141 : vector<8x32xf32>
    %143 = arith.truncf %142 : vector<8x32xf32> to vector<8x32xbf16>
    %c0_71 = arith.constant 0 : index
    %c0_72 = arith.constant 0 : index
    %c0_73 = arith.constant 0 : index
    %144 = vector.load %arg21[%c0_71, %c0_72, %c0_73] : memref<2x32x128xbf16, #tpu.memory_space<vmem>>, vector<1x32x128xbf16>
    %145 = vector.shape_cast %144 : vector<1x32x128xbf16> to vector<32x128xbf16>
    %cst_74 = arith.constant dense<0.000000e+00> : vector<8x128xf32>
    %146 = tpu.matmul %143, %145, %cst_74 {dimension_numbers = #tpu.dot_dimension_numbers<[1], [0], [0], [1], [0, 0, 1, 1], [], []>} : vector<8x32xbf16>, vector<32x128xbf16>, vector<8x128xf32> -> vector<8x128xf32>
    %c0_75 = arith.constant 0 : index
    %c0_76 = arith.constant 0 : index
    %c0_77 = arith.constant 0 : index
    %147 = vector.load %arg22[%c0_75, %c0_76, %c0_77] : memref<2x1x128xf32, #tpu.memory_space<vmem>>, vector<1x1x128xf32>
    %148 = vector.shape_cast %147 : vector<1x1x128xf32> to vector<1x128xf32>
    %149 = vector.broadcast %148 : vector<1x128xf32> to vector<8x128xf32>
    %150 = arith.addf %146, %149 : vector<8x128xf32>
    %cst_78 = arith.constant 5.000000e-01 : f32
    %151 = vector.broadcast %cst_78 : f32 to vector<8x128xf32>
    %152 = arith.mulf %151, %150 : vector<8x128xf32>
    %cst_79 = arith.constant 4.471500e-02 : f32
    %153 = vector.broadcast %cst_79 : f32 to vector<8x128xf32>
    %154 = arith.mulf %153, %150 : vector<8x128xf32>
    %155 = arith.mulf %154, %150 : vector<8x128xf32>
    %156 = arith.mulf %155, %150 : vector<8x128xf32>
    %157 = arith.addf %150, %156 : vector<8x128xf32>
    %cst_80 = arith.constant 0.797884583 : f32
    %158 = vector.broadcast %cst_80 : f32 to vector<8x128xf32>
    %159 = arith.mulf %158, %157 : vector<8x128xf32>
    %160 = math.tanh %159 : vector<8x128xf32>
    %cst_81 = arith.constant 1.000000e+00 : f32
    %161 = vector.broadcast %cst_81 : f32 to vector<8x128xf32>
    %162 = arith.addf %161, %160 : vector<8x128xf32>
    %163 = arith.mulf %152, %162 : vector<8x128xf32>
    %164 = arith.truncf %163 : vector<8x128xf32> to vector<8x128xbf16>
    %c0_82 = arith.constant 0 : index
    %c0_83 = arith.constant 0 : index
    %c0_84 = arith.constant 0 : index
    %165 = vector.load %arg23[%c0_82, %c0_83, %c0_84] : memref<2x128x32xbf16, #tpu.memory_space<vmem>>, vector<1x128x32xbf16>
    %166 = vector.shape_cast %165 : vector<1x128x32xbf16> to vector<128x32xbf16>
    %cst_85 = arith.constant dense<0.000000e+00> : vector<8x32xf32>
    %167 = tpu.matmul %164, %166, %cst_85 {dimension_numbers = #tpu.dot_dimension_numbers<[1], [0], [0], [1], [0, 0, 1, 1], [], []>} : vector<8x128xbf16>, vector<128x32xbf16>, vector<8x32xf32> -> vector<8x32xf32>
    %c0_86 = arith.constant 0 : index
    %c0_87 = arith.constant 0 : index
    %c0_88 = arith.constant 0 : index
    %168 = vector.load %arg24[%c0_86, %c0_87, %c0_88] : memref<2x1x32xf32, #tpu.memory_space<vmem>>, vector<1x1x32xf32>
    %169 = vector.shape_cast %168 : vector<1x1x32xf32> to vector<1x32xf32>
    %170 = vector.broadcast %169 : vector<1x32xf32> to vector<8x32xf32>
    %171 = arith.addf %167, %170 : vector<8x32xf32>
    %172 = arith.addf %118, %171 : vector<8x32xf32>
    %c1 = arith.constant 1 : index
    %c0_89 = arith.constant 0 : index
    %c0_90 = arith.constant 0 : index
    %173 = vector.load %arg9[%c1, %c0_89, %c0_90] : memref<2x1x32xf32, #tpu.memory_space<vmem>>, vector<1x1x32xf32>
    %174 = vector.shape_cast %173 : vector<1x1x32xf32> to vector<1x32xf32>
    %c1_91 = arith.constant 1 : index
    %c0_92 = arith.constant 0 : index
    %c0_93 = arith.constant 0 : index
    %175 = vector.load %arg10[%c1_91, %c0_92, %c0_93] : memref<2x1x32xf32, #tpu.memory_space<vmem>>, vector<1x1x32xf32>
    %176 = vector.shape_cast %175 : vector<1x1x32xf32> to vector<1x32xf32>
    %cst_94 = arith.constant dense<0.000000e+00> : vector<8xf32>
    %177 = vector.multi_reduction <add>, %172, %cst_94 [1] : vector<8x32xf32> to vector<8xf32>
    %178 = vector.shape_cast %177 : vector<8xf32> to vector<8x1xf32>
    %cst_95 = arith.constant 3.200000e+01 : f32
    %179 = vector.broadcast %cst_95 : f32 to vector<8x1xf32>
    %180 = arith.divf %178, %179 : vector<8x1xf32>
    %181 = vector.broadcast %180 : vector<8x1xf32> to vector<8x32xf32>
    %182 = arith.subf %172, %181 : vector<8x32xf32>
    %183 = arith.mulf %182, %182 : vector<8x32xf32>
    %cst_96 = arith.constant dense<0.000000e+00> : vector<8xf32>
    %184 = vector.multi_reduction <add>, %183, %cst_96 [1] : vector<8x32xf32> to vector<8xf32>
    %185 = vector.shape_cast %184 : vector<8xf32> to vector<8x1xf32>
    %cst_97 = arith.constant 3.200000e+01 : f32
    %186 = vector.broadcast %cst_97 : f32 to vector<8x1xf32>
    %187 = arith.divf %185, %186 : vector<8x1xf32>
    %cst_98 = arith.constant 9.99999974E-6 : f32
    %188 = vector.broadcast %cst_98 : f32 to vector<8x1xf32>
    %189 = arith.addf %187, %188 : vector<8x1xf32>
    %190 = math.rsqrt %189 : vector<8x1xf32>
    %191 = vector.broadcast %190 : vector<8x1xf32> to vector<8x32xf32>
    %192 = arith.mulf %182, %191 : vector<8x32xf32>
    %193 = vector.broadcast %174 : vector<1x32xf32> to vector<8x32xf32>
    %194 = arith.mulf %192, %193 : vector<8x32xf32>
    %195 = vector.broadcast %176 : vector<1x32xf32> to vector<8x32xf32>
    %196 = arith.addf %194, %195 : vector<8x32xf32>
    %197 = arith.truncf %196 : vector<8x32xf32> to vector<8x32xbf16>
    %c1_99 = arith.constant 1 : index
    %c0_100 = arith.constant 0 : index
    %c0_101 = arith.constant 0 : index
    %198 = vector.load %arg11[%c1_99, %c0_100, %c0_101] : memref<2x32x32xbf16, #tpu.memory_space<vmem>>, vector<1x32x32xbf16>
    %199 = vector.shape_cast %198 : vector<1x32x32xbf16> to vector<32x32xbf16>
    %cst_102 = arith.constant dense<0.000000e+00> : vector<8x32xf32>
    %200 = tpu.matmul %197, %199, %cst_102 {dimension_numbers = #tpu.dot_dimension_numbers<[1], [0], [0], [1], [0, 0, 1, 1], [], []>} : vector<8x32xbf16>, vector<32x32xbf16>, vector<8x32xf32> -> vector<8x32xf32>
    %c1_103 = arith.constant 1 : index
    %c0_104 = arith.constant 0 : index
    %c0_105 = arith.constant 0 : index
    %201 = vector.load %arg12[%c1_103, %c0_104, %c0_105] : memref<2x1x32xf32, #tpu.memory_space<vmem>>, vector<1x1x32xf32>
    %202 = vector.shape_cast %201 : vector<1x1x32xf32> to vector<1x32xf32>
    %203 = vector.broadcast %202 : vector<1x32xf32> to vector<8x32xf32>
    %204 = arith.addf %200, %203 : vector<8x32xf32>
    %c1_106 = arith.constant 1 : index
    %c0_107 = arith.constant 0 : index
    %c0_108 = arith.constant 0 : index
    %205 = vector.load %arg13[%c1_106, %c0_107, %c0_108] : memref<2x32x32xbf16, #tpu.memory_space<vmem>>, vector<1x32x32xbf16>
    %206 = vector.shape_cast %205 : vector<1x32x32xbf16> to vector<32x32xbf16>
    %cst_109 = arith.constant dense<0.000000e+00> : vector<8x32xf32>
    %207 = tpu.matmul %197, %206, %cst_109 {dimension_numbers = #tpu.dot_dimension_numbers<[1], [0], [0], [1], [0, 0, 1, 1], [], []>} : vector<8x32xbf16>, vector<32x32xbf16>, vector<8x32xf32> -> vector<8x32xf32>
    %c1_110 = arith.constant 1 : index
    %c0_111 = arith.constant 0 : index
    %c0_112 = arith.constant 0 : index
    %208 = vector.load %arg14[%c1_110, %c0_111, %c0_112] : memref<2x1x32xf32, #tpu.memory_space<vmem>>, vector<1x1x32xf32>
    %209 = vector.shape_cast %208 : vector<1x1x32xf32> to vector<1x32xf32>
    %210 = vector.broadcast %209 : vector<1x32xf32> to vector<8x32xf32>
    %211 = arith.addf %207, %210 : vector<8x32xf32>
    %c1_113 = arith.constant 1 : index
    %c0_114 = arith.constant 0 : index
    %c0_115 = arith.constant 0 : index
    %212 = vector.load %arg15[%c1_113, %c0_114, %c0_115] : memref<2x32x32xbf16, #tpu.memory_space<vmem>>, vector<1x32x32xbf16>
    %213 = vector.shape_cast %212 : vector<1x32x32xbf16> to vector<32x32xbf16>
    %cst_116 = arith.constant dense<0.000000e+00> : vector<8x32xf32>
    %214 = tpu.matmul %197, %213, %cst_116 {dimension_numbers = #tpu.dot_dimension_numbers<[1], [0], [0], [1], [0, 0, 1, 1], [], []>} : vector<8x32xbf16>, vector<32x32xbf16>, vector<8x32xf32> -> vector<8x32xf32>
    %c1_117 = arith.constant 1 : index
    %c0_118 = arith.constant 0 : index
    %c0_119 = arith.constant 0 : index
    %215 = vector.load %arg16[%c1_117, %c0_118, %c0_119] : memref<2x1x32xf32, #tpu.memory_space<vmem>>, vector<1x1x32xf32>
    %216 = vector.shape_cast %215 : vector<1x1x32xf32> to vector<1x32xf32>
    %217 = vector.broadcast %216 : vector<1x32xf32> to vector<8x32xf32>
    %218 = arith.addf %214, %217 : vector<8x32xf32>
    %219 = vector.shape_cast %204 : vector<8x32xf32> to vector<1x8x4x8xf32>
    %220 = tpu.transpose %219, [0, 2, 1, 3] : vector<1x8x4x8xf32> -> vector<1x4x8x8xf32>
    %221 = vector.shape_cast %220 : vector<1x4x8x8xf32> to vector<4x8x8xf32>
    %222 = arith.truncf %221 : vector<4x8x8xf32> to vector<4x8x8xbf16>
    %223 = vector.shape_cast %211 : vector<8x32xf32> to vector<1x8x4x8xf32>
    %224 = tpu.transpose %223, [0, 2, 1, 3] : vector<1x8x4x8xf32> -> vector<1x4x8x8xf32>
    %225 = vector.shape_cast %224 : vector<1x4x8x8xf32> to vector<4x8x8xf32>
    %226 = arith.truncf %225 : vector<4x8x8xf32> to vector<4x8x8xbf16>
    %227 = vector.shape_cast %218 : vector<8x32xf32> to vector<1x8x4x8xf32>
    %228 = tpu.transpose %227, [0, 2, 1, 3] : vector<1x8x4x8xf32> -> vector<1x4x8x8xf32>
    %229 = vector.shape_cast %228 : vector<1x4x8x8xf32> to vector<4x8x8xf32>
    %230 = arith.truncf %229 : vector<4x8x8xf32> to vector<4x8x8xbf16>
    "tpu.trace_start"() <{level = 10 : i32, message = "bqd,bkd->bqk"}> : () -> ()
    %cst_120 = arith.constant dense<0.000000e+00> : vector<4x8x8xf32>
    %231 = tpu.matmul %222, %226, %cst_120 {dimension_numbers = #tpu.dot_dimension_numbers<[2], [2], [1], [1], [0, 0, 0, 1, 1, 1], [0], [0]>} : vector<4x8x8xbf16>, vector<4x8x8xbf16>, vector<4x8x8xf32> -> vector<4x8x8xf32>
    "tpu.trace_stop"() : () -> ()
    %232 = vector.shape_cast %33 : vector<8x8xf32> to vector<1x8x8xf32>
    %233 = vector.broadcast %232 : vector<1x8x8xf32> to vector<4x8x8xf32>
    %234 = arith.addf %231, %233 : vector<4x8x8xf32>
    %cst_121 = arith.constant dense<0xFF800000> : vector<4x8xf32>
    %235 = vector.multi_reduction <maximumf>, %234, %cst_121 [2] : vector<4x8x8xf32> to vector<4x8xf32>
    %236 = vector.shape_cast %235 : vector<4x8xf32> to vector<4x8x1xf32>
    %237 = vector.broadcast %236 : vector<4x8x1xf32> to vector<4x8x8xf32>
    %238 = arith.subf %234, %237 : vector<4x8x8xf32>
    %239 = math.exp %238 : vector<4x8x8xf32>
    %cst_122 = arith.constant dense<0.000000e+00> : vector<4x8xf32>
    %240 = vector.multi_reduction <add>, %239, %cst_122 [2] : vector<4x8x8xf32> to vector<4x8xf32>
    %241 = vector.shape_cast %240 : vector<4x8xf32> to vector<4x8x1xf32>
    %242 = vector.broadcast %241 : vector<4x8x1xf32> to vector<4x8x8xf32>
    %243 = arith.divf %239, %242 : vector<4x8x8xf32>
    %244 = arith.truncf %243 : vector<4x8x8xf32> to vector<4x8x8xbf16>
    "tpu.trace_start"() <{level = 10 : i32, message = "bqk,bkd->bqd"}> : () -> ()
    %cst_123 = arith.constant dense<0.000000e+00> : vector<4x8x8xf32>
    %245 = tpu.matmul %244, %230, %cst_123 {dimension_numbers = #tpu.dot_dimension_numbers<[2], [1], [1], [2], [0, 0, 0, 1, 1, 2], [0], [0]>} : vector<4x8x8xbf16>, vector<4x8x8xbf16>, vector<4x8x8xf32> -> vector<4x8x8xf32>
    "tpu.trace_stop"() : () -> ()
    %246 = vector.shape_cast %245 : vector<4x8x8xf32> to vector<1x4x8x8xf32>
    %247 = tpu.transpose %246, [0, 2, 1, 3] : vector<1x4x8x8xf32> -> vector<1x8x4x8xf32>
    %248 = vector.shape_cast %247 : vector<1x8x4x8xf32> to vector<8x32xf32>
    %249 = arith.truncf %248 : vector<8x32xf32> to vector<8x32xbf16>
    %c1_124 = arith.constant 1 : index
    %c0_125 = arith.constant 0 : index
    %c0_126 = arith.constant 0 : index
    %250 = vector.load %arg17[%c1_124, %c0_125, %c0_126] : memref<2x32x32xbf16, #tpu.memory_space<vmem>>, vector<1x32x32xbf16>
    %251 = vector.shape_cast %250 : vector<1x32x32xbf16> to vector<32x32xbf16>
    %cst_127 = arith.constant dense<0.000000e+00> : vector<8x32xf32>
    %252 = tpu.matmul %249, %251, %cst_127 {dimension_numbers = #tpu.dot_dimension_numbers<[1], [0], [0], [1], [0, 0, 1, 1], [], []>} : vector<8x32xbf16>, vector<32x32xbf16>, vector<8x32xf32> -> vector<8x32xf32>
    %253 = arith.addf %172, %252 : vector<8x32xf32>
    %c1_128 = arith.constant 1 : index
    %c0_129 = arith.constant 0 : index
    %c0_130 = arith.constant 0 : index
    %254 = vector.load %arg18[%c1_128, %c0_129, %c0_130] : memref<2x1x32xf32, #tpu.memory_space<vmem>>, vector<1x1x32xf32>
    %255 = vector.shape_cast %254 : vector<1x1x32xf32> to vector<1x32xf32>
    %256 = vector.broadcast %255 : vector<1x32xf32> to vector<8x32xf32>
    %257 = arith.addf %253, %256 : vector<8x32xf32>
    %c1_131 = arith.constant 1 : index
    %c0_132 = arith.constant 0 : index
    %c0_133 = arith.constant 0 : index
    %258 = vector.load %arg19[%c1_131, %c0_132, %c0_133] : memref<2x1x32xf32, #tpu.memory_space<vmem>>, vector<1x1x32xf32>
    %259 = vector.shape_cast %258 : vector<1x1x32xf32> to vector<1x32xf32>
    %c1_134 = arith.constant 1 : index
    %c0_135 = arith.constant 0 : index
    %c0_136 = arith.constant 0 : index
    %260 = vector.load %arg20[%c1_134, %c0_135, %c0_136] : memref<2x1x32xf32, #tpu.memory_space<vmem>>, vector<1x1x32xf32>
    %261 = vector.shape_cast %260 : vector<1x1x32xf32> to vector<1x32xf32>
    %cst_137 = arith.constant dense<0.000000e+00> : vector<8xf32>
    %262 = vector.multi_reduction <add>, %257, %cst_137 [1] : vector<8x32xf32> to vector<8xf32>
    %263 = vector.shape_cast %262 : vector<8xf32> to vector<8x1xf32>
    %cst_138 = arith.constant 3.200000e+01 : f32
    %264 = vector.broadcast %cst_138 : f32 to vector<8x1xf32>
    %265 = arith.divf %263, %264 : vector<8x1xf32>
    %266 = vector.broadcast %265 : vector<8x1xf32> to vector<8x32xf32>
    %267 = arith.subf %257, %266 : vector<8x32xf32>
    %268 = arith.mulf %267, %267 : vector<8x32xf32>
    %cst_139 = arith.constant dense<0.000000e+00> : vector<8xf32>
    %269 = vector.multi_reduction <add>, %268, %cst_139 [1] : vector<8x32xf32> to vector<8xf32>
    %270 = vector.shape_cast %269 : vector<8xf32> to vector<8x1xf32>
    %cst_140 = arith.constant 3.200000e+01 : f32
    %271 = vector.broadcast %cst_140 : f32 to vector<8x1xf32>
    %272 = arith.divf %270, %271 : vector<8x1xf32>
    %cst_141 = arith.constant 9.99999974E-6 : f32
    %273 = vector.broadcast %cst_141 : f32 to vector<8x1xf32>
    %274 = arith.addf %272, %273 : vector<8x1xf32>
    %275 = math.rsqrt %274 : vector<8x1xf32>
    %276 = vector.broadcast %275 : vector<8x1xf32> to vector<8x32xf32>
    %277 = arith.mulf %267, %276 : vector<8x32xf32>
    %278 = vector.broadcast %259 : vector<1x32xf32> to vector<8x32xf32>
    %279 = arith.mulf %277, %278 : vector<8x32xf32>
    %280 = vector.broadcast %261 : vector<1x32xf32> to vector<8x32xf32>
    %281 = arith.addf %279, %280 : vector<8x32xf32>
    %282 = arith.truncf %281 : vector<8x32xf32> to vector<8x32xbf16>
    %c1_142 = arith.constant 1 : index
    %c0_143 = arith.constant 0 : index
    %c0_144 = arith.constant 0 : index
    %283 = vector.load %arg21[%c1_142, %c0_143, %c0_144] : memref<2x32x128xbf16, #tpu.memory_space<vmem>>, vector<1x32x128xbf16>
    %284 = vector.shape_cast %283 : vector<1x32x128xbf16> to vector<32x128xbf16>
    %cst_145 = arith.constant dense<0.000000e+00> : vector<8x128xf32>
    %285 = tpu.matmul %282, %284, %cst_145 {dimension_numbers = #tpu.dot_dimension_numbers<[1], [0], [0], [1], [0, 0, 1, 1], [], []>} : vector<8x32xbf16>, vector<32x128xbf16>, vector<8x128xf32> -> vector<8x128xf32>
    %c1_146 = arith.constant 1 : index
    %c0_147 = arith.constant 0 : index
    %c0_148 = arith.constant 0 : index
    %286 = vector.load %arg22[%c1_146, %c0_147, %c0_148] : memref<2x1x128xf32, #tpu.memory_space<vmem>>, vector<1x1x128xf32>
    %287 = vector.shape_cast %286 : vector<1x1x128xf32> to vector<1x128xf32>
    %288 = vector.broadcast %287 : vector<1x128xf32> to vector<8x128xf32>
    %289 = arith.addf %285, %288 : vector<8x128xf32>
    %cst_149 = arith.constant 5.000000e-01 : f32
    %290 = vector.broadcast %cst_149 : f32 to vector<8x128xf32>
    %291 = arith.mulf %290, %289 : vector<8x128xf32>
    %cst_150 = arith.constant 4.471500e-02 : f32
    %292 = vector.broadcast %cst_150 : f32 to vector<8x128xf32>
    %293 = arith.mulf %292, %289 : vector<8x128xf32>
    %294 = arith.mulf %293, %289 : vector<8x128xf32>
    %295 = arith.mulf %294, %289 : vector<8x128xf32>
    %296 = arith.addf %289, %295 : vector<8x128xf32>
    %cst_151 = arith.constant 0.797884583 : f32
    %297 = vector.broadcast %cst_151 : f32 to vector<8x128xf32>
    %298 = arith.mulf %297, %296 : vector<8x128xf32>
    %299 = math.tanh %298 : vector<8x128xf32>
    %cst_152 = arith.constant 1.000000e+00 : f32
    %300 = vector.broadcast %cst_152 : f32 to vector<8x128xf32>
    %301 = arith.addf %300, %299 : vector<8x128xf32>
    %302 = arith.mulf %291, %301 : vector<8x128xf32>
    %303 = arith.truncf %302 : vector<8x128xf32> to vector<8x128xbf16>
    %c1_153 = arith.constant 1 : index
    %c0_154 = arith.constant 0 : index
    %c0_155 = arith.constant 0 : index
    %304 = vector.load %arg23[%c1_153, %c0_154, %c0_155] : memref<2x128x32xbf16, #tpu.memory_space<vmem>>, vector<1x128x32xbf16>
    %305 = vector.shape_cast %304 : vector<1x128x32xbf16> to vector<128x32xbf16>
    %cst_156 = arith.constant dense<0.000000e+00> : vector<8x32xf32>
    %306 = tpu.matmul %303, %305, %cst_156 {dimension_numbers = #tpu.dot_dimension_numbers<[1], [0], [0], [1], [0, 0, 1, 1], [], []>} : vector<8x128xbf16>, vector<128x32xbf16>, vector<8x32xf32> -> vector<8x32xf32>
    %c1_157 = arith.constant 1 : index
    %c0_158 = arith.constant 0 : index
    %c0_159 = arith.constant 0 : index
    %307 = vector.load %arg24[%c1_157, %c0_158, %c0_159] : memref<2x1x32xf32, #tpu.memory_space<vmem>>, vector<1x1x32xf32>
    %308 = vector.shape_cast %307 : vector<1x1x32xf32> to vector<1x32xf32>
    %309 = vector.broadcast %308 : vector<1x32xf32> to vector<8x32xf32>
    %310 = arith.addf %306, %309 : vector<8x32xf32>
    %311 = arith.addf %257, %310 : vector<8x32xf32>
    %312 = vector.shape_cast %311 : vector<8x32xf32> to vector<1x8x32xf32>
    %313 = vector.extract_strided_slice %312 {offsets = [0, 0, 0], sizes = [1, 1, 32], strides = [1, 1, 1]} : vector<1x8x32xf32> to vector<1x1x32xf32>
    %314 = vector.shape_cast %313 : vector<1x1x32xf32> to vector<1x32xf32>
    %c0_160 = arith.constant 0 : index
    %c0_161 = arith.constant 0 : index
    %315 = vector.load %arg25[%c0_160, %c0_161] : memref<1x32xf32, #tpu.memory_space<vmem>>, vector<1x32xf32>
    %c0_162 = arith.constant 0 : index
    %c0_163 = arith.constant 0 : index
    %316 = vector.load %arg26[%c0_162, %c0_163] : memref<1x32xf32, #tpu.memory_space<vmem>>, vector<1x32xf32>
    %cst_164 = arith.constant dense<0.000000e+00> : vector<1xf32>
    %317 = vector.multi_reduction <add>, %314, %cst_164 [1] : vector<1x32xf32> to vector<1xf32>
    %318 = vector.shape_cast %317 : vector<1xf32> to vector<1x1xf32>
    %cst_165 = arith.constant 3.200000e+01 : f32
    %319 = vector.broadcast %cst_165 : f32 to vector<1x1xf32>
    %320 = arith.divf %318, %319 : vector<1x1xf32>
    %321 = vector.broadcast %320 : vector<1x1xf32> to vector<1x32xf32>
    %322 = arith.subf %314, %321 : vector<1x32xf32>
    %323 = arith.mulf %322, %322 : vector<1x32xf32>
    %cst_166 = arith.constant dense<0.000000e+00> : vector<1xf32>
    %324 = vector.multi_reduction <add>, %323, %cst_166 [1] : vector<1x32xf32> to vector<1xf32>
    %325 = vector.shape_cast %324 : vector<1xf32> to vector<1x1xf32>
    %cst_167 = arith.constant 3.200000e+01 : f32
    %326 = vector.broadcast %cst_167 : f32 to vector<1x1xf32>
    %327 = arith.divf %325, %326 : vector<1x1xf32>
    %cst_168 = arith.constant 9.99999974E-6 : f32
    %328 = vector.broadcast %cst_168 : f32 to vector<1x1xf32>
    %329 = arith.addf %327, %328 : vector<1x1xf32>
    %330 = math.rsqrt %329 : vector<1x1xf32>
    %331 = vector.broadcast %330 : vector<1x1xf32> to vector<1x32xf32>
    %332 = arith.mulf %322, %331 : vector<1x32xf32>
    %333 = arith.mulf %332, %315 : vector<1x32xf32>
    %334 = arith.addf %333, %316 : vector<1x32xf32>
    %335 = arith.truncf %334 : vector<1x32xf32> to vector<1x32xbf16>
    %c0_169 = arith.constant 0 : index
    %c0_170 = arith.constant 0 : index
    %336 = vector.load %arg27[%c0_169, %c0_170] : memref<32x32xbf16, #tpu.memory_space<vmem>>, vector<32x32xbf16>
    %cst_171 = arith.constant dense<0.000000e+00> : vector<1x32xf32>
    %337 = tpu.matmul %335, %336, %cst_171 {dimension_numbers = #tpu.dot_dimension_numbers<[1], [0], [0], [1], [0, 0, 1, 1], [], []>} : vector<1x32xbf16>, vector<32x32xbf16>, vector<1x32xf32> -> vector<1x32xf32>
    %c0_172 = arith.constant 0 : index
    %c0_173 = arith.constant 0 : index
    %338 = vector.load %arg3[%c0_172, %c0_173] : memref<24x64xbf16, #tpu.memory_space<vmem>>, vector<24x64xbf16>
    %c0_174 = arith.constant 0 : index
    %c0_175 = arith.constant 0 : index
    %339 = vector.load %arg28[%c0_174, %c0_175] : memref<64x32xbf16, #tpu.memory_space<vmem>>, vector<64x32xbf16>
    %cst_176 = arith.constant dense<0.000000e+00> : vector<24x32xf32>
    %340 = tpu.matmul %338, %339, %cst_176 {dimension_numbers = #tpu.dot_dimension_numbers<[1], [0], [0], [1], [0, 0, 1, 1], [], []>} : vector<24x64xbf16>, vector<64x32xbf16>, vector<24x32xf32> -> vector<24x32xf32>
    %c0_177 = arith.constant 0 : index
    %c0_178 = arith.constant 0 : index
    %341 = vector.load %arg29[%c0_177, %c0_178] : memref<8x32xf32, #tpu.memory_space<vmem>>, vector<8x32xf32>
    %342 = tpu.concatenate %341, %341, %341 in 0 : vector<8x32xf32>, vector<8x32xf32>, vector<8x32xf32> -> vector<24x32xf32>
    %343 = arith.addf %340, %342 : vector<24x32xf32>
    %344 = tpu.iota {dimensions = array<i32: 0>} : vector<8x8xi32>
    %345 = tpu.iota {dimensions = array<i32: 1>} : vector<8x8xi32>
    %346 = arith.cmpi sgt, %345, %344 : vector<8x8xi32>
    %cst_179 = arith.constant -1.000000e+09 : f32
    %cst_180 = arith.constant 0.000000e+00 : f32
    %347 = vector.broadcast %cst_179 : f32 to vector<8x8xf32>
    %348 = vector.broadcast %cst_180 : f32 to vector<8x8xf32>
    %349 = arith.select %346, %347, %348 : vector<8x8xi1>, vector<8x8xf32>
    %c0_181 = arith.constant 0 : index
    %c0_182 = arith.constant 0 : index
    %c0_183 = arith.constant 0 : index
    %350 = vector.load %arg30[%c0_181, %c0_182, %c0_183] : memref<2x1x32xf32, #tpu.memory_space<vmem>>, vector<1x1x32xf32>
    %351 = vector.shape_cast %350 : vector<1x1x32xf32> to vector<1x32xf32>
    %c0_184 = arith.constant 0 : index
    %c0_185 = arith.constant 0 : index
    %c0_186 = arith.constant 0 : index
    %352 = vector.load %arg31[%c0_184, %c0_185, %c0_186] : memref<2x1x32xf32, #tpu.memory_space<vmem>>, vector<1x1x32xf32>
    %353 = vector.shape_cast %352 : vector<1x1x32xf32> to vector<1x32xf32>
    %cst_187 = arith.constant dense<0.000000e+00> : vector<24xf32>
    %354 = vector.multi_reduction <add>, %343, %cst_187 [1] : vector<24x32xf32> to vector<24xf32>
    %355 = vector.shape_cast %354 : vector<24xf32> to vector<24x1xf32>
    %cst_188 = arith.constant 3.200000e+01 : f32
    %356 = vector.broadcast %cst_188 : f32 to vector<24x1xf32>
    %357 = arith.divf %355, %356 : vector<24x1xf32>
    %358 = vector.broadcast %357 : vector<24x1xf32> to vector<24x32xf32>
    %359 = arith.subf %343, %358 : vector<24x32xf32>
    %360 = arith.mulf %359, %359 : vector<24x32xf32>
    %cst_189 = arith.constant dense<0.000000e+00> : vector<24xf32>
    %361 = vector.multi_reduction <add>, %360, %cst_189 [1] : vector<24x32xf32> to vector<24xf32>
    %362 = vector.shape_cast %361 : vector<24xf32> to vector<24x1xf32>
    %cst_190 = arith.constant 3.200000e+01 : f32
    %363 = vector.broadcast %cst_190 : f32 to vector<24x1xf32>
    %364 = arith.divf %362, %363 : vector<24x1xf32>
    %cst_191 = arith.constant 9.99999974E-6 : f32
    %365 = vector.broadcast %cst_191 : f32 to vector<24x1xf32>
    %366 = arith.addf %364, %365 : vector<24x1xf32>
    %367 = math.rsqrt %366 : vector<24x1xf32>
    %368 = vector.broadcast %367 : vector<24x1xf32> to vector<24x32xf32>
    %369 = arith.mulf %359, %368 : vector<24x32xf32>
    %370 = vector.broadcast %351 : vector<1x32xf32> to vector<24x32xf32>
    %371 = arith.mulf %369, %370 : vector<24x32xf32>
    %372 = vector.broadcast %353 : vector<1x32xf32> to vector<24x32xf32>
    %373 = arith.addf %371, %372 : vector<24x32xf32>
    %374 = arith.truncf %373 : vector<24x32xf32> to vector<24x32xbf16>
    %c0_192 = arith.constant 0 : index
    %c0_193 = arith.constant 0 : index
    %c0_194 = arith.constant 0 : index
    %375 = vector.load %arg32[%c0_192, %c0_193, %c0_194] : memref<2x32x32xbf16, #tpu.memory_space<vmem>>, vector<1x32x32xbf16>
    %376 = vector.shape_cast %375 : vector<1x32x32xbf16> to vector<32x32xbf16>
    %cst_195 = arith.constant dense<0.000000e+00> : vector<24x32xf32>
    %377 = tpu.matmul %374, %376, %cst_195 {dimension_numbers = #tpu.dot_dimension_numbers<[1], [0], [0], [1], [0, 0, 1, 1], [], []>} : vector<24x32xbf16>, vector<32x32xbf16>, vector<24x32xf32> -> vector<24x32xf32>
    %c0_196 = arith.constant 0 : index
    %c0_197 = arith.constant 0 : index
    %c0_198 = arith.constant 0 : index
    %378 = vector.load %arg33[%c0_196, %c0_197, %c0_198] : memref<2x1x32xf32, #tpu.memory_space<vmem>>, vector<1x1x32xf32>
    %379 = vector.shape_cast %378 : vector<1x1x32xf32> to vector<1x32xf32>
    %380 = vector.broadcast %379 : vector<1x32xf32> to vector<24x32xf32>
    %381 = arith.addf %377, %380 : vector<24x32xf32>
    %c0_199 = arith.constant 0 : index
    %c0_200 = arith.constant 0 : index
    %c0_201 = arith.constant 0 : index
    %382 = vector.load %arg34[%c0_199, %c0_200, %c0_201] : memref<2x32x32xbf16, #tpu.memory_space<vmem>>, vector<1x32x32xbf16>
    %383 = vector.shape_cast %382 : vector<1x32x32xbf16> to vector<32x32xbf16>
    %cst_202 = arith.constant dense<0.000000e+00> : vector<24x32xf32>
    %384 = tpu.matmul %374, %383, %cst_202 {dimension_numbers = #tpu.dot_dimension_numbers<[1], [0], [0], [1], [0, 0, 1, 1], [], []>} : vector<24x32xbf16>, vector<32x32xbf16>, vector<24x32xf32> -> vector<24x32xf32>
    %c0_203 = arith.constant 0 : index
    %c0_204 = arith.constant 0 : index
    %c0_205 = arith.constant 0 : index
    %385 = vector.load %arg35[%c0_203, %c0_204, %c0_205] : memref<2x1x32xf32, #tpu.memory_space<vmem>>, vector<1x1x32xf32>
    %386 = vector.shape_cast %385 : vector<1x1x32xf32> to vector<1x32xf32>
    %387 = vector.broadcast %386 : vector<1x32xf32> to vector<24x32xf32>
    %388 = arith.addf %384, %387 : vector<24x32xf32>
    %c0_206 = arith.constant 0 : index
    %c0_207 = arith.constant 0 : index
    %c0_208 = arith.constant 0 : index
    %389 = vector.load %arg36[%c0_206, %c0_207, %c0_208] : memref<2x32x32xbf16, #tpu.memory_space<vmem>>, vector<1x32x32xbf16>
    %390 = vector.shape_cast %389 : vector<1x32x32xbf16> to vector<32x32xbf16>
    %cst_209 = arith.constant dense<0.000000e+00> : vector<24x32xf32>
    %391 = tpu.matmul %374, %390, %cst_209 {dimension_numbers = #tpu.dot_dimension_numbers<[1], [0], [0], [1], [0, 0, 1, 1], [], []>} : vector<24x32xbf16>, vector<32x32xbf16>, vector<24x32xf32> -> vector<24x32xf32>
    %c0_210 = arith.constant 0 : index
    %c0_211 = arith.constant 0 : index
    %c0_212 = arith.constant 0 : index
    %392 = vector.load %arg37[%c0_210, %c0_211, %c0_212] : memref<2x1x32xf32, #tpu.memory_space<vmem>>, vector<1x1x32xf32>
    %393 = vector.shape_cast %392 : vector<1x1x32xf32> to vector<1x32xf32>
    %394 = vector.broadcast %393 : vector<1x32xf32> to vector<24x32xf32>
    %395 = arith.addf %391, %394 : vector<24x32xf32>
    %396 = vector.shape_cast %381 : vector<24x32xf32> to vector<3x8x4x8xf32>
    %397 = tpu.transpose %396, [0, 2, 1, 3] : vector<3x8x4x8xf32> -> vector<3x4x8x8xf32>
    %398 = vector.shape_cast %397 : vector<3x4x8x8xf32> to vector<12x8x8xf32>
    %399 = arith.truncf %398 : vector<12x8x8xf32> to vector<12x8x8xbf16>
    %400 = vector.shape_cast %388 : vector<24x32xf32> to vector<3x8x4x8xf32>
    %401 = tpu.transpose %400, [0, 2, 1, 3] : vector<3x8x4x8xf32> -> vector<3x4x8x8xf32>
    %402 = vector.shape_cast %401 : vector<3x4x8x8xf32> to vector<12x8x8xf32>
    %403 = arith.truncf %402 : vector<12x8x8xf32> to vector<12x8x8xbf16>
    %404 = vector.shape_cast %395 : vector<24x32xf32> to vector<3x8x4x8xf32>
    %405 = tpu.transpose %404, [0, 2, 1, 3] : vector<3x8x4x8xf32> -> vector<3x4x8x8xf32>
    %406 = vector.shape_cast %405 : vector<3x4x8x8xf32> to vector<12x8x8xf32>
    %407 = arith.truncf %406 : vector<12x8x8xf32> to vector<12x8x8xbf16>
    "tpu.trace_start"() <{level = 10 : i32, message = "bqd,bkd->bqk"}> : () -> ()
    %cst_213 = arith.constant dense<0.000000e+00> : vector<12x8x8xf32>
    %408 = tpu.matmul %399, %403, %cst_213 {dimension_numbers = #tpu.dot_dimension_numbers<[2], [2], [1], [1], [0, 0, 0, 1, 1, 1], [0], [0]>} : vector<12x8x8xbf16>, vector<12x8x8xbf16>, vector<12x8x8xf32> -> vector<12x8x8xf32>
    "tpu.trace_stop"() : () -> ()
    %409 = vector.shape_cast %349 : vector<8x8xf32> to vector<1x8x8xf32>
    %410 = vector.broadcast %409 : vector<1x8x8xf32> to vector<12x8x8xf32>
    %411 = arith.addf %408, %410 : vector<12x8x8xf32>
    %cst_214 = arith.constant dense<0xFF800000> : vector<12x8xf32>
    %412 = vector.multi_reduction <maximumf>, %411, %cst_214 [2] : vector<12x8x8xf32> to vector<12x8xf32>
    %413 = vector.shape_cast %412 : vector<12x8xf32> to vector<12x8x1xf32>
    %414 = vector.broadcast %413 : vector<12x8x1xf32> to vector<12x8x8xf32>
    %415 = arith.subf %411, %414 : vector<12x8x8xf32>
    %416 = math.exp %415 : vector<12x8x8xf32>
    %cst_215 = arith.constant dense<0.000000e+00> : vector<12x8xf32>
    %417 = vector.multi_reduction <add>, %416, %cst_215 [2] : vector<12x8x8xf32> to vector<12x8xf32>
    %418 = vector.shape_cast %417 : vector<12x8xf32> to vector<12x8x1xf32>
    %419 = vector.broadcast %418 : vector<12x8x1xf32> to vector<12x8x8xf32>
    %420 = arith.divf %416, %419 : vector<12x8x8xf32>
    %421 = arith.truncf %420 : vector<12x8x8xf32> to vector<12x8x8xbf16>
    "tpu.trace_start"() <{level = 10 : i32, message = "bqk,bkd->bqd"}> : () -> ()
    %cst_216 = arith.constant dense<0.000000e+00> : vector<12x8x8xf32>
    %422 = tpu.matmul %421, %407, %cst_216 {dimension_numbers = #tpu.dot_dimension_numbers<[2], [1], [1], [2], [0, 0, 0, 1, 1, 2], [0], [0]>} : vector<12x8x8xbf16>, vector<12x8x8xbf16>, vector<12x8x8xf32> -> vector<12x8x8xf32>
    "tpu.trace_stop"() : () -> ()
    %423 = vector.shape_cast %422 : vector<12x8x8xf32> to vector<3x4x8x8xf32>
    %424 = tpu.transpose %423, [0, 2, 1, 3] : vector<3x4x8x8xf32> -> vector<3x8x4x8xf32>
    %425 = vector.shape_cast %424 : vector<3x8x4x8xf32> to vector<24x32xf32>
    %426 = arith.truncf %425 : vector<24x32xf32> to vector<24x32xbf16>
    %c0_217 = arith.constant 0 : index
    %c0_218 = arith.constant 0 : index
    %c0_219 = arith.constant 0 : index
    %427 = vector.load %arg38[%c0_217, %c0_218, %c0_219] : memref<2x32x32xbf16, #tpu.memory_space<vmem>>, vector<1x32x32xbf16>
    %428 = vector.shape_cast %427 : vector<1x32x32xbf16> to vector<32x32xbf16>
    %cst_220 = arith.constant dense<0.000000e+00> : vector<24x32xf32>
    %429 = tpu.matmul %426, %428, %cst_220 {dimension_numbers = #tpu.dot_dimension_numbers<[1], [0], [0], [1], [0, 0, 1, 1], [], []>} : vector<24x32xbf16>, vector<32x32xbf16>, vector<24x32xf32> -> vector<24x32xf32>
    %430 = arith.addf %343, %429 : vector<24x32xf32>
    %c0_221 = arith.constant 0 : index
    %c0_222 = arith.constant 0 : index
    %c0_223 = arith.constant 0 : index
    %431 = vector.load %arg39[%c0_221, %c0_222, %c0_223] : memref<2x1x32xf32, #tpu.memory_space<vmem>>, vector<1x1x32xf32>
    %432 = vector.shape_cast %431 : vector<1x1x32xf32> to vector<1x32xf32>
    %433 = vector.broadcast %432 : vector<1x32xf32> to vector<24x32xf32>
    %434 = arith.addf %430, %433 : vector<24x32xf32>
    %c0_224 = arith.constant 0 : index
    %c0_225 = arith.constant 0 : index
    %c0_226 = arith.constant 0 : index
    %435 = vector.load %arg40[%c0_224, %c0_225, %c0_226] : memref<2x1x32xf32, #tpu.memory_space<vmem>>, vector<1x1x32xf32>
    %436 = vector.shape_cast %435 : vector<1x1x32xf32> to vector<1x32xf32>
    %c0_227 = arith.constant 0 : index
    %c0_228 = arith.constant 0 : index
    %c0_229 = arith.constant 0 : index
    %437 = vector.load %arg41[%c0_227, %c0_228, %c0_229] : memref<2x1x32xf32, #tpu.memory_space<vmem>>, vector<1x1x32xf32>
    %438 = vector.shape_cast %437 : vector<1x1x32xf32> to vector<1x32xf32>
    %cst_230 = arith.constant dense<0.000000e+00> : vector<24xf32>
    %439 = vector.multi_reduction <add>, %434, %cst_230 [1] : vector<24x32xf32> to vector<24xf32>
    %440 = vector.shape_cast %439 : vector<24xf32> to vector<24x1xf32>
    %cst_231 = arith.constant 3.200000e+01 : f32
    %441 = vector.broadcast %cst_231 : f32 to vector<24x1xf32>
    %442 = arith.divf %440, %441 : vector<24x1xf32>
    %443 = vector.broadcast %442 : vector<24x1xf32> to vector<24x32xf32>
    %444 = arith.subf %434, %443 : vector<24x32xf32>
    %445 = arith.mulf %444, %444 : vector<24x32xf32>
    %cst_232 = arith.constant dense<0.000000e+00> : vector<24xf32>
    %446 = vector.multi_reduction <add>, %445, %cst_232 [1] : vector<24x32xf32> to vector<24xf32>
    %447 = vector.shape_cast %446 : vector<24xf32> to vector<24x1xf32>
    %cst_233 = arith.constant 3.200000e+01 : f32
    %448 = vector.broadcast %cst_233 : f32 to vector<24x1xf32>
    %449 = arith.divf %447, %448 : vector<24x1xf32>
    %cst_234 = arith.constant 9.99999974E-6 : f32
    %450 = vector.broadcast %cst_234 : f32 to vector<24x1xf32>
    %451 = arith.addf %449, %450 : vector<24x1xf32>
    %452 = math.rsqrt %451 : vector<24x1xf32>
    %453 = vector.broadcast %452 : vector<24x1xf32> to vector<24x32xf32>
    %454 = arith.mulf %444, %453 : vector<24x32xf32>
    %455 = vector.broadcast %436 : vector<1x32xf32> to vector<24x32xf32>
    %456 = arith.mulf %454, %455 : vector<24x32xf32>
    %457 = vector.broadcast %438 : vector<1x32xf32> to vector<24x32xf32>
    %458 = arith.addf %456, %457 : vector<24x32xf32>
    %459 = arith.truncf %458 : vector<24x32xf32> to vector<24x32xbf16>
    %c0_235 = arith.constant 0 : index
    %c0_236 = arith.constant 0 : index
    %c0_237 = arith.constant 0 : index
    %460 = vector.load %arg42[%c0_235, %c0_236, %c0_237] : memref<2x32x128xbf16, #tpu.memory_space<vmem>>, vector<1x32x128xbf16>
    %461 = vector.shape_cast %460 : vector<1x32x128xbf16> to vector<32x128xbf16>
    %cst_238 = arith.constant dense<0.000000e+00> : vector<24x128xf32>
    %462 = tpu.matmul %459, %461, %cst_238 {dimension_numbers = #tpu.dot_dimension_numbers<[1], [0], [0], [1], [0, 0, 1, 1], [], []>} : vector<24x32xbf16>, vector<32x128xbf16>, vector<24x128xf32> -> vector<24x128xf32>
    %c0_239 = arith.constant 0 : index
    %c0_240 = arith.constant 0 : index
    %c0_241 = arith.constant 0 : index
    %463 = vector.load %arg43[%c0_239, %c0_240, %c0_241] : memref<2x1x128xf32, #tpu.memory_space<vmem>>, vector<1x1x128xf32>
    %464 = vector.shape_cast %463 : vector<1x1x128xf32> to vector<1x128xf32>
    %465 = vector.broadcast %464 : vector<1x128xf32> to vector<24x128xf32>
    %466 = arith.addf %462, %465 : vector<24x128xf32>
    %cst_242 = arith.constant 5.000000e-01 : f32
    %467 = vector.broadcast %cst_242 : f32 to vector<24x128xf32>
    %468 = arith.mulf %467, %466 : vector<24x128xf32>
    %cst_243 = arith.constant 4.471500e-02 : f32
    %469 = vector.broadcast %cst_243 : f32 to vector<24x128xf32>
    %470 = arith.mulf %469, %466 : vector<24x128xf32>
    %471 = arith.mulf %470, %466 : vector<24x128xf32>
    %472 = arith.mulf %471, %466 : vector<24x128xf32>
    %473 = arith.addf %466, %472 : vector<24x128xf32>
    %cst_244 = arith.constant 0.797884583 : f32
    %474 = vector.broadcast %cst_244 : f32 to vector<24x128xf32>
    %475 = arith.mulf %474, %473 : vector<24x128xf32>
    %476 = math.tanh %475 : vector<24x128xf32>
    %cst_245 = arith.constant 1.000000e+00 : f32
    %477 = vector.broadcast %cst_245 : f32 to vector<24x128xf32>
    %478 = arith.addf %477, %476 : vector<24x128xf32>
    %479 = arith.mulf %468, %478 : vector<24x128xf32>
    %480 = arith.truncf %479 : vector<24x128xf32> to vector<24x128xbf16>
    %c0_246 = arith.constant 0 : index
    %c0_247 = arith.constant 0 : index
    %c0_248 = arith.constant 0 : index
    %481 = vector.load %arg44[%c0_246, %c0_247, %c0_248] : memref<2x128x32xbf16, #tpu.memory_space<vmem>>, vector<1x128x32xbf16>
    %482 = vector.shape_cast %481 : vector<1x128x32xbf16> to vector<128x32xbf16>
    %cst_249 = arith.constant dense<0.000000e+00> : vector<24x32xf32>
    %483 = tpu.matmul %480, %482, %cst_249 {dimension_numbers = #tpu.dot_dimension_numbers<[1], [0], [0], [1], [0, 0, 1, 1], [], []>} : vector<24x128xbf16>, vector<128x32xbf16>, vector<24x32xf32> -> vector<24x32xf32>
    %c0_250 = arith.constant 0 : index
    %c0_251 = arith.constant 0 : index
    %c0_252 = arith.constant 0 : index
    %484 = vector.load %arg45[%c0_250, %c0_251, %c0_252] : memref<2x1x32xf32, #tpu.memory_space<vmem>>, vector<1x1x32xf32>
    %485 = vector.shape_cast %484 : vector<1x1x32xf32> to vector<1x32xf32>
    %486 = vector.broadcast %485 : vector<1x32xf32> to vector<24x32xf32>
    %487 = arith.addf %483, %486 : vector<24x32xf32>
    %488 = arith.addf %434, %487 : vector<24x32xf32>
    %c1_253 = arith.constant 1 : index
    %c0_254 = arith.constant 0 : index
    %c0_255 = arith.constant 0 : index
    %489 = vector.load %arg30[%c1_253, %c0_254, %c0_255] : memref<2x1x32xf32, #tpu.memory_space<vmem>>, vector<1x1x32xf32>
    %490 = vector.shape_cast %489 : vector<1x1x32xf32> to vector<1x32xf32>
    %c1_256 = arith.constant 1 : index
    %c0_257 = arith.constant 0 : index
    %c0_258 = arith.constant 0 : index
    %491 = vector.load %arg31[%c1_256, %c0_257, %c0_258] : memref<2x1x32xf32, #tpu.memory_space<vmem>>, vector<1x1x32xf32>
    %492 = vector.shape_cast %491 : vector<1x1x32xf32> to vector<1x32xf32>
    %cst_259 = arith.constant dense<0.000000e+00> : vector<24xf32>
    %493 = vector.multi_reduction <add>, %488, %cst_259 [1] : vector<24x32xf32> to vector<24xf32>
    %494 = vector.shape_cast %493 : vector<24xf32> to vector<24x1xf32>
    %cst_260 = arith.constant 3.200000e+01 : f32
    %495 = vector.broadcast %cst_260 : f32 to vector<24x1xf32>
    %496 = arith.divf %494, %495 : vector<24x1xf32>
    %497 = vector.broadcast %496 : vector<24x1xf32> to vector<24x32xf32>
    %498 = arith.subf %488, %497 : vector<24x32xf32>
    %499 = arith.mulf %498, %498 : vector<24x32xf32>
    %cst_261 = arith.constant dense<0.000000e+00> : vector<24xf32>
    %500 = vector.multi_reduction <add>, %499, %cst_261 [1] : vector<24x32xf32> to vector<24xf32>
    %501 = vector.shape_cast %500 : vector<24xf32> to vector<24x1xf32>
    %cst_262 = arith.constant 3.200000e+01 : f32
    %502 = vector.broadcast %cst_262 : f32 to vector<24x1xf32>
    %503 = arith.divf %501, %502 : vector<24x1xf32>
    %cst_263 = arith.constant 9.99999974E-6 : f32
    %504 = vector.broadcast %cst_263 : f32 to vector<24x1xf32>
    %505 = arith.addf %503, %504 : vector<24x1xf32>
    %506 = math.rsqrt %505 : vector<24x1xf32>
    %507 = vector.broadcast %506 : vector<24x1xf32> to vector<24x32xf32>
    %508 = arith.mulf %498, %507 : vector<24x32xf32>
    %509 = vector.broadcast %490 : vector<1x32xf32> to vector<24x32xf32>
    %510 = arith.mulf %508, %509 : vector<24x32xf32>
    %511 = vector.broadcast %492 : vector<1x32xf32> to vector<24x32xf32>
    %512 = arith.addf %510, %511 : vector<24x32xf32>
    %513 = arith.truncf %512 : vector<24x32xf32> to vector<24x32xbf16>
    %c1_264 = arith.constant 1 : index
    %c0_265 = arith.constant 0 : index
    %c0_266 = arith.constant 0 : index
    %514 = vector.load %arg32[%c1_264, %c0_265, %c0_266] : memref<2x32x32xbf16, #tpu.memory_space<vmem>>, vector<1x32x32xbf16>
    %515 = vector.shape_cast %514 : vector<1x32x32xbf16> to vector<32x32xbf16>
    %cst_267 = arith.constant dense<0.000000e+00> : vector<24x32xf32>
    %516 = tpu.matmul %513, %515, %cst_267 {dimension_numbers = #tpu.dot_dimension_numbers<[1], [0], [0], [1], [0, 0, 1, 1], [], []>} : vector<24x32xbf16>, vector<32x32xbf16>, vector<24x32xf32> -> vector<24x32xf32>
    %c1_268 = arith.constant 1 : index
    %c0_269 = arith.constant 0 : index
    %c0_270 = arith.constant 0 : index
    %517 = vector.load %arg33[%c1_268, %c0_269, %c0_270] : memref<2x1x32xf32, #tpu.memory_space<vmem>>, vector<1x1x32xf32>
    %518 = vector.shape_cast %517 : vector<1x1x32xf32> to vector<1x32xf32>
    %519 = vector.broadcast %518 : vector<1x32xf32> to vector<24x32xf32>
    %520 = arith.addf %516, %519 : vector<24x32xf32>
    %c1_271 = arith.constant 1 : index
    %c0_272 = arith.constant 0 : index
    %c0_273 = arith.constant 0 : index
    %521 = vector.load %arg34[%c1_271, %c0_272, %c0_273] : memref<2x32x32xbf16, #tpu.memory_space<vmem>>, vector<1x32x32xbf16>
    %522 = vector.shape_cast %521 : vector<1x32x32xbf16> to vector<32x32xbf16>
    %cst_274 = arith.constant dense<0.000000e+00> : vector<24x32xf32>
    %523 = tpu.matmul %513, %522, %cst_274 {dimension_numbers = #tpu.dot_dimension_numbers<[1], [0], [0], [1], [0, 0, 1, 1], [], []>} : vector<24x32xbf16>, vector<32x32xbf16>, vector<24x32xf32> -> vector<24x32xf32>
    %c1_275 = arith.constant 1 : index
    %c0_276 = arith.constant 0 : index
    %c0_277 = arith.constant 0 : index
    %524 = vector.load %arg35[%c1_275, %c0_276, %c0_277] : memref<2x1x32xf32, #tpu.memory_space<vmem>>, vector<1x1x32xf32>
    %525 = vector.shape_cast %524 : vector<1x1x32xf32> to vector<1x32xf32>
    %526 = vector.broadcast %525 : vector<1x32xf32> to vector<24x32xf32>
    %527 = arith.addf %523, %526 : vector<24x32xf32>
    %c1_278 = arith.constant 1 : index
    %c0_279 = arith.constant 0 : index
    %c0_280 = arith.constant 0 : index
    %528 = vector.load %arg36[%c1_278, %c0_279, %c0_280] : memref<2x32x32xbf16, #tpu.memory_space<vmem>>, vector<1x32x32xbf16>
    %529 = vector.shape_cast %528 : vector<1x32x32xbf16> to vector<32x32xbf16>
    %cst_281 = arith.constant dense<0.000000e+00> : vector<24x32xf32>
    %530 = tpu.matmul %513, %529, %cst_281 {dimension_numbers = #tpu.dot_dimension_numbers<[1], [0], [0], [1], [0, 0, 1, 1], [], []>} : vector<24x32xbf16>, vector<32x32xbf16>, vector<24x32xf32> -> vector<24x32xf32>
    %c1_282 = arith.constant 1 : index
    %c0_283 = arith.constant 0 : index
    %c0_284 = arith.constant 0 : index
    %531 = vector.load %arg37[%c1_282, %c0_283, %c0_284] : memref<2x1x32xf32, #tpu.memory_space<vmem>>, vector<1x1x32xf32>
    %532 = vector.shape_cast %531 : vector<1x1x32xf32> to vector<1x32xf32>
    %533 = vector.broadcast %532 : vector<1x32xf32> to vector<24x32xf32>
    %534 = arith.addf %530, %533 : vector<24x32xf32>
    %535 = vector.shape_cast %520 : vector<24x32xf32> to vector<3x8x4x8xf32>
    %536 = tpu.transpose %535, [0, 2, 1, 3] : vector<3x8x4x8xf32> -> vector<3x4x8x8xf32>
    %537 = vector.shape_cast %536 : vector<3x4x8x8xf32> to vector<12x8x8xf32>
    %538 = arith.truncf %537 : vector<12x8x8xf32> to vector<12x8x8xbf16>
    %539 = vector.shape_cast %527 : vector<24x32xf32> to vector<3x8x4x8xf32>
    %540 = tpu.transpose %539, [0, 2, 1, 3] : vector<3x8x4x8xf32> -> vector<3x4x8x8xf32>
    %541 = vector.shape_cast %540 : vector<3x4x8x8xf32> to vector<12x8x8xf32>
    %542 = arith.truncf %541 : vector<12x8x8xf32> to vector<12x8x8xbf16>
    %543 = vector.shape_cast %534 : vector<24x32xf32> to vector<3x8x4x8xf32>
    %544 = tpu.transpose %543, [0, 2, 1, 3] : vector<3x8x4x8xf32> -> vector<3x4x8x8xf32>
    %545 = vector.shape_cast %544 : vector<3x4x8x8xf32> to vector<12x8x8xf32>
    %546 = arith.truncf %545 : vector<12x8x8xf32> to vector<12x8x8xbf16>
    "tpu.trace_start"() <{level = 10 : i32, message = "bqd,bkd->bqk"}> : () -> ()
    %cst_285 = arith.constant dense<0.000000e+00> : vector<12x8x8xf32>
    %547 = tpu.matmul %538, %542, %cst_285 {dimension_numbers = #tpu.dot_dimension_numbers<[2], [2], [1], [1], [0, 0, 0, 1, 1, 1], [0], [0]>} : vector<12x8x8xbf16>, vector<12x8x8xbf16>, vector<12x8x8xf32> -> vector<12x8x8xf32>
    "tpu.trace_stop"() : () -> ()
    %548 = vector.shape_cast %349 : vector<8x8xf32> to vector<1x8x8xf32>
    %549 = vector.broadcast %548 : vector<1x8x8xf32> to vector<12x8x8xf32>
    %550 = arith.addf %547, %549 : vector<12x8x8xf32>
    %cst_286 = arith.constant dense<0xFF800000> : vector<12x8xf32>
    %551 = vector.multi_reduction <maximumf>, %550, %cst_286 [2] : vector<12x8x8xf32> to vector<12x8xf32>
    %552 = vector.shape_cast %551 : vector<12x8xf32> to vector<12x8x1xf32>
    %553 = vector.broadcast %552 : vector<12x8x1xf32> to vector<12x8x8xf32>
    %554 = arith.subf %550, %553 : vector<12x8x8xf32>
    %555 = math.exp %554 : vector<12x8x8xf32>
    %cst_287 = arith.constant dense<0.000000e+00> : vector<12x8xf32>
    %556 = vector.multi_reduction <add>, %555, %cst_287 [2] : vector<12x8x8xf32> to vector<12x8xf32>
    %557 = vector.shape_cast %556 : vector<12x8xf32> to vector<12x8x1xf32>
    %558 = vector.broadcast %557 : vector<12x8x1xf32> to vector<12x8x8xf32>
    %559 = arith.divf %555, %558 : vector<12x8x8xf32>
    %560 = arith.truncf %559 : vector<12x8x8xf32> to vector<12x8x8xbf16>
    "tpu.trace_start"() <{level = 10 : i32, message = "bqk,bkd->bqd"}> : () -> ()
    %cst_288 = arith.constant dense<0.000000e+00> : vector<12x8x8xf32>
    %561 = tpu.matmul %560, %546, %cst_288 {dimension_numbers = #tpu.dot_dimension_numbers<[2], [1], [1], [2], [0, 0, 0, 1, 1, 2], [0], [0]>} : vector<12x8x8xbf16>, vector<12x8x8xbf16>, vector<12x8x8xf32> -> vector<12x8x8xf32>
    "tpu.trace_stop"() : () -> ()
    %562 = vector.shape_cast %561 : vector<12x8x8xf32> to vector<3x4x8x8xf32>
    %563 = tpu.transpose %562, [0, 2, 1, 3] : vector<3x4x8x8xf32> -> vector<3x8x4x8xf32>
    %564 = vector.shape_cast %563 : vector<3x8x4x8xf32> to vector<24x32xf32>
    %565 = arith.truncf %564 : vector<24x32xf32> to vector<24x32xbf16>
    %c1_289 = arith.constant 1 : index
    %c0_290 = arith.constant 0 : index
    %c0_291 = arith.constant 0 : index
    %566 = vector.load %arg38[%c1_289, %c0_290, %c0_291] : memref<2x32x32xbf16, #tpu.memory_space<vmem>>, vector<1x32x32xbf16>
    %567 = vector.shape_cast %566 : vector<1x32x32xbf16> to vector<32x32xbf16>
    %cst_292 = arith.constant dense<0.000000e+00> : vector<24x32xf32>
    %568 = tpu.matmul %565, %567, %cst_292 {dimension_numbers = #tpu.dot_dimension_numbers<[1], [0], [0], [1], [0, 0, 1, 1], [], []>} : vector<24x32xbf16>, vector<32x32xbf16>, vector<24x32xf32> -> vector<24x32xf32>
    %569 = arith.addf %488, %568 : vector<24x32xf32>
    %c1_293 = arith.constant 1 : index
    %c0_294 = arith.constant 0 : index
    %c0_295 = arith.constant 0 : index
    %570 = vector.load %arg39[%c1_293, %c0_294, %c0_295] : memref<2x1x32xf32, #tpu.memory_space<vmem>>, vector<1x1x32xf32>
    %571 = vector.shape_cast %570 : vector<1x1x32xf32> to vector<1x32xf32>
    %572 = vector.broadcast %571 : vector<1x32xf32> to vector<24x32xf32>
    %573 = arith.addf %569, %572 : vector<24x32xf32>
    %c1_296 = arith.constant 1 : index
    %c0_297 = arith.constant 0 : index
    %c0_298 = arith.constant 0 : index
    %574 = vector.load %arg40[%c1_296, %c0_297, %c0_298] : memref<2x1x32xf32, #tpu.memory_space<vmem>>, vector<1x1x32xf32>
    %575 = vector.shape_cast %574 : vector<1x1x32xf32> to vector<1x32xf32>
    %c1_299 = arith.constant 1 : index
    %c0_300 = arith.constant 0 : index
    %c0_301 = arith.constant 0 : index
    %576 = vector.load %arg41[%c1_299, %c0_300, %c0_301] : memref<2x1x32xf32, #tpu.memory_space<vmem>>, vector<1x1x32xf32>
    %577 = vector.shape_cast %576 : vector<1x1x32xf32> to vector<1x32xf32>
    %cst_302 = arith.constant dense<0.000000e+00> : vector<24xf32>
    %578 = vector.multi_reduction <add>, %573, %cst_302 [1] : vector<24x32xf32> to vector<24xf32>
    %579 = vector.shape_cast %578 : vector<24xf32> to vector<24x1xf32>
    %cst_303 = arith.constant 3.200000e+01 : f32
    %580 = vector.broadcast %cst_303 : f32 to vector<24x1xf32>
    %581 = arith.divf %579, %580 : vector<24x1xf32>
    %582 = vector.broadcast %581 : vector<24x1xf32> to vector<24x32xf32>
    %583 = arith.subf %573, %582 : vector<24x32xf32>
    %584 = arith.mulf %583, %583 : vector<24x32xf32>
    %cst_304 = arith.constant dense<0.000000e+00> : vector<24xf32>
    %585 = vector.multi_reduction <add>, %584, %cst_304 [1] : vector<24x32xf32> to vector<24xf32>
    %586 = vector.shape_cast %585 : vector<24xf32> to vector<24x1xf32>
    %cst_305 = arith.constant 3.200000e+01 : f32
    %587 = vector.broadcast %cst_305 : f32 to vector<24x1xf32>
    %588 = arith.divf %586, %587 : vector<24x1xf32>
    %cst_306 = arith.constant 9.99999974E-6 : f32
    %589 = vector.broadcast %cst_306 : f32 to vector<24x1xf32>
    %590 = arith.addf %588, %589 : vector<24x1xf32>
    %591 = math.rsqrt %590 : vector<24x1xf32>
    %592 = vector.broadcast %591 : vector<24x1xf32> to vector<24x32xf32>
    %593 = arith.mulf %583, %592 : vector<24x32xf32>
    %594 = vector.broadcast %575 : vector<1x32xf32> to vector<24x32xf32>
    %595 = arith.mulf %593, %594 : vector<24x32xf32>
    %596 = vector.broadcast %577 : vector<1x32xf32> to vector<24x32xf32>
    %597 = arith.addf %595, %596 : vector<24x32xf32>
    %598 = arith.truncf %597 : vector<24x32xf32> to vector<24x32xbf16>
    %c1_307 = arith.constant 1 : index
    %c0_308 = arith.constant 0 : index
    %c0_309 = arith.constant 0 : index
    %599 = vector.load %arg42[%c1_307, %c0_308, %c0_309] : memref<2x32x128xbf16, #tpu.memory_space<vmem>>, vector<1x32x128xbf16>
    %600 = vector.shape_cast %599 : vector<1x32x128xbf16> to vector<32x128xbf16>
    %cst_310 = arith.constant dense<0.000000e+00> : vector<24x128xf32>
    %601 = tpu.matmul %598, %600, %cst_310 {dimension_numbers = #tpu.dot_dimension_numbers<[1], [0], [0], [1], [0, 0, 1, 1], [], []>} : vector<24x32xbf16>, vector<32x128xbf16>, vector<24x128xf32> -> vector<24x128xf32>
    %c1_311 = arith.constant 1 : index
    %c0_312 = arith.constant 0 : index
    %c0_313 = arith.constant 0 : index
    %602 = vector.load %arg43[%c1_311, %c0_312, %c0_313] : memref<2x1x128xf32, #tpu.memory_space<vmem>>, vector<1x1x128xf32>
    %603 = vector.shape_cast %602 : vector<1x1x128xf32> to vector<1x128xf32>
    %604 = vector.broadcast %603 : vector<1x128xf32> to vector<24x128xf32>
    %605 = arith.addf %601, %604 : vector<24x128xf32>
    %cst_314 = arith.constant 5.000000e-01 : f32
    %606 = vector.broadcast %cst_314 : f32 to vector<24x128xf32>
    %607 = arith.mulf %606, %605 : vector<24x128xf32>
    %cst_315 = arith.constant 4.471500e-02 : f32
    %608 = vector.broadcast %cst_315 : f32 to vector<24x128xf32>
    %609 = arith.mulf %608, %605 : vector<24x128xf32>
    %610 = arith.mulf %609, %605 : vector<24x128xf32>
    %611 = arith.mulf %610, %605 : vector<24x128xf32>
    %612 = arith.addf %605, %611 : vector<24x128xf32>
    %cst_316 = arith.constant 0.797884583 : f32
    %613 = vector.broadcast %cst_316 : f32 to vector<24x128xf32>
    %614 = arith.mulf %613, %612 : vector<24x128xf32>
    %615 = math.tanh %614 : vector<24x128xf32>
    %cst_317 = arith.constant 1.000000e+00 : f32
    %616 = vector.broadcast %cst_317 : f32 to vector<24x128xf32>
    %617 = arith.addf %616, %615 : vector<24x128xf32>
    %618 = arith.mulf %607, %617 : vector<24x128xf32>
    %619 = arith.truncf %618 : vector<24x128xf32> to vector<24x128xbf16>
    %c1_318 = arith.constant 1 : index
    %c0_319 = arith.constant 0 : index
    %c0_320 = arith.constant 0 : index
    %620 = vector.load %arg44[%c1_318, %c0_319, %c0_320] : memref<2x128x32xbf16, #tpu.memory_space<vmem>>, vector<1x128x32xbf16>
    %621 = vector.shape_cast %620 : vector<1x128x32xbf16> to vector<128x32xbf16>
    %cst_321 = arith.constant dense<0.000000e+00> : vector<24x32xf32>
    %622 = tpu.matmul %619, %621, %cst_321 {dimension_numbers = #tpu.dot_dimension_numbers<[1], [0], [0], [1], [0, 0, 1, 1], [], []>} : vector<24x128xbf16>, vector<128x32xbf16>, vector<24x32xf32> -> vector<24x32xf32>
    %c1_322 = arith.constant 1 : index
    %c0_323 = arith.constant 0 : index
    %c0_324 = arith.constant 0 : index
    %623 = vector.load %arg45[%c1_322, %c0_323, %c0_324] : memref<2x1x32xf32, #tpu.memory_space<vmem>>, vector<1x1x32xf32>
    %624 = vector.shape_cast %623 : vector<1x1x32xf32> to vector<1x32xf32>
    %625 = vector.broadcast %624 : vector<1x32xf32> to vector<24x32xf32>
    %626 = arith.addf %622, %625 : vector<24x32xf32>
    %627 = arith.addf %573, %626 : vector<24x32xf32>
    %c0_325 = arith.constant 0 : index
    %c0_326 = arith.constant 0 : index
    %628 = vector.load %arg46[%c0_325, %c0_326] : memref<1x32xf32, #tpu.memory_space<vmem>>, vector<1x32xf32>
    %c0_327 = arith.constant 0 : index
    %c0_328 = arith.constant 0 : index
    %629 = vector.load %arg47[%c0_327, %c0_328] : memref<1x32xf32, #tpu.memory_space<vmem>>, vector<1x32xf32>
    %cst_329 = arith.constant dense<0.000000e+00> : vector<24xf32>
    %630 = vector.multi_reduction <add>, %627, %cst_329 [1] : vector<24x32xf32> to vector<24xf32>
    %631 = vector.shape_cast %630 : vector<24xf32> to vector<24x1xf32>
    %cst_330 = arith.constant 3.200000e+01 : f32
    %632 = vector.broadcast %cst_330 : f32 to vector<24x1xf32>
    %633 = arith.divf %631, %632 : vector<24x1xf32>
    %634 = vector.broadcast %633 : vector<24x1xf32> to vector<24x32xf32>
    %635 = arith.subf %627, %634 : vector<24x32xf32>
    %636 = arith.mulf %635, %635 : vector<24x32xf32>
    %cst_331 = arith.constant dense<0.000000e+00> : vector<24xf32>
    %637 = vector.multi_reduction <add>, %636, %cst_331 [1] : vector<24x32xf32> to vector<24xf32>
    %638 = vector.shape_cast %637 : vector<24xf32> to vector<24x1xf32>
    %cst_332 = arith.constant 3.200000e+01 : f32
    %639 = vector.broadcast %cst_332 : f32 to vector<24x1xf32>
    %640 = arith.divf %638, %639 : vector<24x1xf32>
    %cst_333 = arith.constant 9.99999974E-6 : f32
    %641 = vector.broadcast %cst_333 : f32 to vector<24x1xf32>
    %642 = arith.addf %640, %641 : vector<24x1xf32>
    %643 = math.rsqrt %642 : vector<24x1xf32>
    %644 = vector.broadcast %643 : vector<24x1xf32> to vector<24x32xf32>
    %645 = arith.mulf %635, %644 : vector<24x32xf32>
    %646 = vector.broadcast %628 : vector<1x32xf32> to vector<24x32xf32>
    %647 = arith.mulf %645, %646 : vector<24x32xf32>
    %648 = vector.broadcast %629 : vector<1x32xf32> to vector<24x32xf32>
    %649 = arith.addf %647, %648 : vector<24x32xf32>
    %c0_334 = arith.constant 0 : index
    %c0_335 = arith.constant 0 : index
    %650 = vector.load %arg4[%c0_334, %c0_335] : memref<3x24xbf16, #tpu.memory_space<vmem>>, vector<3x24xbf16>
    %651 = arith.truncf %649 : vector<24x32xf32> to vector<24x32xbf16>
    %cst_336 = arith.constant dense<0.000000e+00> : vector<3x32xf32>
    %652 = tpu.matmul %650, %651, %cst_336 {dimension_numbers = #tpu.dot_dimension_numbers<[1], [0], [0], [1], [0, 0, 1, 1], [], []>} : vector<3x24xbf16>, vector<24x32xbf16>, vector<3x32xf32> -> vector<3x32xf32>
    %653 = arith.truncf %652 : vector<3x32xf32> to vector<3x32xbf16>
    %c0_337 = arith.constant 0 : index
    %c0_338 = arith.constant 0 : index
    %654 = vector.load %arg48[%c0_337, %c0_338] : memref<32x32xbf16, #tpu.memory_space<vmem>>, vector<32x32xbf16>
    %cst_339 = arith.constant dense<0.000000e+00> : vector<3x32xf32>
    %655 = tpu.matmul %653, %654, %cst_339 {dimension_numbers = #tpu.dot_dimension_numbers<[1], [0], [0], [1], [0, 0, 1, 1], [], []>} : vector<3x32xbf16>, vector<32x32xbf16>, vector<3x32xf32> -> vector<3x32xf32>
    %656 = arith.mulf %337, %337 : vector<1x32xf32>
    %cst_340 = arith.constant dense<0.000000e+00> : vector<1xf32>
    %657 = vector.multi_reduction <add>, %656, %cst_340 [1] : vector<1x32xf32> to vector<1xf32>
    %658 = vector.shape_cast %657 : vector<1xf32> to vector<1x1xf32>
    %cst_341 = arith.constant 1.000000e-24 : f32
    %659 = vector.broadcast %cst_341 : f32 to vector<1x1xf32>
    %660 = arith.maximumf %658, %659 : vector<1x1xf32>
    %661 = math.rsqrt %660 : vector<1x1xf32>
    %662 = vector.broadcast %661 : vector<1x1xf32> to vector<1x32xf32>
    %663 = arith.mulf %337, %662 : vector<1x32xf32>
    %664 = arith.mulf %655, %655 : vector<3x32xf32>
    %cst_342 = arith.constant dense<0.000000e+00> : vector<3xf32>
    %665 = vector.multi_reduction <add>, %664, %cst_342 [1] : vector<3x32xf32> to vector<3xf32>
    %666 = vector.shape_cast %665 : vector<3xf32> to vector<3x1xf32>
    %cst_343 = arith.constant 1.000000e-24 : f32
    %667 = vector.broadcast %cst_343 : f32 to vector<3x1xf32>
    %668 = arith.maximumf %666, %667 : vector<3x1xf32>
    %669 = math.rsqrt %668 : vector<3x1xf32>
    %670 = vector.broadcast %669 : vector<3x1xf32> to vector<3x32xf32>
    %671 = arith.mulf %655, %670 : vector<3x32xf32>
    %cst_344 = arith.constant dense<0.000000e+00> : vector<1x3xf32>
    %672 = tpu.matmul %663, %671, %cst_344 {dimension_numbers = #tpu.dot_dimension_numbers<[1], [1], [0], [0], [0, 0, 1, 0], [], []>} : vector<1x32xf32>, vector<3x32xf32>, vector<1x3xf32> -> vector<1x3xf32>
    %c0_345 = arith.constant 0 : index
    %c0_346 = arith.constant 0 : index
    %673 = memref.load %arg1[%c0_345, %c0_346] : memref<1x1xf32, #tpu.memory_space<smem>>
    %674 = math.exp %673 : f32
    %675 = vector.broadcast %674 : f32 to vector<1x3xf32>
    %676 = arith.mulf %675, %672 : vector<1x3xf32>
    %c0_347 = arith.constant 0 : index
    %c0_348 = arith.constant 0 : index
    %c0_349 = arith.constant 0 : index
    %677 = vector.load %arg49[%c0_347, %c0_348, %c0_349] : memref<1x1x3xf32, #tpu.memory_space<vmem>>, vector<1x1x3xf32>
    %678 = vector.shape_cast %677 : vector<1x1x3xf32> to vector<1x3xf32>
    %679 = vector.shape_cast %676 : vector<1x3xf32> to vector<1x1x3xf32>
    tpu.vector_store %arg49[%c0_347, %c0_348, %c0_349], %679 {strides = array<i32>} : memref<1x1x3xf32, #tpu.memory_space<vmem>>, vector<1x1x3xf32>,
    return
  }
  func.func @transform_0(%arg0: i32) -> (i32, i32) {
    %c0_i32 = arith.constant 0 : i32
    %c0_i32_0 = arith.constant 0 : i32
    %c0_i32_1 = arith.constant 0 : i32
    return %c0_i32, %c0_i32_0 : i32, i32
  }
  func.func @transform_1(%arg0: i32) -> (i32, i32, i32) {
    %c0_i32 = arith.constant 0 : i32
    %c0_i32_0 = arith.constant 0 : i32
    %c0_i32_1 = arith.constant 0 : i32
    return %arg0, %c0_i32, %c0_i32_0 : i32, i32, i32
  }
  func.func @transform_2(%arg0: i32) -> (i32, i32) {
    %c0_i32 = arith.constant 0 : i32
    %c0_i32_0 = arith.constant 0 : i32
    %c0_i32_1 = arith.constant 0 : i32
    return %c0_i32, %c0_i32_0 : i32, i32
  }
  func.func @transform_3(%arg0: i32) -> (i32, i32) {
    %c0_i32 = arith.constant 0 : i32
    %c0_i32_0 = arith.constant 0 : i32
    %c0_i32_1 = arith.constant 0 : i32
    return %c0_i32, %c0_i32_0 : i32, i32
  }
  func.func @transform_4(%arg0: i32) -> (i32, i32) {
    %c0_i32 = arith.constant 0 : i32
    %c0_i32_0 = arith.constant 0 : i32
    %c0_i32_1 = arith.constant 0 : i32
    return %c0_i32, %c0_i32_0 : i32, i32
  }
  func.func @transform_5(%arg0: i32) -> (i32, i32) {
    %c0_i32 = arith.constant 0 : i32
    %c0_i32_0 = arith.constant 0 : i32
    %c0_i32_1 = arith.constant 0 : i32
    return %c0_i32, %c0_i32_0 : i32, i32
  }
  func.func @transform_6(%arg0: i32) -> (i32, i32) {
    %c0_i32 = arith.constant 0 : i32
    %c0_i32_0 = arith.constant 0 : i32
    %c0_i32_1 = arith.constant 0 : i32
    return %c0_i32, %c0_i32_0 : i32, i32
  }
  func.func @transform_7(%arg0: i32) -> (i32, i32) {
    %c0_i32 = arith.constant 0 : i32
    %c0_i32_0 = arith.constant 0 : i32
    %c0_i32_1 = arith.constant 0 : i32
    return %c0_i32, %c0_i32_0 : i32, i32
  }
  func.func @transform_8(%arg0: i32) -> (i32, i32, i32) {
    %c0_i32 = arith.constant 0 : i32
    %c0_i32_0 = arith.constant 0 : i32
    %c0_i32_1 = arith.constant 0 : i32
    %c0_i32_2 = arith.constant 0 : i32
    return %c0_i32, %c0_i32_0, %c0_i32_1 : i32, i32, i32
  }
  func.func @transform_9(%arg0: i32) -> (i32, i32, i32) {
    %c0_i32 = arith.constant 0 : i32
    %c0_i32_0 = arith.constant 0 : i32
    %c0_i32_1 = arith.constant 0 : i32
    %c0_i32_2 = arith.constant 0 : i32
    return %c0_i32, %c0_i32_0, %c0_i32_1 : i32, i32, i32
  }
  func.func @transform_10(%arg0: i32) -> (i32, i32, i32) {
    %c0_i32 = arith.constant 0 : i32
    %c0_i32_0 = arith.constant 0 : i32
    %c0_i32_1 = arith.constant 0 : i32
    %c0_i32_2 = arith.constant 0 : i32
    return %c0_i32, %c0_i32_0, %c0_i32_1 : i32, i32, i32
  }
  func.func @transform_11(%arg0: i32) -> (i32, i32, i32) {
    %c0_i32 = arith.constant 0 : i32
    %c0_i32_0 = arith.constant 0 : i32
    %c0_i32_1 = arith.constant 0 : i32
    %c0_i32_2 = arith.constant 0 : i32
    return %c0_i32, %c0_i32_0, %c0_i32_1 : i32, i32, i32
  }
  func.func @transform_12(%arg0: i32) -> (i32, i32, i32) {
    %c0_i32 = arith.constant 0 : i32
    %c0_i32_0 = arith.constant 0 : i32
    %c0_i32_1 = arith.constant 0 : i32
    %c0_i32_2 = arith.constant 0 : i32
    return %c0_i32, %c0_i32_0, %c0_i32_1 : i32, i32, i32
  }
  func.func @transform_13(%arg0: i32) -> (i32, i32, i32) {
    %c0_i32 = arith.constant 0 : i32
    %c0_i32_0 = arith.constant 0 : i32
    %c0_i32_1 = arith.constant 0 : i32
    %c0_i32_2 = arith.constant 0 : i32
    return %c0_i32, %c0_i32_0, %c0_i32_1 : i32, i32, i32
  }
  func.func @transform_14(%arg0: i32) -> (i32, i32, i32) {
    %c0_i32 = arith.constant 0 : i32
    %c0_i32_0 = arith.constant 0 : i32
    %c0_i32_1 = arith.constant 0 : i32
    %c0_i32_2 = arith.constant 0 : i32
    return %c0_i32, %c0_i32_0, %c0_i32_1 : i32, i32, i32
  }
  func.func @transform_15(%arg0: i32) -> (i32, i32, i32) {
    %c0_i32 = arith.constant 0 : i32
    %c0_i32_0 = arith.constant 0 : i32
    %c0_i32_1 = arith.constant 0 : i32
    %c0_i32_2 = arith.constant 0 : i32
    return %c0_i32, %c0_i32_0, %c0_i32_1 : i32, i32, i32
  }
  func.func @transform_16(%arg0: i32) -> (i32, i32, i32) {
    %c0_i32 = arith.constant 0 : i32
    %c0_i32_0 = arith.constant 0 : i32
    %c0_i32_1 = arith.constant 0 : i32
    %c0_i32_2 = arith.constant 0 : i32
    return %c0_i32, %c0_i32_0, %c0_i32_1 : i32, i32, i32
  }
  func.func @transform_17(%arg0: i32) -> (i32, i32, i32) {
    %c0_i32 = arith.constant 0 : i32
    %c0_i32_0 = arith.constant 0 : i32
    %c0_i32_1 = arith.constant 0 : i32
    %c0_i32_2 = arith.constant 0 : i32
    return %c0_i32, %c0_i32_0, %c0_i32_1 : i32, i32, i32
  }
  func.func @transform_18(%arg0: i32) -> (i32, i32, i32) {
    %c0_i32 = arith.constant 0 : i32
    %c0_i32_0 = arith.constant 0 : i32
    %c0_i32_1 = arith.constant 0 : i32
    %c0_i32_2 = arith.constant 0 : i32
    return %c0_i32, %c0_i32_0, %c0_i32_1 : i32, i32, i32
  }
  func.func @transform_19(%arg0: i32) -> (i32, i32, i32) {
    %c0_i32 = arith.constant 0 : i32
    %c0_i32_0 = arith.constant 0 : i32
    %c0_i32_1 = arith.constant 0 : i32
    %c0_i32_2 = arith.constant 0 : i32
    return %c0_i32, %c0_i32_0, %c0_i32_1 : i32, i32, i32
  }
  func.func @transform_20(%arg0: i32) -> (i32, i32, i32) {
    %c0_i32 = arith.constant 0 : i32
    %c0_i32_0 = arith.constant 0 : i32
    %c0_i32_1 = arith.constant 0 : i32
    %c0_i32_2 = arith.constant 0 : i32
    return %c0_i32, %c0_i32_0, %c0_i32_1 : i32, i32, i32
  }
  func.func @transform_21(%arg0: i32) -> (i32, i32, i32) {
    %c0_i32 = arith.constant 0 : i32
    %c0_i32_0 = arith.constant 0 : i32
    %c0_i32_1 = arith.constant 0 : i32
    %c0_i32_2 = arith.constant 0 : i32
    return %c0_i32, %c0_i32_0, %c0_i32_1 : i32, i32, i32
  }
  func.func @transform_22(%arg0: i32) -> (i32, i32, i32) {
    %c0_i32 = arith.constant 0 : i32
    %c0_i32_0 = arith.constant 0 : i32
    %c0_i32_1 = arith.constant 0 : i32
    %c0_i32_2 = arith.constant 0 : i32
    return %c0_i32, %c0_i32_0, %c0_i32_1 : i32, i32, i32
  }
  func.func @transform_23(%arg0: i32) -> (i32, i32, i32) {
    %c0_i32 = arith.constant 0 : i32
    %c0_i32_0 = arith.constant 0 : i32
    %c0_i32_1 = arith.constant 0 : i32
    %c0_i32_2 = arith.constant 0 : i32
    return %c0_i32, %c0_i32_0, %c0_i32_1 : i32, i32, i32
  }
  func.func @transform_24(%arg0: i32) -> (i32, i32) {
    %c0_i32 = arith.constant 0 : i32
    %c0_i32_0 = arith.constant 0 : i32
    %c0_i32_1 = arith.constant 0 : i32
    return %c0_i32, %c0_i32_0 : i32, i32
  }
  func.func @transform_25(%arg0: i32) -> (i32, i32) {
    %c0_i32 = arith.constant 0 : i32
    %c0_i32_0 = arith.constant 0 : i32
    %c0_i32_1 = arith.constant 0 : i32
    return %c0_i32, %c0_i32_0 : i32, i32
  }
  func.func @transform_26(%arg0: i32) -> (i32, i32) {
    %c0_i32 = arith.constant 0 : i32
    %c0_i32_0 = arith.constant 0 : i32
    %c0_i32_1 = arith.constant 0 : i32
    return %c0_i32, %c0_i32_0 : i32, i32
  }
  func.func @transform_27(%arg0: i32) -> (i32, i32) {
    %c0_i32 = arith.constant 0 : i32
    %c0_i32_0 = arith.constant 0 : i32
    %c0_i32_1 = arith.constant 0 : i32
    return %c0_i32, %c0_i32_0 : i32, i32
  }
  func.func @transform_28(%arg0: i32) -> (i32, i32) {
    %c0_i32 = arith.constant 0 : i32
    %c0_i32_0 = arith.constant 0 : i32
    %c0_i32_1 = arith.constant 0 : i32
    return %c0_i32, %c0_i32_0 : i32, i32
  }
  func.func @transform_29(%arg0: i32) -> (i32, i32, i32) {
    %c0_i32 = arith.constant 0 : i32
    %c0_i32_0 = arith.constant 0 : i32
    %c0_i32_1 = arith.constant 0 : i32
    %c0_i32_2 = arith.constant 0 : i32
    return %c0_i32, %c0_i32_0, %c0_i32_1 : i32, i32, i32
  }
  func.func @transform_30(%arg0: i32) -> (i32, i32, i32) {
    %c0_i32 = arith.constant 0 : i32
    %c0_i32_0 = arith.constant 0 : i32
    %c0_i32_1 = arith.constant 0 : i32
    %c0_i32_2 = arith.constant 0 : i32
    return %c0_i32, %c0_i32_0, %c0_i32_1 : i32, i32, i32
  }
  func.func @transform_31(%arg0: i32) -> (i32, i32, i32) {
    %c0_i32 = arith.constant 0 : i32
    %c0_i32_0 = arith.constant 0 : i32
    %c0_i32_1 = arith.constant 0 : i32
    %c0_i32_2 = arith.constant 0 : i32
    return %c0_i32, %c0_i32_0, %c0_i32_1 : i32, i32, i32
  }
  func.func @transform_32(%arg0: i32) -> (i32, i32, i32) {
    %c0_i32 = arith.constant 0 : i32
    %c0_i32_0 = arith.constant 0 : i32
    %c0_i32_1 = arith.constant 0 : i32
    %c0_i32_2 = arith.constant 0 : i32
    return %c0_i32, %c0_i32_0, %c0_i32_1 : i32, i32, i32
  }
  func.func @transform_33(%arg0: i32) -> (i32, i32, i32) {
    %c0_i32 = arith.constant 0 : i32
    %c0_i32_0 = arith.constant 0 : i32
    %c0_i32_1 = arith.constant 0 : i32
    %c0_i32_2 = arith.constant 0 : i32
    return %c0_i32, %c0_i32_0, %c0_i32_1 : i32, i32, i32
  }
  func.func @transform_34(%arg0: i32) -> (i32, i32, i32) {
    %c0_i32 = arith.constant 0 : i32
    %c0_i32_0 = arith.constant 0 : i32
    %c0_i32_1 = arith.constant 0 : i32
    %c0_i32_2 = arith.constant 0 : i32
    return %c0_i32, %c0_i32_0, %c0_i32_1 : i32, i32, i32
  }
  func.func @transform_35(%arg0: i32) -> (i32, i32, i32) {
    %c0_i32 = arith.constant 0 : i32
    %c0_i32_0 = arith.constant 0 : i32
    %c0_i32_1 = arith.constant 0 : i32
    %c0_i32_2 = arith.constant 0 : i32
    return %c0_i32, %c0_i32_0, %c0_i32_1 : i32, i32, i32
  }
  func.func @transform_36(%arg0: i32) -> (i32, i32, i32) {
    %c0_i32 = arith.constant 0 : i32
    %c0_i32_0 = arith.constant 0 : i32
    %c0_i32_1 = arith.constant 0 : i32
    %c0_i32_2 = arith.constant 0 : i32
    return %c0_i32, %c0_i32_0, %c0_i32_1 : i32, i32, i32
  }
  func.func @transform_37(%arg0: i32) -> (i32, i32, i32) {
    %c0_i32 = arith.constant 0 : i32
    %c0_i32_0 = arith.constant 0 : i32
    %c0_i32_1 = arith.constant 0 : i32
    %c0_i32_2 = arith.constant 0 : i32
    return %c0_i32, %c0_i32_0, %c0_i32_1 : i32, i32, i32
  }
  func.func @transform_38(%arg0: i32) -> (i32, i32, i32) {
    %c0_i32 = arith.constant 0 : i32
    %c0_i32_0 = arith.constant 0 : i32
    %c0_i32_1 = arith.constant 0 : i32
    %c0_i32_2 = arith.constant 0 : i32
    return %c0_i32, %c0_i32_0, %c0_i32_1 : i32, i32, i32
  }
  func.func @transform_39(%arg0: i32) -> (i32, i32, i32) {
    %c0_i32 = arith.constant 0 : i32
    %c0_i32_0 = arith.constant 0 : i32
    %c0_i32_1 = arith.constant 0 : i32
    %c0_i32_2 = arith.constant 0 : i32
    return %c0_i32, %c0_i32_0, %c0_i32_1 : i32, i32, i32
  }
  func.func @transform_40(%arg0: i32) -> (i32, i32, i32) {
    %c0_i32 = arith.constant 0 : i32
    %c0_i32_0 = arith.constant 0 : i32
    %c0_i32_1 = arith.constant 0 : i32
    %c0_i32_2 = arith.constant 0 : i32
    return %c0_i32, %c0_i32_0, %c0_i32_1 : i32, i32, i32
  }
  func.func @transform_41(%arg0: i32) -> (i32, i32, i32) {
    %c0_i32 = arith.constant 0 : i32
    %c0_i32_0 = arith.constant 0 : i32
    %c0_i32_1 = arith.constant 0 : i32
    %c0_i32_2 = arith.constant 0 : i32
    return %c0_i32, %c0_i32_0, %c0_i32_1 : i32, i32, i32
  }
  func.func @transform_42(%arg0: i32) -> (i32, i32, i32) {
    %c0_i32 = arith.constant 0 : i32
    %c0_i32_0 = arith.constant 0 : i32
    %c0_i32_1 = arith.constant 0 : i32
    %c0_i32_2 = arith.constant 0 : i32
    return %c0_i32, %c0_i32_0, %c0_i32_1 : i32, i32, i32
  }
  func.func @transform_43(%arg0: i32) -> (i32, i32, i32) {
    %c0_i32 = arith.constant 0 : i32
    %c0_i32_0 = arith.constant 0 : i32
    %c0_i32_1 = arith.constant 0 : i32
    %c0_i32_2 = arith.constant 0 : i32
    return %c0_i32, %c0_i32_0, %c0_i32_1 : i32, i32, i32
  }
  func.func @transform_44(%arg0: i32) -> (i32, i32, i32) {
    %c0_i32 = arith.constant 0 : i32
    %c0_i32_0 = arith.constant 0 : i32
    %c0_i32_1 = arith.constant 0 : i32
    %c0_i32_2 = arith.constant 0 : i32
    return %c0_i32, %c0_i32_0, %c0_i32_1 : i32, i32, i32
  }
  func.func @transform_45(%arg0: i32) -> (i32, i32) {
    %c0_i32 = arith.constant 0 : i32
    %c0_i32_0 = arith.constant 0 : i32
    %c0_i32_1 = arith.constant 0 : i32
    return %c0_i32, %c0_i32_0 : i32, i32
  }
  func.func @transform_46(%arg0: i32) -> (i32, i32) {
    %c0_i32 = arith.constant 0 : i32
    %c0_i32_0 = arith.constant 0 : i32
    %c0_i32_1 = arith.constant 0 : i32
    return %c0_i32, %c0_i32_0 : i32, i32
  }
  func.func @transform_47(%arg0: i32) -> (i32, i32) {
    %c0_i32 = arith.constant 0 : i32
    %c0_i32_0 = arith.constant 0 : i32
    %c0_i32_1 = arith.constant 0 : i32
    return %c0_i32, %c0_i32_0 : i32, i32
  }
  func.func @transform_48(%arg0: i32) -> (i32, i32, i32) {
    %c0_i32 = arith.constant 0 : i32
    %c0_i32_0 = arith.constant 0 : i32
    %c0_i32_1 = arith.constant 0 : i32
    return %arg0, %c0_i32, %c0_i32_0 : i32, i32, i32
  }
}

</mosaic_0001>

<bundles_post_ra>
// kernel: custom_clip_forward.1
= control target key start
LH: loop header
LB: loop body
LE: loop exit
PB: predicated region body
PF: predicated region fallthrough
CT: control target
= control target key end

     0   :  { %s14893_s6 = smov 1   ;;  %s14894_s10 = smov 2   ;;  %s17551_s0 = inlined_call_operand.smem [shape: u32[49], index: -1, kind: input, shape index: {}] }
   0x1   :  { %s14967_s5 = sld [smem:[%s17551_s0]]   ;;  %s14895_s14 = smov 3  }
   0x2   :  { %s14972_s9 = sld [smem:[%s17551_s0 + %s14893_s6]]   ;;  %s14896_s18 = smov 4  }
   0x3   :  { %s14977_s13 = sld [smem:[%s17551_s0 + %s14894_s10]]   ;;  %s14897_s22 = smov 5  }
   0x4   :  { %s14982_s17 = sld [smem:[%s17551_s0 + %s14895_s14]]   ;;  %s14898_s26 = smov 6  }
   0x5   :  { %s14987_s21 = sld [smem:[%s17551_s0 + %s14896_s18]]   ;;  %s14899_s30 = smov 7  }
   0x6   :  { %s14992_s25 = sld [smem:[%s17551_s0 + %s14897_s22]]   ;;  %s14900_s4 = smov 8  }
   0x7   :  { %s14997_s29 = sld [smem:[%s17551_s0 + %s14898_s26]]   ;;  %s14901_s10 = smov 9  }
   0x8   :  { %17627 = sst [smem:[#allocation20_spill]] %s14972_s9  ;;  %s14902_s15 = smov 10  }
   0x9   :  { %17628 = sst [smem:[#allocation21_spill]] %s14977_s13  ;;  %s14903_s20 = smov 11  }
   0xa   :  { %17629 = sst [smem:[#allocation22_spill]] %s14982_s17  ;;  %s14904_s26 = smov 12  }
   0xb   :  { %17630 = sst [smem:[#allocation23_spill]] %s14987_s21  ;;  %s14905_s1 = smov 13  }
   0xc   :  { %17631 = sst [smem:[#allocation24_spill]] %s14992_s25  ;;  %s14906_s7 = smov 14  }
   0xd   :  { %s15002_s3 = sld [smem:[%s17551_s0 + %s14899_s30]]   ;;  %s14908_s22 = smov 16  }
   0xe   :  { %s15007_s8 = sld [smem:[%s17551_s0 + %s14900_s4]]   ;;  %s14909_s28 = smov 17  }
   0xf   :  { %s15012_s14 = sld [smem:[%s17551_s0 + %s14901_s10]]  }
  0x10   :  { %s15017_s19 = sld [smem:[%s17551_s0 + %s14902_s15]]   ;;  %s14907_s15 = smov 15  }
  0x11   :  { %s15022_s24 = sld [smem:[%s17551_s0 + %s14903_s20]]  }
  0x12   :  { %s15027_s30 = sld [smem:[%s17551_s0 + %s14904_s26]]  }
  0x13   :  { %17632 = sst [smem:[#allocation25_spill]] %s15002_s3 }
  0x14   :  { %17633 = sst [smem:[#allocation26_spill]] %s15007_s8 }
  0x15   :  { %17634 = sst [smem:[#allocation27_spill]] %s15012_s14 }
  0x16   :  { %17635 = sst [smem:[#allocation28_spill]] %s15017_s19 }
  0x17   :  { %17636 = sst [smem:[#allocation29_spill]] %s15022_s24 }
  0x18   :  { %s15032_s6 = sld [smem:[%s17551_s0 + %s14905_s1]]  }
  0x19   :  { %s15037_s12 = sld [smem:[%s17551_s0 + %s14906_s7]]   ;;  %s14910_s7 = smov 18  }
  0x1a   :  { %s15042_s20 = sld [smem:[%s17551_s0 + %s14907_s15]]   ;;  %s14911_s15 = smov 19  }
  0x1b   :  { %s15047_s27 = sld [smem:[%s17551_s0 + %s14908_s22]]   ;;  %s14912_s22 = smov 20  }
  0x1c   :  { %s15052_s4 = sld [smem:[%s17551_s0 + %s14909_s28]]   ;;  %s14913_s28 = smov 21  }
  0x1d   :  { %s15057_s17 = sld [smem:[%s17551_s0 + %s14910_s7]]   ;;  %s14914_s7 = smov 22  }
  0x1e   :  { %17637 = sst [smem:[#allocation30_spill]] %s15032_s6 }
  0x1f   :  { %17638 = sst [smem:[#allocation31_spill]] %s15037_s12 }
  0x20   :  { %17639 = sst [smem:[#allocation32_spill]] %s15042_s20 }
  0x21   :  { %17640 = sst [smem:[#allocation33_spill]] %s15047_s27 }
  0x22   :  { %17641 = sst [smem:[#allocation34_spill]] %s15052_s4 }
  0x23   :  { %17642 = sst [smem:[#allocation35_spill]] %s15057_s17 }
  0x24   :  { %s15062_s13 = sld [smem:[%s17551_s0 + %s14911_s15]]   ;;  %s14915_s15 = smov 23  }
  0x25   :  { %s15067_s27 = sld [smem:[%s17551_s0 + %s14912_s22]]   ;;  %s14916_s22 = smov 24  }
  0x26   :  { %s15072_s4 = sld [smem:[%s17551_s0 + %s14913_s28]]   ;;  %s14917_s28 = smov 25  }
  0x27   :  { %s15077_s17 = sld [smem:[%s17551_s0 + %s14914_s7]]   ;;  %s14918_s7 = smov 26  }
  0x28   :  { %102 = sst [smem:[#allocation2]] %s14967_s5 }
  0x2a   :  { %17643 = sst [smem:[#allocation36_spill]] %s15062_s13 }
  0x2b   :  { %17644 = sst [smem:[#allocation37_spill]] %s15067_s27 }
  0x2c   :  { %17645 = sst [smem:[#allocation38_spill]] %s15072_s4 }
  0x2d   :  { %17646 = sst [smem:[#allocation39_spill]] %s15077_s17 }
  0x2e   :  { %s15082_s13 = sld [smem:[%s17551_s0 + %s14915_s15]]   ;;  %s14919_s15 = smov 27  }
  0x2f   :  { %s15087_s27 = sld [smem:[%s17551_s0 + %s14916_s22]]   ;;  %s14920_s22 = smov 28  }
  0x30   :  { %s15092_s4 = sld [smem:[%s17551_s0 + %s14917_s28]]   ;;  %s14921_s28 = smov 29  }
  0x31   :  { %s15097_s17 = sld [smem:[%s17551_s0 + %s14918_s7]]   ;;  %s14922_s7 = smov 30  }
  0x32   :  { %s15107_s20 = sld [smem:[%s17551_s0 + %s14920_s22]]   ;;  %s14924_s22 = smov 32  }
  0x33   :  { %s15112_s24 = sld [smem:[%s17551_s0 + %s14921_s28]]   ;;  %s14925_s28 = smov 33  }
  0x34   :  { %17647 = sst [smem:[#allocation40_spill]] %s15082_s13 }
  0x35   :  { %17648 = sst [smem:[#allocation41_spill]] %s15087_s27 }
  0x36   :  { %17649 = sst [smem:[#allocation42_spill]] %s15092_s4 }
  0x37   :  { %17650 = sst [smem:[#allocation43_spill]] %s15097_s17 }
  0x38   :  { %s15102_s13 = sld [smem:[%s17551_s0 + %s14919_s15]]   ;;  %s14923_s15 = smov 31  }
  0x39   :  { %17652 = sst [smem:[#allocation45_spill]] %s15107_s20 }
  0x3a   :  { %17653 = sst [smem:[#allocation46_spill]] %s15112_s24 }
  0x3b   :  { %s15117_s17 = sld [smem:[%s17551_s0 + %s14922_s7]]   ;;  %s14926_s7 = smov 34  }
  0x3c   :  { %s15127_s20 = sld [smem:[%s17551_s0 + %s14924_s22]]   ;;  %s14928_s22 = smov 36  }
  0x3d   :  { %s15132_s24 = sld [smem:[%s17551_s0 + %s14925_s28]]   ;;  %s14929_s28 = smov 37  }
  0x3e   :  { %17651 = sst [smem:[#allocation44_spill]] %s15102_s13 }
  0x3f   :  { %s15122_s13 = sld [smem:[%s17551_s0 + %s14923_s15]]   ;;  %s14927_s15 = smov 35  }
  0x41   :  { %17654 = sst [smem:[#allocation47_spill]] %s15117_s17 }
  0x42   :  { %17656 = sst [smem:[#allocation49_spill]] %s15127_s20 }
  0x43   :  { %17657 = sst [smem:[#allocation50_spill]] %s15132_s24 }
  0x44   :  { %s15137_s17 = sld [smem:[%s17551_s0 + %s14926_s7]]   ;;  %s14930_s7 = smov 38  }
  0x45   :  { %17655 = sst [smem:[#allocation48_spill]] %s15122_s13 }
  0x46   :  { %s15142_s13 = sld [smem:[%s17551_s0 + %s14927_s15]]   ;;  %s14931_s15 = smov 39  }
  0x47   :  { %s15147_s20 = sld [smem:[%s17551_s0 + %s14928_s22]]   ;;  %s14932_s22 = smov 40  }
  0x48   :  { %s15152_s24 = sld [smem:[%s17551_s0 + %s14929_s28]]   ;;  %s14933_s28 = smov 41  }
  0x49   :  { %s15172_s10 = sld [smem:[%s17551_s0 + %s14933_s28]]   ;;  %s14937_s28 = smov 45  }
  0x4a   :  { %17658 = sst [smem:[#allocation51_spill]] %s15137_s17 }
  0x4b   :  { %s15157_s17 = sld [smem:[%s17551_s0 + %s14930_s7]]   ;;  %s14934_s7 = smov 42  }
  0x4c   :  { %17659 = sst [smem:[#allocation52_spill]] %s15142_s13 }
  0x4d   :  { %17660 = sst [smem:[#allocation53_spill]] %s15147_s20 }
  0x4e   :  { %17661 = sst [smem:[#allocation54_spill]] %s15152_s24 }
  0x4f   :  { %s15162_s13 = sld [smem:[%s17551_s0 + %s14931_s15]]   ;;  %s14935_s15 = smov 43  }
  0x50   :  { %s15167_s20 = sld [smem:[%s17551_s0 + %s14932_s22]]   ;;  %s14936_s22 = smov 44  }
  0x51   :  { %17662 = sst [smem:[#allocation55_spill]] %s15157_s17  ;;  %s14938_s17 = smov 46  }
  0x52   :  { %17665 = sst [smem:[#allocation58_spill]] %s15172_s10 }
  0x53   :  { %s15177_s16 = sld [smem:[%s17551_s0 + %s14934_s7]]  }
  0x54   :  { %s15182_s23 = sld [smem:[%s17551_s0 + %s14935_s15]]  }
  0x55   :  { %17663 = sst [smem:[#allocation56_spill]] %s15162_s13  ;;  %s14939_s13 = smov 47  }
  0x56   :  { %17664 = sst [smem:[#allocation57_spill]] %s15167_s20  ;;  %s14940_s20 = smov 48  }
  0x57   :  { %s15187_s1 = sld [smem:[%s17551_s0 + %s14936_s22]]  }
  0x58   :  { %s15192_s24 = sld [smem:[%s17551_s0 + %s14937_s28]]  }
  0x59   :  { %17666 = sst [smem:[#allocation59_spill]] %s15177_s16 }
  0x5a   :  { %17667 = sst [smem:[#allocation60_spill]] %s15182_s23 }
  0x5b   :  { %s15197_s16 = sld [smem:[%s17551_s0 + %s14938_s17]]  }
  0x5c   :  { %s15202_s23 = sld [smem:[%s17551_s0 + %s14939_s13]]  }
  0x5d   :  { %17668 = sst [smem:[#allocation61_spill]] %s15187_s1 }
  0x5e   :  { %17669 = sst [smem:[#allocation62_spill]] %s15192_s24 }
  0x5f   :  { %s15207_s1 = sld [smem:[%s17551_s0 + %s14940_s20]]  }
  0x61   :  { %17670 = sst [smem:[#allocation63_spill]] %s15197_s16 }
  0x62   :  { %103 = vsyncpa [#allocation4], 0 }
  0x63   :  { %104 = vsyncpa [#allocation7], 0 }
  0x64   :  { %105 = vsyncpa [#allocation10], 0 }
  0x65   :  { %106 = vsyncpa [#allocation13], 0 }
  0x66   :  { %107 = vsyncpa [#allocation5], 0 }
  0x67   :  { %109 = vsyncpa [#allocation5 + $0x1], 0  ;;  %s15210_s10 = smov 0   ;;  %s15212_s28 = smov 0  }
  0x68   :  { %s15214_s2 = smov 0   ;;  %s15216_s17 = smov 0  }
  0x69 LB: > { %s17671_s27 = sld [smem:[#allocation41_spill]]  ;;  %s17672_s24 = sld [smem:[#allocation62_spill]]  ;;  %s14887_s2 = sphi %s15214_s2, %s17745_s2   ;;  %s14883_s28 = sphi %s15212_s28, %s17747_s28   ;;  %s14879_s10 = sphi %s15210_s10, %s17746_s10   ;;  %s14891_s17 = sphi %s15216_s17, %s17743_s17  }
  0x6a   : > { %s17673_s21 = sld [smem:[#allocation23_spill]]  ;;  %s17674_s19 = sld [smem:[#allocation28_spill]] }
  0x6b   : > { %s17675_s16 = sld [smem:[#allocation63_spill]]  ;;  %s17676_s14 = sld [smem:[#allocation27_spill]] }
  0x6c   : > { %s17677_s12 = sld [smem:[#allocation31_spill]]  ;;  %s17678_s6 = sld [smem:[#allocation30_spill]] }
  0x6d   : > { %s17679_s8 = sld [smem:[#allocation26_spill]]  ;;  %s17681_s3 = sld [smem:[#allocation25_spill]] }
  0x6e   : > { %s17680_s4 = sld [smem:[#allocation42_spill]]  ;;  %17682 = sst [smem:[#allocation64_spill]] %s14887_s2 }
  0x6f   : > { %s15231_s0 = sadd.s32 4294967295, %s14891_s17   ;;  %s12826_s5 = sadd.s32 4294967294, %s14891_s17  }
  0x70   : > { %s15235_s7 = sadd.s32 1, %s14891_s17   ;;  %s1135_s11 = sadd.s32 1, %s14887_s2 }
  0x71   : > { %17683 = sst [smem:[#allocation65_spill]] %s15235_s7  ;;  %s1132_s13 = ssub.s32 %s14891_s17, %s15235_s7 }
  0x72   : > { %p1145_p0 = scmp.ne.s32.totalorder %s14887_s2, %s14883_s28  ;;  %p1133_p1 = scmp.eq.s32.totalorder %s1132_s13, 0 }
  0x73   : > { %p1146_p2 = scmp.eq.s32.totalorder %s15231_s0, 1  ;;  %p1151_p3 = scmp.ne.s32.totalorder %s14883_s28, %s14879_s10 }
  0x74   : > { %p1152_p4 = scmp.eq.s32.totalorder %s12826_s5, 1  ;;  %p12827_p7 = scmp.ge.s32.totalorder %s14891_s17, 1 }
  0x75   : > { %s15246_s15 = scalar_select %p1133_p1, %s14887_s2, %s1135_s11  }
  0x76   : > { %p15248_p5 = por %p1146_p2, %p1145_p0  ;;  %p15252_p6 = por %p1152_p4, %p1151_p3 }
  0x77   : > { %17684 = sst [smem:[#allocation66_spill]] %s15246_s15  ;;  %p1159_p8 = scmp.lt.s32.totalorder %s14891_s17, 3 }
  0x78   : > { %s17685_s18 = scalar_select %p15248_p5, 1, 0 }
  0x79   : > { %s17686_s20 = scalar_select %p15252_p6, 1, 0 }
  0x7a   : > { %p17585_p9 = scmp.eq.s32.totalorder %s15231_s0, 0  ;;  %p15259_p10 = pnand %p12827_p7, %p1159_p8 }
  0x7b   : > { %17687 = sst [smem:[#allocation67_spill]] %s17686_s20  ;;  %s14941_s26 = smov [#allocation6]  }
  0x7c   : > { %s17688_s22 = scalar_select %p15259_p10, 1, 0 }
  0x7d   : > { %s1198_s5 = sshll.u32 %s14941_s26, 4  ;;  %p14193_p11 = pneg %p15259_p10  ;;  %s1199_s5 = int_to_ptr.vmem [resolvable:$true] %s1198_s5 }
  0x7e   : > { %s14942_s11 = smov [#allocation9]   ;;  %s14943_s2 = smov [#allocation3]  }
  0x7f   : > { %s1268_s13 = sshll.u32 %s14942_s11, 4  ;;  %p15267_p12 = pnand %p17585_p9, %p14193_p11  ;;  %s15271_s13 = int_to_ptr.vmem [resolvable:$true] %s1268_s13 }
  0x80   : > { %s1187_s7 = sshll.u32 %s14943_s2, 4  ;;  %s14645_s20 = scalar_lea.hbm %s17681_s3, 16  ;;  %s15273_s7 = int_to_ptr.vmem [resolvable:$true] %s1187_s7 }
  0x81   : > { %p14646_p13 = scmp.ne.s32.totalorder %s17681_s3, %s14645_s20  ;;  %p15279_p0 = pneg %p15267_p12 }
  0x82   : > { %p14652_p3 = scmp.lt.u32.totalorder %s14645_s20, %s17681_s3 }
  0x83   : > { %p14648_p1 = pnand %p15279_p0, %p14646_p13 }
  0x85   : > { %p14649_p2 = pneg %p14648_p1 }
  0x87   : > { %p14654_p4 = pnand %p14652_p3, %p14649_p2 }
  0x89   : > { %14657 = shalt.err (!%p14654_p4)
}
  0x8a   : > { %s14658_s11 = scalar_lea.vmem %s1199_s5, 16  ;;  %s14665_s2 = scalar_lea.vmem %s1199_s5, 32 }
  0x8b   : > { %p14659_p7 = scmp.ne.s32.totalorder %s1199_s5, %s14658_s11  ;;  %p14666_p9 = scmp.lt.s32.totalorder %s1199_s5, %s1199_s5 }
  0x8c   : > { %p14667_p6 = scmp.lt.s32.totalorder %s14665_s2, %s14658_s11 }
  0x8d   : > { %p14661_p8 = pnand %p14659_p7, %p15279_p0 }
  0x8e   : > { %p14668_p5 = por %p14667_p6, %p14666_p9 }
  0x8f   : > { %p14662_p11 = pneg %p14661_p8 }
  0x91   : > { %p14669_p10 = pnand %p14668_p5, %p14662_p11 }
  0x93   : > { %14672 = shalt.err (!%p14669_p10)
}
  0x94   : > { %14199 = dma.hbm_to_vmem [thread:$0]  (!%p15267_p12), %s17681_s3, 16, %s1199_s5, [#allocation7]  }
  0x95   : > { %s14673_s20 = scalar_lea.hbm %s17680_s4, 16 }
  0x96   : > { %p14674_p13 = scmp.ne.s32.totalorder %s17680_s4, %s14673_s20  ;;  %p14680_p3 = scmp.lt.u32.totalorder %s14673_s20, %s17680_s4 }
  0x98   : > { %p14676_p1 = pnand %p14674_p13, %p15279_p0 }
  0x9a   : > { %p14677_p2 = pneg %p14676_p1 }
  0x9c   : > { %p14682_p4 = pnand %p14680_p3, %p14677_p2 }
  0x9e   : > { %14685 = shalt.err (!%p14682_p4)
}
  0x9f   : > { %s14686_s11 = scalar_lea.vmem %s15271_s13, 16  ;;  %s14693_s2 = scalar_lea.vmem %s15271_s13, 32 }
  0xa0   : > { %p14687_p5 = scmp.ne.s32.totalorder %s15271_s13, %s14686_s11  ;;  %p14694_p10 = scmp.lt.s32.totalorder %s15271_s13, %s15271_s13 }
  0xa1   : > { %p14695_p7 = scmp.lt.s32.totalorder %s14693_s2, %s14686_s11 }
  0xa2   : > { %p14689_p6 = pnand %p14687_p5, %p15279_p0 }
  0xa3   : > { %p14696_p8 = por %p14695_p7, %p14694_p10 }
  0xa4   : > { %p14690_p9 = pneg %p14689_p6 }
  0xa6   : > { %p14697_p11 = pnand %p14696_p8, %p14690_p9 }
  0xa8   : > { %14700 = shalt.err (!%p14697_p11)
}
  0xa9   : > { %14205 = dma.hbm_to_vmem [thread:$0]  (!%p15267_p12), %s17680_s4, 16, %s15271_s13, [#allocation10]  }
  0xaa   : > { %s14701_s5 = scalar_lea.hbm %s14997_s29, 16 }
  0xab   : > { %p14702_p13 = scmp.ne.s32.totalorder %s14997_s29, %s14701_s5  ;;  %p14708_p3 = scmp.lt.u32.totalorder %s14701_s5, %s14997_s29 }
  0xad   : > { %p14704_p1 = pnand %p14702_p13, %p15279_p0 }
  0xaf   : > { %p14705_p2 = pneg %p14704_p1 }
  0xb1   : > { %p14710_p4 = pnand %p14708_p3, %p14705_p2 }
  0xb3   : > { %14713 = shalt.err (!%p14710_p4)
}
  0xb4   : > { %s14714_s20 = scalar_lea.vmem %s15273_s7, 16  ;;  %s14721_s11 = scalar_lea.vmem %s15273_s7, 32 }
  0xb5   : > { %p14715_p5 = scmp.ne.s32.totalorder %s15273_s7, %s14714_s20  ;;  %p14722_p10 = scmp.lt.s32.totalorder %s15273_s7, %s15273_s7 }
  0xb6   : > { %p14723_p7 = scmp.lt.s32.totalorder %s14721_s11, %s14714_s20 }
  0xb7   : > { %p14717_p6 = pnand %p14715_p5, %p15279_p0 }
  0xb8   : > { %p14724_p8 = por %p14723_p7, %p14722_p10 }
  0xb9   : > { %p14718_p9 = pneg %p14717_p6 }
  0xbb   : > { %p14725_p11 = pnand %p14724_p8, %p14718_p9 }
  0xbd   : > { %14728 = shalt.err (!%p14725_p11)
}
  0xbe   : > { %14196 = dma.hbm_to_vmem [thread:$0]  (!%p15267_p12), %s14997_s29, 16, %s15273_s7, [#allocation4]  }
  0xbf   : > { %s14944_s13 = smov [#allocation8]   ;;  %s14945_s5 = smov [#allocation11]  }
  0xc0   : > { %s1257_s2 = sshll.u32 %s14944_s13, 4  ;;  %s1336_s3 = sshll.u32 %s14945_s5, 4  ;;  %s1258_s2 = int_to_ptr.vmem [resolvable:$true] %s1257_s2  ;;  %s1337_s3 = int_to_ptr.vmem [resolvable:$true] %s1336_s3 }
  0xc1   : > { %s14729_s4 = scalar_lea.hbm %s17671_s27, 16 }
  0xc2   : > { %p14730_p13 = scmp.ne.s32.totalorder %s17671_s27, %s14729_s4  ;;  %p14736_p3 = scmp.lt.u32.totalorder %s14729_s4, %s17671_s27 }
  0xc4   : > { %p14732_p1 = pnand %p14730_p13, %p15279_p0 }
  0xc6   : > { %p14733_p2 = pneg %p14732_p1 }
  0xc8   : > { %p14738_p4 = pnand %p14736_p3, %p14733_p2 }
  0xca   : > { %14741 = shalt.err (!%p14738_p4)
}
  0xcb   : > { %s14742_s20 = scalar_lea.vmem %s1258_s2, 16  ;;  %s14749_s7 = scalar_lea.vmem %s1258_s2, 32 }
  0xcc   : > { %p14743_p5 = scmp.ne.s32.totalorder %s1258_s2, %s14742_s20  ;;  %p14750_p10 = scmp.lt.s32.totalorder %s1258_s2, %s1258_s2 }
  0xcd   : > { %p14751_p7 = scmp.lt.s32.totalorder %s14749_s7, %s14742_s20 }
  0xce   : > { %p14745_p6 = pnand %p14743_p5, %p15279_p0 }
  0xcf   : > { %p14752_p8 = por %p14751_p7, %p14750_p10 }
  0xd0   : > { %p14746_p9 = pneg %p14745_p6 }
  0xd2   : > { %p14753_p11 = pnand %p14752_p8, %p14746_p9 }
  0xd4   : > { %14756 = shalt.err (!%p14753_p11)
}
  0xd5   : > { %14202 = dma.hbm_to_vmem [thread:$0]  (!%p15267_p12), %s17671_s27, 16, %s1258_s2, [#allocation7]  }
  0xd6   : > { %s14757_s4 = scalar_lea.hbm %s17672_s24, 16 }
  0xd7   : > { %p14758_p13 = scmp.ne.s32.totalorder %s17672_s24, %s14757_s4  ;;  %p14764_p3 = scmp.lt.u32.totalorder %s14757_s4, %s17672_s24 }
  0xd9   : > { %p14760_p1 = pnand %p14758_p13, %p15279_p0 }
  0xdb   : > { %p14761_p2 = pneg %p14760_p1 }
  0xdd   : > { %p14766_p4 = pnand %p14764_p3, %p14761_p2 }
  0xdf   : > { %14769 = shalt.err (!%p14766_p4)
}
  0xe0   : > { %s14770_s11 = scalar_lea.vmem %s1337_s3, 16  ;;  %s14777_s13 = scalar_lea.vmem %s1337_s3, 32 }
  0xe1   : > { %p14771_p5 = scmp.ne.s32.totalorder %s1337_s3, %s14770_s11  ;;  %p14778_p10 = scmp.lt.s32.totalorder %s1337_s3, %s1337_s3 }
  0xe2   : > { %p14779_p7 = scmp.lt.s32.totalorder %s14777_s13, %s14770_s11 }
  0xe3   : > { %p14773_p6 = pnand %p14771_p5, %p15279_p0 }
  0xe4   : > { %p14780_p8 = por %p14779_p7, %p14778_p10 }
  0xe5   : > { %p14774_p9 = pneg %p14773_p6 }
  0xe7   : > { %p14781_p11 = pnand %p14780_p8, %p14774_p9 }
  0xe9   : > { %14784 = shalt.err (!%p14781_p11)
}
  0xea   : > { %14208 = dma.hbm_to_vmem [thread:$0]  (!%p15267_p12), %s17672_s24, 16, %s1337_s3, [#allocation10]  }
  0xeb   : > { %s14946_s2 = smov [#allocation12]   ;;  %s14785_s20 = scalar_lea.hbm %s17675_s16, 16 }
  0xec   : > { %s1347_s5 = sshll.u32 %s14946_s2, 4  ;;  %p14786_p13 = scmp.ne.s32.totalorder %s17675_s16, %s14785_s20  ;;  %s1348_s5 = int_to_ptr.vmem [resolvable:$true] %s1347_s5 }
  0xed   : > { %p14792_p3 = scmp.lt.u32.totalorder %s14785_s20, %s17675_s16 }
  0xee   : > { %p14788_p1 = pnand %p14786_p13, %p15279_p0 }
  0xf0   : > { %p14789_p2 = pneg %p14788_p1 }
  0xf2   : > { %p14794_p4 = pnand %p14792_p3, %p14789_p2 }
  0xf4   : > { %14797 = shalt.err (!%p14794_p4)
}
  0xf5   : > { %s14798_s7 = scalar_lea.vmem %s1348_s5, 16  ;;  %s14805_s4 = scalar_lea.vmem %s1348_s5, 32 }
  0xf6   : > { %p14799_p5 = scmp.ne.s32.totalorder %s1348_s5, %s14798_s7  ;;  %p14806_p10 = scmp.lt.s32.totalorder %s1348_s5, %s1348_s5 }
  0xf7   : > { %p14807_p7 = scmp.lt.s32.totalorder %s14805_s4, %s14798_s7 }
  0xf8   : > { %p14801_p6 = pnand %p14799_p5, %p15279_p0 }
  0xf9   : > { %p14808_p8 = por %p14807_p7, %p14806_p10 }
  0xfa   : > { %p14802_p9 = pneg %p14801_p6 }
  0xfc   : > { %p14809_p11 = pnand %p14808_p8, %p14802_p9 }
  0xfe   : > { %14812 = shalt.err (!%p14809_p11)
}
  0xff   : > { %14211 = dma.hbm_to_vmem [thread:$0]  (!%p15267_p12), %s17675_s16, 16, %s1348_s5, [#allocation13]  }
 0x100   : > { %p17691_p13 = scmp.ne.s32.totalorder %s17688_s22, 0 }
 0x101   : > { %p17692_p1 = scmp.eq.s32.totalorder (!%p17691_p13), %s15231_s0, 0 }
 0x102   : > { %1371 = sbr.rel (%p17691_p13) target bundleno = 13167 (0x336f), region = 212 }
 0x109   : > { %14858 = dma.done.wait (%p17692_p1), [#allocation4], 16   ;;  %p17693_p2 = pmov %p17692_p1 }
 0x10a   : > { %p17694_p0 = pmov %p17692_p1 }
 0x10b   : > { %14860 = vsyncadd (%p17693_p2), [#allocation4], 4294967280 }
 0x10c   : > { %14862 = dma.done.wait (%p17694_p0), [#allocation7], 32   ;;  %p17695_p3 = pmov %p17694_p0 }
 0x10d   : > { %p17696_p4 = pmov %p17694_p0 }
 0x10e   : > { %14864 = vsyncadd (%p17695_p3), [#allocation7], 4294967264 }
 0x10f   : > { %14866 = dma.done.wait (%p17696_p4), [#allocation10], 32   ;;  %p17697_p12 = pmov %p17694_p0 }
 0x110   : > { %p17698_p5 = pmov %p17694_p0 }
 0x111   : > { %14868 = vsyncadd (%p17697_p12), [#allocation10], 4294967264 }
 0x112   : > { %14870 = dma.done.wait (%p17698_p5), [#allocation13], 16   ;;  %p17699_p6 = pmov %p17694_p0 }
 0x113   : > { %s17700_s9 = sld [smem:[#allocation20_spill]]  ;;  %v14947_v0 = vmov 0   ;;  %p1504_p9 = scmp.lt.s32.totalorder %s15231_s0, 1  ;;  %v14356_v1 = vld [vmem:[%s17673_s21] sm:$0xff]   ;;  %v14357_v2 = vld [vmem:[%s17673_s21 + $0x8] sm:$0xff]   ;;  %v14358_v3 = vld [vmem:[%s17673_s21 + $0x10] sm:$0xff]  }
 0x114   : > { %14872 = vsyncadd (%p17699_p6), [#allocation13], 4294967280  ;;  %1628 = vmatprep.subr.bf16.mxu0 %v14947_v0  ;;  %v14359_v4 = vld [vmem:[%s17673_s21 + $0x18] sm:$0xff]   ;;  %vm1622_vm0 = vcmask 1040384   ;;  %vm1618_vm1 = vcmask 531456   ;;  %v14360_v6 = vld [vmem:[%s17673_s21 + $0x20] sm:$0xff]  }
 0x115   : > { %1629 = vmatpush1.bf16.msra.mxu0 %v14356_v1  ;;  %s1505_s3 = scalar_select %p1504_p9, %s15231_s0, 1  ;;  %v1624_v7 = vsel %vm1622_vm0, 65535, %v14947_v0  ;;  %v14361_v9 = vld [vmem:[%s17673_s21 + $0x28] sm:$0xff]   ;;  %v14362_v10 = vld [vmem:[%s17673_s21 + $0x30] sm:$0xff]   ;;  %v14363_v11 = vld [vmem:[%s17673_s21 + $0x38] sm:$0xff]   ;;  %vm1670_vm2 = vcmask 261120  }
 0x116   : > { %1630 = vmatprep.subr.bf16.mxu0 %v14947_v0  ;;  %v14364_v12 = vld [vmem:[%s17673_s21 + $0x40] sm:$0xff]   ;;  %v14365_v13 = vld [vmem:[%s17673_s21 + $0x48] sm:$0xff]   ;;  %s17701_s25 = sld [smem:[#allocation24_spill]]  ;;  %v14366_v14 = vld [vmem:[%s17673_s21 + $0x50] sm:$0xff]   ;;  %v14948_v47 = vmov 0.0   ;;  %vm14949_vm3 = vmmov 0  }
 0x117   : > { %s13246_s15 = sshll.u32 %s1505_s3, 3  ;;  %v14367_v15 = vld [vmem:[%s17673_s21 + $0x58] sm:$0xff]   ;;  %v14368_v16 = vld [vmem:[%s17673_s21 + $0x60] ss:$0 sps:$4 sm:$0x11]   ;;  %13500 = vmatprep.subr.bf16.mxu1 %v14948_v47  ;;  %13504 = vmatprep.mubr.msk.bf16.mxu1 %vm14949_vm3, %v14948_v47  ;;  %v14372_v48 = vld [vmem:[%s17674_s19 + $0x8] sm:$0xff]  }
 0x118   : > { %v1626_v17 = vand.u32 %v14368_v16, %v1624_v7  ;;  %v12860_v35 = vld [vmem:[#allocation3] ss:$0 sm:$0xff]  ;;  %v12861_v37 = vld [vmem:[#allocation6] ss:$0 sm:$0xff]  ;;  %v14374_v60 = vld [vmem:[%s15027_s30 + $0x8] sm:$0xff]   ;;  %s17702_s26 = sld [smem:[#allocation29_spill]] }
 0x119   : > { %1631 = vmatpush1.bf16.msra.mxu0 %v14357_v2  ;;  %s1508_s22 = scalar_lea.vmem %s17700_s9, %s13246_s15  ;;  %v14371_v46 = vld [vmem:[%s17674_s19] sm:$0xff]   ;;  %v14376_v62 = vld [vmem:[%s17677_s12 + $0x8] sm:$0xff]   ;;  %s17600_s11 = smov 112   ;;  %v14953_v16 = vmov 1983009808   ;;  %vm2375_vm4 = vcmask 64512  }
 0x11a   : > { %1632 = vmatprep.subr.bf16.mxu0 %v14947_v0  ;;  %v1510_v5 = vld [vmem:[%s1508_s22] sm:$0xff]  ;;  %13501 = vmatpush3.bf16.msra.mxu1 %v14371_v46  ;;  %s17598_s13 = smov 120   ;;  %s17596_s2 = smov 104   ;;  %vm2611_vm6 = vcmask 1043456   ;;  %vm2942_vm7 = vcmask 130048   ;;  %vm2944_vm8 = vcmask 195584  }
 0x11b   : > { %v12845_v8 = vcombine.high %v1510_v5, %v1510_v5  ;;  %v12844_v18 = vcombine.low %v1510_v5, %v1510_v5  ;;  %13502 = vmatprep.subr.bf16.mxu1 %v14948_v47  ;;  %v12862_v53 = vld [vmem:[%s17679_s8] ss:$0 sm:$0xff]  ;;  %s17703_s5 = sld [smem:[#allocation32_spill]]  ;;  %s17704_s20 = sld [smem:[#allocation33_spill]]  ;;  %vm4777_vm9 = vcmask 253952   ;;  %vm4897_vm10 = vcmask 523264  }
 0x11c   : > { %v1536_v19 = vld [vmem:[%s17701_s25] sm:$0xff]  ;;  %s17594_s7 = smov 16   ;;  %s17592_s4 = smov 8   ;;  %vm12558_vm12 = vcmask 256000   ;;  %vm12648_vm13 = vcmask 16384  }
 0x11d   : > { %1633 = vmatpush1.bf16.msra.mxu0 %v14358_v3  ;;  %12859 = vmatprep.mubr.msk.bf16.mxu0 %vm1618_vm1, %v12845_v8  ;;  %v12863_v55 = vld [vmem:[%s17676_s14] ss:$0 sm:$0xff]  ;;  %s17705_s3 = sld [smem:[#allocation34_spill]]  ;;  %s17590_s15 = smov 24  }
 0x11e   : > { %1634 = vmatprep.subr.bf16.mxu0 %v14947_v0  ;;  %13503 = vmatpush3.bf16.msra.mxu1 %v14372_v48  ;;  %v14373_v58 = vld [vmem:[%s15027_s30] sm:$0xff]   ;;  %s17706_s22 = sld [smem:[#allocation37_spill]]  ;;  %s17715_s9 = smov 104  }
 0x11f   : > { %13508 = vmatprep.subr.bf16.mxu1 %v14948_v47  ;;  %v14375_v61 = vld [vmem:[%s17677_s12] sm:$0xff]   ;;  %s17730_s16 = sld [smem:[#allocation53_spill]]  ;;  %s17733_s21 = sld [smem:[#allocation58_spill]] }
 0x120   : > { %v12868_v3 = vld [vmem:[%s17678_s6] ss:$0 sm:$0xff]  ;;  %s17735_s24 = sld [smem:[#allocation57_spill]]  ;;  %s17736_s25 = sld [smem:[#allocation60_spill]] }
 0x121   : > { %1635 = vmatpush1.bf16.msra.mxu0 %v14359_v4  ;;  %v12864_v7 = vld [vmem:[%s17702_s26] ss:$0 sm:$0xff]  ;;  %s17738_s27 = sld [smem:[#allocation61_spill]]  ;;  %p17740_p7 = scmp.ne.s32.totalorder %s17685_s18, 0 }
 0x122   : > { %1636 = vmatprep.subr.bf16.mxu0 %v14947_v0 }
 0x125   : > { %1637 = vmatpush1.bf16.msra.mxu0 %v14360_v6 }
 0x126   : > { %1638 = vmatprep.subr.bf16.mxu0 %v14947_v0 }
 0x129   : > { %1639 = vmatpush1.bf16.msra.mxu0 %v14361_v9 }
 0x12a   : > { %1640 = vmatprep.subr.bf16.mxu0 %v14947_v0 }
 0x12d   : > { %1641 = vmatpush1.bf16.msra.mxu0 %v14362_v10 }
 0x12e   : > { %1642 = vmatprep.subr.bf16.mxu0 %v14947_v0 }
 0x131   : > { %1643 = vmatpush1.bf16.msra.mxu0 %v14363_v11 }
 0x132   : > { %1644 = vmatprep.subr.bf16.mxu0 %v14947_v0 }
 0x135   : > { %1645 = vmatpush1.bf16.msra.mxu0 %v14364_v12 }
 0x136   : > { %1646 = vmatprep.subr.bf16.mxu0 %v14947_v0 }
 0x139   : > { %1647 = vmatpush1.bf16.msra.mxu0 %v14365_v13 }
 0x13a   : > { %1648 = vmatprep.subr.bf16.mxu0 %v14947_v0 }
 0x13d   : > { %1649 = vmatpush1.bf16.msra.mxu0 %v14366_v14 }
 0x13e   : > { %1650 = vmatprep.subr.bf16.mxu0 %v14947_v0 }
 0x141   : > { %1651 = vmatpush1.bf16.msra.mxu0 %v14367_v15  ;;  %v1699_v15 = vlaneseq }
 0x142   : > { %1652 = vmatprep.subr.bf16.mxu0 %v14947_v0 }
 0x145   : > { %1653 = vmatpush1.bf16.msra.mxu0 %v1626_v17  ;;  %v1938_v17 = vunpack.c.l.s4 %v14953_v16 }
 0x146   : > { %13548 = vmatprep.subr.bf16.mxu0 %v14948_v47 }
 0x148   : > { %1661 = vmatmul.mubr.bf16.vlgmr.msra.gmra.mrb[0].mxu0 %v12844_v18  ;;  %v14954_v18 = vmov 1934713408  }
 0x149   : > { %13550 = vmatprep.mubr.msk.bf16.mxu0 %vm14949_vm3, %v14948_v47 }
 0x21b   : > { %v1662_v20 = vpop.f32.mrb[0].mxu0 }
 0x21c   : > { %v1663_v21 = vadd.f32 %v1662_v20, %v1536_v19  ;;  %v1664_v22 = vpop.f32.mrb[1].mxu0  ;;  %v1970_v19 = vunpack.c.l.s4 %v14954_v18  ;;  %v1939_v20 = vunpack.c.0.s8 %v1938_v17 }
 0x21d   : > { %v1665_v23 = vpop.f32.mrb[2].mxu0 }
 0x21e   : > { %v1666_v24 = vpop.f32.mrb[3].mxu0  ;;  %v1671_v25 = vsel %vm1670_vm2, %v1663_v21, 0.0  ;;  %v1971_v23 = vunpack.c.0.s8 %v1970_v19 }
 0x21f   : > { %1672 = vadd.xlane.f32.xlu0 %v1671_v25 }
 0x2ac   : > { %v1673_v26 = vpop.xlane.xlu0 %1672 }
 0x2ad   : > { %v1675_v27 = vmul.f32 0.03125, %v1673_v26 }
 0x2af   : > { %v1676_v28 = vsub.f32 %v1663_v21, %v1675_v27  ;;  %v15436_v21 = vshrl.u32 %v1699_v15, 7 }
 0x2b1   : > { %v1677_v29 = vmul.f32 %v1676_v28, %v1676_v28  ;;  %v15439_v24 = vsub.s32 %v1939_v20, %v15436_v21 }
 0x2b3   : > { %v1678_v30 = vsel %vm1670_vm2, %v1677_v29, 0.0 }
 0x2b4   : > { %1679 = vadd.xlane.f32.xlu0 %v1678_v30 }
 0x341   : > { %v1680_v31 = vpop.xlane.xlu0 %1679 }
 0x342   : > { %v1681_v32 = vmul.f32 0.03125, %v1680_v31  ;;  %v15442_v31 = vsub.s32 %v1971_v23, %v15436_v21 }
 0x344   : > { %v1682_v33 = vadd.f32 1e-05, %v1681_v32 }
 0x346   : > { %14453 = vrsqrt.f32 %v1682_v33 }
 0x350   : > { %v14454_v34 = vpop.eup %14453 }
 0x351   : > { %v1684_v36 = vmul.f32 %v14454_v34, %v1676_v28 }
 0x353   : > { %v1691_v38 = vmul.f32 %v12860_v35, %v1684_v36 }
 0x355   : > { %v15390_v39 = vadd.f32 %v12861_v37, %v1691_v38 }
 0x357   : > { %v1705_v40 = vsel %vm1670_vm2, %v15390_v39, 0.0 }
 0x358   : > { %1706 = vadd.xlane.f32.xlu1 %v1705_v40 }
 0x3e5   : > { %v1707_v41 = vpop.xlane.xlu1 %1706 }
 0x3e6   : > { %v1708_v42 = vmul.f32 0.03125, %v1707_v41 }
 0x3e8   : > { %v1709_v43 = vsub.f32 %v15390_v39, %v1708_v42 }
 0x3ea   : > { %v1710_v44 = vmul.f32 %v1709_v43, %v1709_v43 }
 0x3ec   : > { %v1711_v45 = vsel %vm1670_vm2, %v1710_v44, 0.0 }
 0x3ed   : > { %1712 = vadd.xlane.f32.xlu1 %v1711_v45 }
 0x47a   : > { %v1713_v49 = vpop.xlane.xlu1 %1712 }
 0x47b   : > { %v1714_v50 = vmul.f32 0.03125, %v1713_v49 }
 0x47d   : > { %v1715_v51 = vadd.f32 1e-05, %v1714_v50 }
 0x47f   : > { %14455 = vrsqrt.f32 %v1715_v51 }
 0x489   : > { %v14456_v52 = vpop.eup %14455 }
 0x48a   : > { %v1717_v54 = vmul.f32 %v14456_v52, %v1709_v43 }
 0x48c   : > { %v1724_v56 = vmul.f32 %v12862_v53, %v1717_v54 }
 0x48e   : > { %v1731_v57 = vadd.f32 %v12863_v55, %v1724_v56 }
 0x490   : > { %v1732_v59 = vpack.c.bf16 %v1731_v57, %v1731_v57 }
 0x492   : > { %13505 = vmatmul.mubr.msk.bf16.vlgmr.msra.gmra.mrb[0].mxu1 %vm1670_vm2, %v1732_v59 }
 0x493   : > { %13509 = vmatpush3.bf16.msra.mxu1 %v14373_v58  ;;  %13512 = vmatprep.mubr.msk.bf16.mxu1 %vm14949_vm3, %v14948_v47 }
 0x494   : > { %13510 = vmatprep.subr.bf16.mxu1 %v14948_v47 }
 0x497   : > { %13511 = vmatpush3.bf16.msra.mxu1 %v14374_v60 }
 0x498   : > { %13516 = vmatprep.subr.bf16.mxu1 %v14948_v47 }
 0x49a   : > { %13513 = vmatmul.mubr.msk.bf16.vlgmr.msra.gmra.mrb[4].mxu1 %vm1670_vm2, %v1732_v59 }
 0x49b   : > { %13517 = vmatpush3.bf16.msra.mxu1 %v14375_v61  ;;  %13520 = vmatprep.mubr.msk.bf16.mxu1 %vm14949_vm3, %v14948_v47 }
 0x49c   : > { %13518 = vmatprep.subr.bf16.mxu1 %v14948_v47 }
 0x49f   : > { %13519 = vmatpush3.bf16.msra.mxu1 %v14376_v62 }
 0x4a0   : > { %13524 = vmatprep.subr.bf16.mxu1 %v14948_v47 }
 0x4a2   : > { %13521 = vmatmul.mubr.msk.bf16.vlgmr.msra.gmra.mrb[8].mxu1 %vm1670_vm2, %v1732_v59 }
 0x4a3   : > { %13526 = vmatprep.mubr.msk.bf16.mxu1 %vm14949_vm3, %v14948_v47 }
 0x565   : > { %v1793_v63 = vpop.f32.mrb[0].mxu1 }
 0x566   : > { %v13506_v0 = vpop.f32.mrb[1].mxu1  ;;  %v1794_v10 = vadd.f32 %v12864_v7, %v1793_v63 }
 0x567   : > { %v1796_v1 = vpop.f32.mrb[2].mxu1 }
 0x568   : > { %v13507_v2 = vpop.f32.mrb[3].mxu1 }
 0x56d   : > { %v1856_v4 = vpop.f32.mrb[4].mxu1 }
 0x56e   : > { %v1857_v5 = vadd.f32 %v12868_v3, %v1856_v4  ;;  %v13514_v6 = vpop.f32.mrb[5].mxu1 }
 0x56f   : > { %v1859_v8 = vpop.f32.mrb[6].mxu1 }
 0x570   : > { %2079 = vrot.lane.b32.xlu1 %v1857_v5, %s17600_s11  ;;  %2076 = vrot.lane.b32.xlu0 %v1857_v5, %s17598_s13  ;;  %v13515_v9 = vpop.f32.mrb[7].mxu1 }
 0x574   : > { %2082 = vrot.lane.b32.xlu1 %v1857_v5, %s17596_s2  ;;  %1929 = vrot.lane.b32.xlu0 %v1794_v10, %s17600_s11 }
 0x575   : > { %v15431_v11 = vpop.f32.mrb[8].mxu1 }
 0x576   : > { %v13522_v12 = vpop.f32.mrb[9].mxu1 }
 0x577   : > { %v1922_v13 = vpop.f32.mrb[10].mxu1 }
 0x578   : > { %1926 = vrot.lane.b32.xlu1 %v1794_v10, %s17598_s13  ;;  %v13523_v14 = vpop.f32.mrb[11].mxu1 }
 0x57c   : > { %1932 = vrot.lane.b32.xlu1 %v1794_v10, %s17596_s2 }
 0x5e2   : > { %v2080_v22 = vpop.permute.xlu1 %2079  ;;  %v2077_v27 = vpop.permute.xlu0 %2076 }
 0x5e3   : > { %v2085_v25 = vcombine.low %v1857_v5, %v2080_v22  ;;  %v2086_v26 = vcombine.high %v1857_v5, %v2080_v22 }
 0x5e5   : > { %v2093_v32 = vrot.slane %v2085_v25, %v15439_v24  ;;  %v2100_v33 = vrot.slane %v2086_v26, %v15439_v24 }
 0x5e6   : > { %v2083_v28 = vpop.permute.xlu1 %2082  ;;  %v1930_v42 = vpop.permute.xlu0 %1929 }
 0x5e7   : > { %v2101_v29 = vcombine.low %v2077_v27, %v2083_v28  ;;  %v2102_v30 = vcombine.high %v2077_v27, %v2083_v28  ;;  %v1935_v48 = vcombine.low %v1794_v10, %v1930_v42  ;;  %v1936_v49 = vcombine.high %v1794_v10, %v1930_v42 }
 0x5e9   : > { %v2109_v34 = vrot.slane %v2101_v29, %v15439_v24  ;;  %v2116_v35 = vrot.slane %v2102_v30, %v15439_v24  ;;  %v1943_v61 = vrot.slane %v1935_v48, %v15439_v24  ;;  %v1950_v62 = vrot.slane %v1936_v49, %v15439_v24 }
 0x5ea   : > { %v1927_v36 = vpop.permute.xlu1 %1926 }
 0x5eb   : > { %v2117_v37 = vcombine.low %v2093_v32, %v2109_v34  ;;  %v2118_v38 = vcombine.high %v2093_v32, %v2109_v34  ;;  %v2133_v40 = vcombine.low %v2100_v33, %v2116_v35  ;;  %v2134_v41 = vcombine.high %v2100_v33, %v2116_v35 }
 0x5ed   : > { %v2125_v43 = vrot.slane %v2117_v37, %v15442_v31  ;;  %v2132_v44 = vrot.slane %v2118_v38, %v15442_v31  ;;  %v2141_v45 = vrot.slane %v2133_v40, %v15442_v31  ;;  %v2148_v46 = vrot.slane %v2134_v41, %v15442_v31 }
 0x5ee   : > { %v1933_v50 = vpop.permute.xlu1 %1932 }
 0x5ef   : > { %v2153_v51 = vcombine.low %v2125_v43, %v2132_v44  ;;  %v12878_v52 = vcombine.high %v2125_v43, %v2132_v44  ;;  %v2169_v53 = vcombine.low %v2141_v45, %v2148_v46  ;;  %v12879_v54 = vcombine.high %v2141_v45, %v2148_v46 }
 0x5f0   : > { %v1951_v55 = vcombine.low %v1927_v36, %v1933_v50  ;;  %v1952_v56 = vcombine.high %v1927_v36, %v1933_v50 }
 0x5f1   : > { %v2160_v57 = vrot.slane %v2153_v51, %v15439_v24  ;;  %v2168_v58 = vrot.slane %v12878_v52, %v15439_v24  ;;  %v2176_v59 = vrot.slane %v2169_v53, %v15439_v24  ;;  %v2184_v60 = vrot.slane %v12879_v54, %v15439_v24 }
 0x5f2   : > { %v1959_v63 = vrot.slane %v1951_v55, %v15439_v24  ;;  %v1966_v0 = vrot.slane %v1952_v56, %v15439_v24 }
 0x5f3   : > { %v2185_v1 = vcombine.low %v2160_v57, %v2168_v58  ;;  %v2201_v2 = vcombine.low %v2176_v59, %v2184_v60  ;;  %v2186_v28 = vcombine.high %v2160_v57, %v2168_v58  ;;  %v2202_v33 = vcombine.high %v2176_v59, %v2184_v60 }
 0x5f4   : > { %v1967_v3 = vcombine.low %v1943_v61, %v1959_v63  ;;  %v1968_v4 = vcombine.high %v1943_v61, %v1959_v63  ;;  %v1983_v5 = vcombine.low %v1950_v62, %v1966_v0  ;;  %v1984_v6 = vcombine.high %v1950_v62, %v1966_v0 }
 0x5f5   : > { %v2193_v7 = vrot.slane %v2185_v1, %v15442_v31  ;;  %v2209_v8 = vrot.slane %v2201_v2, %v15442_v31  ;;  %v2200_v38 = vrot.slane %v2186_v28, %v15442_v31  ;;  %v2216_v40 = vrot.slane %v2202_v33, %v15442_v31 }
 0x5f6   : > { %v1975_v9 = vrot.slane %v1967_v3, %v15442_v31  ;;  %v1982_v10 = vrot.slane %v1968_v4, %v15442_v31  ;;  %v1991_v12 = vrot.slane %v1983_v5, %v15442_v31  ;;  %v1998_v13 = vrot.slane %v1984_v6, %v15442_v31 }
 0x5f7   : > { %v2217_v14 = vcombine.low %v2193_v7, %v2209_v8  ;;  %v2218_v32 = vcombine.high %v2193_v7, %v2209_v8  ;;  %v2219_v43 = vcombine.low %v2200_v38, %v2216_v40  ;;  %v2220_v53 = vcombine.high %v2200_v38, %v2216_v40 }
 0x5f8   : > { %v2003_v16 = vcombine.low %v1975_v9, %v1982_v10  ;;  %v12876_v17 = vcombine.high %v1975_v9, %v1982_v10  ;;  %v2019_v18 = vcombine.low %v1991_v12, %v1998_v13  ;;  %v12877_v19 = vcombine.high %v1991_v12, %v1998_v13 }
 0x5f9   : > { %v2221_v20 = vpack.c.bf16 %v2217_v14, %v2217_v14  ;;  %v2222_v37 = vpack.c.bf16 %v2218_v32, %v2218_v32  ;;  %v2223_v48 = vpack.c.bf16 %v2219_v43, %v2219_v43  ;;  %v2224_v55 = vpack.c.bf16 %v2220_v53, %v2220_v53 }
 0x5fa   : > { %v2010_v22 = vrot.slane %v2003_v16, %v15439_v24  ;;  %v2018_v23 = vrot.slane %v12876_v17, %v15439_v24  ;;  %v2026_v25 = vrot.slane %v2019_v18, %v15439_v24  ;;  %v2034_v26 = vrot.slane %v12877_v19, %v15439_v24  ;;  %v12872_v17 = vld [vmem:[%s17703_s5] ss:$0 sm:$0xff] }
 0x5fb   : > { %v2380_v27 = vsel %vm2375_vm4, %v2221_v20, 0  ;;  %v2426_v42 = vsel %vm2375_vm4, %v2222_v37, 0  ;;  %v2472_v52 = vsel %vm2375_vm4, %v2223_v48, 0  ;;  %v2518_v57 = vsel %vm2375_vm4, %v2224_v55, 0 }
 0x5fc   : > { %v2035_v29 = vcombine.low %v2010_v22, %v2018_v23  ;;  %v2051_v30 = vcombine.low %v2026_v25, %v2034_v26  ;;  %13525 = vmatpush3.bf16.xpose.msra.mxu1 %v2380_v27  ;;  %v2036_v44 = vcombine.high %v2010_v22, %v2018_v23  ;;  %v2052_v45 = vcombine.high %v2026_v25, %v2034_v26 }
 0x5fd   : > { %13530 = vmatprep.subr.bf16.mxu1 %v14948_v47  ;;  %v15497_v60 = vand.u32 127, %v1699_v15  ;;  %v1920_v23 = vadd.f32 %v12872_v17, %v15431_v11 }
 0x5fe   : > { %v2043_v34 = vrot.slane %v2035_v29, %v15442_v31  ;;  %v2059_v35 = vrot.slane %v2051_v30, %v15442_v31  ;;  %v2050_v50 = vrot.slane %v2036_v44, %v15442_v31  ;;  %v2066_v51 = vrot.slane %v2052_v45, %v15442_v31 }
 0x5ff   : > { %vm1701_vm5 = vcmp.ge.s32.totalorder %v15497_v60, 5  ;;  %vm4954_vm11 = vcmp.gt.s32.totalorder %v15497_v60, %v15436_v21 }
 0x600   : > { %v2067_v36 = vcombine.low %v2043_v34, %v2059_v35  ;;  %v2068_v46 = vcombine.high %v2043_v34, %v2059_v35  ;;  %v2069_v54 = vcombine.low %v2050_v50, %v2066_v51  ;;  %v2070_v58 = vcombine.high %v2050_v50, %v2066_v51 }
 0x601   : > { %v15501_v61 = vsel %vm1701_vm5, -1e+09, %v14948_v47 }
 0x602   : > { %v2071_v41 = vpack.c.bf16 %v2067_v36, %v2067_v36  ;;  %v2072_v49 = vpack.c.bf16 %v2068_v46, %v2068_v46  ;;  %v2073_v56 = vpack.c.bf16 %v2069_v54, %v2069_v54  ;;  %v2074_v59 = vpack.c.bf16 %v2070_v58, %v2070_v58 }
 0x604   : > { %13527 = vmatmul.mubr.msk.bf16.vlgmr.msra.gmra.mrb[12].mxu1 %vm2375_vm4, %v2071_v41 }
 0x605   : > { %13531 = vmatpush3.bf16.xpose.msra.mxu1 %v2426_v42  ;;  %13532 = vmatprep.mubr.msk.bf16.mxu1 %vm14949_vm3, %v14948_v47 }
 0x606   : > { %13536 = vmatprep.subr.bf16.mxu1 %v14948_v47 }
 0x60c   : > { %13533 = vmatmul.mubr.msk.bf16.vlgmr.msra.gmra.mrb[16].mxu1 %vm2375_vm4, %v2072_v49 }
 0x60d   : > { %13537 = vmatpush3.bf16.xpose.msra.mxu1 %v2472_v52  ;;  %13538 = vmatprep.mubr.msk.bf16.mxu1 %vm14949_vm3, %v14948_v47 }
 0x60e   : > { %13542 = vmatprep.subr.bf16.mxu1 %v14948_v47 }
 0x614   : > { %13539 = vmatmul.mubr.msk.bf16.vlgmr.msra.gmra.mrb[20].mxu1 %vm2375_vm4, %v2073_v56 }
 0x615   : > { %13543 = vmatpush3.bf16.xpose.msra.mxu1 %v2518_v57  ;;  %13544 = vmatprep.mubr.msk.bf16.mxu1 %vm14949_vm3, %v14948_v47 }
 0x616   : > { %13554 = vmatprep.subr.bf16.mxu1 %v14948_v47 }
 0x61c   : > { %13545 = vmatmul.mubr.msk.bf16.vlgmr.msra.gmra.mrb[24].mxu1 %vm2375_vm4, %v2074_v59 }
 0x61d   : > { %13556 = vmatprep.mubr.msk.bf16.mxu1 %vm14949_vm3, %v14948_v47 }
 0x6d7   : > { %v2416_v62 = vpop.f32.mrb[12].mxu1 }
 0x6d8   : > { %v2417_v63 = vadd.f32 %v2416_v62, %v15501_v61  ;;  %v13528_v0 = vpop.f32.mrb[13].mxu1 }
 0x6d9   : > { %v2419_v1 = vpop.f32.mrb[14].mxu1 }
 0x6da   : > { %v13529_v2 = vpop.f32.mrb[15].mxu1  ;;  %v2560_v3 = vsel %vm2375_vm4, %v2417_v63, -inf }
 0x6db   : > { %2561 = vmax.xlane.f32.xlu0 %v2560_v3 }
 0x6df   : > { %v2462_v4 = vpop.f32.mrb[16].mxu1 }
 0x6e0   : > { %v2463_v5 = vadd.f32 %v2462_v4, %v15501_v61  ;;  %v13534_v15 = vpop.f32.mrb[17].mxu1 }
 0x6e1   : > { %v2465_v6 = vpop.f32.mrb[18].mxu1 }
 0x6e2   : > { %v13535_v7 = vpop.f32.mrb[19].mxu1  ;;  %v2563_v8 = vsel %vm2375_vm4, %v2463_v5, -inf }
 0x6e3   : > { %2564 = vmax.xlane.f32.xlu1 %v2563_v8 }
 0x6e7   : > { %v2508_v9 = vpop.f32.mrb[20].mxu1 }
 0x6e8   : > { %v2509_v10 = vadd.f32 %v2508_v9, %v15501_v61  ;;  %v13540_v12 = vpop.f32.mrb[21].mxu1 }
 0x6e9   : > { %v2511_v13 = vpop.f32.mrb[22].mxu1 }
 0x6ea   : > { %v13541_v14 = vpop.f32.mrb[23].mxu1  ;;  %v2566_v16 = vsel %vm2375_vm4, %v2509_v10, -inf }
 0x6eb   : > { %2567 = vmax.xlane.f32.xlu0 %v2566_v16 }
 0x6ef   : > { %v2554_v18 = vpop.f32.mrb[24].mxu1 }
 0x6f0   : > { %v2555_v19 = vadd.f32 %v2554_v18, %v15501_v61  ;;  %v13546_v20 = vpop.f32.mrb[25].mxu1 }
 0x6f1   : > { %v2557_v22 = vpop.f32.mrb[26].mxu1 }
 0x6f2   : > { %v13547_v25 = vpop.f32.mrb[27].mxu1  ;;  %v2569_v26 = vsel %vm2375_vm4, %v2555_v19, -inf }
 0x6f3   : > { %2570 = vmax.xlane.f32.xlu0 %v2569_v26 }
 0x6f4   : > { %2229 = vrot.lane.b32.xlu1 %v1920_v23, %s17600_s11  ;;  %s17712_s11 = sld [smem:[#allocation40_spill]] }
 0x768   : > { %v2562_v27 = vpop.xlane.xlu0 %2561 }
 0x769   : > { %v2572_v28 = vsub.f32 %v2417_v63, %v2562_v27 }
 0x76b   : > { %v2576_v29 = vmul.f32 1.442695, %v2572_v28 }
 0x76d   : > { %14457 = vpow2.f32 %v2576_v29 }
 0x770   : > { %v2565_v30 = vpop.xlane.xlu1 %2564 }
 0x771   : > { %v2573_v32 = vsub.f32 %v2463_v5, %v2565_v30 }
 0x773   : > { %v2578_v33 = vmul.f32 1.442695, %v2573_v32 }
 0x774   : > { %v2230_v49 = vpop.permute.xlu1 %2229 }
 0x775   : > { %14459 = vpow2.f32 %v2578_v33  ;;  %v2235_v52 = vcombine.low %v1920_v23, %v2230_v49  ;;  %v2236_v53 = vcombine.high %v1920_v23, %v2230_v49 }
 0x777   : > { %v15514_v34 = vpop.eup %14457  ;;  %v2243_v58 = vrot.slane %v2235_v52, %v15439_v24  ;;  %v2250_v59 = vrot.slane %v2236_v53, %v15439_v24 }
 0x778   : > { %v2584_v35 = vsel %vm2375_vm4, %v15514_v34, 0.0  ;;  %v2568_v37 = vpop.xlane.xlu0 %2567 }
 0x779   : > { %2585 = vadd.xlane.f32.xlu0 %v2584_v35  ;;  %v2574_v42 = vsub.f32 %v2509_v10, %v2568_v37 }
 0x77b   : > { %v2580_v43 = vmul.f32 1.442695, %v2574_v42 }
 0x77f   : > { %v15518_v11 = vpop.eup %14459 }
 0x780   : > { %v2587_v36 = vsel %vm2375_vm4, %v15518_v11, 0.0  ;;  %v2571_v38 = vpop.xlane.xlu0 %2570 }
 0x781   : > { %2588 = vadd.xlane.f32.xlu1 %v2587_v36  ;;  %v2575_v40 = vsub.f32 %v2555_v19, %v2571_v38 }
 0x783   : > { %v2582_v41 = vmul.f32 1.442695, %v2575_v40 }
 0x785   : > { %14461 = vpow2.f32 %v2582_v41 }
 0x786   : > { %14463 = vpow2.f32 %v2580_v43 }
 0x78f   : > { %2226 = vrot.lane.b32.xlu0 %v1920_v23, %s17598_s13  ;;  %v15524_v44 = vpop.eup %14461 }
 0x790   : > { %v2593_v45 = vsel %vm2375_vm4, %v15524_v44, 0.0  ;;  %v15528_v46 = vpop.eup %14463 }
 0x791   : > { %v2590_v48 = vsel %vm2375_vm4, %v15528_v46, 0.0 }
 0x792   : > { %2232 = vrot.lane.b32.xlu1 %v1920_v23, %s17596_s2  ;;  %s17710_s2 = sld [smem:[#allocation38_spill]] }
 0x798   : > { %s17711_s13 = smov %s17710_s2 }
 0x7ae   : > { %2594 = vadd.xlane.f32.xlu0 %v2593_v45 }
 0x7b6   : > { %2591 = vadd.xlane.f32.xlu1 %v2590_v48 }
 0x806   : > { %v2586_v50 = vpop.xlane.xlu0 %2585 }
 0x807   : > { %14465 = vrcp.f32 %v2586_v50 }
 0x80a   : > { %v2227_v54 = vpop.permute.xlu0 %2226 }
 0x80e   : > { %v2589_v51 = vpop.xlane.xlu1 %2588 }
 0x80f   : > { %14467 = vrcp.f32 %v2589_v51 }
 0x811   : > { %v14466_v22 = vpop.eup %14465 }
 0x812   : > { %v2233_v55 = vpop.permute.xlu1 %2232  ;;  %v2597_v37 = vmul.f32 %v14466_v22, %v15514_v34 }
 0x813   : > { %v2251_v56 = vcombine.low %v2227_v54, %v2233_v55  ;;  %v2252_v57 = vcombine.high %v2227_v54, %v2233_v55 }
 0x814   : > { %v2604_v45 = vpack.c.bf16 %v2597_v37, %v2597_v37 }
 0x815   : > { %v2259_v62 = vrot.slane %v2251_v56, %v15439_v24  ;;  %v2266_v63 = vrot.slane %v2252_v57, %v15439_v24 }
 0x817   : > { %v2267_v0 = vcombine.low %v2243_v58, %v2259_v62  ;;  %v2268_v1 = vcombine.high %v2243_v58, %v2259_v62  ;;  %v2283_v2 = vcombine.low %v2250_v59, %v2266_v63  ;;  %v2284_v3 = vcombine.high %v2250_v59, %v2266_v63 }
 0x819   : > { %v2275_v4 = vrot.slane %v2267_v0, %v15442_v31  ;;  %v2282_v5 = vrot.slane %v2268_v1, %v15442_v31  ;;  %v2291_v15 = vrot.slane %v2283_v2, %v15442_v31  ;;  %v2298_v6 = vrot.slane %v2284_v3, %v15442_v31  ;;  %v14468_v28 = vpop.eup %14467 }
 0x81a   : > { %v2599_v38 = vmul.f32 %v14468_v28, %v15518_v11 }
 0x81b   : > { %v2303_v7 = vcombine.low %v2275_v4, %v2282_v5  ;;  %v12880_v8 = vcombine.high %v2275_v4, %v2282_v5  ;;  %v2319_v9 = vcombine.low %v2291_v15, %v2298_v6  ;;  %v12881_v10 = vcombine.high %v2291_v15, %v2298_v6 }
 0x81c   : > { %v2605_v48 = vpack.c.bf16 %v2599_v38, %v2599_v38 }
 0x81d   : > { %v2310_v12 = vrot.slane %v2303_v7, %v15439_v24  ;;  %v2318_v13 = vrot.slane %v12880_v8, %v15439_v24  ;;  %v2326_v14 = vrot.slane %v2319_v9, %v15439_v24  ;;  %v2334_v16 = vrot.slane %v12881_v10, %v15439_v24 }
 0x81f   : > { %v2335_v17 = vcombine.low %v2310_v12, %v2318_v13  ;;  %v2351_v18 = vcombine.low %v2326_v14, %v2334_v16  ;;  %v2336_v19 = vcombine.high %v2310_v12, %v2318_v13  ;;  %v2352_v20 = vcombine.high %v2326_v14, %v2334_v16 }
 0x821   : > { %v2343_v23 = vrot.slane %v2335_v17, %v15442_v31  ;;  %v2359_v25 = vrot.slane %v2351_v18, %v15442_v31  ;;  %v2350_v26 = vrot.slane %v2336_v19, %v15442_v31  ;;  %v2366_v27 = vrot.slane %v2352_v20, %v15442_v31  ;;  %v14377_v18 = vld [vmem:[%s17704_s20] sm:$0xff]  }
 0x823   : > { %v2367_v29 = vcombine.low %v2343_v23, %v2359_v25  ;;  %v2368_v30 = vcombine.high %v2343_v23, %v2359_v25  ;;  %v2369_v32 = vcombine.low %v2350_v26, %v2366_v27  ;;  %v2370_v33 = vcombine.high %v2350_v26, %v2366_v27 }
 0x825   : > { %v2371_v35 = vpack.c.bf16 %v2367_v29, %v2367_v29  ;;  %v2372_v36 = vpack.c.bf16 %v2368_v30, %v2368_v30  ;;  %v2373_v42 = vpack.c.bf16 %v2369_v32, %v2369_v32  ;;  %v2374_v43 = vpack.c.bf16 %v2370_v33, %v2370_v33  ;;  %v14378_v29 = vld [vmem:[%s17704_s20 + $0x8] sm:$0xff]  }
 0x827   : > { %v2613_v40 = vsel %vm2611_vm6, %v2371_v35, 0  ;;  %v2659_v41 = vsel %vm2611_vm6, %v2372_v36, 0  ;;  %v2705_v34 = vsel %vm2611_vm6, %v2373_v42, 0  ;;  %v2751_v11 = vsel %vm2611_vm6, %v2374_v43, 0 }
 0x828   : > { %13549 = vmatpush3.bf16.msra.mxu0 %v2613_v40  ;;  %13555 = vmatpush3.bf16.msra.mxu1 %v2659_v41 }
 0x829   : > { %13560 = vmatprep.subr.bf16.mxu0 %v14948_v47  ;;  %13566 = vmatprep.subr.bf16.mxu1 %v14948_v47 }
 0x82b   : > { %13551 = vmatmul.mubr.msk.bf16.vlgmr.msra.gmra.mrb[4].mxu0 %vm2375_vm4, %v2604_v45  ;;  %13557 = vmatmul.mubr.msk.bf16.vlgmr.msra.gmra.mrb[28].mxu1 %vm2375_vm4, %v2605_v48 }
 0x82c   : > { %13561 = vmatpush3.bf16.msra.mxu0 %v2705_v34  ;;  %13567 = vmatpush3.bf16.msra.mxu1 %v2751_v11 }
 0x82d   : > { %13568 = vmatprep.mubr.msk.bf16.mxu1 %vm14949_vm3, %v14948_v47  ;;  %13562 = vmatprep.mubr.msk.bf16.mxu0 %vm14949_vm3, %v14948_v47 }
 0x82e   : > { %13572 = vmatprep.subr.bf16.mxu0 %v14948_v47  ;;  %13580 = vmatprep.subr.bf16.mxu1 %v14948_v47 }
 0x83b   : > { %v2595_v49 = vpop.xlane.xlu0 %2594 }
 0x83c   : > { %14469 = vrcp.f32 %v2595_v49 }
 0x843   : > { %v2592_v50 = vpop.xlane.xlu1 %2591 }
 0x844   : > { %14471 = vrcp.f32 %v2592_v50 }
 0x846   : > { %v14470_v51 = vpop.eup %14469 }
 0x847   : > { %v2603_v52 = vmul.f32 %v14470_v51, %v15524_v44 }
 0x849   : > { %v2607_v53 = vpack.c.bf16 %v2603_v52, %v2603_v52 }
 0x84b   : > { %13569 = vmatmul.mubr.msk.bf16.vlgmr.msra.gmra.mrb[32].mxu1 %vm2375_vm4, %v2607_v53 }
 0x84c   : > { %13584 = vmatprep.mubr.msk.bf16.mxu1 %vm14949_vm3, %v14948_v47 }
 0x84e   : > { %v14472_v54 = vpop.eup %14471 }
 0x84f   : > { %v2601_v55 = vmul.f32 %v14472_v54, %v15528_v46 }
 0x851   : > { %v2606_v56 = vpack.c.bf16 %v2601_v55, %v2601_v55 }
 0x853   : > { %13563 = vmatmul.mubr.msk.bf16.vlgmr.msra.gmra.mrb[8].mxu0 %vm2375_vm4, %v2606_v56 }
 0x854   : > { %13576 = vmatprep.mubr.msk.bf16.mxu0 %vm14949_vm3, %v14948_v47  ;;  %13573 = vmatpush3.bf16.msra.mxu0 %v14377_v18 }
 0x855   : > { %13574 = vmatprep.subr.bf16.mxu0 %v14948_v47 }
 0x858   : > { %13575 = vmatpush3.bf16.msra.mxu0 %v14378_v29 }
 0x859   : > { %13588 = vmatprep.subr.bf16.mxu0 %v14948_v47 }
 0x8fe   : > { %v2649_v57 = vpop.f32.mrb[4].mxu0  ;;  %v2695_v58 = vpop.f32.mrb[28].mxu1 }
 0x8ff   : > { %v13552_v59 = vpop.f32.mrb[5].mxu0  ;;  %v13558_v62 = vpop.f32.mrb[29].mxu1 }
 0x900   : > { %v2652_v44 = vpop.f32.mrb[6].mxu0  ;;  %v2698_v63 = vpop.f32.mrb[30].mxu1 }
 0x901   : > { %v13553_v0 = vpop.f32.mrb[7].mxu0  ;;  %v13559_v1 = vpop.f32.mrb[31].mxu1  ;;  %v12895_v63 = vld [vmem:[%s17705_s3] ss:$0 sm:$0xff] }
 0x91e   : > { %v2787_v2 = vpop.f32.mrb[32].mxu1 }
 0x91f   : > { %v2809_v3 = vcombine.low %v2695_v58, %v2787_v2  ;;  %v2810_v4 = vcombine.high %v2695_v58, %v2787_v2  ;;  %v13570_v5 = vpop.f32.mrb[33].mxu1 }
 0x920   : > { %v2790_v46 = vpop.f32.mrb[34].mxu1 }
 0x921   : > { %v13571_v15 = vpop.f32.mrb[35].mxu1  ;;  %v2817_v12 = vrot.slane %v2809_v3, %v15439_v24  ;;  %v2824_v13 = vrot.slane %v2810_v4, %v15439_v24 }
 0x926   : > { %v2741_v6 = vpop.f32.mrb[8].mxu0 }
 0x927   : > { %v2793_v7 = vcombine.low %v2649_v57, %v2741_v6  ;;  %v2794_v8 = vcombine.high %v2649_v57, %v2741_v6  ;;  %v13564_v9 = vpop.f32.mrb[9].mxu0 }
 0x928   : > { %v2744_v10 = vpop.f32.mrb[10].mxu0  ;;  %v14380_v9 = vld [vmem:[%s17706_s22 + $0x8] sm:$0xff]  }
 0x929   : > { %v2801_v14 = vrot.slane %v2793_v7, %v15439_v24  ;;  %v2808_v16 = vrot.slane %v2794_v8, %v15439_v24  ;;  %v13565_v17 = vpop.f32.mrb[11].mxu0 }
 0x92b   : > { %v2825_v19 = vcombine.low %v2801_v14, %v2817_v12  ;;  %v2826_v20 = vcombine.high %v2801_v14, %v2817_v12  ;;  %v2841_v22 = vcombine.low %v2808_v16, %v2824_v13  ;;  %v2842_v23 = vcombine.high %v2808_v16, %v2824_v13 }
 0x92d   : > { %v2833_v25 = vrot.slane %v2825_v19, %v15442_v31  ;;  %v2840_v26 = vrot.slane %v2826_v20, %v15442_v31  ;;  %v2849_v27 = vrot.slane %v2841_v22, %v15442_v31  ;;  %v2856_v28 = vrot.slane %v2842_v23, %v15442_v31 }
 0x92f   : > { %v2861_v30 = vcombine.low %v2833_v25, %v2840_v26  ;;  %v12890_v32 = vcombine.high %v2833_v25, %v2840_v26  ;;  %v2877_v33 = vcombine.low %v2849_v27, %v2856_v28  ;;  %v12891_v35 = vcombine.high %v2849_v27, %v2856_v28 }
 0x931   : > { %v2868_v36 = vrot.slane %v2861_v30, %v15439_v24  ;;  %v2876_v37 = vrot.slane %v12890_v32, %v15439_v24  ;;  %v2884_v38 = vrot.slane %v2877_v33, %v15439_v24  ;;  %v2892_v40 = vrot.slane %v12891_v35, %v15439_v24  ;;  %v12898_v33 = vld [vmem:[%s17710_s2] ss:$0 sm:$0xff]  ;;  %s17713_s2 = smov 112  }
 0x933   : > { %v2894_v41 = vcombine.high %v2868_v36, %v2876_v37  ;;  %v2910_v42 = vcombine.high %v2884_v38, %v2892_v40  ;;  %v2893_v43 = vcombine.low %v2868_v36, %v2876_v37  ;;  %v2909_v45 = vcombine.low %v2884_v38, %v2892_v40 }
 0x935   : > { %v2908_v48 = vrot.slane %v2894_v41, %v15442_v31  ;;  %v2924_v34 = vrot.slane %v2910_v42, %v15442_v31  ;;  %v2901_v11 = vrot.slane %v2893_v43, %v15442_v31  ;;  %v2917_v49 = vrot.slane %v2909_v45, %v15442_v31 }
 0x937   : > { %v2927_v50 = vcombine.low %v2908_v48, %v2924_v34  ;;  %v2926_v51 = vcombine.high %v2901_v11, %v2917_v49  ;;  %v2928_v52 = vcombine.high %v2908_v48, %v2924_v34  ;;  %v2925_v53 = vcombine.low %v2901_v11, %v2917_v49 }
 0x939   : > { %2934 = vrot.lane.b32.xlu1 %v2927_v50, %s17594_s7  ;;  %2930 = vrot.lane.b32.xlu0 %v2926_v51, %s17592_s4  ;;  %s17708_s4 = sld [smem:[#allocation35_spill]]  ;;  %s17709_s7 = sld [smem:[#allocation36_spill]] }
 0x93d   : > { %2938 = vrot.lane.b32.xlu1 %v2928_v52, %s17590_s15  ;;  %s17707_s15 = sld [smem:[#allocation39_spill]]  ;;  %v12902_v52 = vld [vmem:[%s17712_s11] ss:$0 sm:$0xff] }
 0x93f   : > { %v12896_v17 = vld [vmem:[%s17708_s4] ss:$0 sm:$0xff] }
 0x940   : > { %v12897_v19 = vld [vmem:[%s17709_s7] ss:$0 sm:$0xff] }
 0x943   : > { %v14381_v10 = vld [vmem:[%s17707_s15] sm:$0xff]   ;;  %v14382_v25 = vld [vmem:[%s17707_s15 + $0x8] sm:$0xff]   ;;  %v14383_v26 = vld [vmem:[%s17707_s15 + $0x10] sm:$0xff]  }
 0x944   : > { %v14384_v27 = vld [vmem:[%s17707_s15 + $0x18] sm:$0xff]   ;;  %v14385_v28 = vld [vmem:[%s17707_s15 + $0x20] sm:$0xff]   ;;  %v14386_v29 = vld [vmem:[%s17707_s15 + $0x28] sm:$0xff]  }
 0x945   : > { %v14387_v30 = vld [vmem:[%s17707_s15 + $0x30] sm:$0xff]   ;;  %v14388_v32 = vld [vmem:[%s17707_s15 + $0x38] sm:$0xff]  }
 0x9ab   : > { %v2935_v54 = vpop.permute.xlu1 %2934  ;;  %v2931_v55 = vpop.permute.xlu0 %2930 }
 0x9ac   : > { %v2941_v56 = vsel %vm2375_vm4, %v2925_v53, %v2931_v55 }
 0x9ad   : > { %v2943_v58 = vsel %vm2942_vm7, %v2941_v56, %v2935_v54 }
 0x9af   : > { %v2939_v57 = vpop.permute.xlu1 %2938 }
 0x9b0   : > { %v2945_v59 = vsel %vm2944_vm8, %v2943_v58, %v2939_v57 }
 0x9b1   : > { %v2946_v62 = vpack.c.bf16 %v2945_v59, %v2945_v59 }
 0x9b3   : > { %13577 = vmatmul.mubr.msk.bf16.vlgmr.msra.gmra.mrb[12].mxu0 %vm1670_vm2, %v2946_v62 }
 0x9b4   : > { %13604 = vmatprep.mubr.msk.bf16.mxu0 %vm14949_vm3, %v14948_v47  ;;  %13589 = vmatpush3.bf16.msra.mxu0 %v14381_v10  ;;  %v14391_v10 = vld [vmem:[%s15027_s30 + $0x10] sm:$0xff]  }
 0x9b5   : > { %13590 = vmatprep.subr.bf16.mxu0 %v14948_v47 }
 0x9b8   : > { %13591 = vmatpush3.bf16.msra.mxu0 %v14382_v25 }
 0x9b9   : > { %13592 = vmatprep.subr.bf16.mxu0 %v14948_v47 }
 0x9bc   : > { %13593 = vmatpush3.bf16.msra.mxu0 %v14383_v26 }
 0x9bd   : > { %13594 = vmatprep.subr.bf16.mxu0 %v14948_v47 }
 0x9c0   : > { %13595 = vmatpush3.bf16.msra.mxu0 %v14384_v27  ;;  %v12920_v27 = vld [vmem:[%s17702_s26 + $0x1] ss:$0 sm:$0xff]  ;;  %s17737_s26 = sld [smem:[#allocation59_spill]] }
 0x9c1   : > { %13596 = vmatprep.subr.bf16.mxu0 %v14948_v47 }
 0x9c4   : > { %13597 = vmatpush3.bf16.msra.mxu0 %v14385_v28 }
 0x9c5   : > { %13598 = vmatprep.subr.bf16.mxu0 %v14948_v47 }
 0x9c8   : > { %13599 = vmatpush3.bf16.msra.mxu0 %v14386_v29 }
 0x9c9   : > { %13600 = vmatprep.subr.bf16.mxu0 %v14948_v47 }
 0x9cc   : > { %13601 = vmatpush3.bf16.msra.mxu0 %v14387_v30 }
 0x9cd   : > { %13602 = vmatprep.subr.bf16.mxu0 %v14948_v47 }
 0x9d0   : > { %13603 = vmatpush3.bf16.msra.mxu0 %v14388_v32 }
 0x9d1   : > { %13638 = vmatprep.subr.bf16.mxu0 %v14948_v47 }
 0xa86   : > { %v3000_v44 = vpop.f32.mrb[12].mxu0 }
 0xa87   : > { %v3006_v0 = vadd.f32 %v3000_v44, %v15390_v39  ;;  %v13578_v1 = vpop.f32.mrb[13].mxu0  ;;  %v14379_v39 = vld [vmem:[%s17706_s22] sm:$0xff]  }
 0xa88   : > { %v3003_v2 = vpop.f32.mrb[14].mxu0  ;;  %13581 = vmatpush3.bf16.msra.mxu1 %v14379_v39 }
 0xa89   : > { %v15603_v3 = vadd.f32 %v12895_v63, %v3006_v0  ;;  %v13579_v4 = vpop.f32.mrb[15].mxu0  ;;  %13582 = vmatprep.subr.bf16.mxu1 %v14948_v47  ;;  %v14389_v2 = vld [vmem:[%s17674_s19 + $0x10] sm:$0xff]  }
 0xa8b   : > { %v3017_v5 = vsel %vm1670_vm2, %v15603_v3, 0.0 }
 0xa8c   : > { %3018 = vadd.xlane.f32.xlu0 %v3017_v5  ;;  %13583 = vmatpush3.bf16.msra.mxu1 %v14380_v9 }
 0xa8d   : > { %13608 = vmatprep.subr.bf16.mxu1 %v14948_v47 }
 0xb19   : > { %v3019_v46 = vpop.xlane.xlu0 %3018 }
 0xb1a   : > { %v3020_v15 = vmul.f32 0.03125, %v3019_v46 }
 0xb1c   : > { %v3021_v6 = vsub.f32 %v15603_v3, %v3020_v15 }
 0xb1e   : > { %v3022_v7 = vmul.f32 %v3021_v6, %v3021_v6 }
 0xb20   : > { %v3023_v8 = vsel %vm1670_vm2, %v3022_v7, 0.0 }
 0xb21   : > { %3024 = vadd.xlane.f32.xlu1 %v3023_v8  ;;  %v12914_v8 = vld [vmem:[%s17676_s14 + $0x1] ss:$0 sm:$0xff]  ;;  %s17728_s14 = sld [smem:[#allocation51_spill]] }
 0xbae   : > { %v3025_v12 = vpop.xlane.xlu1 %3024 }
 0xbaf   : > { %v3026_v13 = vmul.f32 0.03125, %v3025_v12 }
 0xbb1   : > { %v3027_v14 = vadd.f32 1e-05, %v3026_v13  ;;  %v14392_v13 = vld [vmem:[%s15027_s30 + $0x18] sm:$0xff]  }
 0xbb3   : > { %14473 = vrsqrt.f32 %v3027_v14  ;;  %v14393_v14 = vld [vmem:[%s17677_s12 + $0x10] sm:$0xff]  }
 0xbbd   : > { %v14474_v16 = vpop.eup %14473 }
 0xbbe   : > { %v3029_v18 = vmul.f32 %v14474_v16, %v3021_v6  ;;  %v12913_v6 = vld [vmem:[%s17679_s8 + $0x1] ss:$0 sm:$0xff]  ;;  %v14394_v16 = vld [vmem:[%s17677_s12 + $0x18] sm:$0xff]   ;;  %s17714_s8 = smov 120   ;;  %s17718_s12 = smov 24  }
 0xbc0   : > { %v3036_v20 = vmul.f32 %v12896_v17, %v3029_v18 }
 0xbc2   : > { %v3043_v22 = vadd.f32 %v12897_v19, %v3036_v20 }
 0xbc4   : > { %v3044_v23 = vpack.c.bf16 %v3043_v22, %v3043_v22  ;;  %v12929_v22 = vld [vmem:[%s17678_s6 + $0x1] ss:$0 sm:$0xff]  ;;  %s17717_s6 = smov 8  }
 0xbc6   : > { %13585 = vmatmul.mubr.msk.bf16.vlgmr.msra.gmra.mrb[36].mxu1 %vm1670_vm2, %v3044_v23 }
 0xbc7   : > { %13612 = vmatprep.mubr.msk.bf16.mxu1 %vm14949_vm3, %v14948_v47  ;;  %13609 = vmatpush3.bf16.msra.mxu1 %v14389_v2 }
 0xbc8   : > { %13610 = vmatprep.subr.bf16.mxu1 %v14948_v47 }
 0xc99   : > { %v3105_v35 = vpop.f32.mrb[36].mxu1 }
 0xc9a   : > { %v3106_v36 = vadd.f32 %v12898_v33, %v3105_v35  ;;  %v13586_v37 = vpop.f32.mrb[37].mxu1 }
 0xc9b   : > { %v3108_v38 = vpop.f32.mrb[38].mxu1 }
 0xc9c   : > { %v3112_v40 = vmul.f32 0.044715, %v3106_v36  ;;  %v13587_v41 = vpop.f32.mrb[39].mxu1  ;;  %v3111_v11 = vmul.f32 0.5, %v3106_v36 }
 0xc9e   : > { %v3113_v42 = vmul.f32 %v3112_v40, %v3106_v36 }
 0xca0   : > { %v3114_v43 = vmul.f32 %v3113_v42, %v3106_v36 }
 0xca2   : > { %v3115_v45 = vadd.f32 %v3114_v43, %v3106_v36 }
 0xca4   : > { %v3116_v48 = vmul.f32 0.7978846, %v3115_v45 }
 0xca6   : > { %14475 = vtanh.f32 %v3116_v48 }
 0xcb0   : > { %v14476_v34 = vpop.eup %14475 }
 0xcb1   : > { %v3118_v49 = vadd.f32 1.0, %v14476_v34 }
 0xcb3   : > { %v3119_v50 = vmul.f32 %v3118_v49, %v3111_v11 }
 0xcb5   : > { %v3120_v51 = vpack.c.bf16 %v3119_v50, %v3119_v50 }
 0xcb7   : > { %13605 = vmatmul.mubr.bf16.vlgmr.msra.gmra.mrb[16].mxu0 %v3120_v51 }
 0xcb8   : > { %13640 = vmatprep.mubr.msk.bf16.mxu0 %vm14949_vm3, %v14948_v47 }
 0xd8a   : > { %v3226_v53 = vpop.f32.mrb[16].mxu0 }
 0xd8b   : > { %v3227_v54 = vadd.f32 %v12902_v52, %v3226_v53  ;;  %v13606_v55 = vpop.f32.mrb[17].mxu0 }
 0xd8c   : > { %v3229_v56 = vpop.f32.mrb[18].mxu0 }
 0xd8d   : > { %v15639_v57 = vadd.f32 %v3227_v54, %v15603_v3  ;;  %v13607_v58 = vpop.f32.mrb[19].mxu0  ;;  %v14390_v3 = vld [vmem:[%s17674_s19 + $0x18] sm:$0xff]   ;;  %s17731_s19 = sld [smem:[#allocation54_spill]] }
 0xd8e   : > { %13611 = vmatpush3.bf16.msra.mxu1 %v14390_v3 }
 0xd8f   : > { %v3237_v59 = vsel %vm1670_vm2, %v15639_v57, 0.0  ;;  %13616 = vmatprep.subr.bf16.mxu1 %v14948_v47 }
 0xd90   : > { %3238 = vadd.xlane.f32.xlu0 %v3237_v59 }
 0xe1d   : > { %v3239_v62 = vpop.xlane.xlu0 %3238 }
 0xe1e   : > { %v3240_v44 = vmul.f32 0.03125, %v3239_v62 }
 0xe20   : > { %v3241_v63 = vsub.f32 %v15639_v57, %v3240_v44 }
 0xe22   : > { %v3242_v0 = vmul.f32 %v3241_v63, %v3241_v63 }
 0xe24   : > { %v3243_v1 = vsel %vm1670_vm2, %v3242_v0, 0.0 }
 0xe25   : > { %3244 = vadd.xlane.f32.xlu0 %v3243_v1 }
 0xeb2   : > { %v3245_v4 = vpop.xlane.xlu0 %3244 }
 0xeb3   : > { %v3246_v5 = vmul.f32 0.03125, %v3245_v4 }
 0xeb5   : > { %v3247_v46 = vadd.f32 1e-05, %v3246_v5 }
 0xeb7   : > { %14477 = vrsqrt.f32 %v3247_v46 }
 0xec1   : > { %v14478_v15 = vpop.eup %14477 }
 0xec2   : > { %v3249_v7 = vmul.f32 %v14478_v15, %v3241_v63 }
 0xec4   : > { %v3256_v39 = vmul.f32 %v12913_v6, %v3249_v7 }
 0xec6   : > { %v3263_v9 = vadd.f32 %v12914_v8, %v3256_v39 }
 0xec8   : > { %v3264_v12 = vpack.c.bf16 %v3263_v9, %v3263_v9 }
 0xeca   : > { %13613 = vmatmul.mubr.msk.bf16.vlgmr.msra.gmra.mrb[40].mxu1 %vm1670_vm2, %v3264_v12 }
 0xecb   : > { %13617 = vmatpush3.bf16.msra.mxu1 %v14391_v10  ;;  %13620 = vmatprep.mubr.msk.bf16.mxu1 %vm14949_vm3, %v14948_v47 }
 0xecc   : > { %13618 = vmatprep.subr.bf16.mxu1 %v14948_v47 }
 0xecf   : > { %13619 = vmatpush3.bf16.msra.mxu1 %v14392_v13 }
 0xed0   : > { %13624 = vmatprep.subr.bf16.mxu1 %v14948_v47 }
 0xed2   : > { %13621 = vmatmul.mubr.msk.bf16.vlgmr.msra.gmra.mrb[44].mxu1 %vm1670_vm2, %v3264_v12 }
 0xed3   : > { %13625 = vmatpush3.bf16.msra.mxu1 %v14393_v14  ;;  %13628 = vmatprep.mubr.msk.bf16.mxu1 %vm14949_vm3, %v14948_v47 }
 0xed4   : > { %13626 = vmatprep.subr.bf16.mxu1 %v14948_v47 }
 0xed7   : > { %13627 = vmatpush3.bf16.msra.mxu1 %v14394_v16 }
 0xed8   : > { %13632 = vmatprep.subr.bf16.mxu1 %v14948_v47 }
 0xeda   : > { %13629 = vmatmul.mubr.msk.bf16.vlgmr.msra.gmra.mrb[48].mxu1 %vm1670_vm2, %v3264_v12 }
 0xedb   : > { %13634 = vmatprep.mubr.msk.bf16.mxu1 %vm14949_vm3, %v14948_v47 }
 0xf9d   : > { %v3327_v17 = vpop.f32.mrb[40].mxu1 }
 0xf9e   : > { %v13614_v18 = vpop.f32.mrb[41].mxu1  ;;  %v3328_v30 = vadd.f32 %v12920_v27, %v3327_v17 }
 0xf9f   : > { %v3330_v19 = vpop.f32.mrb[42].mxu1 }
 0xfa0   : > { %v13615_v20 = vpop.f32.mrb[43].mxu1 }
 0xfa5   : > { %v3392_v23 = vpop.f32.mrb[44].mxu1 }
 0xfa6   : > { %v3393_v25 = vadd.f32 %v12929_v22, %v3392_v23  ;;  %v13622_v26 = vpop.f32.mrb[45].mxu1 }
 0xfa7   : > { %v3395_v28 = vpop.f32.mrb[46].mxu1 }
 0xfa8   : > { %3617 = vrot.lane.b32.xlu1 %v3393_v25, %s17713_s2  ;;  %3614 = vrot.lane.b32.xlu0 %v3393_v25, %s17714_s8  ;;  %v13623_v29 = vpop.f32.mrb[47].mxu1 }
 0xfac   : > { %3620 = vrot.lane.b32.xlu1 %v3393_v25, %s17715_s9  ;;  %3467 = vrot.lane.b32.xlu0 %v3328_v30, %s17713_s2 }
 0xfad   : > { %v15674_v32 = vpop.f32.mrb[48].mxu1 }
 0xfae   : > { %v13630_v33 = vpop.f32.mrb[49].mxu1 }
 0xfaf   : > { %v3460_v35 = vpop.f32.mrb[50].mxu1 }
 0xfb0   : > { %3464 = vrot.lane.b32.xlu1 %v3328_v30, %s17714_s8  ;;  %v13631_v36 = vpop.f32.mrb[51].mxu1 }
 0xfb4   : > { %3470 = vrot.lane.b32.xlu1 %v3328_v30, %s17715_s9 }
0x101a   : > { %v3618_v37 = vpop.permute.xlu1 %3617  ;;  %v3615_v41 = vpop.permute.xlu0 %3614 }
0x101b   : > { %v3623_v38 = vcombine.low %v3393_v25, %v3618_v37  ;;  %v3624_v40 = vcombine.high %v3393_v25, %v3618_v37 }
0x101d   : > { %v3631_v48 = vrot.slane %v3623_v38, %v15439_v24  ;;  %v3638_v34 = vrot.slane %v3624_v40, %v15439_v24 }
0x101e   : > { %v3621_v42 = vpop.permute.xlu1 %3620  ;;  %v3468_v55 = vpop.permute.xlu0 %3467 }
0x101f   : > { %v3639_v43 = vcombine.low %v3615_v41, %v3621_v42  ;;  %v3640_v45 = vcombine.high %v3615_v41, %v3621_v42  ;;  %v3473_v44 = vcombine.low %v3328_v30, %v3468_v55  ;;  %v3474_v63 = vcombine.high %v3328_v30, %v3468_v55 }
0x1021   : > { %v3647_v11 = vrot.slane %v3639_v43, %v15439_v24  ;;  %v3654_v49 = vrot.slane %v3640_v45, %v15439_v24  ;;  %v3481_v39 = vrot.slane %v3473_v44, %v15439_v24  ;;  %v3488_v9 = vrot.slane %v3474_v63, %v15439_v24 }
0x1022   : > { %v3465_v50 = vpop.permute.xlu1 %3464 }
0x1023   : > { %v3655_v51 = vcombine.low %v3631_v48, %v3647_v11  ;;  %v3656_v52 = vcombine.high %v3631_v48, %v3647_v11  ;;  %v3671_v53 = vcombine.low %v3638_v34, %v3654_v49  ;;  %v3672_v54 = vcombine.high %v3638_v34, %v3654_v49 }
0x1025   : > { %v3663_v56 = vrot.slane %v3655_v51, %v15442_v31  ;;  %v3670_v58 = vrot.slane %v3656_v52, %v15442_v31  ;;  %v3679_v59 = vrot.slane %v3671_v53, %v15442_v31  ;;  %v3686_v62 = vrot.slane %v3672_v54, %v15442_v31 }
0x1026   : > { %v3471_v0 = vpop.permute.xlu1 %3470 }
0x1027   : > { %v3691_v1 = vcombine.low %v3663_v56, %v3670_v58  ;;  %v12944_v2 = vcombine.high %v3663_v56, %v3670_v58  ;;  %v3707_v3 = vcombine.low %v3679_v59, %v3686_v62  ;;  %v12945_v4 = vcombine.high %v3679_v59, %v3686_v62 }
0x1028   : > { %v3489_v5 = vcombine.low %v3465_v50, %v3471_v0  ;;  %v3490_v46 = vcombine.high %v3465_v50, %v3471_v0 }
0x1029   : > { %v3698_v15 = vrot.slane %v3691_v1, %v15439_v24  ;;  %v3706_v6 = vrot.slane %v12944_v2, %v15439_v24  ;;  %v3714_v7 = vrot.slane %v3707_v3, %v15439_v24  ;;  %v3722_v8 = vrot.slane %v12945_v4, %v15439_v24 }
0x102a   : > { %v3497_v10 = vrot.slane %v3489_v5, %v15439_v24  ;;  %v3504_v12 = vrot.slane %v3490_v46, %v15439_v24 }
0x102b   : > { %v3723_v13 = vcombine.low %v3698_v15, %v3706_v6  ;;  %v3739_v14 = vcombine.low %v3714_v7, %v3722_v8  ;;  %v3724_v16 = vcombine.high %v3698_v15, %v3706_v6  ;;  %v3740_v17 = vcombine.high %v3714_v7, %v3722_v8 }
0x102c   : > { %v3505_v18 = vcombine.low %v3481_v39, %v3497_v10  ;;  %v3506_v19 = vcombine.high %v3481_v39, %v3497_v10  ;;  %v3521_v20 = vcombine.low %v3488_v9, %v3504_v12  ;;  %v3522_v22 = vcombine.high %v3488_v9, %v3504_v12 }
0x102d   : > { %v3731_v23 = vrot.slane %v3723_v13, %v15442_v31  ;;  %v3747_v25 = vrot.slane %v3739_v14, %v15442_v31  ;;  %v3738_v35 = vrot.slane %v3724_v16, %v15442_v31  ;;  %v3754_v36 = vrot.slane %v3740_v17, %v15442_v31 }
0x102e   : > { %v3513_v26 = vrot.slane %v3505_v18, %v15442_v31  ;;  %v3520_v27 = vrot.slane %v3506_v19, %v15442_v31  ;;  %v3529_v28 = vrot.slane %v3521_v20, %v15442_v31  ;;  %v3536_v29 = vrot.slane %v3522_v22, %v15442_v31 }
0x102f   : > { %v3755_v30 = vcombine.low %v3731_v23, %v3747_v25  ;;  %v3756_v33 = vcombine.high %v3731_v23, %v3747_v25  ;;  %v3757_v53 = vcombine.low %v3738_v35, %v3754_v36  ;;  %v3758_v54 = vcombine.high %v3738_v35, %v3754_v36 }
0x1030   : > { %v3541_v37 = vcombine.low %v3513_v26, %v3520_v27  ;;  %v12942_v38 = vcombine.high %v3513_v26, %v3520_v27  ;;  %v3557_v40 = vcombine.low %v3529_v28, %v3536_v29  ;;  %v12943_v41 = vcombine.high %v3529_v28, %v3536_v29 }
0x1031   : > { %v3759_v42 = vpack.c.bf16 %v3755_v30, %v3755_v30  ;;  %v3760_v43 = vpack.c.bf16 %v3756_v33, %v3756_v33  ;;  %v3761_v63 = vpack.c.bf16 %v3757_v53, %v3757_v53  ;;  %v3762_v0 = vpack.c.bf16 %v3758_v54, %v3758_v54 }
0x1032   : > { %v3548_v45 = vrot.slane %v3541_v37, %v15439_v24  ;;  %v3556_v48 = vrot.slane %v12942_v38, %v15439_v24  ;;  %v3564_v34 = vrot.slane %v3557_v40, %v15439_v24  ;;  %v3572_v11 = vrot.slane %v12943_v41, %v15439_v24  ;;  %v12938_v40 = vld [vmem:[%s17703_s5 + $0x1] ss:$0 sm:$0xff]  ;;  %s17716_s5 = smov 16  }
0x1033   : > { %v3917_v49 = vsel %vm2375_vm4, %v3759_v42, 0  ;;  %v3963_v50 = vsel %vm2375_vm4, %v3760_v43, 0  ;;  %v4009_v5 = vsel %vm2375_vm4, %v3761_v63, 0  ;;  %v4055_v46 = vsel %vm2375_vm4, %v3762_v0, 0 }
0x1034   : > { %v3573_v51 = vcombine.low %v3548_v45, %v3556_v48  ;;  %v3589_v52 = vcombine.low %v3564_v34, %v3572_v11  ;;  %13633 = vmatpush3.bf16.xpose.msra.mxu1 %v3917_v49  ;;  %13639 = vmatpush3.bf16.xpose.msra.mxu0 %v3963_v50  ;;  %v3574_v55 = vcombine.high %v3548_v45, %v3556_v48 }
0x1035   : > { %13644 = vmatprep.subr.bf16.mxu1 %v14948_v47  ;;  %v3590_v56 = vcombine.high %v3564_v34, %v3572_v11  ;;  %13650 = vmatprep.subr.bf16.mxu0 %v14948_v47  ;;  %v3458_v41 = vadd.f32 %v12938_v40, %v15674_v32 }
0x1036   : > { %v3581_v58 = vrot.slane %v3573_v51, %v15442_v31  ;;  %v3597_v59 = vrot.slane %v3589_v52, %v15442_v31  ;;  %v3588_v3 = vrot.slane %v3574_v55, %v15442_v31 }
0x1037   : > { %v3604_v4 = vrot.slane %v3590_v56, %v15442_v31 }
0x1038   : > { %v3605_v62 = vcombine.low %v3581_v58, %v3597_v59  ;;  %v3606_v44 = vcombine.high %v3581_v58, %v3597_v59 }
0x1039   : > { %v3607_v15 = vcombine.low %v3588_v3, %v3604_v4  ;;  %v3608_v6 = vcombine.high %v3588_v3, %v3604_v4 }
0x103a   : > { %v3609_v1 = vpack.c.bf16 %v3605_v62, %v3605_v62  ;;  %v3610_v2 = vpack.c.bf16 %v3606_v44, %v3606_v44 }
0x103b   : > { %v3611_v7 = vpack.c.bf16 %v3607_v15, %v3607_v15  ;;  %v3612_v8 = vpack.c.bf16 %v3608_v6, %v3608_v6 }
0x103c   : > { %13635 = vmatmul.mubr.msk.bf16.vlgmr.msra.gmra.mrb[52].mxu1 %vm2375_vm4, %v3609_v1  ;;  %13641 = vmatmul.mubr.msk.bf16.vlgmr.msra.gmra.mrb[20].mxu0 %vm2375_vm4, %v3610_v2 }
0x103d   : > { %13645 = vmatpush3.bf16.xpose.msra.mxu1 %v4009_v5  ;;  %13651 = vmatpush3.bf16.xpose.msra.mxu0 %v4055_v46 }
0x103e   : > { %13646 = vmatprep.mubr.msk.bf16.mxu1 %vm14949_vm3, %v14948_v47  ;;  %13652 = vmatprep.mubr.msk.bf16.mxu0 %vm14949_vm3, %v14948_v47 }
0x103f   : > { %13656 = vmatprep.subr.bf16.mxu1 %v14948_v47  ;;  %13662 = vmatprep.subr.bf16.mxu0 %v14948_v47 }
0x1044   : > { %13647 = vmatmul.mubr.msk.bf16.vlgmr.msra.gmra.mrb[56].mxu1 %vm2375_vm4, %v3611_v7  ;;  %13653 = vmatmul.mubr.msk.bf16.vlgmr.msra.gmra.mrb[24].mxu0 %vm2375_vm4, %v3612_v8 }
0x1045   : > { %13658 = vmatprep.mubr.msk.bf16.mxu1 %vm14949_vm3, %v14948_v47  ;;  %13664 = vmatprep.mubr.msk.bf16.mxu0 %vm14949_vm3, %v14948_v47 }
0x110f   : > { %v3953_v39 = vpop.f32.mrb[52].mxu1  ;;  %v3999_v9 = vpop.f32.mrb[20].mxu0 }
0x1110   : > { %v3954_v10 = vadd.f32 %v3953_v39, %v15501_v61  ;;  %v4000_v12 = vadd.f32 %v3999_v9, %v15501_v61  ;;  %v13636_v13 = vpop.f32.mrb[53].mxu1  ;;  %v13642_v14 = vpop.f32.mrb[21].mxu0 }
0x1111   : > { %v3956_v16 = vpop.f32.mrb[54].mxu1  ;;  %v4002_v17 = vpop.f32.mrb[22].mxu0 }
0x1112   : > { %v13637_v18 = vpop.f32.mrb[55].mxu1  ;;  %v13643_v19 = vpop.f32.mrb[23].mxu0  ;;  %v4100_v20 = vsel %vm2375_vm4, %v4000_v12, -inf  ;;  %v4097_v22 = vsel %vm2375_vm4, %v3954_v10, -inf }
0x1113   : > { %4101 = vmax.xlane.f32.xlu1 %v4100_v20  ;;  %4098 = vmax.xlane.f32.xlu0 %v4097_v22 }
0x1117   : > { %v4045_v23 = vpop.f32.mrb[56].mxu1  ;;  %v4091_v25 = vpop.f32.mrb[24].mxu0 }
0x1118   : > { %v4046_v26 = vadd.f32 %v4045_v23, %v15501_v61  ;;  %v13648_v27 = vpop.f32.mrb[57].mxu1  ;;  %v13654_v28 = vpop.f32.mrb[25].mxu0  ;;  %v4092_v33 = vadd.f32 %v4091_v25, %v15501_v61 }
0x1119   : > { %v4048_v29 = vpop.f32.mrb[58].mxu1  ;;  %v4094_v30 = vpop.f32.mrb[26].mxu0 }
0x111a   : > { %v13649_v35 = vpop.f32.mrb[59].mxu1  ;;  %v13655_v36 = vpop.f32.mrb[27].mxu0  ;;  %v4103_v37 = vsel %vm2375_vm4, %v4046_v26, -inf  ;;  %v4106_v38 = vsel %vm2375_vm4, %v4092_v33, -inf }
0x111b   : > { %4104 = vmax.xlane.f32.xlu0 %v4103_v37 }
0x111f   : > { %4107 = vmax.xlane.f32.xlu0 %v4106_v38 }
0x1124   : > { %3767 = vrot.lane.b32.xlu1 %v3458_v41, %s17713_s2 }
0x11a0   : > { %v4102_v42 = vpop.xlane.xlu1 %4101  ;;  %v4099_v43 = vpop.xlane.xlu0 %4098 }
0x11a1   : > { %v4110_v45 = vsub.f32 %v4000_v12, %v4102_v42  ;;  %v4109_v48 = vsub.f32 %v3954_v10, %v4099_v43 }
0x11a3   : > { %v4115_v34 = vmul.f32 1.442695, %v4110_v45  ;;  %v4113_v11 = vmul.f32 1.442695, %v4109_v48 }
0x11a4   : > { %v3768_v63 = vpop.permute.xlu1 %3767 }
0x11a5   : > { %14479 = vpow2.f32 %v4115_v34  ;;  %v3773_v2 = vcombine.low %v3458_v41, %v3768_v63  ;;  %v3774_v3 = vcombine.high %v3458_v41, %v3768_v63 }
0x11a6   : > { %14481 = vpow2.f32 %v4113_v11 }
0x11a7   : > { %v3781_v6 = vrot.slane %v3773_v2, %v15439_v24  ;;  %v3788_v7 = vrot.slane %v3774_v3, %v15439_v24 }
0x11a8   : > { %v4105_v51 = vpop.xlane.xlu0 %4104 }
0x11a9   : > { %v4111_v53 = vsub.f32 %v4046_v26, %v4105_v51 }
0x11ab   : > { %v4117_v55 = vmul.f32 1.442695, %v4111_v53 }
0x11ac   : > { %v4108_v52 = vpop.xlane.xlu0 %4107 }
0x11ad   : > { %v4112_v54 = vsub.f32 %v4092_v33, %v4108_v52  ;;  %14483 = vpow2.f32 %v4117_v55 }
0x11af   : > { %v15741_v61 = vpop.eup %14479  ;;  %v4119_v56 = vmul.f32 1.442695, %v4112_v54 }
0x11b0   : > { %v15743_v49 = vpop.eup %14481  ;;  %v4124_v50 = vsel %vm2375_vm4, %v15741_v61, 0.0 }
0x11b1   : > { %4125 = vadd.xlane.f32.xlu1 %v4124_v50  ;;  %v4121_v32 = vsel %vm2375_vm4, %v15743_v49, 0.0  ;;  %14485 = vpow2.f32 %v4119_v56 }
0x11b2   : > { %4122 = vadd.xlane.f32.xlu0 %v4121_v32 }
0x11b7   : > { %v15751_v58 = vpop.eup %14483 }
0x11b8   : > { %v4127_v62 = vsel %vm2375_vm4, %v15751_v58, 0.0 }
0x11bb   : > { %v15753_v59 = vpop.eup %14485 }
0x11bc   : > { %v4130_v44 = vsel %vm2375_vm4, %v15753_v59, 0.0 }
0x11c2   : > { %3770 = vrot.lane.b32.xlu1 %v3458_v41, %s17715_s9 }
0x11c8   : > { %3764 = vrot.lane.b32.xlu0 %v3458_v41, %s17714_s8 }
0x11e6   : > { %4128 = vadd.xlane.f32.xlu1 %v4127_v62 }
0x11e7   : > { %4131 = vadd.xlane.f32.xlu0 %v4130_v44 }
0x123e   : > { %v4126_v0 = vpop.xlane.xlu1 %4125 }
0x123f   : > { %v4123_v1 = vpop.xlane.xlu0 %4122  ;;  %14487 = vrcp.f32 %v4126_v0 }
0x1240   : > { %14489 = vrcp.f32 %v4123_v1 }
0x1242   : > { %v3771_v4 = vpop.permute.xlu1 %3770 }
0x1243   : > { %v3765_v5 = vpop.permute.xlu0 %3764 }
0x1244   : > { %v3789_v46 = vcombine.low %v3765_v5, %v3771_v4  ;;  %v3790_v15 = vcombine.high %v3765_v5, %v3771_v4 }
0x1246   : > { %v3797_v8 = vrot.slane %v3789_v46, %v15439_v24  ;;  %v3804_v39 = vrot.slane %v3790_v15, %v15439_v24 }
0x1248   : > { %v3805_v9 = vcombine.low %v3781_v6, %v3797_v8  ;;  %v3806_v10 = vcombine.high %v3781_v6, %v3797_v8  ;;  %v3821_v12 = vcombine.low %v3788_v7, %v3804_v39  ;;  %v3822_v13 = vcombine.high %v3788_v7, %v3804_v39 }
0x1249   : > { %v14488_v36 = vpop.eup %14487 }
0x124a   : > { %v3813_v14 = vrot.slane %v3805_v9, %v15442_v31  ;;  %v3820_v16 = vrot.slane %v3806_v10, %v15442_v31  ;;  %v3829_v17 = vrot.slane %v3821_v12, %v15442_v31  ;;  %v3836_v18 = vrot.slane %v3822_v13, %v15442_v31  ;;  %v14490_v42 = vpop.eup %14489 }
0x124b   : > { %v4134_v32 = vmul.f32 %v14490_v42, %v15743_v49  ;;  %v4136_v51 = vmul.f32 %v14488_v36, %v15741_v61  ;;  %v14396_v42 = vld [vmem:[%s17704_s20 + $0x18] sm:$0xff]  }
0x124c   : > { %v3841_v19 = vcombine.low %v3813_v14, %v3820_v16  ;;  %v12946_v20 = vcombine.high %v3813_v14, %v3820_v16  ;;  %v3857_v22 = vcombine.low %v3829_v17, %v3836_v18  ;;  %v12947_v23 = vcombine.high %v3829_v17, %v3836_v18 }
0x124d   : > { %v4141_v56 = vpack.c.bf16 %v4134_v32, %v4134_v32  ;;  %v4142_v62 = vpack.c.bf16 %v4136_v51, %v4136_v51 }
0x124e   : > { %v3848_v25 = vrot.slane %v3841_v19, %v15439_v24  ;;  %v3856_v26 = vrot.slane %v12946_v20, %v15439_v24  ;;  %v3864_v27 = vrot.slane %v3857_v22, %v15439_v24  ;;  %v3872_v28 = vrot.slane %v12947_v23, %v15439_v24 }
0x1250   : > { %v3873_v29 = vcombine.low %v3848_v25, %v3856_v26  ;;  %v3889_v30 = vcombine.low %v3864_v27, %v3872_v28  ;;  %v3874_v33 = vcombine.high %v3848_v25, %v3856_v26  ;;  %v3890_v35 = vcombine.high %v3864_v27, %v3872_v28 }
0x1252   : > { %v3881_v37 = vrot.slane %v3873_v29, %v15442_v31  ;;  %v3897_v38 = vrot.slane %v3889_v30, %v15442_v31  ;;  %v3888_v40 = vrot.slane %v3874_v33, %v15442_v31  ;;  %v3904_v41 = vrot.slane %v3890_v35, %v15442_v31  ;;  %v14395_v29 = vld [vmem:[%s17704_s20 + $0x10] sm:$0xff]   ;;  %s17732_s20 = sld [smem:[#allocation55_spill]] }
0x1254   : > { %v3905_v43 = vcombine.low %v3881_v37, %v3897_v38  ;;  %v3906_v45 = vcombine.high %v3881_v37, %v3897_v38  ;;  %v3907_v48 = vcombine.low %v3888_v40, %v3904_v41  ;;  %v3908_v34 = vcombine.high %v3888_v40, %v3904_v41 }
0x1256   : > { %v3909_v11 = vpack.c.bf16 %v3905_v43, %v3905_v43  ;;  %v3910_v50 = vpack.c.bf16 %v3906_v45, %v3906_v45  ;;  %v3911_v54 = vpack.c.bf16 %v3907_v48, %v3907_v48  ;;  %v3912_v55 = vpack.c.bf16 %v3908_v34, %v3908_v34 }
0x1258   : > { %v4149_v52 = vsel %vm2611_vm6, %v3909_v11, 0  ;;  %v4195_v53 = vsel %vm2611_vm6, %v3910_v50, 0  ;;  %v4241_v61 = vsel %vm2611_vm6, %v3911_v54, 0  ;;  %v4287_v49 = vsel %vm2611_vm6, %v3912_v55, 0 }
0x1259   : > { %13657 = vmatpush3.bf16.msra.mxu1 %v4149_v52  ;;  %13663 = vmatpush3.bf16.msra.mxu0 %v4195_v53 }
0x125a   : > { %13668 = vmatprep.subr.bf16.mxu1 %v14948_v47  ;;  %13674 = vmatprep.subr.bf16.mxu0 %v14948_v47 }
0x125c   : > { %13659 = vmatmul.mubr.msk.bf16.vlgmr.msra.gmra.mrb[60].mxu1 %vm2375_vm4, %v4141_v56  ;;  %13665 = vmatmul.mubr.msk.bf16.vlgmr.msra.gmra.mrb[28].mxu0 %vm2375_vm4, %v4142_v62 }
0x125d   : > { %13669 = vmatpush3.bf16.msra.mxu1 %v4241_v61  ;;  %13675 = vmatpush3.bf16.msra.mxu0 %v4287_v49 }
0x125e   : > { %13670 = vmatprep.mubr.msk.bf16.mxu1 %vm14949_vm3, %v14948_v47  ;;  %13676 = vmatprep.mubr.msk.bf16.mxu0 %vm14949_vm3, %v14948_v47 }
0x125f   : > { %13680 = vmatprep.subr.bf16.mxu1 %v14948_v47  ;;  %13688 = vmatprep.subr.bf16.mxu0 %v14948_v47 }
0x1273   : > { %v4129_v44 = vpop.xlane.xlu1 %4128 }
0x1274   : > { %14491 = vrcp.f32 %v4129_v44  ;;  %v4132_v63 = vpop.xlane.xlu0 %4131 }
0x1275   : > { %14493 = vrcp.f32 %v4132_v63 }
0x127e   : > { %v14492_v0 = vpop.eup %14491 }
0x127f   : > { %v14494_v1 = vpop.eup %14493  ;;  %v4138_v2 = vmul.f32 %v14492_v0, %v15751_v58 }
0x1280   : > { %v4140_v3 = vmul.f32 %v14494_v1, %v15753_v59 }
0x1281   : > { %v4143_v4 = vpack.c.bf16 %v4138_v2, %v4138_v2 }
0x1282   : > { %v4144_v5 = vpack.c.bf16 %v4140_v3, %v4140_v3 }
0x1283   : > { %13671 = vmatmul.mubr.msk.bf16.vlgmr.msra.gmra.mrb[64].mxu1 %vm2375_vm4, %v4143_v4 }
0x1284   : > { %13677 = vmatmul.mubr.msk.bf16.vlgmr.msra.gmra.mrb[32].mxu0 %vm2375_vm4, %v4144_v5  ;;  %13684 = vmatprep.mubr.msk.bf16.mxu1 %vm14949_vm3, %v14948_v47 }
0x1285   : > { %13692 = vmatprep.mubr.msk.bf16.mxu0 %vm14949_vm3, %v14948_v47  ;;  %13681 = vmatpush3.bf16.msra.mxu1 %v14395_v29  ;;  %v12970_v29 = vld [vmem:[%s17709_s7 + $0x1] ss:$0 sm:$0xff]  ;;  %s17721_s7 = sld [smem:[#allocation21_spill]] }
0x1286   : > { %13682 = vmatprep.subr.bf16.mxu1 %v14948_v47 }
0x1289   : > { %13683 = vmatpush3.bf16.msra.mxu1 %v14396_v42  ;;  %v14405_v42 = vld [vmem:[%s17707_s15 + $0x70] sm:$0xff]  }
0x128a   : > { %13696 = vmatprep.subr.bf16.mxu1 %v14948_v47 }
0x132f   : > { %v4185_v46 = vpop.f32.mrb[60].mxu1  ;;  %v4231_v15 = vpop.f32.mrb[28].mxu0 }
0x1330   : > { %v13660_v6 = vpop.f32.mrb[61].mxu1  ;;  %v13666_v7 = vpop.f32.mrb[29].mxu0 }
0x1331   : > { %v4188_v8 = vpop.f32.mrb[62].mxu1  ;;  %v4234_v58 = vpop.f32.mrb[30].mxu0 }
0x1332   : > { %v13661_v39 = vpop.f32.mrb[63].mxu1  ;;  %v13667_v59 = vpop.f32.mrb[31].mxu0  ;;  %v12966_v8 = vld [vmem:[%s17705_s3 + $0x1] ss:$0 sm:$0xff]  ;;  %s17719_s3 = sld [smem:[#allocation43_spill]] }
0x1356   : > { %v4277_v9 = vpop.f32.mrb[64].mxu1 }
0x1357   : > { %v4329_v10 = vcombine.low %v4185_v46, %v4277_v9  ;;  %v4330_v12 = vcombine.high %v4185_v46, %v4277_v9  ;;  %v4323_v13 = vpop.f32.mrb[32].mxu0  ;;  %v13672_v14 = vpop.f32.mrb[65].mxu1 }
0x1358   : > { %v4345_v16 = vcombine.low %v4231_v15, %v4323_v13  ;;  %v4346_v17 = vcombine.high %v4231_v15, %v4323_v13  ;;  %v13678_v18 = vpop.f32.mrb[33].mxu0  ;;  %v4280_v19 = vpop.f32.mrb[66].mxu1 }
0x1359   : > { %v4337_v20 = vrot.slane %v4329_v10, %v15439_v24  ;;  %v4344_v22 = vrot.slane %v4330_v12, %v15439_v24  ;;  %v4326_v23 = vpop.f32.mrb[34].mxu0  ;;  %v13673_v25 = vpop.f32.mrb[67].mxu1  ;;  %v14398_v19 = vld [vmem:[%s17706_s22 + $0x18] sm:$0xff]  }
0x135a   : > { %v4353_v26 = vrot.slane %v4345_v16, %v15439_v24  ;;  %v4360_v27 = vrot.slane %v4346_v17, %v15439_v24  ;;  %v13679_v28 = vpop.f32.mrb[35].mxu0 }
0x135c   : > { %v4361_v30 = vcombine.low %v4337_v20, %v4353_v26  ;;  %v4362_v33 = vcombine.high %v4337_v20, %v4353_v26  ;;  %v4377_v35 = vcombine.low %v4344_v22, %v4360_v27  ;;  %v4378_v36 = vcombine.high %v4344_v22, %v4360_v27  ;;  %v14399_v20 = vld [vmem:[%s17707_s15 + $0x40] sm:$0xff]  }
0x135d   : > { %v12969_v27 = vld [vmem:[%s17708_s4 + $0x1] ss:$0 sm:$0xff]  ;;  %s17720_s4 = sld [smem:[#allocation44_spill]] }
0x135e   : > { %v4369_v37 = vrot.slane %v4361_v30, %v15442_v31  ;;  %v4376_v38 = vrot.slane %v4362_v33, %v15442_v31  ;;  %v4385_v40 = vrot.slane %v4377_v35, %v15442_v31  ;;  %v4392_v41 = vrot.slane %v4378_v36, %v15442_v31  ;;  %v14400_v36 = vld [vmem:[%s17707_s15 + $0x48] sm:$0xff]  }
0x1360   : > { %v4397_v43 = vcombine.low %v4369_v37, %v4376_v38  ;;  %v12956_v45 = vcombine.high %v4369_v37, %v4376_v38  ;;  %v4413_v48 = vcombine.low %v4385_v40, %v4392_v41  ;;  %v12957_v34 = vcombine.high %v4385_v40, %v4392_v41  ;;  %v14401_v37 = vld [vmem:[%s17707_s15 + $0x50] sm:$0xff]   ;;  %v14402_v38 = vld [vmem:[%s17707_s15 + $0x58] sm:$0xff]   ;;  %v14403_v40 = vld [vmem:[%s17707_s15 + $0x60] sm:$0xff]  }
0x1361   : > { %v14404_v41 = vld [vmem:[%s17707_s15 + $0x68] sm:$0xff]  }
0x1362   : > { %v4404_v11 = vrot.slane %v4397_v43, %v15439_v24  ;;  %v4412_v50 = vrot.slane %v12956_v45, %v15439_v24  ;;  %v4420_v32 = vrot.slane %v4413_v48, %v15439_v24  ;;  %v4428_v51 = vrot.slane %v12957_v34, %v15439_v24  ;;  %v14406_v43 = vld [vmem:[%s17707_s15 + $0x78] sm:$0xff]   ;;  %v12976_v45 = vld [vmem:[%s17711_s13 + $0x1] ss:$0 sm:$0xff]  ;;  %s17727_s13 = sld [smem:[#allocation47_spill]]  ;;  %s17729_s15 = sld [smem:[#allocation49_spill]] }
0x1364   : > { %v4430_v52 = vcombine.high %v4404_v11, %v4412_v50  ;;  %v4446_v53 = vcombine.high %v4420_v32, %v4428_v51  ;;  %v4429_v54 = vcombine.low %v4404_v11, %v4412_v50  ;;  %v4445_v55 = vcombine.low %v4420_v32, %v4428_v51 }
0x1366   : > { %v4444_v56 = vrot.slane %v4430_v52, %v15442_v31  ;;  %v4460_v62 = vrot.slane %v4446_v53, %v15442_v31  ;;  %v4437_v61 = vrot.slane %v4429_v54, %v15442_v31  ;;  %v4453_v49 = vrot.slane %v4445_v55, %v15442_v31 }
0x1368   : > { %v4463_v44 = vcombine.low %v4444_v56, %v4460_v62  ;;  %v4462_v63 = vcombine.high %v4437_v61, %v4453_v49  ;;  %v4464_v0 = vcombine.high %v4444_v56, %v4460_v62  ;;  %v4461_v1 = vcombine.low %v4437_v61, %v4453_v49 }
0x136a   : > { %4470 = vrot.lane.b32.xlu1 %v4463_v44, %s17716_s5  ;;  %4466 = vrot.lane.b32.xlu0 %v4462_v63, %s17717_s6  ;;  %v12997_v63 = vld [vmem:[%s17712_s11 + $0x1] ss:$0 sm:$0xff]  ;;  %s17726_s11 = sld [smem:[#allocation46_spill]] }
0x136e   : > { %4474 = vrot.lane.b32.xlu1 %v4464_v0, %s17718_s12 }
0x13dc   : > { %v4471_v2 = vpop.permute.xlu1 %4470  ;;  %v4467_v3 = vpop.permute.xlu0 %4466 }
0x13dd   : > { %v4477_v4 = vsel %vm2375_vm4, %v4461_v1, %v4467_v3 }
0x13de   : > { %v4478_v46 = vsel %vm2942_vm7, %v4477_v4, %v4471_v2 }
0x13e0   : > { %v4475_v5 = vpop.permute.xlu1 %4474 }
0x13e1   : > { %v4479_v15 = vsel %vm2944_vm8, %v4478_v46, %v4475_v5 }
0x13e2   : > { %v4480_v6 = vpack.c.bf16 %v4479_v15, %v4479_v15 }
0x13e4   : > { %13685 = vmatmul.mubr.msk.bf16.vlgmr.msra.gmra.mrb[68].mxu1 %vm1670_vm2, %v4480_v6 }
0x13e5   : > { %13712 = vmatprep.mubr.msk.bf16.mxu1 %vm14949_vm3, %v14948_v47  ;;  %13697 = vmatpush3.bf16.msra.mxu1 %v14399_v20  ;;  %v14413_v20 = vld [vmem:[%s17721_s7] sm:$0xff]  }
0x13e6   : > { %13698 = vmatprep.subr.bf16.mxu1 %v14948_v47 }
0x13e9   : > { %13699 = vmatpush3.bf16.msra.mxu1 %v14400_v36 }
0x13ea   : > { %13700 = vmatprep.subr.bf16.mxu1 %v14948_v47 }
0x13ed   : > { %13701 = vmatpush3.bf16.msra.mxu1 %v14401_v37 }
0x13ee   : > { %13702 = vmatprep.subr.bf16.mxu1 %v14948_v47 }
0x13f1   : > { %13703 = vmatpush3.bf16.msra.mxu1 %v14402_v38 }
0x13f2   : > { %13704 = vmatprep.subr.bf16.mxu1 %v14948_v47 }
0x13f5   : > { %13705 = vmatpush3.bf16.msra.mxu1 %v14403_v40 }
0x13f6   : > { %13706 = vmatprep.subr.bf16.mxu1 %v14948_v47 }
0x13f9   : > { %13707 = vmatpush3.bf16.msra.mxu1 %v14404_v41 }
0x13fa   : > { %13708 = vmatprep.subr.bf16.mxu1 %v14948_v47 }
0x13fd   : > { %13709 = vmatpush3.bf16.msra.mxu1 %v14405_v42 }
0x13fe   : > { %13710 = vmatprep.subr.bf16.mxu1 %v14948_v47 }
0x1401   : > { %13711 = vmatpush3.bf16.msra.mxu1 %v14406_v43 }
0x14b7   : > { %v4535_v7 = vpop.f32.mrb[68].mxu1 }
0x14b8   : > { %v4541_v58 = vadd.f32 %v4535_v7, %v15639_v57  ;;  %v13686_v39 = vpop.f32.mrb[69].mxu1  ;;  %v14397_v57 = vld [vmem:[%s17706_s22 + $0x10] sm:$0xff]   ;;  %s17734_s22 = sld [smem:[#allocation56_spill]] }
0x14b9   : > { %v4538_v59 = vpop.f32.mrb[70].mxu1  ;;  %13689 = vmatpush3.bf16.msra.mxu0 %v14397_v57  ;;  %v14407_v39 = vld [vmem:[%s17719_s3] sm:$0xff]  }
0x14ba   : > { %v15830_v9 = vadd.f32 %v12966_v8, %v4541_v58  ;;  %v13687_v10 = vpop.f32.mrb[71].mxu1  ;;  %13690 = vmatprep.subr.bf16.mxu0 %v14948_v47  ;;  %v14408_v59 = vld [vmem:[%s17719_s3 + $0x8] sm:$0xff]   ;;  %s17722_s3 = sld [smem:[#allocation45_spill]] }
0x14bb   : > { %v14409_v10 = vld [vmem:[%s17720_s4] sm:$0xff]  }
0x14bc   : > { %v4555_v12 = vsel %vm1670_vm2, %v15830_v9, 0.0 }
0x14bd   : > { %4556 = vadd.xlane.f32.xlu0 %v4555_v12  ;;  %13691 = vmatpush3.bf16.msra.mxu0 %v14398_v19 }
0x14be   : > { %13716 = vmatprep.subr.bf16.mxu0 %v14948_v47 }
0x154a   : > { %v4557_v13 = vpop.xlane.xlu0 %4556 }
0x154b   : > { %v4558_v14 = vmul.f32 0.03125, %v4557_v13 }
0x154d   : > { %v4559_v16 = vsub.f32 %v15830_v9, %v4558_v14 }
0x154f   : > { %v4560_v17 = vmul.f32 %v4559_v16, %v4559_v16 }
0x1551   : > { %v4561_v18 = vsel %vm1670_vm2, %v4560_v17, 0.0 }
0x1552   : > { %4562 = vadd.xlane.f32.xlu1 %v4561_v18  ;;  %v4776_v18 = vld [vmem:[#allocation9] sm:$0x1] }
0x15df   : > { %v4563_v22 = vpop.xlane.xlu1 %4562 }
0x15e0   : > { %v4564_v23 = vmul.f32 0.03125, %v4563_v22 }
0x15e2   : > { %v4565_v25 = vadd.f32 1e-05, %v4564_v23  ;;  %v14410_v23 = vld [vmem:[%s17720_s4 + $0x8] sm:$0xff]  }
0x15e4   : > { %14495 = vrsqrt.f32 %v4565_v25  ;;  %v14411_v25 = vld [vmem:[%s17720_s4 + $0x10] sm:$0xff]  }
0x15ee   : > { %v14496_v26 = vpop.eup %14495 }
0x15ef   : > { %v4567_v28 = vmul.f32 %v14496_v26, %v4559_v16  ;;  %v4775_v16 = vld [vmem:[#allocation8] sm:$0x1]  ;;  %v14412_v26 = vld [vmem:[%s17720_s4 + $0x18] sm:$0xff]   ;;  %s17724_s4 = sld [smem:[#allocation50_spill]] }
0x15f1   : > { %v4574_v30 = vmul.f32 %v12969_v27, %v4567_v28  ;;  %v14414_v27 = vld [vmem:[%s17721_s7 + $0x8] ss:$0 sps:$4 sm:$0xff]   ;;  %s17725_s7 = sld [smem:[#allocation52_spill]] }
0x15f3   : > { %v4581_v33 = vadd.f32 %v12970_v29, %v4574_v30 }
0x15f5   : > { %v4582_v35 = vpack.c.bf16 %v4581_v33, %v4581_v33 }
0x15f7   : > { %13693 = vmatmul.mubr.msk.bf16.vlgmr.msra.gmra.mrb[36].mxu0 %vm1670_vm2, %v4582_v35  ;;  %v4864_v35 = vld [vmem:[%s17722_s3] sm:$0xff]  ;;  %s17723_s3 = sld [smem:[#allocation48_spill]] }
0x15f8   : > { %13720 = vmatprep.mubr.msk.bf16.mxu0 %vm14949_vm3, %v14948_v47  ;;  %13717 = vmatpush3.bf16.msra.mxu0 %v14407_v39 }
0x15f9   : > { %13718 = vmatprep.subr.bf16.mxu0 %v14948_v47 }
0x15fc   : > { %13719 = vmatpush3.bf16.msra.mxu0 %v14408_v59 }
0x15fd   : > { %13724 = vmatprep.subr.bf16.mxu0 %v14409_v10 }
0x16ca   : > { %v4645_v48 = vpop.f32.mrb[36].mxu0 }
0x16cb   : > { %v4646_v34 = vadd.f32 %v12976_v45, %v4645_v48  ;;  %v13694_v11 = vpop.f32.mrb[37].mxu0 }
0x16cc   : > { %v4648_v50 = vpop.f32.mrb[38].mxu0 }
0x16cd   : > { %v4652_v32 = vmul.f32 0.044715, %v4646_v34  ;;  %v13695_v51 = vpop.f32.mrb[39].mxu0  ;;  %v4651_v62 = vmul.f32 0.5, %v4646_v34 }
0x16cf   : > { %v4653_v52 = vmul.f32 %v4652_v32, %v4646_v34 }
0x16d1   : > { %v4654_v53 = vmul.f32 %v4653_v52, %v4646_v34 }
0x16d3   : > { %v4655_v54 = vadd.f32 %v4654_v53, %v4646_v34 }
0x16d5   : > { %v4656_v55 = vmul.f32 0.7978846, %v4655_v54 }
0x16d7   : > { %14497 = vtanh.f32 %v4656_v55 }
0x16e1   : > { %v14498_v56 = vpop.eup %14497 }
0x16e2   : > { %v4658_v61 = vadd.f32 1.0, %v14498_v56 }
0x16e4   : > { %v4659_v49 = vmul.f32 %v4658_v61, %v4651_v62 }
0x16e6   : > { %v4660_v44 = vpack.c.bf16 %v4659_v49, %v4659_v49 }
0x16e8   : > { %13713 = vmatmul.mubr.bf16.vlgmr.msra.gmra.mrb[72].mxu1 %v4660_v44 }
0x17bb   : > { %v4768_v0 = vpop.f32.mrb[72].mxu1 }
0x17bc   : > { %v4769_v1 = vadd.f32 %v12997_v63, %v4768_v0  ;;  %v13714_v2 = vpop.f32.mrb[73].mxu1 }
0x17bd   : > { %v4771_v3 = vpop.f32.mrb[74].mxu1  ;;  %v14416_v2 = vld [vmem:[%s17724_s4] sm:$0xff]  }
0x17be   : > { %v13715_v4 = vpop.f32.mrb[75].mxu1  ;;  %v4774_v5 = vadd.f32 %v4769_v1, %v15830_v9  ;;  %v14415_v1 = vld [vmem:[%s17723_s3] sm:$0xff]   ;;  %13744 = vmatprep.subr.bf16.mxu1 %v14416_v2  ;;  %v14417_v3 = vld [vmem:[%s17723_s3 + $0x8] sm:$0xff]  }
0x17bf   : > { %v14418_v4 = vld [vmem:[%s17724_s4 + $0x8] sm:$0xff]   ;;  %13745 = vmatpush3.bf16.msra.mxu1 %v14416_v2 }
0x17c0   : > { %v4778_v46 = vsel %vm4777_vm9, %v4774_v5, 0.0  ;;  %13746 = vmatprep.subr.bf16.mxu1 %v14418_v4 }
0x17c1   : > { %4779 = vadd.xlane.f32.xlu0 %v4778_v46 }
0x17c3   : > { %13747 = vmatpush3.bf16.msra.mxu1 %v14418_v4 }
0x17c4   : > { %13760 = vmatprep.subr.bf16.mxu1 %v14948_v47 }
0x184e   : > { %v4780_v15 = vpop.xlane.xlu0 %4779 }
0x184f   : > { %v4781_v6 = vmul.f32 0.03125, %v4780_v15 }
0x1851   : > { %v4782_v7 = vsub.f32 %v4774_v5, %v4781_v6  ;;  %v14419_v5 = vld [vmem:[%s17725_s7] sm:$0xff]  }
0x1853   : > { %v4783_v8 = vmul.f32 %v4782_v7, %v4782_v7 }
0x1855   : > { %v4784_v58 = vsel %vm4777_vm9, %v4783_v8, 0.0 }
0x1856   : > { %4785 = vadd.xlane.f32.xlu0 %v4784_v58 }
0x18e3   : > { %v4786_v9 = vpop.xlane.xlu0 %4785 }
0x18e4   : > { %v4787_v12 = vmul.f32 0.03125, %v4786_v9 }
0x18e6   : > { %v4788_v13 = vadd.f32 1e-05, %v4787_v12  ;;  %v13017_v12 = vld [vmem:[%s17726_s11] ss:$0 sm:$0xff] }
0x18e8   : > { %14499 = vrsqrt.f32 %v4788_v13 }
0x18f2   : > { %v14500_v14 = vpop.eup %14499 }
0x18f3   : > { %v4790_v17 = vmul.f32 %v14500_v14, %v4782_v7 }
0x18f5   : > { %v4791_v57 = vmul.f32 %v4790_v17, %v4775_v16 }
0x18f7   : > { %v4792_v19 = vadd.f32 %v4791_v57, %v4776_v18  ;;  %v13018_v57 = vld [vmem:[%s17727_s13] ss:$0 sm:$0xff] }
0x18f9   : > { %v4793_v22 = vpack.c.bf16 %v4792_v19, %v4792_v19 }
0x18fb   : > { %13721 = vmatmul.mubr.msk.bf16.vlgmr.msra.gmra.mrb[40].mxu0 %vm1670_vm2, %v4793_v22 }
0x18fc   : > { %13725 = vmatpush3.bf16.msra.mxu0 %v14409_v10  ;;  %13732 = vmatprep.mubr.msk.bf16.mxu0 %vm4897_vm10, %v14413_v20 }
0x18fd   : > { %13726 = vmatprep.subr.bf16.mxu0 %v14410_v23 }
0x1900   : > { %13727 = vmatpush3.bf16.msra.mxu0 %v14410_v23 }
0x1901   : > { %13728 = vmatprep.subr.bf16.mxu0 %v14411_v25 }
0x1904   : > { %13729 = vmatpush3.bf16.msra.mxu0 %v14411_v25 }
0x1905   : > { %13730 = vmatprep.subr.bf16.mxu0 %v14412_v26 }
0x1908   : > { %13731 = vmatpush3.bf16.msra.mxu0 %v14412_v26 }
0x1909   : > { %13736 = vmatprep.subr.bf16.mxu0 %v14415_v1 }
0x190b   : > { %13733 = vmatmul.mubr.msk.bf16.vlgmr.msra.gmra.mrb[44].mxu0 %vm4897_vm10, %v14414_v27 }
0x190c   : > { %13737 = vmatpush3.bf16.msra.mxu0 %v14415_v1 }
0x190d   : > { %13738 = vmatprep.subr.bf16.mxu0 %v14417_v3 }
0x1910   : > { %13739 = vmatpush3.bf16.msra.mxu0 %v14417_v3 }
0x1911   : > { %13752 = vmatprep.subr.bf16.mxu0 %v14419_v5 }
0x19ce   : > { %v15875_v28 = vpop.f32.mrb[40].mxu0 }
0x19cf   : > { %v13722_v29 = vpop.f32.mrb[41].mxu0 }
0x19d0   : > { %v4850_v30 = vpop.f32.mrb[42].mxu0 }
0x19d1   : > { %v13723_v33 = vpop.f32.mrb[43].mxu0  ;;  %v14420_v30 = vld [vmem:[%s17725_s7 + $0x8] sm:$0xff]  }
0x19d2   : > { %v13024_v33 = vld [vmem:[%s17728_s14] ss:$0 sm:$0xff] }
0x19de   : > { %v13734_v36 = vpop.f32.mrb[44].mxu0 }
0x19df   : > { %v4938_v37 = vpop.f32.mrb[45].mxu0  ;;  %v15880_v42 = vadd.f32 %v13734_v36, %v4864_v35 }
0x19e0   : > { %v15878_v38 = vadd.f32 %v4938_v37, %v4864_v35  ;;  %v13735_v40 = vpop.f32.mrb[46].mxu0 }
0x19e1   : > { %v4941_v41 = vpop.f32.mrb[47].mxu0  ;;  %v4964_v34 = vsel %vm1670_vm2, %v15880_v42, 0.0 }
0x19e2   : > { %v15882_v43 = vadd.f32 %v4941_v41, %v4864_v35  ;;  %v4958_v45 = vsel %vm1670_vm2, %v15878_v38, 0.0 }
0x19e3   : > { %4959 = vadd.xlane.f32.xlu0 %v4958_v45 }
0x19e4   : > { %v4961_v48 = vsel %vm1670_vm2, %v15882_v43, 0.0 }
0x19e5   : > { %4962 = vadd.xlane.f32.xlu1 %v4961_v48 }
0x19e7   : > { %4965 = vadd.xlane.f32.xlu0 %v4964_v34  ;;  %v13019_v34 = vld [vmem:[%s17729_s15] ss:$0 sm:$0xff] }
0x1a70   : > { %v4960_v11 = vpop.xlane.xlu0 %4959 }
0x1a71   : > { %v4967_v50 = vmul.f32 0.03125, %v4960_v11 }
0x1a72   : > { %v4963_v32 = vpop.xlane.xlu1 %4962 }
0x1a73   : > { %v4970_v51 = vsub.f32 %v15878_v38, %v4967_v50  ;;  %v4968_v52 = vmul.f32 0.03125, %v4963_v32 }
0x1a74   : > { %v4966_v53 = vpop.xlane.xlu0 %4965 }
0x1a75   : > { %v4971_v54 = vsub.f32 %v15882_v43, %v4968_v52  ;;  %v4969_v55 = vmul.f32 0.03125, %v4966_v53  ;;  %v4973_v56 = vmul.f32 %v4970_v51, %v4970_v51 }
0x1a77   : > { %v4972_v62 = vsub.f32 %v15880_v42, %v4969_v55  ;;  %v4976_v61 = vsel %vm1670_vm2, %v4973_v56, 0.0  ;;  %v4974_v49 = vmul.f32 %v4971_v54, %v4971_v54 }
0x1a78   : > { %4977 = vadd.xlane.f32.xlu1 %v4976_v61 }
0x1a79   : > { %v4979_v44 = vsel %vm1670_vm2, %v4974_v49, 0.0  ;;  %v4975_v63 = vmul.f32 %v4972_v62, %v4972_v62 }
0x1a7a   : > { %4980 = vadd.xlane.f32.xlu0 %v4979_v44 }
0x1a7b   : > { %v4982_v0 = vsel %vm1670_vm2, %v4975_v63, 0.0 }
0x1a7c   : > { %4983 = vadd.xlane.f32.xlu1 %v4982_v0 }
0x1b05   : > { %v4978_v46 = vpop.xlane.xlu1 %4977 }
0x1b06   : > { %v4985_v15 = vmul.f32 0.03125, %v4978_v46 }
0x1b07   : > { %v4981_v6 = vpop.xlane.xlu0 %4980 }
0x1b08   : > { %v4988_v7 = vadd.f32 1e-05, %v4985_v15  ;;  %v4986_v8 = vmul.f32 0.03125, %v4981_v6 }
0x1b09   : > { %v4984_v58 = vpop.xlane.xlu1 %4983 }
0x1b0a   : > { %14501 = vrsqrt.f32 %v4988_v7  ;;  %v4989_v39 = vadd.f32 1e-05, %v4986_v8  ;;  %v4987_v59 = vmul.f32 0.03125, %v4984_v58 }
0x1b0c   : > { %14503 = vrsqrt.f32 %v4989_v39  ;;  %v4990_v10 = vadd.f32 1e-05, %v4987_v59 }
0x1b0e   : > { %14505 = vrsqrt.f32 %v4990_v10 }
0x1b14   : > { %v14502_v9 = vpop.eup %14501 }
0x1b15   : > { %v4994_v13 = vmul.f32 %v14502_v9, %v4970_v51  ;;  %v13029_v51 = vld [vmem:[%s17730_s16] ss:$0 sm:$0xff] }
0x1b16   : > { %v14504_v14 = vpop.eup %14503 }
0x1b17   : > { %v4995_v16 = vmul.f32 %v14504_v14, %v4971_v54  ;;  %v5003_v17 = vmul.f32 %v13017_v12, %v4994_v13 }
0x1b18   : > { %v14506_v18 = vpop.eup %14505 }
0x1b19   : > { %v4996_v19 = vmul.f32 %v14506_v18, %v4972_v62  ;;  %v5004_v20 = vmul.f32 %v13017_v12, %v4995_v16  ;;  %v5012_v22 = vadd.f32 %v13018_v57, %v5003_v17 }
0x1b1b   : > { %v5013_v23 = vadd.f32 %v13018_v57, %v5004_v20  ;;  %v5005_v25 = vmul.f32 %v13017_v12, %v4996_v19 }
0x1b1d   : > { %v5015_v26 = vpack.c.bf16 %v5013_v23, %v5012_v22  ;;  %v5014_v27 = vadd.f32 %v13018_v57, %v5005_v25 }
0x1b1f   : > { %13740 = vmatprep.mubr.msk.bf16.mxu0 %vm1670_vm2, %v5015_v26  ;;  %13748 = vmatprep.mubr.msk.bf16.mxu1 %vm1670_vm2, %v5015_v26  ;;  %v5016_v29 = vpack.c.bf16 %v5014_v27, %v5014_v27 }
0x1b21   : > { %13741 = vmatmul.mubr.msk.bf16.vlgmr.msra.gmra.mrb[48].mxu0 %vm1670_vm2, %v5016_v29  ;;  %13749 = vmatmul.mubr.msk.bf16.vlgmr.msra.gmra.mrb[76].mxu1 %vm1670_vm2, %v5016_v29 }
0x1b22   : > { %13753 = vmatpush3.bf16.msra.mxu0 %v14419_v5  ;;  %13756 = vmatprep.mubr.msk.bf16.mxu0 %vm1670_vm2, %v5015_v26 }
0x1b23   : > { %13754 = vmatprep.subr.bf16.mxu0 %v14420_v30  ;;  %13762 = vmatprep.mubr.msk.bf16.mxu1 %vm14949_vm3, %v14948_v47 }
0x1b26   : > { %13755 = vmatpush3.bf16.msra.mxu0 %v14420_v30 }
0x1b27   : > { %13766 = vmatprep.subr.bf16.mxu0 %v14948_v47 }
0x1b29   : > { %13757 = vmatmul.mubr.msk.bf16.vlgmr.msra.gmra.mrb[52].mxu0 %vm1670_vm2, %v5016_v29 }
0x1b2a   : > { %13768 = vmatprep.mubr.msk.bf16.mxu0 %vm14949_vm3, %v14948_v47 }
0x1bf4   : > { %v13742_v35 = vpop.f32.mrb[48].mxu0  ;;  %v13750_v36 = vpop.f32.mrb[76].mxu1 }
0x1bf5   : > { %v5080_v37 = vpop.f32.mrb[49].mxu0  ;;  %v5151_v40 = vpop.f32.mrb[77].mxu1  ;;  %v15944_v49 = vadd.f32 %v13750_v36, %v13024_v33  ;;  %v15954_v44 = vadd.f32 %v13742_v35, %v13019_v34 }
0x1bf6   : > { %v5152_v41 = vadd.f32 %v13024_v33, %v5151_v40  ;;  %v13743_v45 = vpop.f32.mrb[50].mxu0  ;;  %v13751_v48 = vpop.f32.mrb[78].mxu1  ;;  %v15920_v32 = vadd.f32 %v13019_v34, %v5080_v37 }
0x1bf7   : > { %v5083_v11 = vpop.f32.mrb[51].mxu0  ;;  %v5154_v50 = vpop.f32.mrb[79].mxu1 }
0x1bf8   : > { %5698 = vrot.lane.b32.xlu1 %v5152_v41, %s17713_s2  ;;  %5689 = vrot.lane.b32.xlu0 %v5152_v41, %s17714_s8  ;;  %v15928_v55 = vadd.f32 %v13024_v33, %v5154_v50  ;;  %v15938_v61 = vadd.f32 %v13019_v34, %v5083_v11 }
0x1bfc   : > { %v13758_v52 = vpop.f32.mrb[52].mxu0  ;;  %5707 = vrot.lane.b32.xlu1 %v5152_v41, %s17715_s9  ;;  %5248 = vrot.lane.b32.xlu0 %v15920_v32, %s17713_s2 }
0x1bfd   : > { %v15926_v53 = vadd.f32 %v13758_v52, %v13029_v51  ;;  %v5222_v54 = vpop.f32.mrb[53].mxu0 }
0x1bfe   : > { %v13759_v56 = vpop.f32.mrb[54].mxu0  ;;  %v15960_v63 = vadd.f32 %v13029_v51, %v5222_v54 }
0x1bff   : > { %v5225_v62 = vpop.f32.mrb[55].mxu0 }
0x1c00   : > { %5239 = vrot.lane.b32.xlu1 %v15920_v32, %s17714_s8  ;;  %5691 = vrot.lane.b32.xlu0 %v15928_v55, %s17714_s8  ;;  %v15972_v0 = vadd.f32 %v13029_v51, %v5225_v62 }
0x1c04   : > { %5257 = vrot.lane.b32.xlu1 %v15920_v32, %s17715_s9  ;;  %5709 = vrot.lane.b32.xlu0 %v15928_v55, %s17715_s9 }
0x1c08   : > { %5700 = vrot.lane.b32.xlu1 %v15928_v55, %s17713_s2  ;;  %5250 = vrot.lane.b32.xlu0 %v15938_v61, %s17713_s2 }
0x1c0c   : > { %5241 = vrot.lane.b32.xlu1 %v15938_v61, %s17714_s8  ;;  %5693 = vrot.lane.b32.xlu0 %v15944_v49, %s17714_s8 }
0x1c10   : > { %5259 = vrot.lane.b32.xlu1 %v15938_v61, %s17715_s9  ;;  %5711 = vrot.lane.b32.xlu0 %v15944_v49, %s17715_s9 }
0x1c14   : > { %5702 = vrot.lane.b32.xlu1 %v15944_v49, %s17713_s2  ;;  %5252 = vrot.lane.b32.xlu0 %v15954_v44, %s17713_s2 }
0x1c18   : > { %5243 = vrot.lane.b32.xlu1 %v15954_v44, %s17714_s8  ;;  %6139 = vrot.lane.b32.xlu0 %v15960_v63, %s17714_s8 }
0x1c1c   : > { %5261 = vrot.lane.b32.xlu1 %v15954_v44, %s17715_s9 }
0x1c20   : > { %6148 = vrot.lane.b32.xlu1 %v15960_v63, %s17713_s2 }
0x1c24   : > { %6157 = vrot.lane.b32.xlu1 %v15960_v63, %s17715_s9 }
0x1c28   : > { %6141 = vrot.lane.b32.xlu1 %v15972_v0, %s17714_s8 }
0x1c6a   : > { %v5699_v1 = vpop.permute.xlu1 %5698  ;;  %v5690_v2 = vpop.permute.xlu0 %5689 }
0x1c6b   : > { %v5716_v3 = vcombine.low %v5152_v41, %v5699_v1  ;;  %v5717_v4 = vcombine.high %v5152_v41, %v5699_v1 }
0x1c6d   : > { %v5724_v7 = vrot.slane %v5716_v3, %v15439_v24  ;;  %v5731_v8 = vrot.slane %v5717_v4, %v15439_v24 }
0x1c6e   : > { %v5708_v5 = vpop.permute.xlu1 %5707  ;;  %v5249_v46 = vpop.permute.xlu0 %5248 }
0x1c6f   : > { %v5732_v15 = vcombine.low %v5690_v2, %v5708_v5  ;;  %v5733_v6 = vcombine.high %v5690_v2, %v5708_v5  ;;  %v5266_v16 = vcombine.low %v15920_v32, %v5249_v46  ;;  %v5267_v17 = vcombine.high %v15920_v32, %v5249_v46 }
0x1c71   : > { %v5740_v58 = vrot.slane %v5732_v15, %v15439_v24  ;;  %v5747_v39 = vrot.slane %v5733_v6, %v15439_v24  ;;  %v5274_v27 = vrot.slane %v5266_v16, %v15439_v24  ;;  %v5281_v29 = vrot.slane %v5267_v17, %v15439_v24 }
0x1c72   : > { %v5240_v59 = vpop.permute.xlu1 %5239  ;;  %v5692_v10 = vpop.permute.xlu0 %5691 }
0x1c73   : > { %v5748_v9 = vcombine.low %v5724_v7, %v5740_v58  ;;  %v5749_v12 = vcombine.high %v5724_v7, %v5740_v58  ;;  %v5764_v13 = vcombine.low %v5731_v8, %v5747_v39  ;;  %v5765_v14 = vcombine.high %v5731_v8, %v5747_v39 }
0x1c75   : > { %v5756_v18 = vrot.slane %v5748_v9, %v15442_v31  ;;  %v5763_v57 = vrot.slane %v5749_v12, %v15442_v31  ;;  %v5772_v22 = vrot.slane %v5764_v13, %v15442_v31  ;;  %v5779_v23 = vrot.slane %v5765_v14, %v15442_v31 }
0x1c76   : > { %v5258_v19 = vpop.permute.xlu1 %5257  ;;  %v5710_v20 = vpop.permute.xlu0 %5709 }
0x1c77   : > { %v5282_v25 = vcombine.low %v5240_v59, %v5258_v19  ;;  %v5283_v26 = vcombine.high %v5240_v59, %v5258_v19  ;;  %v5800_v30 = vcombine.low %v5692_v10, %v5710_v20  ;;  %v5920_v33 = vcombine.low %v5756_v18, %v5763_v57 }
0x1c78   : > { %v13040_v35 = vcombine.high %v5756_v18, %v5763_v57  ;;  %v5936_v45 = vcombine.low %v5772_v22, %v5779_v23  ;;  %v5801_v48 = vcombine.high %v5692_v10, %v5710_v20  ;;  %v13041_v54 = vcombine.high %v5772_v22, %v5779_v23 }
0x1c79   : > { %v5290_v36 = vrot.slane %v5282_v25, %v15439_v24  ;;  %v5297_v37 = vrot.slane %v5283_v26, %v15439_v24  ;;  %v5808_v56 = vrot.slane %v5800_v30, %v15439_v24  ;;  %v16005_v9 = vrot.slane %v5920_v33, %v15439_v24 }
0x1c7a   : > { %v5701_v40 = vpop.permute.xlu1 %5700  ;;  %v5251_v41 = vpop.permute.xlu0 %5250  ;;  %v5815_v15 = vrot.slane %v5801_v48, %v15439_v24  ;;  %v16008_v12 = vrot.slane %v13040_v35, %v15439_v24  ;;  %v16011_v17 = vrot.slane %v5936_v45, %v15439_v24  ;;  %v16014_v18 = vrot.slane %v13041_v54, %v15439_v24 }
0x1c7b   : > { %v5784_v34 = vcombine.low %v15928_v55, %v5701_v40  ;;  %v5785_v11 = vcombine.high %v15928_v55, %v5701_v40  ;;  %v5298_v50 = vcombine.low %v5274_v27, %v5290_v36  ;;  %v5299_v32 = vcombine.high %v5274_v27, %v5290_v36 }
0x1c7c   : > { %v5314_v51 = vcombine.low %v5281_v29, %v5297_v37  ;;  %v5315_v52 = vcombine.high %v5281_v29, %v5297_v37  ;;  %v5334_v6 = vcombine.low %v15938_v61, %v5251_v41  ;;  %v5335_v39 = vcombine.high %v15938_v61, %v5251_v41 }
0x1c7d   : > { %v5792_v62 = vrot.slane %v5784_v34, %v15439_v24  ;;  %v5799_v1 = vrot.slane %v5785_v11, %v15439_v24  ;;  %v5306_v2 = vrot.slane %v5298_v50, %v15442_v31  ;;  %v5313_v3 = vrot.slane %v5299_v32, %v15442_v31 }
0x1c7e   : > { %v5322_v4 = vrot.slane %v5314_v51, %v15442_v31  ;;  %v5329_v5 = vrot.slane %v5315_v52, %v15442_v31  ;;  %v5242_v55 = vpop.permute.xlu1 %5241  ;;  %v15999_v46 = vpop.permute.xlu0 %5693  ;;  %v5342_v61 = vrot.slane %v5334_v6, %v15439_v24  ;;  %v5349_v23 = vrot.slane %v5335_v39, %v15439_v24 }
0x1c7f   : > { %v5470_v7 = vcombine.low %v5306_v2, %v5313_v3  ;;  %v13034_v8 = vcombine.high %v5306_v2, %v5313_v3  ;;  %v5816_v58 = vcombine.low %v5792_v62, %v5808_v56  ;;  %v5817_v59 = vcombine.high %v5792_v62, %v5808_v56 }
0x1c80   : > { %v5832_v10 = vcombine.low %v5799_v1, %v5815_v15  ;;  %v5486_v13 = vcombine.low %v5322_v4, %v5329_v5  ;;  %v13035_v14 = vcombine.high %v5322_v4, %v5329_v5  ;;  %v5833_v57 = vcombine.high %v5799_v1, %v5815_v15 }
0x1c81   : > { %v16018_v19 = vrot.slane %v5470_v7, %v15439_v24  ;;  %v16021_v20 = vrot.slane %v13034_v8, %v15439_v24  ;;  %v16024_v22 = vrot.slane %v5816_v58, %v15442_v31  ;;  %v16028_v26 = vrot.slane %v5817_v59, %v15442_v31 }
0x1c82   : > { %v5260_v16 = vpop.permute.xlu1 %5259  ;;  %v5712_v25 = vpop.permute.xlu0 %5711  ;;  %v16031_v27 = vrot.slane %v5832_v10, %v15442_v31  ;;  %v16034_v33 = vrot.slane %v5486_v13, %v15439_v24  ;;  %v16037_v35 = vrot.slane %v13035_v14, %v15439_v24  ;;  %v5952_v36 = vcombine.low %v16005_v9, %v16008_v12 }
0x1c83   : > { %v5350_v29 = vcombine.low %v5242_v55, %v5260_v16  ;;  %v5351_v30 = vcombine.high %v5242_v55, %v5260_v16  ;;  %v5968_v37 = vcombine.low %v16011_v17, %v16014_v18  ;;  %v16044_v41 = vrot.slane %v5833_v57, %v15442_v31 }
0x1c84   : > { %v5868_v34 = vcombine.low %v15999_v46, %v5712_v25  ;;  %v5502_v11 = vcombine.low %v16018_v19, %v16021_v20  ;;  %v5960_v50 = vrot.slane %v5952_v36, %v15442_v31  ;;  %v5518_v1 = vcombine.low %v16034_v33, %v16037_v35 }
0x1c85   : > { %v5358_v45 = vrot.slane %v5350_v29, %v15439_v24  ;;  %v5365_v48 = vrot.slane %v5351_v30, %v15439_v24  ;;  %v5976_v32 = vrot.slane %v5968_v37, %v15442_v31  ;;  %v5869_v10 = vcombine.high %v15999_v46, %v5712_v25 }
0x1c86   : > { %v5703_v40 = vpop.permute.xlu1 %5702  ;;  %v5876_v6 = vrot.slane %v5868_v34, %v15439_v24  ;;  %v5988_v29 = vcombine.low %v16024_v22, %v16028_v26  ;;  %v5510_v30 = vrot.slane %v5502_v11, %v15442_v31  ;;  %v5526_v36 = vrot.slane %v5518_v1, %v15442_v31 }
0x1c87   : > { %v5852_v51 = vcombine.low %v15944_v49, %v5703_v40  ;;  %v5366_v52 = vcombine.low %v5342_v61, %v5358_v45  ;;  %v5367_v54 = vcombine.high %v5342_v61, %v5358_v45  ;;  %v5382_v56 = vcombine.low %v5349_v23, %v5365_v48 }
0x1c88   : > { %v5383_v62 = vcombine.high %v5349_v23, %v5365_v48  ;;  %v5984_v2 = vcombine.low %v5960_v50, %v5976_v32  ;;  %v5985_v3 = vcombine.high %v5960_v50, %v5976_v32  ;;  %v5853_v7 = vcombine.high %v15944_v49, %v5703_v40  ;;  %v5253_v32 = vpop.permute.xlu0 %5252 }
0x1c89   : > { %v5860_v4 = vrot.slane %v5852_v51, %v15439_v24  ;;  %v5374_v55 = vrot.slane %v5366_v52, %v15442_v31  ;;  %v5381_v15 = vrot.slane %v5367_v54, %v15442_v31  ;;  %v5390_v8 = vrot.slane %v5382_v56, %v15442_v31 }
0x1c8a   : > { %v16057_v5 = vpop.permute.xlu1 %5243  ;;  %v5397_v58 = vrot.slane %v5383_v62, %v15442_v31  ;;  %v6124_v39 = vpack.c.bf16 %v5984_v2, %v5984_v2  ;;  %v6125_v59 = vpack.c.bf16 %v5985_v3, %v5985_v3  ;;  %v13042_v49 = vcombine.high %v16024_v22, %v16028_v26 }
0x1c8b   : > { %v5884_v13 = vcombine.low %v5860_v4, %v5876_v6  ;;  %v5885_v14 = vcombine.high %v5860_v4, %v5876_v6  ;;  %v5538_v16 = vcombine.low %v5374_v55, %v5381_v15  ;;  %v13036_v57 = vcombine.high %v5374_v55, %v5381_v15 }
0x1c8c   : > { %v6590_v61 = vsel %vm2375_vm4, %v6124_v39, 0  ;;  %v6636_v23 = vsel %vm2375_vm4, %v6125_v59, 0  ;;  %v6004_v46 = vcombine.low %v16031_v27, %v16044_v41  ;;  %v5554_v25 = vcombine.low %v5390_v8, %v5397_v58 }
0x1c8d   : > { %13761 = vmatpush3.bf16.xpose.msra.mxu1 %v6590_v61  ;;  %v13037_v37 = vcombine.high %v5390_v8, %v5397_v58  ;;  %13767 = vmatpush3.bf16.xpose.msra.mxu0 %v6636_v23  ;;  %v16077_v40 = vrot.slane %v5853_v7, %v15439_v24  ;;  %v5503_v48 = vcombine.high %v16018_v19, %v16021_v20 }
0x1c8e   : > { %v5262_v45 = vpop.permute.xlu1 %5261  ;;  %v5519_v34 = vcombine.high %v16034_v33, %v16037_v35  ;;  %v13043_v11 = vcombine.high %v16031_v27, %v16044_v41  ;;  %v5883_v50 = vrot.slane %v5869_v10, %v15439_v24  ;;  %13772 = vmatprep.subr.bf16.mxu1 %v14948_v47  ;;  %v16088_v51 = vrot.slane %v5538_v16, %v15439_v24 }
0x1c8f   : > { %v16091_v52 = vrot.slane %v13036_v57, %v15439_v24  ;;  %v16094_v54 = vrot.slane %v5884_v13, %v15442_v31  ;;  %v16097_v19 = vrot.slane %v5885_v14, %v15442_v31  ;;  %13778 = vmatprep.subr.bf16.mxu0 %v14948_v47  ;;  %v5534_v20 = vcombine.low %v5510_v30, %v5526_v36 }
0x1c90   : > { %v5535_v33 = vcombine.high %v5510_v30, %v5526_v36  ;;  %v5953_v35 = vcombine.high %v16005_v9, %v16008_v12  ;;  %v5969_v56 = vcombine.high %v16011_v17, %v16014_v18  ;;  %v16105_v62 = vrot.slane %v5554_v25, %v15439_v24 }
0x1c91   : > { %v16108_v1 = vrot.slane %v13037_v37, %v15439_v24  ;;  %v5900_v2 = vcombine.low %v16077_v40, %v5883_v50  ;;  %v5402_v3 = vcombine.low %v15954_v44, %v5253_v32  ;;  %v5674_v4 = vpack.c.bf16 %v5534_v20, %v5534_v20 }
0x1c92   : > { %v5675_v55 = vpack.c.bf16 %v5535_v33, %v5535_v33  ;;  %v5967_v15 = vrot.slane %v5953_v35, %v15442_v31  ;;  %v5983_v6 = vrot.slane %v5969_v56, %v15442_v31  ;;  %v5901_v9 = vcombine.high %v16077_v40, %v5883_v50  ;;  %v16118_v7 = vpop.permute.xlu1 %6148 }
0x1c93   : > { %v5403_v12 = vcombine.high %v15954_v44, %v5253_v32  ;;  %v5418_v17 = vcombine.low %v16057_v5, %v5262_v45  ;;  %v5419_v18 = vcombine.high %v16057_v5, %v5262_v45  ;;  %v6056_v8 = vcombine.low %v16094_v54, %v16097_v19 }
0x1c94   : > { %13763 = vmatmul.mubr.msk.bf16.vlgmr.msra.gmra.mrb[80].mxu1 %vm2375_vm4, %v5674_v4  ;;  %13769 = vmatmul.mubr.msk.bf16.vlgmr.msra.gmra.mrb[56].mxu0 %vm2375_vm4, %v5675_v55  ;;  %v5986_v58 = vcombine.low %v5967_v15, %v5983_v6  ;;  %v5987_v39 = vcombine.high %v5967_v15, %v5983_v6  ;;  %v13044_v59 = vcombine.high %v16094_v54, %v16097_v19 }
0x1c95   : > { %v5410_v44 = vrot.slane %v5402_v3, %v15439_v24  ;;  %v5426_v10 = vrot.slane %v5418_v17, %v15439_v24  ;;  %v5433_v5 = vrot.slane %v5419_v18, %v15439_v24  ;;  %13774 = vmatprep.mubr.msk.bf16.mxu1 %vm14949_vm3, %v14948_v47  ;;  %13780 = vmatprep.mubr.msk.bf16.mxu0 %vm14949_vm3, %v14948_v47  ;;  %v6140_v3 = vpop.permute.xlu0 %6139 }
0x1c96   : > { %v6126_v13 = vpack.c.bf16 %v5986_v58, %v5986_v58  ;;  %v6127_v14 = vpack.c.bf16 %v5987_v39, %v5987_v39  ;;  %v5517_v16 = vrot.slane %v5503_v48, %v15442_v31  ;;  %v5533_v57 = vrot.slane %v5519_v34, %v15442_v31  ;;  %v6158_v32 = vpop.permute.xlu1 %6157 }
0x1c97   : > { %v5570_v61 = vcombine.low %v16088_v51, %v16091_v52  ;;  %v5571_v23 = vcombine.high %v16088_v51, %v16091_v52  ;;  %v5586_v30 = vcombine.low %v16105_v62, %v16108_v1  ;;  %v5417_v36 = vrot.slane %v5403_v12, %v15439_v24 }
0x1c98   : > { %v6682_v25 = vsel %vm2375_vm4, %v6126_v13, 0  ;;  %v6728_v37 = vsel %vm2375_vm4, %v6127_v14, 0  ;;  %v5434_v40 = vcombine.low %v5410_v44, %v5426_v10  ;;  %v5435_v45 = vcombine.high %v5410_v44, %v5426_v10 }
0x1c99   : > { %13773 = vmatpush3.bf16.xpose.msra.mxu1 %v6682_v25  ;;  %13779 = vmatpush3.bf16.xpose.msra.mxu0 %v6728_v37  ;;  %v5450_v48 = vcombine.low %v5417_v36, %v5433_v5  ;;  %v5451_v34 = vcombine.high %v5417_v36, %v5433_v5  ;;  %v16148_v50 = vrot.slane %v5988_v29, %v15439_v24 }
0x1c9a   : > { %v16151_v20 = vrot.slane %v5900_v2, %v15442_v31  ;;  %v5536_v33 = vcombine.low %v5517_v16, %v5533_v57  ;;  %v5537_v35 = vcombine.high %v5517_v16, %v5533_v57  ;;  %13784 = vmatprep.subr.bf16.mxu1 %v14948_v47  ;;  %13790 = vmatprep.subr.bf16.mxu0 %v14948_v47 }
0x1c9b   : > { %v16156_v56 = vrot.slane %v5901_v9, %v15442_v31  ;;  %v6166_v4 = vcombine.low %v15960_v63, %v16118_v7  ;;  %v6003_v29 = vrot.slane %v13042_v49, %v15439_v24  ;;  %v6011_v2 = vrot.slane %v6004_v46, %v15439_v24 }
0x1c9c   : > { %v5442_v55 = vrot.slane %v5434_v40, %v15442_v31  ;;  %v5449_v15 = vrot.slane %v5435_v45, %v15442_v31  ;;  %v6019_v6 = vrot.slane %v13043_v11, %v15439_v24  ;;  %v6182_v9 = vcombine.low %v6140_v3, %v6158_v32 }
0x1c9d   : > { %v5458_v12 = vrot.slane %v5450_v48, %v15442_v31  ;;  %v5465_v22 = vrot.slane %v5451_v34, %v15442_v31  ;;  %v6020_v26 = vcombine.low %v16148_v50, %v6003_v29  ;;  %v6183_v49 = vcombine.high %v6140_v3, %v6158_v32 }
0x1c9e   : > { %v5676_v17 = vpack.c.bf16 %v5536_v33, %v5536_v33  ;;  %v5677_v18 = vpack.c.bf16 %v5537_v35, %v5537_v35  ;;  %v6036_v46 = vcombine.low %v6011_v2, %v6019_v6  ;;  %v6190_v58 = vrot.slane %v6182_v9, %v15439_v24 }
0x1c9f   : > { %v5587_v39 = vcombine.high %v16105_v62, %v16108_v1  ;;  %v6167_v27 = vcombine.high %v15960_v63, %v16118_v7  ;;  %v6174_v41 = vrot.slane %v6166_v4, %v15439_v24  ;;  %v6028_v11 = vrot.slane %v6020_v26, %v15442_v31 }
0x1ca0   : > { %v5606_v44 = vcombine.low %v5442_v55, %v5449_v15  ;;  %v13038_v10 = vcombine.high %v5442_v55, %v5449_v15  ;;  %13775 = vmatmul.mubr.msk.bf16.vlgmr.msra.gmra.mrb[84].mxu1 %vm2375_vm4, %v5676_v17  ;;  %13781 = vmatmul.mubr.msk.bf16.vlgmr.msra.gmra.mrb[60].mxu0 %vm2375_vm4, %v5677_v18  ;;  %v6044_v5 = vrot.slane %v6036_v46, %v15442_v31 }
0x1ca1   : > { %v6072_v13 = vcombine.low %v16151_v20, %v16156_v56  ;;  %v5622_v14 = vcombine.low %v5458_v12, %v5465_v22  ;;  %v13039_v16 = vcombine.high %v5458_v12, %v5465_v22  ;;  %v6197_v57 = vrot.slane %v6183_v49, %v15439_v24  ;;  %13786 = vmatprep.mubr.msk.bf16.mxu1 %vm14949_vm3, %v14948_v47 }
0x1ca2   : > { %v6052_v63 = vcombine.low %v6028_v11, %v6044_v5  ;;  %v6053_v7 = vcombine.high %v6028_v11, %v6044_v5  ;;  %v6198_v36 = vcombine.low %v6174_v41, %v6190_v58  ;;  %v6199_v25 = vcombine.high %v6174_v41, %v6190_v58  ;;  %13792 = vmatprep.mubr.msk.bf16.mxu0 %vm14949_vm3, %v14948_v47 }
0x1ca3   : > { %v13045_v37 = vcombine.high %v16151_v20, %v16156_v56  ;;  %v6181_v40 = vrot.slane %v6167_v27, %v15439_v24  ;;  %v5578_v45 = vrot.slane %v5570_v61, %v15442_v31  ;;  %v5594_v48 = vrot.slane %v5586_v30, %v15442_v31 }
0x1ca4   : > { %v16200_v34 = vrot.slane %v5606_v44, %v15439_v24  ;;  %v16203_v32 = vrot.slane %v13038_v10, %v15439_v24  ;;  %v6128_v33 = vpack.c.bf16 %v6052_v63, %v6052_v63  ;;  %v6129_v35 = vpack.c.bf16 %v6053_v7, %v6053_v7 }
0x1ca5   : > { %v16206_v3 = vrot.slane %v5622_v14, %v15439_v24  ;;  %v16209_v4 = vrot.slane %v13039_v16, %v15439_v24  ;;  %v6214_v20 = vcombine.low %v6181_v40, %v6197_v57  ;;  %v6215_v56 = vcombine.high %v6181_v40, %v6197_v57 }
0x1ca6   : > { %v6774_v61 = vsel %vm2375_vm4, %v6128_v33, 0  ;;  %v6820_v30 = vsel %vm2375_vm4, %v6129_v35, 0  ;;  %v6206_v55 = vrot.slane %v6198_v36, %v15442_v31  ;;  %v6213_v15 = vrot.slane %v6199_v25, %v15442_v31 }
0x1ca7   : > { %13785 = vmatpush3.bf16.xpose.msra.mxu1 %v6774_v61  ;;  %13791 = vmatpush3.bf16.xpose.msra.mxu0 %v6820_v30  ;;  %v5602_v9 = vcombine.low %v5578_v45, %v5594_v48  ;;  %v6021_v12 = vcombine.high %v16148_v50, %v6003_v29  ;;  %v6037_v22 = vcombine.high %v6011_v2, %v6019_v6 }
0x1ca8   : > { %v5603_v26 = vcombine.high %v5578_v45, %v5594_v48  ;;  %13796 = vmatprep.subr.bf16.mxu1 %v14948_v47  ;;  %13802 = vmatprep.subr.bf16.mxu0 %v14948_v47  ;;  %v6063_v49 = vrot.slane %v6056_v8, %v15439_v24  ;;  %v6071_v17 = vrot.slane %v13044_v59, %v15439_v24 }
0x1ca9   : > { %v6035_v18 = vrot.slane %v6021_v12, %v15442_v31  ;;  %v6051_v50 = vrot.slane %v6037_v22, %v15442_v31  ;;  %v6079_v29 = vrot.slane %v6072_v13, %v15439_v24  ;;  %v6087_v2 = vrot.slane %v13045_v37, %v15439_v24 }
0x1caa   : > { %v6222_v6 = vrot.slane %v6214_v20, %v15442_v31  ;;  %v6229_v46 = vrot.slane %v6215_v56, %v15442_v31  ;;  %v6370_v58 = vcombine.low %v6206_v55, %v6213_v15  ;;  %v6088_v27 = vcombine.low %v6063_v49, %v6071_v17 }
0x1cab   : > { %v13046_v8 = vcombine.high %v6206_v55, %v6213_v15  ;;  %v6054_v41 = vcombine.low %v6035_v18, %v6051_v50  ;;  %v6055_v11 = vcombine.high %v6035_v18, %v6051_v50  ;;  %v6104_v44 = vcombine.low %v6079_v29, %v6087_v2 }
0x1cac   : > { %v5678_v54 = vpack.c.bf16 %v5602_v9, %v5602_v9  ;;  %v5679_v19 = vpack.c.bf16 %v5603_v26, %v5603_v26  ;;  %v5585_v59 = vrot.slane %v5571_v23, %v15442_v31  ;;  %v6096_v10 = vrot.slane %v6088_v27, %v15442_v31 }
0x1cad   : > { %v6130_v5 = vpack.c.bf16 %v6054_v41, %v6054_v41  ;;  %v6131_v13 = vpack.c.bf16 %v6055_v11, %v6055_v11  ;;  %v5601_v14 = vrot.slane %v5587_v39, %v15442_v31  ;;  %v6112_v16 = vrot.slane %v6104_v44, %v15442_v31 }
0x1cae   : > { %v6386_v57 = vcombine.low %v6222_v6, %v6229_v46  ;;  %13787 = vmatmul.mubr.msk.bf16.vlgmr.msra.gmra.mrb[88].mxu1 %vm2375_vm4, %v5678_v54  ;;  %13793 = vmatmul.mubr.msk.bf16.vlgmr.msra.gmra.mrb[64].mxu0 %vm2375_vm4, %v5679_v19  ;;  %v6089_v63 = vcombine.high %v6063_v49, %v6071_v17  ;;  %v6105_v7 = vcombine.high %v6079_v29, %v6087_v2 }
0x1caf   : > { %v6866_v51 = vsel %vm2375_vm4, %v6130_v5, 0  ;;  %v6912_v52 = vsel %vm2375_vm4, %v6131_v13, 0  ;;  %13798 = vmatprep.mubr.msk.bf16.mxu1 %vm14949_vm3, %v14948_v47  ;;  %13804 = vmatprep.mubr.msk.bf16.mxu0 %vm14949_vm3, %v14948_v47  ;;  %v6120_v62 = vcombine.low %v6096_v10, %v6112_v16  ;;  %v6121_v1 = vcombine.high %v6096_v10, %v6112_v16 }
0x1cb0   : > { %v5638_v23 = vcombine.low %v16200_v34, %v16203_v32  ;;  %v5654_v39 = vcombine.low %v16206_v3, %v16209_v4  ;;  %13797 = vmatpush3.bf16.xpose.msra.mxu1 %v6866_v51  ;;  %13803 = vmatpush3.bf16.xpose.msra.mxu0 %v6912_v52  ;;  %v13047_v36 = vcombine.high %v6222_v6, %v6229_v46 }
0x1cb1   : > { %v5604_v25 = vcombine.low %v5585_v59, %v5601_v14  ;;  %v5605_v37 = vcombine.high %v5585_v59, %v5601_v14  ;;  %13808 = vmatprep.subr.bf16.mxu1 %v14948_v47  ;;  %13814 = vmatprep.subr.bf16.mxu0 %v14948_v47  ;;  %v6103_v40 = vrot.slane %v6089_v63, %v15442_v31 }
0x1cb2   : > { %v6119_v45 = vrot.slane %v6105_v7, %v15442_v31  ;;  %v6377_v48 = vrot.slane %v6370_v58, %v15439_v24  ;;  %v6132_v33 = vpack.c.bf16 %v6120_v62, %v6120_v62  ;;  %v6133_v35 = vpack.c.bf16 %v6121_v1, %v6121_v1 }
0x1cb3   : > { %v6385_v20 = vrot.slane %v13046_v8, %v15439_v24  ;;  %v6393_v56 = vrot.slane %v6386_v57, %v15439_v24  ;;  %v5646_v61 = vrot.slane %v5638_v23, %v15442_v31  ;;  %v5662_v30 = vrot.slane %v5654_v39, %v15442_v31 }
0x1cb4   : > { %v5680_v55 = vpack.c.bf16 %v5604_v25, %v5604_v25  ;;  %v5681_v15 = vpack.c.bf16 %v5605_v37, %v5605_v37  ;;  %v6401_v9 = vrot.slane %v13047_v36, %v15439_v24  ;;  %v6122_v22 = vcombine.low %v6103_v40, %v6119_v45 }
0x1cb5   : > { %v6403_v12 = vcombine.high %v6377_v48, %v6385_v20  ;;  %v6123_v26 = vcombine.high %v6103_v40, %v6119_v45  ;;  %v6958_v49 = vsel %vm2375_vm4, %v6132_v33, 0  ;;  %v7004_v17 = vsel %vm2375_vm4, %v6133_v35, 0 }
0x1cb6   : > { %v6402_v18 = vcombine.low %v6377_v48, %v6385_v20  ;;  %v6418_v50 = vcombine.low %v6393_v56, %v6401_v9  ;;  %v5639_v29 = vcombine.high %v16200_v34, %v16203_v32  ;;  %v6419_v6 = vcombine.high %v6393_v56, %v6401_v9 }
0x1cb7   : > { %13799 = vmatmul.mubr.msk.bf16.vlgmr.msra.gmra.mrb[92].mxu1 %vm2375_vm4, %v5680_v55  ;;  %13805 = vmatmul.mubr.msk.bf16.vlgmr.msra.gmra.mrb[68].mxu0 %vm2375_vm4, %v5681_v15  ;;  %v6417_v2 = vrot.slane %v6403_v12, %v15442_v31  ;;  %v5655_v46 = vcombine.high %v16206_v3, %v16209_v4  ;;  %v5670_v58 = vcombine.low %v5646_v61, %v5662_v30  ;;  %v16311_v23 = vsel %vm4954_vm11, -1e+09, %v14948_v47 }
0x1cb8   : > { %13809 = vmatpush3.bf16.xpose.msra.mxu1 %v6958_v49  ;;  %13815 = vmatpush3.bf16.xpose.msra.mxu0 %v7004_v17  ;;  %v5671_v27 = vcombine.high %v5646_v61, %v5662_v30  ;;  %v6433_v34 = vrot.slane %v6419_v6, %v15442_v31  ;;  %v6134_v32 = vpack.c.bf16 %v6122_v22, %v6122_v22 }
0x1cb9   : > { %13810 = vmatprep.mubr.msk.bf16.mxu1 %vm14949_vm3, %v14948_v47  ;;  %13816 = vmatprep.mubr.msk.bf16.mxu0 %vm14949_vm3, %v14948_v47  ;;  %v6135_v8 = vpack.c.bf16 %v6123_v26, %v6123_v26  ;;  %v6410_v41 = vrot.slane %v6402_v18, %v15442_v31  ;;  %v6426_v3 = vrot.slane %v6418_v50, %v15442_v31 }
0x1cba   : > { %13820 = vmatprep.subr.bf16.mxu1 %v14948_v47  ;;  %13826 = vmatprep.subr.bf16.mxu0 %v14948_v47  ;;  %v16282_v4 = vcombine.low %v6417_v2, %v6433_v34  ;;  %v16284_v11 = vcombine.high %v6417_v2, %v6433_v34  ;;  %v5682_v44 = vpack.c.bf16 %v5670_v58, %v5670_v58  ;;  %v7050_v10 = vsel %vm2375_vm4, %v6134_v32, 0 }
0x1cbb   : > { %v5683_v54 = vpack.c.bf16 %v5671_v27, %v5671_v27  ;;  %v5653_v19 = vrot.slane %v5639_v29, %v15442_v31  ;;  %v5669_v59 = vrot.slane %v5655_v46, %v15442_v31  ;;  %v7096_v5 = vsel %vm2375_vm4, %v6135_v8, 0 }
0x1cbc   : > { %v6434_v13 = vcombine.low %v6410_v41, %v6426_v3  ;;  %v6435_v14 = vcombine.high %v6410_v41, %v6426_v3 }
0x1cbd   : > { %v5672_v16 = vcombine.low %v5653_v19, %v5669_v59  ;;  %v5673_v57 = vcombine.high %v5653_v19, %v5669_v59 }
0x1cbe   : > { %v6574_v63 = vpack.c.bf16 %v6434_v13, %v6434_v13  ;;  %v6575_v7 = vpack.c.bf16 %v6435_v14, %v6435_v14 }
0x1cbf   : > { %13811 = vmatmul.mubr.msk.bf16.vlgmr.msra.gmra.mrb[96].mxu1 %vm2375_vm4, %v5682_v44  ;;  %13817 = vmatmul.mubr.msk.bf16.vlgmr.msra.gmra.mrb[72].mxu0 %vm2375_vm4, %v5683_v54  ;;  %v5684_v51 = vpack.c.bf16 %v5672_v16, %v5672_v16  ;;  %v5685_v52 = vpack.c.bf16 %v5673_v57, %v5673_v57 }
0x1cc0   : > { %13821 = vmatpush3.bf16.xpose.msra.mxu1 %v7050_v10  ;;  %13827 = vmatpush3.bf16.xpose.msra.mxu0 %v7096_v5  ;;  %v7286_v62 = vsel %vm2611_vm6, %v6574_v63, 0  ;;  %v7332_v1 = vsel %vm2611_vm6, %v6575_v7, 0 }
0x1cc1   : > { %13822 = vmatprep.mubr.msk.bf16.mxu1 %vm14949_vm3, %v14948_v47  ;;  %13828 = vmatprep.mubr.msk.bf16.mxu0 %vm14949_vm3, %v14948_v47 }
0x1cc2   : > { %13832 = vmatprep.subr.bf16.mxu1 %v14948_v47  ;;  %13838 = vmatprep.subr.bf16.mxu0 %v14948_v47 }
0x1cc7   : > { %13823 = vmatmul.mubr.msk.bf16.vlgmr.msra.gmra.mrb[100].mxu1 %vm2375_vm4, %v5684_v51  ;;  %13829 = vmatmul.mubr.msk.bf16.vlgmr.msra.gmra.mrb[76].mxu0 %vm2375_vm4, %v5685_v52 }
0x1cc8   : > { %13833 = vmatpush3.bf16.msra.mxu1 %v7286_v62  ;;  %13839 = vmatpush3.bf16.msra.mxu0 %v7332_v1 }
0x1cc9   : > { %13834 = vmatprep.mubr.msk.bf16.mxu1 %vm14949_vm3, %v14948_v47  ;;  %13840 = vmatprep.mubr.msk.bf16.mxu0 %vm14949_vm3, %v14948_v47 }
0x1cca   : > { %13844 = vmatprep.subr.bf16.mxu1 %v14948_v47  ;;  %13850 = vmatprep.subr.bf16.mxu0 %v14948_v47 }
0x1d67   : > { %v6626_v39 = vpop.f32.mrb[80].mxu1  ;;  %v6672_v36 = vpop.f32.mrb[56].mxu0 }
0x1d68   : > { %v16314_v25 = vadd.f32 %v6626_v39, %v16311_v23  ;;  %v16317_v37 = vadd.f32 %v6672_v36, %v16311_v23  ;;  %v13764_v40 = vpop.f32.mrb[81].mxu1  ;;  %v13770_v45 = vpop.f32.mrb[57].mxu0 }
0x1d69   : > { %v6629_v48 = vpop.f32.mrb[82].mxu1  ;;  %v6675_v33 = vpop.f32.mrb[58].mxu0 }
0x1d6a   : > { %v13765_v35 = vpop.f32.mrb[83].mxu1  ;;  %v13771_v20 = vpop.f32.mrb[59].mxu0  ;;  %v7141_v21 = vsel %vm2375_vm4, %v16317_v37, -inf  ;;  %v7138_v60 = vsel %vm2375_vm4, %v16314_v25, -inf }
0x1d6b   : > { %7142 = vmax.xlane.f32.xlu1 %v7141_v21  ;;  %7139 = vmax.xlane.f32.xlu0 %v7138_v60 }
0x1d73   : > { %v6718_v56 = vpop.f32.mrb[84].mxu1  ;;  %v6764_v61 = vpop.f32.mrb[60].mxu0 }
0x1d74   : > { %v16324_v30 = vadd.f32 %v6718_v56, %v16311_v23  ;;  %v13776_v55 = vpop.f32.mrb[85].mxu1  ;;  %v13782_v15 = vpop.f32.mrb[61].mxu0  ;;  %v16327_v22 = vadd.f32 %v6764_v61, %v16311_v23 }
0x1d75   : > { %v6721_v9 = vpop.f32.mrb[86].mxu1  ;;  %v6767_v12 = vpop.f32.mrb[62].mxu0 }
0x1d76   : > { %v13777_v26 = vpop.f32.mrb[87].mxu1  ;;  %v13783_v49 = vpop.f32.mrb[63].mxu0  ;;  %v7144_v17 = vsel %vm2375_vm4, %v16324_v30, -inf  ;;  %v7147_v18 = vsel %vm2375_vm4, %v16327_v22, -inf }
0x1d77   : > { %7145 = vmax.xlane.f32.xlu0 %v7144_v17 }
0x1d7b   : > { %7148 = vmax.xlane.f32.xlu0 %v7147_v18 }
0x1d81   : > { %v6810_v50 = vpop.f32.mrb[88].mxu1  ;;  %v6856_v29 = vpop.f32.mrb[64].mxu0 }
0x1d82   : > { %v16334_v2 = vadd.f32 %v6810_v50, %v16311_v23  ;;  %v16337_v6 = vadd.f32 %v6856_v29, %v16311_v23  ;;  %v13788_v46 = vpop.f32.mrb[89].mxu1  ;;  %v13794_v58 = vpop.f32.mrb[65].mxu0 }
0x1d83   : > { %v6813_v27 = vpop.f32.mrb[90].mxu1  ;;  %v6859_v34 = vpop.f32.mrb[66].mxu0 }
0x1d84   : > { %v13789_v32 = vpop.f32.mrb[91].mxu1  ;;  %v13795_v8 = vpop.f32.mrb[67].mxu0  ;;  %v7153_v41 = vsel %vm2375_vm4, %v16337_v6, -inf  ;;  %v7150_v3 = vsel %vm2375_vm4, %v16334_v2, -inf }
0x1d85   : > { %7154 = vmax.xlane.f32.xlu1 %v7153_v41  ;;  %7151 = vmax.xlane.f32.xlu0 %v7150_v3  ;;  %v16377_v50 = vpop.permute.xlu1 %6141 }
0x1d8a   : > { %v6902_v44 = vpop.f32.mrb[92].mxu1  ;;  %v6948_v54 = vpop.f32.mrb[68].mxu0 }
0x1d8b   : > { %v16344_v19 = vadd.f32 %v6902_v44, %v16311_v23  ;;  %v16347_v59 = vadd.f32 %v6948_v54, %v16311_v23  ;;  %v13800_v10 = vpop.f32.mrb[93].mxu1  ;;  %v13806_v5 = vpop.f32.mrb[69].mxu0 }
0x1d8c   : > { %v6905_v13 = vpop.f32.mrb[94].mxu1  ;;  %v6951_v14 = vpop.f32.mrb[70].mxu0 }
0x1d8d   : > { %v13801_v16 = vpop.f32.mrb[95].mxu1  ;;  %v13807_v57 = vpop.f32.mrb[71].mxu0  ;;  %v7159_v63 = vsel %vm2375_vm4, %v16347_v59, -inf  ;;  %v7156_v7 = vsel %vm2375_vm4, %v16344_v19, -inf }
0x1d8e   : > { %7160 = vmax.xlane.f32.xlu1 %v7159_v63  ;;  %7157 = vmax.xlane.f32.xlu0 %v7156_v7 }
0x1d92   : > { %v6994_v51 = vpop.f32.mrb[96].mxu1  ;;  %v7040_v52 = vpop.f32.mrb[72].mxu0 }
0x1d93   : > { %v16354_v62 = vadd.f32 %v6994_v51, %v16311_v23  ;;  %v16357_v1 = vadd.f32 %v7040_v52, %v16311_v23  ;;  %v13812_v39 = vpop.f32.mrb[97].mxu1  ;;  %v13818_v36 = vpop.f32.mrb[73].mxu0 }
0x1d94   : > { %v6997_v40 = vpop.f32.mrb[98].mxu1  ;;  %v7043_v45 = vpop.f32.mrb[74].mxu0 }
0x1d95   : > { %v13813_v48 = vpop.f32.mrb[99].mxu1  ;;  %v13819_v33 = vpop.f32.mrb[75].mxu0  ;;  %v7165_v35 = vsel %vm2375_vm4, %v16357_v1, -inf  ;;  %v7162_v20 = vsel %vm2375_vm4, %v16354_v62, -inf }
0x1d96   : > { %7166 = vmax.xlane.f32.xlu1 %v7165_v35  ;;  %7163 = vmax.xlane.f32.xlu0 %v7162_v20 }
0x1d9a   : > { %v7086_v21 = vpop.f32.mrb[100].mxu1  ;;  %v7132_v60 = vpop.f32.mrb[76].mxu0 }
0x1d9b   : > { %v16364_v56 = vadd.f32 %v7086_v21, %v16311_v23  ;;  %v13824_v61 = vpop.f32.mrb[101].mxu1  ;;  %v13830_v55 = vpop.f32.mrb[77].mxu0  ;;  %v16373_v17 = vadd.f32 %v7132_v60, %v16311_v23 }
0x1d9c   : > { %v7089_v15 = vpop.f32.mrb[102].mxu1  ;;  %v7135_v9 = vpop.f32.mrb[78].mxu0 }
0x1d9d   : > { %v13825_v12 = vpop.f32.mrb[103].mxu1  ;;  %v13831_v26 = vpop.f32.mrb[79].mxu0  ;;  %v7168_v49 = vsel %vm2375_vm4, %v16364_v56, -inf  ;;  %v7171_v18 = vsel %vm2375_vm4, %v16373_v17, -inf }
0x1d9e   : > { %7169 = vmax.xlane.f32.xlu0 %v7168_v49 }
0x1da7   : > { %6159 = vrot.lane.b32.xlu1 %v15972_v0, %s17715_s9 }
0x1db4   : > { %6150 = vrot.lane.b32.xlu0 %v15972_v0, %s17713_s2 }
0x1dcb   : > { %7172 = vmax.xlane.f32.xlu1 %v7171_v18 }
0x1df8   : > { %v7143_v29 = vpop.xlane.xlu1 %7142  ;;  %v7140_v46 = vpop.xlane.xlu0 %7139 }
0x1df9   : > { %v7175_v58 = vsub.f32 %v16317_v37, %v7143_v29  ;;  %v7174_v27 = vsub.f32 %v16314_v25, %v7140_v46 }
0x1dfb   : > { %v7188_v34 = vmul.f32 1.442695, %v7175_v58  ;;  %v7186_v32 = vmul.f32 1.442695, %v7174_v27 }
0x1dfd   : > { %14507 = vpow2.f32 %v7188_v34 }
0x1dfe   : > { %14509 = vpow2.f32 %v7186_v32 }
0x1e04   : > { %v7146_v8 = vpop.xlane.xlu0 %7145 }
0x1e05   : > { %v7176_v41 = vsub.f32 %v16324_v30, %v7146_v8 }
0x1e07   : > { %v16382_v3 = vpop.eup %14507  ;;  %v7190_v44 = vmul.f32 1.442695, %v7176_v41 }
0x1e08   : > { %v16384_v54 = vpop.eup %14509  ;;  %v7149_v10 = vpop.xlane.xlu0 %7148  ;;  %v7213_v5 = vsel %vm2375_vm4, %v16382_v3, 0.0 }
0x1e09   : > { %14511 = vpow2.f32 %v7190_v44  ;;  %v7177_v37 = vsub.f32 %v16327_v22, %v7149_v10  ;;  %7214 = vadd.xlane.f32.xlu1 %v7213_v5  ;;  %v7210_v25 = vsel %vm2375_vm4, %v16384_v54, 0.0 }
0x1e0a   : > { %7211 = vadd.xlane.f32.xlu0 %v7210_v25 }
0x1e0b   : > { %v7192_v13 = vmul.f32 1.442695, %v7177_v37 }
0x1e0d   : > { %14513 = vpow2.f32 %v7192_v13 }
0x1e12   : > { %v7155_v30 = vpop.xlane.xlu1 %7154  ;;  %v7152_v14 = vpop.xlane.xlu0 %7151 }
0x1e13   : > { %v16391_v16 = vpop.eup %14511  ;;  %v7179_v57 = vsub.f32 %v16337_v6, %v7155_v30  ;;  %v7178_v63 = vsub.f32 %v16334_v2, %v7152_v14 }
0x1e14   : > { %v7216_v7 = vsel %vm2375_vm4, %v16391_v16, 0.0 }
0x1e15   : > { %v7194_v51 = vmul.f32 1.442695, %v7178_v63  ;;  %7217 = vadd.xlane.f32.xlu1 %v7216_v7  ;;  %v7196_v22 = vmul.f32 1.442695, %v7179_v57 }
0x1e17   : > { %v16397_v52 = vpop.eup %14513  ;;  %14515 = vpow2.f32 %v7194_v51 }
0x1e18   : > { %v7219_v39 = vsel %vm2375_vm4, %v16397_v52, 0.0  ;;  %14517 = vpow2.f32 %v7196_v22 }
0x1e19   : > { %7220 = vadd.xlane.f32.xlu0 %v7219_v39 }
0x1e1b   : > { %v7161_v36 = vpop.xlane.xlu1 %7160  ;;  %v7158_v40 = vpop.xlane.xlu0 %7157 }
0x1e1c   : > { %v7181_v6 = vsub.f32 %v16347_v59, %v7161_v36  ;;  %v7180_v2 = vsub.f32 %v16344_v19, %v7158_v40 }
0x1e1e   : > { %v7200_v45 = vmul.f32 1.442695, %v7181_v6  ;;  %v7198_v48 = vmul.f32 1.442695, %v7180_v2 }
0x1e20   : > { %14519 = vpow2.f32 %v7200_v45 }
0x1e21   : > { %14521 = vpow2.f32 %v7198_v48  ;;  %v16403_v33 = vpop.eup %14515 }
0x1e22   : > { %v7222_v20 = vsel %vm2375_vm4, %v16403_v33, 0.0  ;;  %v16407_v21 = vpop.eup %14517 }
0x1e23   : > { %v7164_v35 = vpop.xlane.xlu0 %7163  ;;  %7223 = vadd.xlane.f32.xlu0 %v7222_v20  ;;  %v7225_v59 = vsel %vm2375_vm4, %v16407_v21, 0.0  ;;  %v7167_v26 = vpop.xlane.xlu1 %7166 }
0x1e24   : > { %v7182_v60 = vsub.f32 %v16354_v62, %v7164_v35  ;;  %v7183_v49 = vsub.f32 %v16357_v1, %v7167_v26 }
0x1e26   : > { %v7202_v61 = vmul.f32 1.442695, %v7182_v60  ;;  %v7204_v18 = vmul.f32 1.442695, %v7183_v49 }
0x1e27   : > { %7226 = vadd.xlane.f32.xlu0 %v7225_v59  ;;  %v6160_v29 = vpop.permute.xlu1 %6159 }
0x1e28   : > { %14523 = vpow2.f32 %v7202_v61  ;;  %v6250_v25 = vcombine.low %v16377_v50, %v6160_v29  ;;  %v6251_v13 = vcombine.high %v16377_v50, %v6160_v29  ;;  %v6577_v29 = vpack.c.bf16 %v16284_v11, %v16284_v11 }
0x1e29   : > { %14525 = vpow2.f32 %v7204_v18 }
0x1e2a   : > { %v16412_v19 = vpop.eup %14519  ;;  %v6258_v57 = vrot.slane %v6250_v25, %v15439_v24  ;;  %v6265_v63 = vrot.slane %v6251_v13, %v15439_v24 }
0x1e2b   : > { %v16414_v55 = vpop.eup %14521  ;;  %v7231_v15 = vsel %vm2375_vm4, %v16412_v19, 0.0  ;;  %v7170_v41 = vpop.xlane.xlu0 %7169 }
0x1e2c   : > { %7232 = vadd.xlane.f32.xlu0 %v7231_v15  ;;  %v7228_v9 = vsel %vm2375_vm4, %v16414_v55, 0.0 }
0x1e2d   : > { %7229 = vadd.xlane.f32.xlu1 %v7228_v9 }
0x1e2f   : > { %v6151_v10 = vpop.permute.xlu0 %6150 }
0x1e30   : > { %v6234_v5 = vcombine.low %v15972_v0, %v6151_v10  ;;  %v6235_v37 = vcombine.high %v15972_v0, %v6151_v10 }
0x1e32   : > { %v16420_v62 = vpop.eup %14523  ;;  %v6242_v30 = vrot.slane %v6234_v5, %v15439_v24  ;;  %v6249_v14 = vrot.slane %v6235_v37, %v15439_v24 }
0x1e33   : > { %v7234_v12 = vsel %vm2375_vm4, %v16420_v62, 0.0  ;;  %v16430_v34 = vpop.eup %14525 }
0x1e34   : > { %7235 = vadd.xlane.f32.xlu0 %v7234_v12  ;;  %v7237_v32 = vsel %vm2375_vm4, %v16430_v34, 0.0  ;;  %v6267_v7 = vcombine.high %v6242_v30, %v6258_v57  ;;  %v6282_v51 = vcombine.low %v6249_v14, %v6265_v63  ;;  %v6283_v22 = vcombine.high %v6249_v14, %v6265_v63 }
0x1e36   : > { %v6281_v36 = vrot.slane %v6267_v7, %v15442_v31  ;;  %v6290_v50 = vrot.slane %v6282_v51, %v15442_v31  ;;  %v6297_v40 = vrot.slane %v6283_v22, %v15442_v31 }
0x1e38   : > { %v6454_v20 = vcombine.low %v6290_v50, %v6297_v40  ;;  %v13049_v60 = vcombine.high %v6290_v50, %v6297_v40 }
0x1e3a   : > { %v6461_v15 = vrot.slane %v6454_v20, %v15439_v24  ;;  %v6469_v9 = vrot.slane %v13049_v60, %v15439_v24 }
0x1e3c   : > { %v6487_v63 = vcombine.high %v6461_v15, %v6469_v9 }
0x1e3e   : > { %6152 = vrot.lane.b32.xlu1 %v15926_v53, %s17713_s2 }
0x1e4a   : > { %6143 = vrot.lane.b32.xlu0 %v15926_v53, %s17714_s8 }
0x1e58   : > { %v7173_v46 = vpop.xlane.xlu1 %7172 }
0x1e59   : > { %v7185_v58 = vsub.f32 %v16373_v17, %v7173_v46  ;;  %v7184_v17 = vsub.f32 %v16364_v56, %v7170_v41  ;;  %v6266_v56 = vcombine.low %v6242_v30, %v6258_v57 }
0x1e5b   : > { %v7208_v27 = vmul.f32 1.442695, %v7185_v58  ;;  %v7206_v44 = vmul.f32 1.442695, %v7184_v17  ;;  %v6274_v0 = vrot.slane %v6266_v56, %v15442_v31  ;;  %v6486_v58 = vcombine.low %v6461_v15, %v6469_v9 }
0x1e5d   : > { %14527 = vpow2.f32 %v7208_v27  ;;  %v6438_v48 = vcombine.low %v6274_v0, %v6281_v36  ;;  %v13048_v35 = vcombine.high %v6274_v0, %v6281_v36  ;;  %v6494_v10 = vrot.slane %v6486_v58, %v15442_v31 }
0x1e5e   : > { %14529 = vpow2.f32 %v7206_v44  ;;  %v7424_v44 = vsel %vm2611_vm6, %v6577_v29, 0  ;;  %v6501_v36 = vrot.slane %v6487_v63, %v15442_v31 }
0x1e5f   : > { %v6445_v61 = vrot.slane %v6438_v48, %v15439_v24  ;;  %v6453_v59 = vrot.slane %v13048_v35, %v15439_v24 }
0x1e61   : > { %v6470_v46 = vcombine.low %v6445_v61, %v6453_v59  ;;  %v6471_v57 = vcombine.high %v6445_v61, %v6453_v59 }
0x1e62   : > { %7238 = vadd.xlane.f32.xlu1 %v7237_v32  ;;  %v6576_v32 = vpack.c.bf16 %v16282_v4, %v16282_v4 }
0x1e63   : > { %v6485_v0 = vrot.slane %v6471_v57, %v15442_v31 }
0x1e64   : > { %v7378_v11 = vsel %vm2611_vm6, %v6576_v32, 0 }
0x1e65   : > { %v6504_v40 = vcombine.low %v6485_v0, %v6501_v36  ;;  %v6505_v35 = vcombine.high %v6485_v0, %v6501_v36 }
0x1e67   : > { %v16434_v8 = vpop.eup %14527  ;;  %v6580_v48 = vpack.c.bf16 %v6504_v40, %v6504_v40  ;;  %v6581_v15 = vpack.c.bf16 %v6505_v35, %v6505_v35 }
0x1e68   : > { %v7243_v1 = vsel %vm2375_vm4, %v16434_v8, 0.0  ;;  %v16449_v39 = vpop.eup %14529 }
0x1e69   : > { %7244 = vadd.xlane.f32.xlu0 %v7243_v1  ;;  %v7240_v6 = vsel %vm2375_vm4, %v16449_v39, 0.0  ;;  %v7562_v61 = vsel %vm2611_vm6, %v6580_v48, 0 }
0x1e73   : > { %6161 = vrot.lane.b32.xlu1 %v15926_v53, %s17715_s9 }
0x1e96   : > { %v7215_v2 = vpop.xlane.xlu1 %7214 }
0x1e97   : > { %7241 = vadd.xlane.f32.xlu1 %v7240_v6  ;;  %14531 = vrcp.f32 %v7215_v2  ;;  %v7212_v45 = vpop.xlane.xlu0 %7211 }
0x1e98   : > { %14533 = vrcp.f32 %v7212_v45 }
0x1ea1   : > { %v14532_v12 = vpop.eup %14531 }
0x1ea2   : > { %v14534_v26 = vpop.eup %14533  ;;  %v7218_v49 = vpop.xlane.xlu1 %7217  ;;  %v7249_v18 = vmul.f32 %v14532_v12, %v16382_v3  ;;  %v6478_v3 = vrot.slane %v6470_v46, %v15442_v31 }
0x1ea3   : > { %14535 = vrcp.f32 %v7218_v49  ;;  %v7247_v27 = vmul.f32 %v14534_v26, %v16384_v54  ;;  %v7608_v26 = vsel %vm2611_vm6, %v6581_v15, 0 }
0x1ea4   : > { %v7271_v1 = vpack.c.bf16 %v7249_v18, %v7249_v18  ;;  %v6502_v4 = vcombine.low %v6478_v3, %v6494_v10  ;;  %v6503_v25 = vcombine.high %v6478_v3, %v6494_v10 }
0x1ea5   : > { %v7270_v41 = vpack.c.bf16 %v7247_v27, %v7247_v27 }
0x1ea6   : > { %v7221_v17 = vpop.xlane.xlu0 %7220  ;;  %13841 = vmatmul.mubr.msk.bf16.vlgmr.msra.gmra.mrb[80].mxu0 %vm2375_vm4, %v7271_v1  ;;  %v6578_v37 = vpack.c.bf16 %v6502_v4, %v6502_v4  ;;  %v6579_v51 = vpack.c.bf16 %v6503_v25, %v6503_v25 }
0x1ea7   : > { %14537 = vrcp.f32 %v7221_v17  ;;  %13835 = vmatmul.mubr.msk.bf16.vlgmr.msra.gmra.mrb[104].mxu1 %vm2375_vm4, %v7270_v41  ;;  %13851 = vmatpush3.bf16.msra.mxu0 %v7424_v44 }
0x1ea8   : > { %13845 = vmatpush3.bf16.msra.mxu1 %v7378_v11  ;;  %13846 = vmatprep.mubr.msk.bf16.mxu1 %vm14949_vm3, %v14948_v47  ;;  %v7470_v56 = vsel %vm2611_vm6, %v6578_v37, 0  ;;  %v7516_v50 = vsel %vm2611_vm6, %v6579_v51, 0 }
0x1ea9   : > { %13856 = vmatprep.subr.bf16.mxu1 %v14948_v47  ;;  %13852 = vmatprep.mubr.msk.bf16.mxu0 %vm14949_vm3, %v14948_v47 }
0x1eaa   : > { %13862 = vmatprep.subr.bf16.mxu0 %v14948_v47 }
0x1ead   : > { %v14536_v54 = vpop.eup %14535 }
0x1eae   : > { %v7251_v5 = vmul.f32 %v14536_v54, %v16391_v16 }
0x1eb0   : > { %v7272_v13 = vpack.c.bf16 %v7251_v5, %v7251_v5  ;;  %v7224_v14 = vpop.xlane.xlu0 %7223 }
0x1eb1   : > { %v14538_v30 = vpop.eup %14537  ;;  %14539 = vrcp.f32 %v7224_v14 }
0x1eb2   : > { %13847 = vmatmul.mubr.msk.bf16.vlgmr.msra.gmra.mrb[108].mxu1 %vm2375_vm4, %v7272_v13  ;;  %v7253_v7 = vmul.f32 %v14538_v30, %v16397_v52 }
0x1eb3   : > { %13857 = vmatpush3.bf16.msra.mxu1 %v7470_v56  ;;  %13858 = vmatprep.mubr.msk.bf16.mxu1 %vm14949_vm3, %v14948_v47 }
0x1eb4   : > { %v7273_v16 = vpack.c.bf16 %v7253_v7, %v7253_v7  ;;  %13868 = vmatprep.subr.bf16.mxu1 %v14948_v47  ;;  %v7227_v22 = vpop.xlane.xlu0 %7226 }
0x1eb5   : > { %14541 = vrcp.f32 %v7227_v22 }
0x1eb6   : > { %13853 = vmatmul.mubr.msk.bf16.vlgmr.msra.gmra.mrb[84].mxu0 %vm2375_vm4, %v7273_v16 }
0x1eb7   : > { %13863 = vmatpush3.bf16.msra.mxu0 %v7516_v50  ;;  %13864 = vmatprep.mubr.msk.bf16.mxu0 %vm14949_vm3, %v14948_v47 }
0x1eb8   : > { %13874 = vmatprep.subr.bf16.mxu0 %v14948_v47 }
0x1eb9   : > { %v7233_v52 = vpop.xlane.xlu0 %7232 }
0x1eba   : > { %v7230_v6 = vpop.xlane.xlu1 %7229  ;;  %14543 = vrcp.f32 %v7233_v52 }
0x1ebb   : > { %14545 = vrcp.f32 %v7230_v6  ;;  %v14540_v2 = vpop.eup %14539 }
0x1ebc   : > { %v7255_v45 = vmul.f32 %v14540_v2, %v16403_v33 }
0x1ebe   : > { %v7274_v20 = vpack.c.bf16 %v7255_v45, %v7255_v45 }
0x1ebf   : > { %v14542_v60 = vpop.eup %14541 }
0x1ec0   : > { %13859 = vmatmul.mubr.msk.bf16.vlgmr.msra.gmra.mrb[112].mxu1 %vm2375_vm4, %v7274_v20  ;;  %v7257_v59 = vmul.f32 %v14542_v60, %v16407_v21 }
0x1ec1   : > { %13869 = vmatpush3.bf16.msra.mxu1 %v7562_v61  ;;  %13870 = vmatprep.mubr.msk.bf16.mxu1 %vm14949_vm3, %v14948_v47  ;;  %v7236_v46 = vpop.xlane.xlu0 %7235 }
0x1ec2   : > { %v7275_v9 = vpack.c.bf16 %v7257_v59, %v7257_v59  ;;  %13880 = vmatprep.subr.bf16.mxu1 %v14948_v47  ;;  %14547 = vrcp.f32 %v7236_v46 }
0x1ec4   : > { %v14544_v12 = vpop.eup %14543  ;;  %13865 = vmatmul.mubr.msk.bf16.vlgmr.msra.gmra.mrb[88].mxu0 %vm2375_vm4, %v7275_v9 }
0x1ec5   : > { %v14546_v33 = vpop.eup %14545  ;;  %13875 = vmatpush3.bf16.msra.mxu0 %v7608_v26  ;;  %13876 = vmatprep.mubr.msk.bf16.mxu0 %vm14949_vm3, %v14948_v47  ;;  %v7261_v21 = vmul.f32 %v14544_v12, %v16412_v19  ;;  %v6144_v32 = vpop.permute.xlu0 %6143 }
0x1ec6   : > { %v7259_v49 = vmul.f32 %v14546_v33, %v16414_v55  ;;  %13886 = vmatprep.subr.bf16.mxu0 %v14948_v47  ;;  %v6153_v55 = vpop.permute.xlu1 %6152 }
0x1ec7   : > { %v7277_v29 = vpack.c.bf16 %v7261_v21, %v7261_v21  ;;  %v6302_v27 = vcombine.low %v15926_v53, %v6153_v55  ;;  %v6303_v19 = vcombine.high %v15926_v53, %v6153_v55 }
0x1ec8   : > { %v7276_v18 = vpack.c.bf16 %v7259_v49, %v7259_v49 }
0x1ec9   : > { %v6310_v44 = vrot.slane %v6302_v27, %v15439_v24  ;;  %v6317_v3 = vrot.slane %v6303_v19, %v15439_v24 }
0x1eca   : > { %13871 = vmatmul.mubr.msk.bf16.vlgmr.msra.gmra.mrb[116].mxu1 %vm2375_vm4, %v7276_v18 }
0x1ecb   : > { %13882 = vmatprep.mubr.msk.bf16.mxu1 %vm14949_vm3, %v14948_v47 }
0x1ecc   : > { %13877 = vmatmul.mubr.msk.bf16.vlgmr.msra.gmra.mrb[92].mxu0 %vm2375_vm4, %v7277_v29  ;;  %v14548_v6 = vpop.eup %14547 }
0x1ecd   : > { %13888 = vmatprep.mubr.msk.bf16.mxu0 %vm14949_vm3, %v14948_v47  ;;  %v7263_v9 = vmul.f32 %v14548_v6, %v16420_v62 }
0x1ecf   : > { %v7278_v55 = vpack.c.bf16 %v7263_v9, %v7263_v9 }
0x1eef   : > { %v7239_v58 = vpop.xlane.xlu1 %7238 }
0x1ef0   : > { %14549 = vrcp.f32 %v7239_v58 }
0x1ef3   : > { %v6162_v1 = vpop.permute.xlu1 %6161 }
0x1ef4   : > { %v6318_v41 = vcombine.low %v6144_v32, %v6162_v1  ;;  %v6319_v17 = vcombine.high %v6144_v32, %v6162_v1 }
0x1ef6   : > { %v6326_v10 = vrot.slane %v6318_v41, %v15439_v24  ;;  %v6333_v11 = vrot.slane %v6319_v17, %v15439_v24  ;;  %v7245_v0 = vpop.xlane.xlu0 %7244 }
0x1ef7   : > { %14551 = vrcp.f32 %v7245_v0 }
0x1ef8   : > { %v6334_v4 = vcombine.low %v6310_v44, %v6326_v10  ;;  %v6335_v54 = vcombine.high %v6310_v44, %v6326_v10  ;;  %v6350_v5 = vcombine.low %v6317_v3, %v6333_v11  ;;  %v6351_v37 = vcombine.high %v6317_v3, %v6333_v11 }
0x1efa   : > { %v6342_v53 = vrot.slane %v6334_v4, %v15442_v31  ;;  %v6349_v25 = vrot.slane %v6335_v54, %v15442_v31  ;;  %v6358_v13 = vrot.slane %v6350_v5, %v15442_v31  ;;  %v6365_v30 = vrot.slane %v6351_v37, %v15442_v31  ;;  %v14550_v20 = vpop.eup %14549 }
0x1efb   : > { %v7265_v12 = vmul.f32 %v14550_v20, %v16430_v34 }
0x1efc   : > { %v6506_v14 = vcombine.low %v6342_v53, %v6349_v25  ;;  %v13050_v57 = vcombine.high %v6342_v53, %v6349_v25  ;;  %v6522_v63 = vcombine.low %v6358_v13, %v6365_v30  ;;  %v13051_v56 = vcombine.high %v6358_v13, %v6365_v30 }
0x1efd   : > { %v7279_v46 = vpack.c.bf16 %v7265_v12, %v7265_v12 }
0x1efe   : > { %v6513_v7 = vrot.slane %v6506_v14, %v15439_v24  ;;  %v6521_v51 = vrot.slane %v13050_v57, %v15439_v24  ;;  %v6529_v16 = vrot.slane %v6522_v63, %v15439_v24  ;;  %v6537_v22 = vrot.slane %v13051_v56, %v15439_v24 }
0x1f00   : > { %v6538_v36 = vcombine.low %v6513_v7, %v6521_v51  ;;  %v6554_v50 = vcombine.low %v6529_v16, %v6537_v22  ;;  %v6539_v52 = vcombine.high %v6513_v7, %v6521_v51  ;;  %v6555_v40 = vcombine.high %v6529_v16, %v6537_v22 }
0x1f01   : > { %v14552_v58 = vpop.eup %14551 }
0x1f02   : > { %v6546_v2 = vrot.slane %v6538_v36, %v15442_v31  ;;  %v6562_v45 = vrot.slane %v6554_v50, %v15442_v31  ;;  %v6553_v48 = vrot.slane %v6539_v52, %v15442_v31  ;;  %v6569_v35 = vrot.slane %v6555_v40, %v15442_v31 }
0x1f03   : > { %v7269_v27 = vmul.f32 %v14552_v58, %v16434_v8 }
0x1f04   : > { %v6570_v60 = vcombine.low %v6546_v2, %v6562_v45  ;;  %v6571_v61 = vcombine.high %v6546_v2, %v6562_v45  ;;  %v6572_v59 = vcombine.low %v6553_v48, %v6569_v35  ;;  %v6573_v15 = vcombine.high %v6553_v48, %v6569_v35 }
0x1f05   : > { %v7281_v19 = vpack.c.bf16 %v7269_v27, %v7269_v27 }
0x1f06   : > { %v6582_v33 = vpack.c.bf16 %v6570_v60, %v6570_v60  ;;  %v6583_v26 = vpack.c.bf16 %v6571_v61, %v6571_v61  ;;  %v6584_v18 = vpack.c.bf16 %v6572_v59, %v6572_v59  ;;  %v6585_v29 = vpack.c.bf16 %v6573_v15, %v6573_v15 }
0x1f08   : > { %v7654_v49 = vsel %vm2611_vm6, %v6582_v33, 0  ;;  %v7700_v21 = vsel %vm2611_vm6, %v6583_v26, 0  ;;  %v7746_v62 = vsel %vm2611_vm6, %v6584_v18, 0  ;;  %v7792_v34 = vsel %vm2611_vm6, %v6585_v29, 0 }
0x1f09   : > { %13881 = vmatpush3.bf16.msra.mxu1 %v7654_v49  ;;  %13887 = vmatpush3.bf16.msra.mxu0 %v7700_v21 }
0x1f0a   : > { %13892 = vmatprep.subr.bf16.mxu1 %v14948_v47  ;;  %13898 = vmatprep.subr.bf16.mxu0 %v14948_v47 }
0x1f0c   : > { %13883 = vmatmul.mubr.msk.bf16.vlgmr.msra.gmra.mrb[120].mxu1 %vm2375_vm4, %v7278_v55  ;;  %13889 = vmatmul.mubr.msk.bf16.vlgmr.msra.gmra.mrb[96].mxu0 %vm2375_vm4, %v7279_v46 }
0x1f0d   : > { %13893 = vmatpush3.bf16.msra.mxu1 %v7746_v62  ;;  %13899 = vmatpush3.bf16.msra.mxu0 %v7792_v34 }
0x1f0e   : > { %13900 = vmatprep.mubr.msk.bf16.mxu0 %vm14949_vm3, %v14948_v47  ;;  %13894 = vmatprep.mubr.msk.bf16.mxu1 %vm14949_vm3, %v14948_v47 }
0x1f14   : > { %13901 = vmatmul.mubr.msk.bf16.vlgmr.msra.gmra.mrb[100].mxu0 %vm2375_vm4, %v7281_v19 }
0x1f24   : > { %v7242_v32 = vpop.xlane.xlu1 %7241 }
0x1f25   : > { %14553 = vrcp.f32 %v7242_v32 }
0x1f2f   : > { %v14554_v1 = vpop.eup %14553 }
0x1f30   : > { %v7267_v41 = vmul.f32 %v14554_v1, %v16449_v39 }
0x1f32   : > { %v7280_v17 = vpack.c.bf16 %v7267_v41, %v7267_v41 }
0x1f34   : > { %13895 = vmatmul.mubr.msk.bf16.vlgmr.msra.gmra.mrb[124].mxu1 %vm2375_vm4, %v7280_v17 }
0x1f79   : > { %v7368_v44 = vpop.f32.mrb[80].mxu0 }
0x1f7a   : > { %v7322_v3 = vpop.f32.mrb[104].mxu1  ;;  %v13842_v8 = vpop.f32.mrb[81].mxu0 }
0x1f7b   : > { %v13836_v10 = vpop.f32.mrb[105].mxu1  ;;  %v7371_v11 = vpop.f32.mrb[82].mxu0 }
0x1f7c   : > { %v7325_v4 = vpop.f32.mrb[106].mxu1  ;;  %v13843_v54 = vpop.f32.mrb[83].mxu0 }
0x1f7d   : > { %v13837_v5 = vpop.f32.mrb[107].mxu1 }
0x1f85   : > { %v7414_v37 = vpop.f32.mrb[108].mxu1 }
0x1f86   : > { %v7834_v53 = vcombine.low %v7322_v3, %v7414_v37  ;;  %v7835_v25 = vcombine.high %v7322_v3, %v7414_v37  ;;  %v13848_v13 = vpop.f32.mrb[109].mxu1 }
0x1f87   : > { %v7417_v30 = vpop.f32.mrb[110].mxu1 }
0x1f88   : > { %v13849_v14 = vpop.f32.mrb[111].mxu1  ;;  %v7842_v51 = vrot.slane %v7834_v53, %v15439_v24  ;;  %v7849_v16 = vrot.slane %v7835_v25, %v15439_v24 }
0x1f89   : > { %v7460_v57 = vpop.f32.mrb[84].mxu0 }
0x1f8a   : > { %v7850_v63 = vcombine.low %v7368_v44, %v7460_v57  ;;  %v7851_v39 = vcombine.high %v7368_v44, %v7460_v57  ;;  %v13854_v56 = vpop.f32.mrb[85].mxu0 }
0x1f8b   : > { %v7463_v7 = vpop.f32.mrb[86].mxu0 }
0x1f8c   : > { %v7858_v22 = vrot.slane %v7850_v63, %v15439_v24  ;;  %v7865_v0 = vrot.slane %v7851_v39, %v15439_v24  ;;  %v13855_v36 = vpop.f32.mrb[87].mxu0 }
0x1f8e   : > { %v7866_v50 = vcombine.low %v7842_v51, %v7858_v22  ;;  %v7867_v52 = vcombine.high %v7842_v51, %v7858_v22  ;;  %v7882_v40 = vcombine.low %v7849_v16, %v7865_v0  ;;  %v7883_v6 = vcombine.high %v7849_v16, %v7865_v0 }
0x1f90   : > { %v7874_v2 = vrot.slane %v7866_v50, %v15442_v31  ;;  %v7881_v45 = vrot.slane %v7867_v52, %v15442_v31  ;;  %v7890_v48 = vrot.slane %v7882_v40, %v15442_v31  ;;  %v7897_v35 = vrot.slane %v7883_v6, %v15442_v31 }
0x1f92   : > { %v8038_v20 = vcombine.low %v7874_v2, %v7881_v45  ;;  %v13076_v60 = vcombine.high %v7874_v2, %v7881_v45  ;;  %v8054_v61 = vcombine.low %v7890_v48, %v7897_v35  ;;  %v13077_v59 = vcombine.high %v7890_v48, %v7897_v35 }
0x1f93   : > { %v7506_v26 = vpop.f32.mrb[112].mxu1 }
0x1f94   : > { %v8045_v15 = vrot.slane %v8038_v20, %v15439_v24  ;;  %v8053_v9 = vrot.slane %v13076_v60, %v15439_v24  ;;  %v8061_v12 = vrot.slane %v8054_v61, %v15439_v24  ;;  %v8069_v33 = vrot.slane %v13077_v59, %v15439_v24  ;;  %v13860_v49 = vpop.f32.mrb[113].mxu1 }
0x1f95   : > { %v7509_v21 = vpop.f32.mrb[114].mxu1 }
0x1f96   : > { %v8071_v18 = vcombine.high %v8045_v15, %v8053_v9  ;;  %v8087_v29 = vcombine.high %v8061_v12, %v8069_v33  ;;  %v8070_v55 = vcombine.low %v8045_v15, %v8053_v9  ;;  %v8086_v46 = vcombine.low %v8061_v12, %v8069_v33  ;;  %v13861_v58 = vpop.f32.mrb[115].mxu1 }
0x1f97   : > { %v7552_v62 = vpop.f32.mrb[88].mxu0 }
0x1f98   : > { %v8085_v34 = vrot.slane %v8071_v18, %v15442_v31  ;;  %v8101_v27 = vrot.slane %v8087_v29, %v15442_v31  ;;  %v16564_v19 = vrot.slane %v8070_v55, %v15442_v31  ;;  %v16567_v32 = vrot.slane %v8086_v46, %v15442_v31  ;;  %v13866_v1 = vpop.f32.mrb[89].mxu0 }
0x1f99   : > { %v7555_v41 = vpop.f32.mrb[90].mxu0 }
0x1f9a   : > { %v8104_v17 = vcombine.low %v8085_v34, %v8101_v27  ;;  %v8103_v44 = vcombine.high %v16564_v19, %v16567_v32  ;;  %v8105_v3 = vcombine.high %v8085_v34, %v8101_v27  ;;  %v8102_v8 = vcombine.low %v16564_v19, %v16567_v32  ;;  %v13867_v10 = vpop.f32.mrb[91].mxu0 }
0x1f9d   : > { %v7598_v11 = vpop.f32.mrb[116].mxu1 }
0x1f9e   : > { %v7902_v4 = vcombine.low %v7506_v26, %v7598_v11  ;;  %v7903_v54 = vcombine.high %v7506_v26, %v7598_v11  ;;  %v13872_v5 = vpop.f32.mrb[117].mxu1 }
0x1f9f   : > { %v7601_v37 = vpop.f32.mrb[118].mxu1  ;;  %v7644_v25 = vpop.f32.mrb[92].mxu0 }
0x1fa0   : > { %v13873_v53 = vpop.f32.mrb[119].mxu1  ;;  %v7918_v13 = vcombine.low %v7552_v62, %v7644_v25  ;;  %v7919_v30 = vcombine.high %v7552_v62, %v7644_v25  ;;  %v13878_v14 = vpop.f32.mrb[93].mxu0  ;;  %v7910_v63 = vrot.slane %v7902_v4, %v15439_v24  ;;  %v7917_v39 = vrot.slane %v7903_v54, %v15439_v24 }
0x1fa1   : > { %v7647_v57 = vpop.f32.mrb[94].mxu0 }
0x1fa2   : > { %v7926_v56 = vrot.slane %v7918_v13, %v15439_v24  ;;  %v7933_v7 = vrot.slane %v7919_v30, %v15439_v24  ;;  %v13879_v51 = vpop.f32.mrb[95].mxu0 }
0x1fa4   : > { %v7934_v16 = vcombine.low %v7910_v63, %v7926_v56  ;;  %v7935_v22 = vcombine.high %v7910_v63, %v7926_v56  ;;  %v7950_v0 = vcombine.low %v7917_v39, %v7933_v7  ;;  %v7951_v36 = vcombine.high %v7917_v39, %v7933_v7 }
0x1fa6   : > { %v7942_v50 = vrot.slane %v7934_v16, %v15442_v31  ;;  %v7949_v52 = vrot.slane %v7935_v22, %v15442_v31  ;;  %v7958_v40 = vrot.slane %v7950_v0, %v15442_v31  ;;  %v7965_v6 = vrot.slane %v7951_v36, %v15442_v31 }
0x1fa8   : > { %v8106_v2 = vcombine.low %v7942_v50, %v7949_v52  ;;  %v13078_v45 = vcombine.high %v7942_v50, %v7949_v52  ;;  %v8122_v48 = vcombine.low %v7958_v40, %v7965_v6  ;;  %v13079_v35 = vcombine.high %v7958_v40, %v7965_v6 }
0x1faa   : > { %v8113_v20 = vrot.slane %v8106_v2, %v15439_v24  ;;  %v8121_v60 = vrot.slane %v13078_v45, %v15439_v24  ;;  %v8129_v61 = vrot.slane %v8122_v48, %v15439_v24  ;;  %v8137_v59 = vrot.slane %v13079_v35, %v15439_v24  ;;  %v14421_v48 = vld [vmem:[%s17731_s19] sm:$0xff]  }
0x1fab   : > { %13904 = vmatprep.subr.bf16.mxu1 %v14421_v48 }
0x1fac   : > { %v8139_v15 = vcombine.high %v8113_v20, %v8121_v60  ;;  %v8155_v9 = vcombine.high %v8129_v61, %v8137_v59  ;;  %v8138_v12 = vcombine.low %v8113_v20, %v8121_v60  ;;  %v8154_v33 = vcombine.low %v8129_v61, %v8137_v59  ;;  %13905 = vmatpush3.bf16.msra.mxu1 %v14421_v48 }
0x1fae   : > { %v8153_v26 = vrot.slane %v8139_v15, %v15442_v31  ;;  %v8169_v49 = vrot.slane %v8155_v9, %v15442_v31  ;;  %v16588_v21 = vrot.slane %v8138_v12, %v15442_v31  ;;  %v16591_v18 = vrot.slane %v8154_v33, %v15442_v31 }
0x1fb0   : > { %v8172_v29 = vcombine.low %v8153_v26, %v8169_v49  ;;  %v8171_v55 = vcombine.high %v16588_v21, %v16591_v18  ;;  %v8173_v46 = vcombine.high %v8153_v26, %v8169_v49  ;;  %v8170_v58 = vcombine.low %v16588_v21, %v16591_v18 }
0x1fb2   : > { %v14331_v62 = vpack.i.bf16 %v8172_v29, %v8104_v17  ;;  %v14326_v34 = vpack.i.bf16 %v8171_v55, %v8103_v44  ;;  %v16597_v27 = vpack.i.bf16 %v8173_v46, %v8105_v3  ;;  %v14422_v55 = vld [vmem:[%s17731_s19 + $0x8] sm:$0xff]  }
0x1fb3   : > { %13906 = vmatprep.subr.bf16.mxu1 %v14422_v55 }
0x1fb4   : > { %14332 = vrot.lane.b32.xlu1 %v14331_v62, %s17716_s5  ;;  %14327 = vrot.lane.b32.xlu0 %v14326_v34, %s17717_s6 }
0x1fb5   : > { %13907 = vmatpush3.bf16.msra.mxu1 %v14422_v55 }
0x1fdf   : > { %v7690_v1 = vpop.f32.mrb[120].mxu1  ;;  %v7736_v41 = vpop.f32.mrb[96].mxu0 }
0x1fe0   : > { %v13884_v10 = vpop.f32.mrb[121].mxu1  ;;  %v13890_v11 = vpop.f32.mrb[97].mxu0 }
0x1fe1   : > { %v7693_v4 = vpop.f32.mrb[122].mxu1  ;;  %v7739_v54 = vpop.f32.mrb[98].mxu0 }
0x1fe2   : > { %v13885_v5 = vpop.f32.mrb[123].mxu1  ;;  %v13891_v37 = vpop.f32.mrb[99].mxu0 }
0x1fe7   : > { %v7828_v53 = vpop.f32.mrb[100].mxu0 }
0x1fe8   : > { %v7986_v25 = vcombine.low %v7736_v41, %v7828_v53  ;;  %v7987_v13 = vcombine.high %v7736_v41, %v7828_v53  ;;  %v13902_v30 = vpop.f32.mrb[101].mxu0 }
0x1fe9   : > { %v7831_v17 = vpop.f32.mrb[102].mxu0 }
0x1fea   : > { %v13903_v44 = vpop.f32.mrb[103].mxu0  ;;  %v7994_v56 = vrot.slane %v7986_v25, %v15439_v24  ;;  %v8001_v7 = vrot.slane %v7987_v13, %v15439_v24 }
0x2007   : > { %v7782_v3 = vpop.f32.mrb[124].mxu1 }
0x2008   : > { %v7970_v14 = vcombine.low %v7690_v1, %v7782_v3  ;;  %v7971_v57 = vcombine.high %v7690_v1, %v7782_v3  ;;  %v13896_v63 = vpop.f32.mrb[125].mxu1 }
0x2009   : > { %v7785_v39 = vpop.f32.mrb[126].mxu1 }
0x200a   : > { %v7978_v51 = vrot.slane %v7970_v14, %v15439_v24  ;;  %v7985_v16 = vrot.slane %v7971_v57, %v15439_v24  ;;  %v13897_v22 = vpop.f32.mrb[127].mxu1 }
0x200c   : > { %v8002_v0 = vcombine.low %v7978_v51, %v7994_v56  ;;  %v8003_v36 = vcombine.high %v7978_v51, %v7994_v56  ;;  %v8018_v50 = vcombine.low %v7985_v16, %v8001_v7  ;;  %v8019_v52 = vcombine.high %v7985_v16, %v8001_v7  ;;  %v13086_v16 = vld [vmem:[%s17732_s20] ss:$0 sm:$0xff] }
0x200e   : > { %v8010_v40 = vrot.slane %v8002_v0, %v15442_v31  ;;  %v8017_v6 = vrot.slane %v8003_v36, %v15442_v31  ;;  %v8026_v2 = vrot.slane %v8018_v50, %v15442_v31  ;;  %v8033_v45 = vrot.slane %v8019_v52, %v15442_v31 }
0x2010   : > { %v8174_v35 = vcombine.low %v8010_v40, %v8017_v6  ;;  %v13080_v20 = vcombine.high %v8010_v40, %v8017_v6  ;;  %v8190_v60 = vcombine.low %v8026_v2, %v8033_v45  ;;  %v13081_v61 = vcombine.high %v8026_v2, %v8033_v45 }
0x2012   : > { %v8181_v59 = vrot.slane %v8174_v35, %v15439_v24  ;;  %v8189_v15 = vrot.slane %v13080_v20, %v15439_v24  ;;  %v8197_v9 = vrot.slane %v8190_v60, %v15439_v24  ;;  %v8205_v12 = vrot.slane %v13081_v61, %v15439_v24 }
0x2014   : > { %v8207_v33 = vcombine.high %v8181_v59, %v8189_v15  ;;  %v8223_v26 = vcombine.high %v8197_v9, %v8205_v12  ;;  %v8206_v49 = vcombine.low %v8181_v59, %v8189_v15  ;;  %v8222_v29 = vcombine.low %v8197_v9, %v8205_v12 }
0x2016   : > { %v8221_v46 = vrot.slane %v8207_v33, %v15442_v31  ;;  %v8237_v62 = vrot.slane %v8223_v26, %v15442_v31  ;;  %v8214_v34 = vrot.slane %v8206_v49, %v15442_v31  ;;  %v8230_v1 = vrot.slane %v8222_v29, %v15442_v31 }
0x2018   : > { %v8240_v41 = vcombine.low %v8221_v46, %v8237_v62  ;;  %v8239_v10 = vcombine.high %v8214_v34, %v8230_v1  ;;  %v8241_v11 = vcombine.high %v8221_v46, %v8237_v62  ;;  %v8238_v4 = vcombine.low %v8214_v34, %v8230_v1  ;;  %v14423_v62 = vld [vmem:[%s17733_s21] sm:$0xff]   ;;  %v14424_v34 = vld [vmem:[%s17733_s21 + $0x8] sm:$0xff]  }
0x2019   : > { %13912 = vmatprep.subr.bf16.mxu0 %v14423_v62 }
0x201a   : > { %8261 = vrot.lane.b32.xlu0 %v8240_v41, %s17716_s5  ;;  %8249 = vrot.lane.b32.xlu1 %v8239_v10, %s17717_s6 }
0x201b   : > { %13913 = vmatpush3.bf16.msra.mxu0 %v14423_v62 }
0x201c   : > { %13914 = vmatprep.subr.bf16.mxu0 %v14424_v34 }
0x201e   : > { %8273 = vrot.lane.b32.xlu0 %v8241_v11, %s17718_s12  ;;  %14337 = vrot.lane.b32.xlu1 %v16597_v27, %s17718_s12 }
0x201f   : > { %13915 = vmatpush3.bf16.msra.mxu0 %v14424_v34 }
0x2026   : > { %v14333_v54 = vpop.permute.xlu1 %14332  ;;  %v14328_v5 = vpop.permute.xlu0 %14327 }
0x2027   : > { %v14330_v37 = vunpack.i.h.bf16 %v14328_v5  ;;  %v14329_v53 = vunpack.i.l.bf16 %v14328_v5  ;;  %v14335_v30 = vunpack.i.h.bf16 %v14333_v54  ;;  %v14334_v17 = vunpack.i.l.bf16 %v14333_v54 }
0x2029   : > { %v8279_v3 = vsel %vm2375_vm4, %v8170_v58, %v14330_v37  ;;  %v8278_v27 = vsel %vm2375_vm4, %v8102_v8, %v14329_v53 }
0x202a   : > { %v8281_v7 = vsel %vm2942_vm7, %v8278_v27, %v14334_v17  ;;  %v8282_v51 = vsel %vm2942_vm7, %v8279_v3, %v14335_v30  ;;  %v13088_v27 = vld [vmem:[%s17735_s24] ss:$0 sm:$0xff] }
0x208c   : > { %v8250_v25 = vpop.permute.xlu1 %8249  ;;  %v8262_v13 = vpop.permute.xlu0 %8261 }
0x208d   : > { %v8280_v44 = vsel %vm2375_vm4, %v8238_v4, %v8250_v25 }
0x208e   : > { %v8283_v63 = vsel %vm2942_vm7, %v8280_v44, %v8262_v13  ;;  %v13087_v13 = vld [vmem:[%s17734_s22] ss:$0 sm:$0xff] }
0x2090   : > { %v14338_v14 = vpop.permute.xlu1 %14337  ;;  %v8274_v57 = vpop.permute.xlu0 %8273 }
0x2091   : > { %v14340_v39 = vunpack.i.h.bf16 %v14338_v14  ;;  %v14339_v56 = vunpack.i.l.bf16 %v14338_v14  ;;  %v8286_v21 = vsel %vm2944_vm8, %v8283_v63, %v8274_v57 }
0x2092   : > { %v8288_v32 = vpack.c.bf16 %v8286_v21, %v8286_v21 }
0x2093   : > { %v8284_v18 = vsel %vm2944_vm8, %v8281_v7, %v14339_v56  ;;  %v8285_v58 = vsel %vm2944_vm8, %v8282_v51, %v14340_v39 }
0x2094   : > { %v8287_v19 = vpack.c.bf16 %v8285_v58, %v8284_v18  ;;  %v14425_v58 = vld [vmem:[%s17736_s25] sm:$0xff]  }
0x2095   : > { %13920 = vmatprep.subr.bf16.mxu1 %v14425_v58 }
0x2096   : > { %13908 = vmatprep.mubr.msk.bf16.mxu1 %vm1670_vm2, %v8287_v19  ;;  %v14426_v19 = vld [vmem:[%s17736_s25 + $0x8] sm:$0xff]  }
0x2097   : > { %13909 = vmatmul.mubr.msk.bf16.vlgmr.msra.gmra.mrb[128].mxu1 %vm1670_vm2, %v8288_v32  ;;  %v14427_v32 = vld [vmem:[%s17736_s25 + $0x10] sm:$0xff]  }
0x2098   : > { %13921 = vmatpush3.bf16.msra.mxu1 %v14425_v58 }
0x2099   : > { %13922 = vmatprep.subr.bf16.mxu1 %v14426_v19 }
0x209c   : > { %13923 = vmatpush3.bf16.msra.mxu1 %v14426_v19 }
0x209d   : > { %13924 = vmatprep.subr.bf16.mxu1 %v14427_v32 }
0x20a0   : > { %13925 = vmatpush3.bf16.msra.mxu1 %v14427_v32 }
0x216a   : > { %v13910_v8 = vpop.f32.mrb[128].mxu1 }
0x216b   : > { %v8345_v22 = vpop.f32.mrb[129].mxu1  ;;  %v8361_v52 = vadd.f32 %v13910_v8, %v15880_v42  ;;  %v14428_v8 = vld [vmem:[%s17736_s25 + $0x18] sm:$0xff]  }
0x216c   : > { %v8359_v0 = vadd.f32 %v8345_v22, %v15878_v38  ;;  %v13911_v36 = vpop.f32.mrb[130].mxu1  ;;  %13926 = vmatprep.subr.bf16.mxu1 %v14428_v8  ;;  %v14430_v22 = vld [vmem:[%s17736_s25 + $0x28] sm:$0xff]  }
0x216d   : > { %v8348_v50 = vpop.f32.mrb[131].mxu1  ;;  %v16651_v48 = vadd.f32 %v13086_v16, %v8361_v52  ;;  %13927 = vmatpush3.bf16.msra.mxu1 %v14428_v8  ;;  %v14432_v36 = vld [vmem:[%s17736_s25 + $0x38] sm:$0xff]  }
0x216e   : > { %v16644_v40 = vadd.f32 %v13086_v16, %v8359_v0  ;;  %v8360_v6 = vadd.f32 %v8348_v50, %v15882_v43  ;;  %v14431_v0 = vld [vmem:[%s17736_s25 + $0x30] sm:$0xff]   ;;  %v13089_v50 = vld [vmem:[%s17737_s26] ss:$0 sm:$0xff] }
0x216f   : > { %v8380_v38 = vsel %vm1670_vm2, %v16651_v48, 0.0 }
0x2170   : > { %v16647_v2 = vadd.f32 %v13086_v16, %v8360_v6  ;;  %v8374_v45 = vsel %vm1670_vm2, %v16644_v40, 0.0  ;;  %v14429_v16 = vld [vmem:[%s17736_s25 + $0x20] sm:$0xff]  }
0x2171   : > { %8375 = vadd.xlane.f32.xlu1 %v8374_v45  ;;  %13928 = vmatprep.subr.bf16.mxu1 %v14429_v16 }
0x2172   : > { %v8377_v35 = vsel %vm1670_vm2, %v16647_v2, 0.0  ;;  %13929 = vmatpush3.bf16.msra.mxu1 %v14429_v16 }
0x2173   : > { %8378 = vadd.xlane.f32.xlu0 %v8377_v35  ;;  %13930 = vmatprep.subr.bf16.mxu1 %v14430_v22 }
0x2176   : > { %13931 = vmatpush3.bf16.msra.mxu1 %v14430_v22 }
0x2177   : > { %8381 = vadd.xlane.f32.xlu0 %v8380_v38  ;;  %13932 = vmatprep.subr.bf16.mxu1 %v14431_v0 }
0x217a   : > { %13933 = vmatpush3.bf16.msra.mxu1 %v14431_v0 }
0x217b   : > { %13934 = vmatprep.subr.bf16.mxu1 %v14432_v36 }
0x217e   : > { %13935 = vmatpush3.bf16.msra.mxu1 %v14432_v36 }
0x217f   : > { %13970 = vmatprep.subr.bf16.mxu1 %v14948_v47 }
0x21fe   : > { %v8376_v42 = vpop.xlane.xlu1 %8375 }
0x21ff   : > { %v8383_v20 = vmul.f32 0.03125, %v8376_v42 }
0x2200   : > { %v8379_v60 = vpop.xlane.xlu0 %8378 }
0x2201   : > { %v8386_v43 = vsub.f32 %v16644_v40, %v8383_v20  ;;  %v8384_v61 = vmul.f32 0.03125, %v8379_v60 }
0x2203   : > { %v8387_v59 = vsub.f32 %v16647_v2, %v8384_v61  ;;  %v8389_v15 = vmul.f32 %v8386_v43, %v8386_v43 }
0x2204   : > { %v8382_v9 = vpop.xlane.xlu0 %8381 }
0x2205   : > { %v8385_v12 = vmul.f32 0.03125, %v8382_v9  ;;  %v8392_v33 = vsel %vm1670_vm2, %v8389_v15, 0.0  ;;  %v8390_v26 = vmul.f32 %v8387_v59, %v8387_v59 }
0x2206   : > { %8393 = vadd.xlane.f32.xlu0 %v8392_v33 }
0x2207   : > { %v8388_v49 = vsub.f32 %v16651_v48, %v8385_v12  ;;  %v8395_v29 = vsel %vm1670_vm2, %v8390_v26, 0.0 }
0x2208   : > { %8396 = vadd.xlane.f32.xlu1 %v8395_v29 }
0x2209   : > { %v8391_v55 = vmul.f32 %v8388_v49, %v8388_v49 }
0x220b   : > { %v8398_v46 = vsel %vm1670_vm2, %v8391_v55, 0.0 }
0x220c   : > { %8399 = vadd.xlane.f32.xlu0 %v8398_v46 }
0x2293   : > { %v8394_v1 = vpop.xlane.xlu0 %8393 }
0x2294   : > { %v8401_v41 = vmul.f32 0.03125, %v8394_v1 }
0x2295   : > { %v8397_v10 = vpop.xlane.xlu1 %8396 }
0x2296   : > { %v8404_v11 = vadd.f32 1e-05, %v8401_v41  ;;  %v8402_v4 = vmul.f32 0.03125, %v8397_v10 }
0x2298   : > { %14555 = vrsqrt.f32 %v8404_v11  ;;  %v8405_v54 = vadd.f32 1e-05, %v8402_v4 }
0x2299   : > { %v8400_v5 = vpop.xlane.xlu0 %8399 }
0x229a   : > { %14557 = vrsqrt.f32 %v8405_v54  ;;  %v8403_v37 = vmul.f32 0.03125, %v8400_v5 }
0x229c   : > { %v8406_v53 = vadd.f32 1e-05, %v8403_v37 }
0x229e   : > { %14559 = vrsqrt.f32 %v8406_v53 }
0x22a2   : > { %v14556_v25 = vpop.eup %14555 }
0x22a3   : > { %v8410_v30 = vmul.f32 %v14556_v25, %v8386_v43 }
0x22a4   : > { %v14558_v17 = vpop.eup %14557 }
0x22a5   : > { %v8411_v44 = vmul.f32 %v14558_v17, %v8387_v59  ;;  %v8419_v3 = vmul.f32 %v13087_v13, %v8410_v30 }
0x22a7   : > { %v8420_v14 = vmul.f32 %v13087_v13, %v8411_v44  ;;  %v8428_v39 = vadd.f32 %v13088_v27, %v8419_v3  ;;  %v13094_v3 = vld [vmem:[%s17738_s27] ss:$0 sm:$0xff] }
0x22a8   : > { %v14560_v57 = vpop.eup %14559 }
0x22a9   : > { %v8412_v63 = vmul.f32 %v14560_v57, %v8388_v49  ;;  %v8429_v56 = vadd.f32 %v13088_v27, %v8420_v14 }
0x22ab   : > { %v8431_v7 = vpack.c.bf16 %v8429_v56, %v8428_v39  ;;  %v8421_v51 = vmul.f32 %v13087_v13, %v8412_v63 }
0x22ad   : > { %13916 = vmatprep.mubr.msk.bf16.mxu0 %vm1670_vm2, %v8431_v7  ;;  %v8430_v21 = vadd.f32 %v13088_v27, %v8421_v51 }
0x22af   : > { %v8432_v18 = vpack.c.bf16 %v8430_v21, %v8430_v21 }
0x22b1   : > { %13917 = vmatmul.mubr.msk.bf16.vlgmr.msra.gmra.mrb[104].mxu0 %vm1670_vm2, %v8432_v18 }
0x2384   : > { %v13918_v52 = vpop.f32.mrb[104].mxu0 }
0x2385   : > { %v8505_v6 = vadd.f32 %v13918_v52, %v13089_v50  ;;  %v8496_v45 = vpop.f32.mrb[105].mxu0 }
0x2386   : > { %v8497_v35 = vadd.f32 %v13089_v50, %v8496_v45  ;;  %v13919_v38 = vpop.f32.mrb[106].mxu0 }
0x2387   : > { %v8515_v42 = vmul.f32 0.044715, %v8505_v6  ;;  %v8499_v20 = vpop.f32.mrb[107].mxu0  ;;  %v8512_v54 = vmul.f32 0.5, %v8505_v6 }
0x2388   : > { %v8513_v60 = vmul.f32 0.044715, %v8497_v35  ;;  %v8500_v43 = vadd.f32 %v13089_v50, %v8499_v20  ;;  %v8510_v5 = vmul.f32 0.5, %v8497_v35  ;;  %v14433_v20 = vld [vmem:[%s17723_s3 + $0x10] sm:$0xff]  }
0x2389   : > { %v8518_v61 = vmul.f32 %v8515_v42, %v8505_v6  ;;  %13940 = vmatprep.subr.bf16.mxu0 %v14433_v20 }
0x238a   : > { %v8516_v59 = vmul.f32 %v8513_v60, %v8497_v35  ;;  %v8514_v15 = vmul.f32 0.044715, %v8500_v43  ;;  %v8511_v37 = vmul.f32 0.5, %v8500_v43  ;;  %v14434_v60 = vld [vmem:[%s17723_s3 + $0x18] sm:$0xff]   ;;  %13941 = vmatpush3.bf16.msra.mxu0 %v14433_v20 }
0x238b   : > { %v8521_v9 = vmul.f32 %v8518_v61, %v8505_v6  ;;  %13942 = vmatprep.subr.bf16.mxu0 %v14434_v60 }
0x238c   : > { %v8519_v12 = vmul.f32 %v8516_v59, %v8497_v35  ;;  %v8517_v33 = vmul.f32 %v8514_v15, %v8500_v43 }
0x238d   : > { %v8524_v26 = vadd.f32 %v8521_v9, %v8505_v6 }
0x238e   : > { %v8520_v49 = vmul.f32 %v8517_v33, %v8500_v43  ;;  %v8522_v29 = vadd.f32 %v8519_v12, %v8497_v35  ;;  %13943 = vmatpush3.bf16.msra.mxu0 %v14434_v60 }
0x238f   : > { %v8527_v55 = vmul.f32 0.7978846, %v8524_v26 }
0x2390   : > { %v8523_v46 = vadd.f32 %v8520_v49, %v8500_v43  ;;  %v8525_v62 = vmul.f32 0.7978846, %v8522_v29  ;;  %v14435_v43 = vld [vmem:[%s17724_s4 + $0x10] sm:$0xff]  }
0x2391   : > { %14561 = vtanh.f32 %v8527_v55  ;;  %13948 = vmatprep.subr.bf16.mxu0 %v14435_v43 }
0x2392   : > { %v8526_v34 = vmul.f32 0.7978846, %v8523_v46  ;;  %14563 = vtanh.f32 %v8525_v62  ;;  %v13105_v46 = vld [vmem:[%s17726_s11 + $0x1] ss:$0 sm:$0xff] }
0x2394   : > { %14565 = vtanh.f32 %v8526_v34 }
0x239b   : > { %v14562_v1 = vpop.eup %14561 }
0x239c   : > { %v14564_v41 = vpop.eup %14563  ;;  %v8533_v10 = vadd.f32 1.0, %v14562_v1 }
0x239d   : > { %v8531_v11 = vadd.f32 1.0, %v14564_v41 }
0x239e   : > { %v14566_v4 = vpop.eup %14565  ;;  %v8536_v25 = vmul.f32 %v8533_v10, %v8512_v54 }
0x239f   : > { %v8532_v53 = vadd.f32 1.0, %v14566_v4  ;;  %v8534_v13 = vmul.f32 %v8531_v11, %v8510_v5  ;;  %v13106_v11 = vld [vmem:[%s17727_s13 + $0x1] ss:$0 sm:$0xff] }
0x23a0   : > { %v8538_v44 = vpack.c.bf16 %v8536_v25, %v8536_v25 }
0x23a1   : > { %v8535_v30 = vmul.f32 %v8532_v53, %v8511_v37 }
0x23a3   : > { %v8537_v17 = vpack.c.bf16 %v8535_v30, %v8534_v13 }
0x23a5   : > { %13936 = vmatprep.mubr.bf16.mxu1 %v8537_v17  ;;  %v14436_v17 = vld [vmem:[%s17724_s4 + $0x18] sm:$0xff]  }
0x23a6   : > { %13937 = vmatmul.mubr.bf16.vlgmr.msra.gmra.mrb[132].mxu1 %v8538_v44  ;;  %v14437_v44 = vld [vmem:[%s17725_s7 + $0x10] sm:$0xff]  }
0x23a7   : > { %13972 = vmatprep.mubr.msk.bf16.mxu1 %vm14949_vm3, %v14948_v47 }
0x2479   : > { %v13938_v27 = vpop.f32.mrb[132].mxu1 }
0x247a   : > { %v8644_v14 = vpop.f32.mrb[133].mxu1  ;;  %v8653_v57 = vadd.f32 %v13938_v27, %v13094_v3 }
0x247b   : > { %v8645_v63 = vadd.f32 %v13094_v3, %v8644_v14  ;;  %v13939_v39 = vpop.f32.mrb[134].mxu1 }
0x247c   : > { %v8647_v56 = vpop.f32.mrb[135].mxu1  ;;  %v16686_v21 = vadd.f32 %v8653_v57, %v16651_v48  ;;  %v13122_v39 = vld [vmem:[%s17728_s14 + $0x1] ss:$0 sm:$0xff] }
0x247d   : > { %v16683_v7 = vadd.f32 %v8645_v63, %v16644_v40  ;;  %v8648_v51 = vadd.f32 %v13094_v3, %v8647_v56  ;;  %v14438_v3 = vld [vmem:[%s17725_s7 + $0x18] sm:$0xff]  }
0x247e   : > { %v8671_v32 = vsel %vm1670_vm2, %v16686_v21, 0.0 }
0x247f   : > { %v16689_v18 = vadd.f32 %v8648_v51, %v16647_v2  ;;  %v8665_v58 = vsel %vm1670_vm2, %v16683_v7, 0.0 }
0x2480   : > { %8666 = vadd.xlane.f32.xlu1 %v8665_v58 }
0x2481   : > { %v8668_v19 = vsel %vm1670_vm2, %v16689_v18, 0.0 }
0x2482   : > { %8669 = vadd.xlane.f32.xlu0 %v8668_v19 }
0x2484   : > { %8672 = vadd.xlane.f32.xlu1 %v8671_v32  ;;  %v13112_v32 = vld [vmem:[%s17729_s15 + $0x1] ss:$0 sm:$0xff] }
0x250d   : > { %v8667_v40 = vpop.xlane.xlu1 %8666 }
0x250e   : > { %v8674_v8 = vmul.f32 0.03125, %v8667_v40 }
0x250f   : > { %v8670_v16 = vpop.xlane.xlu0 %8669 }
0x2510   : > { %v8677_v48 = vsub.f32 %v16683_v7, %v8674_v8  ;;  %v8675_v2 = vmul.f32 0.03125, %v8670_v16  ;;  %v13132_v16 = vld [vmem:[%s17730_s16 + $0x1] ss:$0 sm:$0xff] }
0x2511   : > { %v8673_v22 = vpop.xlane.xlu1 %8672 }
0x2512   : > { %v8678_v0 = vsub.f32 %v16689_v18, %v8675_v2  ;;  %v8676_v36 = vmul.f32 0.03125, %v8673_v22  ;;  %v8680_v50 = vmul.f32 %v8677_v48, %v8677_v48 }
0x2514   : > { %v8679_v52 = vsub.f32 %v16686_v21, %v8676_v36  ;;  %v8683_v6 = vsel %vm1670_vm2, %v8680_v50, 0.0  ;;  %v8681_v45 = vmul.f32 %v8678_v0, %v8678_v0 }
0x2515   : > { %8684 = vadd.xlane.f32.xlu0 %v8683_v6 }
0x2516   : > { %v8686_v35 = vsel %vm1670_vm2, %v8681_v45, 0.0  ;;  %v8682_v38 = vmul.f32 %v8679_v52, %v8679_v52 }
0x2517   : > { %8687 = vadd.xlane.f32.xlu1 %v8686_v35 }
0x2518   : > { %v8689_v42 = vsel %vm1670_vm2, %v8682_v38, 0.0 }
0x2519   : > { %8690 = vadd.xlane.f32.xlu0 %v8689_v42 }
0x25a2   : > { %v8685_v61 = vpop.xlane.xlu0 %8684 }
0x25a3   : > { %v8692_v59 = vmul.f32 0.03125, %v8685_v61 }
0x25a4   : > { %v8688_v15 = vpop.xlane.xlu1 %8687 }
0x25a5   : > { %v8695_v9 = vadd.f32 1e-05, %v8692_v59  ;;  %v8693_v12 = vmul.f32 0.03125, %v8688_v15 }
0x25a6   : > { %v8691_v33 = vpop.xlane.xlu0 %8690 }
0x25a7   : > { %14567 = vrsqrt.f32 %v8695_v9  ;;  %v8696_v26 = vadd.f32 1e-05, %v8693_v12  ;;  %v8694_v49 = vmul.f32 0.03125, %v8691_v33 }
0x25a9   : > { %14569 = vrsqrt.f32 %v8696_v26  ;;  %v8697_v29 = vadd.f32 1e-05, %v8694_v49 }
0x25ab   : > { %14571 = vrsqrt.f32 %v8697_v29 }
0x25b1   : > { %v14568_v55 = vpop.eup %14567 }
0x25b2   : > { %v8701_v62 = vmul.f32 %v14568_v55, %v8677_v48 }
0x25b3   : > { %v14570_v34 = vpop.eup %14569 }
0x25b4   : > { %v8702_v1 = vmul.f32 %v14570_v34, %v8678_v0  ;;  %v8710_v41 = vmul.f32 %v13105_v46, %v8701_v62 }
0x25b5   : > { %v14572_v10 = vpop.eup %14571 }
0x25b6   : > { %v8703_v4 = vmul.f32 %v14572_v10, %v8679_v52  ;;  %v8711_v54 = vmul.f32 %v13105_v46, %v8702_v1  ;;  %v8719_v5 = vadd.f32 %v13106_v11, %v8710_v41 }
0x25b8   : > { %v8720_v37 = vadd.f32 %v13106_v11, %v8711_v54  ;;  %v8712_v53 = vmul.f32 %v13105_v46, %v8703_v4 }
0x25ba   : > { %v8722_v25 = vpack.c.bf16 %v8720_v37, %v8719_v5  ;;  %v8721_v13 = vadd.f32 %v13106_v11, %v8712_v53 }
0x25bc   : > { %13944 = vmatprep.mubr.msk.bf16.mxu0 %vm1670_vm2, %v8722_v25  ;;  %v8723_v30 = vpack.c.bf16 %v8721_v13, %v8721_v13 }
0x25be   : > { %13945 = vmatmul.mubr.msk.bf16.vlgmr.msra.gmra.mrb[108].mxu0 %vm1670_vm2, %v8723_v30 }
0x25bf   : > { %13949 = vmatpush3.bf16.msra.mxu0 %v14435_v43  ;;  %13952 = vmatprep.mubr.msk.bf16.mxu0 %vm1670_vm2, %v8722_v25 }
0x25c0   : > { %13950 = vmatprep.subr.bf16.mxu0 %v14436_v17 }
0x25c3   : > { %13951 = vmatpush3.bf16.msra.mxu0 %v14436_v17 }
0x25c4   : > { %13956 = vmatprep.subr.bf16.mxu0 %v14437_v44 }
0x25c6   : > { %13953 = vmatmul.mubr.msk.bf16.vlgmr.msra.gmra.mrb[112].mxu0 %vm1670_vm2, %v8723_v30 }
0x25c7   : > { %13957 = vmatpush3.bf16.msra.mxu0 %v14437_v44  ;;  %13960 = vmatprep.mubr.msk.bf16.mxu0 %vm1670_vm2, %v8722_v25 }
0x25c8   : > { %13958 = vmatprep.subr.bf16.mxu0 %v14438_v3 }
0x25cb   : > { %13959 = vmatpush3.bf16.msra.mxu0 %v14438_v3 }
0x25cc   : > { %13964 = vmatprep.subr.bf16.mxu0 %v14948_v47 }
0x25ce   : > { %13961 = vmatmul.mubr.msk.bf16.vlgmr.msra.gmra.mrb[116].mxu0 %vm1670_vm2, %v8723_v30 }
0x25cf   : > { %13966 = vmatprep.mubr.msk.bf16.mxu0 %vm14949_vm3, %v14948_v47 }
0x2691   : > { %v13946_v27 = vpop.f32.mrb[108].mxu0 }
0x2692   : > { %v8789_v14 = vpop.f32.mrb[109].mxu0  ;;  %v16756_v35 = vadd.f32 %v13946_v27, %v13112_v32 }
0x2693   : > { %v13947_v57 = vpop.f32.mrb[110].mxu0  ;;  %v16724_v8 = vadd.f32 %v13112_v32, %v8789_v14 }
0x2694   : > { %v8792_v63 = vpop.f32.mrb[111].mxu0 }
0x2695   : > { %v16740_v6 = vadd.f32 %v13112_v32, %v8792_v63 }
0x2699   : > { %v13954_v56 = vpop.f32.mrb[112].mxu0 }
0x269a   : > { %v8862_v51 = vpop.f32.mrb[113].mxu0  ;;  %v16750_v45 = vadd.f32 %v13954_v56, %v13122_v39 }
0x269b   : > { %v8863_v58 = vadd.f32 %v13122_v39, %v8862_v51  ;;  %v13955_v19 = vpop.f32.mrb[114].mxu0 }
0x269c   : > { %v8865_v40 = vpop.f32.mrb[115].mxu0 }
0x269d   : > { %9411 = vrot.lane.b32.xlu0 %v8863_v58, %s17713_s2  ;;  %9402 = vrot.lane.b32.xlu1 %v8863_v58, %s17714_s8  ;;  %v16732_v0 = vadd.f32 %v13122_v39, %v8865_v40 }
0x26a1   : > { %v13962_v48 = vpop.f32.mrb[116].mxu0  ;;  %9420 = vrot.lane.b32.xlu1 %v8863_v58, %s17715_s9  ;;  %8970 = vrot.lane.b32.xlu0 %v16724_v8, %s17715_s9 }
0x26a2   : > { %v16730_v2 = vadd.f32 %v13962_v48, %v13132_v16  ;;  %v8935_v22 = vpop.f32.mrb[117].mxu0 }
0x26a3   : > { %v13963_v36 = vpop.f32.mrb[118].mxu0  ;;  %v16766_v38 = vadd.f32 %v13132_v16, %v8935_v22 }
0x26a4   : > { %v8938_v50 = vpop.f32.mrb[119].mxu0 }
0x26a5   : > { %v16734_v52 = vadd.f32 %v13132_v16, %v8938_v50  ;;  %9413 = vrot.lane.b32.xlu0 %v16732_v0, %s17713_s2  ;;  %8952 = vrot.lane.b32.xlu1 %v16724_v8, %s17714_s8 }
0x26a9   : > { %8954 = vrot.lane.b32.xlu0 %v16740_v6, %s17714_s8  ;;  %8961 = vrot.lane.b32.xlu1 %v16724_v8, %s17713_s2 }
0x26ad   : > { %8972 = vrot.lane.b32.xlu0 %v16740_v6, %s17715_s9  ;;  %9404 = vrot.lane.b32.xlu1 %v16732_v0, %s17714_s8 }
0x26b1   : > { %9415 = vrot.lane.b32.xlu0 %v16750_v45, %s17713_s2  ;;  %9422 = vrot.lane.b32.xlu1 %v16732_v0, %s17715_s9 }
0x26b5   : > { %8956 = vrot.lane.b32.xlu0 %v16756_v35, %s17714_s8  ;;  %8963 = vrot.lane.b32.xlu1 %v16740_v6, %s17713_s2 }
0x26b9   : > { %8974 = vrot.lane.b32.xlu0 %v16756_v35, %s17715_s9  ;;  %9406 = vrot.lane.b32.xlu1 %v16750_v45, %s17714_s8 }
0x26bd   : > { %9861 = vrot.lane.b32.xlu0 %v16766_v38, %s17713_s2  ;;  %9424 = vrot.lane.b32.xlu1 %v16750_v45, %s17715_s9 }
0x26c1   : > { %8965 = vrot.lane.b32.xlu1 %v16756_v35, %s17713_s2 }
0x26c5   : > { %9852 = vrot.lane.b32.xlu1 %v16766_v38, %s17714_s8 }
0x26c9   : > { %9870 = vrot.lane.b32.xlu1 %v16766_v38, %s17715_s9 }
0x270f   : > { %v9412_v42 = vpop.permute.xlu0 %9411  ;;  %v9403_v20 = vpop.permute.xlu1 %9402 }
0x2710   : > { %v9429_v60 = vcombine.low %v8863_v58, %v9412_v42  ;;  %v9430_v43 = vcombine.high %v8863_v58, %v9412_v42 }
0x2712   : > { %v9437_v12 = vrot.slane %v9429_v60, %v15439_v24  ;;  %v9444_v33 = vrot.slane %v9430_v43, %v15439_v24 }
0x2713   : > { %v9421_v61 = vpop.permute.xlu1 %9420  ;;  %v8971_v59 = vpop.permute.xlu0 %8970 }
0x2714   : > { %v9445_v15 = vcombine.low %v9403_v20, %v9421_v61  ;;  %v9446_v9 = vcombine.high %v9403_v20, %v9421_v61 }
0x2716   : > { %v9453_v26 = vrot.slane %v9445_v15, %v15439_v24  ;;  %v9460_v49 = vrot.slane %v9446_v9, %v15439_v24 }
0x2717   : > { %v9414_v29 = vpop.permute.xlu0 %9413  ;;  %v8953_v55 = vpop.permute.xlu1 %8952 }
0x2718   : > { %v9461_v46 = vcombine.low %v9437_v12, %v9453_v26  ;;  %v9462_v62 = vcombine.high %v9437_v12, %v9453_v26  ;;  %v9477_v34 = vcombine.low %v9444_v33, %v9460_v49  ;;  %v9478_v1 = vcombine.high %v9444_v33, %v9460_v49 }
0x2719   : > { %v8995_v41 = vcombine.low %v8953_v55, %v8971_v59  ;;  %v8996_v10 = vcombine.high %v8953_v55, %v8971_v59  ;;  %v9497_v44 = vcombine.low %v16732_v0, %v9414_v29 }
0x271a   : > { %v9469_v11 = vrot.slane %v9461_v46, %v15442_v31  ;;  %v9476_v4 = vrot.slane %v9462_v62, %v15442_v31  ;;  %v9485_v54 = vrot.slane %v9477_v34, %v15442_v31  ;;  %v9492_v5 = vrot.slane %v9478_v1, %v15442_v31 }
0x271b   : > { %v8955_v37 = vpop.permute.xlu0 %8954  ;;  %v8962_v53 = vpop.permute.xlu1 %8961  ;;  %v9003_v63 = vrot.slane %v8995_v41, %v15439_v24  ;;  %v9010_v39 = vrot.slane %v8996_v10, %v15439_v24  ;;  %v9505_v50 = vrot.slane %v9497_v44, %v15439_v24 }
0x271c   : > { %v9633_v25 = vcombine.low %v9469_v11, %v9476_v4  ;;  %v13143_v13 = vcombine.high %v9469_v11, %v9476_v4  ;;  %v9649_v30 = vcombine.low %v9485_v54, %v9492_v5  ;;  %v13144_v17 = vcombine.high %v9485_v54, %v9492_v5 }
0x271d   : > { %v8979_v3 = vcombine.low %v16724_v8, %v8962_v53  ;;  %v8980_v27 = vcombine.high %v16724_v8, %v8962_v53  ;;  %v9498_v8 = vcombine.high %v16732_v0, %v9414_v29 }
0x271e   : > { %v16790_v14 = vrot.slane %v9633_v25, %v15439_v24  ;;  %v16793_v57 = vrot.slane %v13143_v13, %v15439_v24  ;;  %v16798_v56 = vrot.slane %v9649_v30, %v15439_v24  ;;  %v16801_v51 = vrot.slane %v13144_v17, %v15439_v24 }
0x271f   : > { %v8987_v58 = vrot.slane %v8979_v3, %v15439_v24  ;;  %v8994_v19 = vrot.slane %v8980_v27, %v15439_v24  ;;  %v8973_v32 = vpop.permute.xlu0 %8972  ;;  %v9405_v40 = vpop.permute.xlu1 %9404  ;;  %v9512_v0 = vrot.slane %v9498_v8, %v15439_v24 }
0x2720   : > { %v9665_v61 = vcombine.low %v16790_v14, %v16793_v57  ;;  %v9681_v59 = vcombine.low %v16798_v56, %v16801_v51  ;;  %v9063_v15 = vcombine.low %v8955_v37, %v8973_v32  ;;  %v9064_v49 = vcombine.high %v8955_v37, %v8973_v32 }
0x2721   : > { %v9011_v16 = vcombine.low %v8987_v58, %v9003_v63  ;;  %v9012_v48 = vcombine.high %v8987_v58, %v9003_v63  ;;  %v9027_v22 = vcombine.low %v8994_v19, %v9010_v39  ;;  %v9028_v36 = vcombine.high %v8994_v19, %v9010_v39 }
0x2722   : > { %v9673_v10 = vrot.slane %v9665_v61, %v15442_v31  ;;  %v9689_v11 = vrot.slane %v9681_v59, %v15442_v31  ;;  %v9071_v25 = vrot.slane %v9063_v15, %v15439_v24  ;;  %v9078_v13 = vrot.slane %v9064_v49, %v15439_v24 }
0x2723   : > { %v9019_v42 = vrot.slane %v9011_v16, %v15442_v31  ;;  %v9026_v20 = vrot.slane %v9012_v48, %v15442_v31  ;;  %v9416_v60 = vpop.permute.xlu0 %9415  ;;  %v9423_v43 = vpop.permute.xlu1 %9422  ;;  %v9035_v33 = vrot.slane %v9027_v22, %v15442_v31  ;;  %v9042_v26 = vrot.slane %v9028_v36, %v15442_v31 }
0x2724   : > { %v9513_v9 = vcombine.low %v9405_v40, %v9423_v43  ;;  %v9514_v12 = vcombine.high %v9405_v40, %v9423_v43  ;;  %v9565_v29 = vcombine.low %v16750_v45, %v9416_v60  ;;  %v9566_v30 = vcombine.high %v16750_v45, %v9416_v60 }
0x2725   : > { %v9183_v55 = vcombine.low %v9019_v42, %v9026_v20  ;;  %v13137_v46 = vcombine.high %v9019_v42, %v9026_v20  ;;  %v9199_v37 = vcombine.low %v9035_v33, %v9042_v26  ;;  %v13138_v3 = vcombine.high %v9035_v33, %v9042_v26 }
0x2726   : > { %v9521_v62 = vrot.slane %v9513_v9, %v15439_v24  ;;  %v9528_v34 = vrot.slane %v9514_v12, %v15439_v24  ;;  %v16833_v27 = vrot.slane %v9565_v29, %v15439_v24  ;;  %v9697_v58 = vcombine.low %v9673_v10, %v9689_v11 }
0x2727   : > { %v16819_v1 = vpop.permute.xlu0 %8956  ;;  %v8964_v41 = vpop.permute.xlu1 %8963  ;;  %v16827_v17 = vrot.slane %v9183_v55, %v15439_v24  ;;  %v16830_v44 = vrot.slane %v13137_v46, %v15439_v24  ;;  %v9698_v19 = vcombine.high %v9673_v10, %v9689_v11  ;;  %v16847_v20 = vrot.slane %v13138_v3, %v15439_v24 }
0x2728   : > { %v9529_v4 = vcombine.low %v9505_v50, %v9521_v62  ;;  %v9530_v54 = vcombine.high %v9505_v50, %v9521_v62  ;;  %v9545_v5 = vcombine.low %v9512_v0, %v9528_v34  ;;  %v9546_v53 = vcombine.high %v9512_v0, %v9528_v34 }
0x2729   : > { %v9047_v63 = vcombine.low %v16740_v6, %v8964_v41  ;;  %v9048_v39 = vcombine.high %v16740_v6, %v8964_v41  ;;  %v9837_v50 = vpack.c.bf16 %v9697_v58, %v9697_v58  ;;  %v9838_v42 = vpack.c.bf16 %v9698_v19, %v9698_v19 }
0x272a   : > { %v9537_v45 = vrot.slane %v9529_v4, %v15442_v31  ;;  %v9544_v8 = vrot.slane %v9530_v54, %v15442_v31  ;;  %v9553_v16 = vrot.slane %v9545_v5, %v15442_v31  ;;  %v9560_v48 = vrot.slane %v9546_v53, %v15442_v31 }
0x272b   : > { %v8975_v32 = vpop.permute.xlu0 %8974  ;;  %v9407_v40 = vpop.permute.xlu1 %9406  ;;  %v9055_v22 = vrot.slane %v9047_v63, %v15439_v24  ;;  %v9062_v36 = vrot.slane %v9048_v39, %v15439_v24  ;;  %v16844_v6 = vrot.slane %v9199_v37, %v15439_v24  ;;  %v9215_v60 = vcombine.low %v16827_v17, %v16830_v44 }
0x272c   : > { %v16852_v43 = vrot.slane %v9566_v30, %v15439_v24  ;;  %v9216_v9 = vcombine.high %v16827_v17, %v16830_v44  ;;  %v9701_v12 = vcombine.low %v9537_v45, %v9544_v8  ;;  %v10303_v33 = vsel %vm2375_vm4, %v9837_v50, 0 }
0x272d   : > { %v9079_v61 = vcombine.low %v9055_v22, %v9071_v25  ;;  %v9080_v59 = vcombine.high %v9055_v22, %v9071_v25  ;;  %v9095_v0 = vcombine.low %v9062_v36, %v9078_v13  ;;  %v9096_v15 = vcombine.high %v9062_v36, %v9078_v13  ;;  %13965 = vmatpush3.bf16.xpose.msra.mxu0 %v10303_v33 }
0x272e   : > { %v10349_v26 = vsel %vm2375_vm4, %v9838_v42, 0  ;;  %v13145_v55 = vcombine.high %v9537_v45, %v9544_v8  ;;  %v9717_v46 = vcombine.low %v9553_v16, %v9560_v48  ;;  %v9231_v41 = vcombine.low %v16844_v6, %v16847_v20  ;;  %13976 = vmatprep.subr.bf16.mxu0 %v14948_v47 }
0x272f   : > { %v9862_v49 = vpop.permute.xlu0 %9861  ;;  %v9425_v29 = vpop.permute.xlu1 %9424  ;;  %v9087_v62 = vrot.slane %v9079_v61, %v15442_v31  ;;  %v9094_v34 = vrot.slane %v9080_v59, %v15442_v31  ;;  %v9232_v10 = vcombine.high %v16844_v6, %v16847_v20  ;;  %v13146_v11 = vcombine.high %v9553_v16, %v9560_v48  ;;  %13971 = vmatpush3.bf16.xpose.msra.mxu1 %v10349_v26 }
0x2730   : > { %v9131_v4 = vcombine.low %v16819_v1, %v8975_v32  ;;  %v9103_v54 = vrot.slane %v9095_v0, %v15442_v31  ;;  %v9110_v5 = vrot.slane %v9096_v15, %v15442_v31  ;;  %v9132_v53 = vcombine.high %v16819_v1, %v8975_v32  ;;  %13982 = vmatprep.subr.bf16.mxu1 %v14948_v47 }
0x2731   : > { %v9879_v37 = vcombine.low %v16766_v38, %v9862_v49  ;;  %v9251_v25 = vcombine.low %v9087_v62, %v9094_v34  ;;  %v13139_v13 = vcombine.high %v9087_v62, %v9094_v34  ;;  %v9581_v30 = vcombine.low %v9407_v40, %v9425_v29 }
0x2732   : > { %v9582_v3 = vcombine.high %v9407_v40, %v9425_v29  ;;  %v16872_v63 = vrot.slane %v9701_v12, %v15439_v24  ;;  %v16875_v39 = vrot.slane %v13145_v55, %v15439_v24  ;;  %v16878_v58 = vrot.slane %v9717_v46, %v15439_v24 }
0x2733   : > { %v9880_v1 = vcombine.high %v16766_v38, %v9862_v49  ;;  %v9589_v19 = vrot.slane %v9581_v30, %v15439_v24  ;;  %v9223_v45 = vrot.slane %v9215_v60, %v15442_v31  ;;  %v9239_v40 = vrot.slane %v9231_v41, %v15442_v31  ;;  %v8966_v8 = vpop.permute.xlu1 %8965 }
0x2734   : > { %v9596_v32 = vrot.slane %v9582_v3, %v15439_v24  ;;  %v16886_v16 = vrot.slane %v13146_v11, %v15439_v24  ;;  %v9267_v48 = vcombine.low %v9103_v54, %v9110_v5  ;;  %v16889_v22 = vrot.slane %v9131_v4, %v15439_v24 }
0x2735   : > { %v16892_v36 = vrot.slane %v9132_v53, %v15439_v24  ;;  %v16895_v38 = vrot.slane %v9251_v25, %v15439_v24  ;;  %v16898_v50 = vrot.slane %v13139_v13, %v15439_v24  ;;  %v13140_v42 = vcombine.high %v9103_v54, %v9110_v5 }
0x2736   : > { %v16901_v60 = vrot.slane %v9879_v37, %v15439_v24  ;;  %v9247_v61 = vcombine.low %v9223_v45, %v9239_v40  ;;  %v9248_v59 = vcombine.high %v9223_v45, %v9239_v40  ;;  %v9666_v0 = vcombine.high %v16790_v14, %v16793_v57 }
0x2737   : > { %v9682_v15 = vcombine.high %v16798_v56, %v16801_v51  ;;  %v16908_v12 = vrot.slane %v9880_v1, %v15439_v24  ;;  %v9597_v33 = vcombine.low %v16833_v27, %v9589_v19  ;;  %v9598_v26 = vcombine.high %v16833_v27, %v9589_v19  ;;  %v9853_v27 = vpop.permute.xlu1 %9852 }
0x2738   : > { %v9613_v49 = vcombine.low %v16852_v43, %v9596_v32  ;;  %v9387_v29 = vpack.c.bf16 %v9247_v61, %v9247_v61  ;;  %v9388_v55 = vpack.c.bf16 %v9248_v59, %v9248_v59  ;;  %v9680_v46 = vrot.slane %v9666_v0, %v15442_v31 }
0x2739   : > { %v9696_v62 = vrot.slane %v9682_v15, %v15442_v31  ;;  %v16916_v14 = vrot.slane %v9267_v48, %v15439_v24  ;;  %v16919_v57 = vrot.slane %v13140_v42, %v15439_v24  ;;  %v9283_v56 = vcombine.low %v16895_v38, %v16898_v50 }
0x273a   : > { %v9614_v51 = vcombine.high %v16852_v43, %v9596_v32  ;;  %13967 = vmatmul.mubr.msk.bf16.vlgmr.msra.gmra.mrb[120].mxu0 %vm2375_vm4, %v9387_v29  ;;  %13973 = vmatmul.mubr.msk.bf16.vlgmr.msra.gmra.mrb[136].mxu1 %vm2375_vm4, %v9388_v55  ;;  %v9115_v11 = vcombine.low %v16756_v35, %v8966_v8  ;;  %v9284_v4 = vcombine.high %v16895_v38, %v16898_v50 }
0x273b   : > { %v9699_v34 = vcombine.low %v9680_v46, %v9696_v62  ;;  %v9700_v41 = vcombine.high %v9680_v46, %v9696_v62  ;;  %v9605_v54 = vrot.slane %v9597_v33, %v15442_v31  ;;  %v9612_v5 = vrot.slane %v9598_v26, %v15442_v31  ;;  %13978 = vmatprep.mubr.msk.bf16.mxu0 %vm14949_vm3, %v14948_v47  ;;  %v9871_v20 = vpop.permute.xlu1 %9870 }
0x273c   : > { %v16932_v53 = vrot.slane %v9613_v49, %v15442_v31  ;;  %v9116_v25 = vcombine.high %v16756_v35, %v8966_v8  ;;  %v9123_v13 = vrot.slane %v9115_v11, %v15439_v24  ;;  %13984 = vmatprep.mubr.msk.bf16.mxu1 %vm14949_vm3, %v14948_v47  ;;  %v16941_v30 = vrot.slane %v9614_v51, %v15442_v31 }
0x273d   : > { %v9839_v43 = vpack.c.bf16 %v9699_v34, %v9699_v34  ;;  %v9840_v37 = vpack.c.bf16 %v9700_v41, %v9700_v41  ;;  %v9230_v3 = vrot.slane %v9216_v9, %v15442_v31  ;;  %v9246_v1 = vrot.slane %v9232_v10, %v15442_v31 }
0x273e   : > { %v9733_v35 = vcombine.low %v16872_v63, %v16875_v39  ;;  %v9130_v45 = vrot.slane %v9116_v25, %v15439_v24  ;;  %v9749_v40 = vcombine.low %v16878_v58, %v16886_v16  ;;  %v9299_v17 = vcombine.low %v16916_v14, %v16919_v57 }
0x273f   : > { %v10395_v19 = vsel %vm2375_vm4, %v9839_v43, 0  ;;  %v10441_v32 = vsel %vm2375_vm4, %v9840_v37, 0  ;;  %v9147_v44 = vcombine.low %v9123_v13, %v16889_v22  ;;  %v9148_v6 = vcombine.high %v9123_v13, %v16889_v22 }
0x2740   : > { %13977 = vmatpush3.bf16.xpose.msra.mxu0 %v10395_v19  ;;  %13983 = vmatpush3.bf16.xpose.msra.mxu1 %v10441_v32  ;;  %v9300_v9 = vcombine.high %v16916_v14, %v16919_v57  ;;  %v9249_v10 = vcombine.low %v9230_v3, %v9246_v1  ;;  %v9250_v8 = vcombine.high %v9230_v3, %v9246_v1 }
0x2741   : > { %13988 = vmatprep.subr.bf16.mxu0 %v14948_v47  ;;  %13994 = vmatprep.subr.bf16.mxu1 %v14948_v47  ;;  %v9769_v48 = vcombine.low %v9605_v54, %v9612_v5  ;;  %v9163_v42 = vcombine.low %v9130_v45, %v16892_v36  ;;  %v9164_v61 = vcombine.high %v9130_v45, %v16892_v36 }
0x2742   : > { %v9741_v59 = vrot.slane %v9733_v35, %v15442_v31  ;;  %v13147_v0 = vcombine.high %v9605_v54, %v9612_v5  ;;  %v9785_v22 = vcombine.low %v16932_v53, %v16941_v30  ;;  %v9757_v15 = vrot.slane %v9749_v40, %v15442_v31 }
0x2743   : > { %v9895_v33 = vcombine.low %v9853_v27, %v9871_v20  ;;  %v13148_v26 = vcombine.high %v16932_v53, %v16941_v30  ;;  %v9155_v49 = vrot.slane %v9147_v44, %v15442_v31  ;;  %v9162_v29 = vrot.slane %v9148_v6, %v15442_v31 }
0x2744   : > { %v9896_v55 = vcombine.high %v9853_v27, %v9871_v20  ;;  %v9389_v46 = vpack.c.bf16 %v9249_v10, %v9249_v10  ;;  %v9390_v62 = vpack.c.bf16 %v9250_v8, %v9250_v8  ;;  %v9765_v36 = vcombine.low %v9741_v59, %v9757_v15 }
0x2745   : > { %v9766_v51 = vcombine.high %v9741_v59, %v9757_v15  ;;  %v9171_v34 = vrot.slane %v9163_v42, %v15442_v31  ;;  %v9178_v41 = vrot.slane %v9164_v61, %v15442_v31  ;;  %v9903_v11 = vrot.slane %v9895_v33, %v15439_v24 }
0x2746   : > { %v9910_v54 = vrot.slane %v9896_v55, %v15439_v24  ;;  %v16981_v5 = vrot.slane %v9769_v48, %v15439_v24  ;;  %v16984_v53 = vrot.slane %v13147_v0, %v15439_v24  ;;  %v9841_v27 = vpack.c.bf16 %v9765_v36, %v9765_v36 }
0x2747   : > { %13979 = vmatmul.mubr.msk.bf16.vlgmr.msra.gmra.mrb[124].mxu0 %vm2375_vm4, %v9389_v46  ;;  %13985 = vmatmul.mubr.msk.bf16.vlgmr.msra.gmra.mrb[140].mxu1 %vm2375_vm4, %v9390_v62  ;;  %v16989_v43 = vrot.slane %v9785_v22, %v15439_v24  ;;  %v9319_v37 = vcombine.low %v9155_v49, %v9162_v29  ;;  %v9842_v25 = vpack.c.bf16 %v9766_v51, %v9766_v51 }
0x2748   : > { %v9911_v13 = vcombine.low %v16901_v60, %v9903_v11  ;;  %13990 = vmatprep.mubr.msk.bf16.mxu0 %vm14949_vm3, %v14948_v47  ;;  %v13141_v30 = vcombine.high %v9155_v49, %v9162_v29  ;;  %v10487_v3 = vsel %vm2375_vm4, %v9841_v27, 0  ;;  %v9912_v1 = vcombine.high %v16901_v60, %v9903_v11  ;;  %13996 = vmatprep.mubr.msk.bf16.mxu1 %vm14949_vm3, %v14948_v47 }
0x2749   : > { %v9291_v35 = vrot.slane %v9283_v56, %v15442_v31  ;;  %v9335_v19 = vcombine.low %v9171_v34, %v9178_v41  ;;  %13989 = vmatpush3.bf16.xpose.msra.mxu0 %v10487_v3  ;;  %v10533_v32 = vsel %vm2375_vm4, %v9842_v25, 0  ;;  %v9927_v45 = vcombine.low %v16908_v12, %v9910_v54 }
0x274a   : > { %v9928_v40 = vcombine.high %v16908_v12, %v9910_v54  ;;  %v13142_v44 = vcombine.high %v9171_v34, %v9178_v41  ;;  %13995 = vmatpush3.bf16.xpose.msra.mxu1 %v10533_v32  ;;  %v9307_v60 = vrot.slane %v9299_v17, %v15442_v31  ;;  %14000 = vmatprep.subr.bf16.mxu0 %v14948_v47 }
0x274b   : > { %v9734_v6 = vcombine.high %v16872_v63, %v16875_v39  ;;  %v9800_v20 = vrot.slane %v13148_v26, %v15439_v24  ;;  %v9919_v56 = vrot.slane %v9911_v13, %v15442_v31  ;;  %v9926_v10 = vrot.slane %v9912_v1, %v15442_v31  ;;  %14006 = vmatprep.subr.bf16.mxu1 %v14948_v47 }
0x274c   : > { %v9750_v12 = vcombine.high %v16878_v58, %v16886_v16  ;;  %v9935_v8 = vrot.slane %v9927_v45, %v15442_v31  ;;  %v9942_v17 = vrot.slane %v9928_v40, %v15442_v31  ;;  %v9315_v48 = vcombine.low %v9291_v35, %v9307_v60 }
0x274d   : > { %v9316_v42 = vcombine.high %v9291_v35, %v9307_v60  ;;  %v17018_v61 = vrot.slane %v9319_v37, %v15439_v24  ;;  %v17021_v63 = vrot.slane %v13141_v30, %v15439_v24  ;;  %v9748_v39 = vrot.slane %v9734_v6, %v15442_v31 }
0x274e   : > { %v9764_v59 = vrot.slane %v9750_v12, %v15442_v31  ;;  %v17026_v0 = vrot.slane %v9335_v19, %v15439_v24  ;;  %v17029_v58 = vrot.slane %v13142_v44, %v15439_v24  ;;  %v9391_v16 = vpack.c.bf16 %v9315_v48, %v9315_v48 }
0x274f   : > { %v9298_v22 = vrot.slane %v9284_v4, %v15442_v31  ;;  %v10083_v15 = vcombine.low %v9919_v56, %v9926_v10  ;;  %v9392_v33 = vpack.c.bf16 %v9316_v42, %v9316_v42  ;;  %v13149_v29 = vcombine.high %v9919_v56, %v9926_v10 }
0x2750   : > { %v9767_v26 = vcombine.low %v9748_v39, %v9764_v59  ;;  %v9768_v49 = vcombine.high %v9748_v39, %v9764_v59  ;;  %v10099_v55 = vcombine.low %v9935_v8, %v9942_v17  ;;  %13991 = vmatmul.mubr.msk.bf16.vlgmr.msra.gmra.mrb[128].mxu0 %vm2375_vm4, %v9391_v16  ;;  %v9801_v46 = vcombine.low %v16981_v5, %v16984_v53 }
0x2751   : > { %v9817_v62 = vcombine.low %v16989_v43, %v9800_v20  ;;  %13997 = vmatmul.mubr.msk.bf16.vlgmr.msra.gmra.mrb[144].mxu1 %vm2375_vm4, %v9392_v33  ;;  %14002 = vmatprep.mubr.msk.bf16.mxu0 %vm14949_vm3, %v14948_v47  ;;  %v9314_v38 = vrot.slane %v9300_v9, %v15442_v31  ;;  %v9351_v50 = vcombine.low %v17018_v61, %v17021_v63 }
0x2752   : > { %v9843_v36 = vpack.c.bf16 %v9767_v26, %v9767_v26  ;;  %v9844_v51 = vpack.c.bf16 %v9768_v49, %v9768_v49  ;;  %v13150_v4 = vcombine.high %v9935_v8, %v9942_v17  ;;  %14008 = vmatprep.mubr.msk.bf16.mxu1 %vm14949_vm3, %v14948_v47  ;;  %v9809_v34 = vrot.slane %v9801_v46, %v15442_v31 }
0x2753   : > { %v9825_v41 = vrot.slane %v9817_v62, %v15442_v31  ;;  %v9367_v11 = vcombine.low %v17026_v0, %v17029_v58  ;;  %v10090_v54 = vrot.slane %v10083_v15, %v15439_v24  ;;  %v10098_v57 = vrot.slane %v13149_v29, %v15439_v24 }
0x2754   : > { %v10579_v27 = vsel %vm2375_vm4, %v9843_v36, 0  ;;  %v10625_v14 = vsel %vm2375_vm4, %v9844_v51, 0  ;;  %v10106_v9 = vrot.slane %v10099_v55, %v15439_v24  ;;  %v9317_v25 = vcombine.low %v9298_v22, %v9314_v38 }
0x2755   : > { %14001 = vmatpush3.bf16.xpose.msra.mxu0 %v10579_v27  ;;  %14007 = vmatpush3.bf16.xpose.msra.mxu1 %v10625_v14  ;;  %v9833_v37 = vcombine.low %v9809_v34, %v9825_v41  ;;  %v9318_v13 = vcombine.high %v9298_v22, %v9314_v38  ;;  %v9834_v30 = vcombine.high %v9809_v34, %v9825_v41 }
0x2756   : > { %14012 = vmatprep.subr.bf16.mxu0 %v14948_v47  ;;  %14018 = vmatprep.subr.bf16.mxu1 %v14948_v47  ;;  %v10114_v3 = vrot.slane %v13150_v4, %v15439_v24  ;;  %v9802_v35 = vcombine.high %v16981_v5, %v16984_v53  ;;  %v9818_v19 = vcombine.high %v16989_v43, %v9800_v20 }
0x2757   : > { %v9845_v1 = vpack.c.bf16 %v9833_v37, %v9833_v37  ;;  %v9846_v32 = vpack.c.bf16 %v9834_v30, %v9834_v30  ;;  %v10116_v44 = vcombine.high %v10090_v54, %v10098_v57  ;;  %v9393_v60 = vpack.c.bf16 %v9317_v25, %v9317_v25 }
0x2758   : > { %v9816_v45 = vrot.slane %v9802_v35, %v15442_v31  ;;  %v9832_v40 = vrot.slane %v9818_v19, %v15442_v31  ;;  %v9394_v6 = vpack.c.bf16 %v9318_v13, %v9318_v13  ;;  %v9359_v56 = vrot.slane %v9351_v50, %v15442_v31 }
0x2759   : > { %v9375_v10 = vrot.slane %v9367_v11, %v15442_v31  ;;  %v10671_v12 = vsel %vm2375_vm4, %v9845_v1, 0  ;;  %v10115_v17 = vcombine.low %v10090_v54, %v10098_v57  ;;  %v10131_v48 = vcombine.low %v10106_v9, %v10114_v3 }
0x275a   : > { %v9835_v8 = vcombine.low %v9816_v45, %v9832_v40  ;;  %v10717_v5 = vsel %vm2375_vm4, %v9846_v32, 0  ;;  %v9836_v53 = vcombine.high %v9816_v45, %v9832_v40  ;;  %v10130_v43 = vrot.slane %v10116_v44, %v15442_v31 }
0x275b   : > { %v10132_v20 = vcombine.high %v10106_v9, %v10114_v3  ;;  %v9352_v42 = vcombine.high %v17018_v61, %v17021_v63  ;;  %v9368_v39 = vcombine.high %v17026_v0, %v17029_v58  ;;  %v9383_v59 = vcombine.low %v9359_v56, %v9375_v10 }
0x275c   : > { %14003 = vmatmul.mubr.msk.bf16.vlgmr.msra.gmra.mrb[132].mxu0 %vm2375_vm4, %v9393_v60  ;;  %14009 = vmatmul.mubr.msk.bf16.vlgmr.msra.gmra.mrb[148].mxu1 %vm2375_vm4, %v9394_v6  ;;  %v9384_v16 = vcombine.high %v9359_v56, %v9375_v10  ;;  %v10123_v61 = vrot.slane %v10115_v17, %v15442_v31  ;;  %v10139_v63 = vrot.slane %v10131_v48, %v15442_v31 }
0x275d   : > { %14013 = vmatpush3.bf16.xpose.msra.mxu0 %v10671_v12  ;;  %14019 = vmatpush3.bf16.xpose.msra.mxu1 %v10717_v5  ;;  %v10146_v22 = vrot.slane %v10132_v20, %v15442_v31  ;;  %v9847_v0 = vpack.c.bf16 %v9835_v8, %v9835_v8  ;;  %v9848_v58 = vpack.c.bf16 %v9836_v53, %v9836_v53 }
0x275e   : > { %14014 = vmatprep.mubr.msk.bf16.mxu0 %vm14949_vm3, %v14948_v47  ;;  %14020 = vmatprep.mubr.msk.bf16.mxu1 %vm14949_vm3, %v14948_v47  ;;  %v9395_v26 = vpack.c.bf16 %v9383_v59, %v9383_v59  ;;  %v9396_v49 = vpack.c.bf16 %v9384_v16, %v9384_v16  ;;  %v9366_v29 = vrot.slane %v9352_v42, %v15442_v31 }
0x275f   : > { %14024 = vmatprep.subr.bf16.mxu0 %v14948_v47  ;;  %14030 = vmatprep.subr.bf16.mxu1 %v14948_v47  ;;  %v17087_v15 = vcombine.high %v10130_v43, %v10146_v22  ;;  %v17089_v33 = vcombine.low %v10130_v43, %v10146_v22  ;;  %v9382_v55 = vrot.slane %v9368_v39, %v15442_v31  ;;  %v10763_v46 = vsel %vm2375_vm4, %v9847_v0, 0 }
0x2760   : > { %v10809_v62 = vsel %vm2375_vm4, %v9848_v58, 0  ;;  %v10147_v36 = vcombine.low %v10123_v61, %v10139_v63  ;;  %v10148_v51 = vcombine.high %v10123_v61, %v10139_v63 }
0x2761   : > { %v9385_v38 = vcombine.low %v9366_v29, %v9382_v55  ;;  %v9386_v50 = vcombine.high %v9366_v29, %v9382_v55 }
0x2762   : > { %v10287_v4 = vpack.c.bf16 %v10147_v36, %v10147_v36  ;;  %v10288_v34 = vpack.c.bf16 %v10148_v51, %v10148_v51 }
0x2763   : > { %v9397_v41 = vpack.c.bf16 %v9385_v38, %v9385_v38  ;;  %v9398_v11 = vpack.c.bf16 %v9386_v50, %v9386_v50 }
0x2764   : > { %14015 = vmatmul.mubr.msk.bf16.vlgmr.msra.gmra.mrb[136].mxu0 %vm2375_vm4, %v9395_v26  ;;  %14021 = vmatmul.mubr.msk.bf16.vlgmr.msra.gmra.mrb[152].mxu1 %vm2375_vm4, %v9396_v49  ;;  %v10999_v54 = vsel %vm2611_vm6, %v10287_v4, 0  ;;  %v11045_v27 = vsel %vm2611_vm6, %v10288_v34, 0 }
0x2765   : > { %14025 = vmatpush3.bf16.xpose.msra.mxu0 %v10763_v46  ;;  %14031 = vmatpush3.bf16.xpose.msra.mxu1 %v10809_v62 }
0x2766   : > { %14026 = vmatprep.mubr.msk.bf16.mxu0 %vm14949_vm3, %v14948_v47  ;;  %14032 = vmatprep.mubr.msk.bf16.mxu1 %vm14949_vm3, %v14948_v47 }
0x2767   : > { %14036 = vmatprep.subr.bf16.mxu0 %v14948_v47  ;;  %14042 = vmatprep.subr.bf16.mxu1 %v14948_v47 }
0x276c   : > { %14027 = vmatmul.mubr.msk.bf16.vlgmr.msra.gmra.mrb[140].mxu0 %vm2375_vm4, %v9397_v41  ;;  %14033 = vmatmul.mubr.msk.bf16.vlgmr.msra.gmra.mrb[156].mxu1 %vm2375_vm4, %v9398_v11 }
0x276d   : > { %14037 = vmatpush3.bf16.msra.mxu0 %v10999_v54  ;;  %14043 = vmatpush3.bf16.msra.mxu1 %v11045_v27 }
0x276e   : > { %14038 = vmatprep.mubr.msk.bf16.mxu0 %vm14949_vm3, %v14948_v47  ;;  %14044 = vmatprep.mubr.msk.bf16.mxu1 %vm14949_vm3, %v14948_v47 }
0x276f   : > { %14048 = vmatprep.subr.bf16.mxu0 %v14948_v47  ;;  %14054 = vmatprep.subr.bf16.mxu1 %v14948_v47 }
0x280d   : > { %v10339_v14 = vpop.f32.mrb[120].mxu0  ;;  %v10385_v57 = vpop.f32.mrb[136].mxu1 }
0x280e   : > { %v17114_v9 = vadd.f32 %v10339_v14, %v16311_v23  ;;  %v17117_v37 = vadd.f32 %v10385_v57, %v16311_v23  ;;  %v13968_v25 = vpop.f32.mrb[121].mxu0  ;;  %v13974_v13 = vpop.f32.mrb[137].mxu1 }
0x280f   : > { %v10342_v30 = vpop.f32.mrb[122].mxu0  ;;  %v10388_v3 = vpop.f32.mrb[138].mxu1 }
0x2810   : > { %v13969_v1 = vpop.f32.mrb[123].mxu0  ;;  %v13975_v35 = vpop.f32.mrb[139].mxu1  ;;  %v10854_v19 = vsel %vm2375_vm4, %v17117_v37, -inf  ;;  %v10851_v32 = vsel %vm2375_vm4, %v17114_v9, -inf }
0x2811   : > { %10855 = vmax.xlane.f32.xlu0 %v10854_v19  ;;  %10852 = vmax.xlane.f32.xlu1 %v10851_v32 }
0x281a   : > { %v10431_v45 = vpop.f32.mrb[124].mxu0  ;;  %v10477_v40 = vpop.f32.mrb[140].mxu1 }
0x281b   : > { %v17124_v44 = vadd.f32 %v10431_v45, %v16311_v23  ;;  %v13980_v60 = vpop.f32.mrb[125].mxu0  ;;  %v13986_v6 = vpop.f32.mrb[141].mxu1  ;;  %v17127_v12 = vadd.f32 %v10477_v40, %v16311_v23 }
0x281c   : > { %v10434_v56 = vpop.f32.mrb[126].mxu0  ;;  %v10480_v10 = vpop.f32.mrb[142].mxu1 }
0x281d   : > { %v13981_v8 = vpop.f32.mrb[127].mxu0  ;;  %v13987_v17 = vpop.f32.mrb[143].mxu1  ;;  %v10857_v48 = vsel %vm2375_vm4, %v17124_v44, -inf  ;;  %v10860_v5 = vsel %vm2375_vm4, %v17127_v12, -inf }
0x281e   : > { %10858 = vmax.xlane.f32.xlu0 %v10857_v48 }
0x2822   : > { %10861 = vmax.xlane.f32.xlu0 %v10860_v5 }
0x2823   : > { %v10523_v53 = vpop.f32.mrb[128].mxu0 }
0x2824   : > { %v17134_v43 = vadd.f32 %v10523_v53, %v16311_v23  ;;  %v10569_v20 = vpop.f32.mrb[144].mxu1  ;;  %v13992_v42 = vpop.f32.mrb[129].mxu0 }
0x2825   : > { %v17137_v39 = vadd.f32 %v10569_v20, %v16311_v23  ;;  %v13998_v59 = vpop.f32.mrb[145].mxu1  ;;  %v10526_v16 = vpop.f32.mrb[130].mxu0 }
0x2826   : > { %v10572_v22 = vpop.f32.mrb[146].mxu1  ;;  %v13993_v61 = vpop.f32.mrb[131].mxu0  ;;  %v10863_v63 = vsel %vm2375_vm4, %v17134_v43, -inf }
0x2827   : > { %v13999_v0 = vpop.f32.mrb[147].mxu1  ;;  %v10866_v58 = vsel %vm2375_vm4, %v17137_v39, -inf  ;;  %10864 = vmax.xlane.f32.xlu1 %v10863_v63 }
0x2828   : > { %10867 = vmax.xlane.f32.xlu0 %v10866_v58 }
0x282f   : > { %v10615_v26 = vpop.f32.mrb[132].mxu0  ;;  %v10661_v49 = vpop.f32.mrb[148].mxu1 }
0x2830   : > { %v17144_v29 = vadd.f32 %v10615_v26, %v16311_v23  ;;  %v17147_v55 = vadd.f32 %v10661_v49, %v16311_v23  ;;  %v14004_v46 = vpop.f32.mrb[133].mxu0  ;;  %v14010_v62 = vpop.f32.mrb[149].mxu1 }
0x2831   : > { %v10618_v36 = vpop.f32.mrb[134].mxu0  ;;  %v10664_v51 = vpop.f32.mrb[150].mxu1 }
0x2832   : > { %v14005_v38 = vpop.f32.mrb[135].mxu0  ;;  %v14011_v50 = vpop.f32.mrb[151].mxu1  ;;  %v10872_v4 = vsel %vm2375_vm4, %v17147_v55, -inf  ;;  %v10869_v34 = vsel %vm2375_vm4, %v17144_v29, -inf }
0x2833   : > { %10873 = vmax.xlane.f32.xlu0 %v10872_v4  ;;  %10870 = vmax.xlane.f32.xlu1 %v10869_v34 }
0x2837   : > { %v10707_v41 = vpop.f32.mrb[136].mxu0  ;;  %v10753_v11 = vpop.f32.mrb[152].mxu1 }
0x2838   : > { %v17154_v54 = vadd.f32 %v10707_v41, %v16311_v23  ;;  %v17157_v27 = vadd.f32 %v10753_v11, %v16311_v23  ;;  %v14016_v14 = vpop.f32.mrb[137].mxu0  ;;  %v14022_v57 = vpop.f32.mrb[153].mxu1 }
0x2839   : > { %v10710_v25 = vpop.f32.mrb[138].mxu0  ;;  %v10756_v13 = vpop.f32.mrb[154].mxu1 }
0x283a   : > { %v14017_v30 = vpop.f32.mrb[139].mxu0  ;;  %v14023_v3 = vpop.f32.mrb[155].mxu1  ;;  %v10878_v1 = vsel %vm2375_vm4, %v17157_v27, -inf  ;;  %v10875_v35 = vsel %vm2375_vm4, %v17154_v54, -inf }
0x283b   : > { %10879 = vmax.xlane.f32.xlu0 %v10878_v1  ;;  %10876 = vmax.xlane.f32.xlu1 %v10875_v35 }
0x283f   : > { %v10799_v19 = vpop.f32.mrb[140].mxu0  ;;  %v10845_v32 = vpop.f32.mrb[156].mxu1 }
0x2840   : > { %v17164_v45 = vadd.f32 %v10799_v19, %v16311_v23  ;;  %v17167_v40 = vadd.f32 %v10845_v32, %v16311_v23  ;;  %v14028_v60 = vpop.f32.mrb[141].mxu0  ;;  %v14034_v6 = vpop.f32.mrb[157].mxu1 }
0x2841   : > { %v10802_v56 = vpop.f32.mrb[142].mxu0  ;;  %v10848_v10 = vpop.f32.mrb[158].mxu1 }
0x2842   : > { %v14029_v8 = vpop.f32.mrb[143].mxu0  ;;  %v14035_v17 = vpop.f32.mrb[159].mxu1  ;;  %v10884_v48 = vsel %vm2375_vm4, %v17167_v40, -inf  ;;  %v10881_v5 = vsel %vm2375_vm4, %v17164_v45, -inf }
0x2843   : > { %10885 = vmax.xlane.f32.xlu0 %v10884_v48  ;;  %10882 = vmax.xlane.f32.xlu1 %v10881_v5 }
0x2854   : > { %9863 = vrot.lane.b32.xlu1 %v16734_v52, %s17713_s2 }
0x2858   : > { %9872 = vrot.lane.b32.xlu1 %v16734_v52, %s17715_s9 }
0x2859   : > { %9854 = vrot.lane.b32.xlu0 %v16734_v52, %s17714_s8 }
0x285c   : > { %9856 = vrot.lane.b32.xlu1 %v16730_v2, %s17714_s8  ;;  %s12641_s8 = sld [smem:[#allocation2]] }
0x289e   : > { %v10856_v23 = vpop.xlane.xlu0 %10855  ;;  %v10853_v53 = vpop.xlane.xlu1 %10852 }
0x289f   : > { %v10888_v20 = vsub.f32 %v17117_v37, %v10856_v23  ;;  %v10887_v42 = vsub.f32 %v17114_v9, %v10853_v53 }
0x28a1   : > { %v10901_v59 = vmul.f32 1.442695, %v10888_v20  ;;  %v10899_v16 = vmul.f32 1.442695, %v10887_v42 }
0x28a3   : > { %14573 = vpow2.f32 %v10901_v59 }
0x28a4   : > { %14575 = vpow2.f32 %v10899_v16 }
0x28ab   : > { %v10859_v22 = vpop.xlane.xlu0 %10858 }
0x28ac   : > { %v10889_v61 = vsub.f32 %v17124_v44, %v10859_v22 }
0x28ad   : > { %v17184_v63 = vpop.eup %14573 }
0x28ae   : > { %v10903_v0 = vmul.f32 1.442695, %v10889_v61  ;;  %v17186_v58 = vpop.eup %14575  ;;  %v10926_v49 = vsel %vm2375_vm4, %v17184_v63, 0.0 }
0x28af   : > { %v10862_v26 = vpop.xlane.xlu0 %10861  ;;  %10927 = vadd.xlane.f32.xlu0 %v10926_v49  ;;  %v10923_v9 = vsel %vm2375_vm4, %v17186_v58, 0.0 }
0x28b0   : > { %14577 = vpow2.f32 %v10903_v0  ;;  %v10890_v37 = vsub.f32 %v17127_v12, %v10862_v26  ;;  %10924 = vadd.xlane.f32.xlu1 %v10923_v9 }
0x28b2   : > { %v10905_v46 = vmul.f32 1.442695, %v10890_v37 }
0x28b4   : > { %14579 = vpow2.f32 %v10905_v46  ;;  %v10865_v44 = vpop.xlane.xlu1 %10864 }
0x28b5   : > { %v10868_v62 = vpop.xlane.xlu0 %10867  ;;  %v10891_v36 = vsub.f32 %v17134_v43, %v10865_v44 }
0x28b6   : > { %v10892_v51 = vsub.f32 %v17137_v39, %v10868_v62 }
0x28b7   : > { %v10907_v38 = vmul.f32 1.442695, %v10891_v36 }
0x28b8   : > { %v10909_v50 = vmul.f32 1.442695, %v10892_v51 }
0x28b9   : > { %14581 = vpow2.f32 %v10907_v38 }
0x28ba   : > { %v17195_v4 = vpop.eup %14577  ;;  %14583 = vpow2.f32 %v10909_v50 }
0x28bb   : > { %v10929_v12 = vsel %vm2375_vm4, %v17195_v4, 0.0 }
0x28bc   : > { %10930 = vadd.xlane.f32.xlu1 %v10929_v12 }
0x28be   : > { %v17199_v34 = vpop.eup %14579 }
0x28bf   : > { %v10932_v41 = vsel %vm2375_vm4, %v17199_v34, 0.0 }
0x28c0   : > { %v10874_v11 = vpop.xlane.xlu0 %10873  ;;  %v10871_v14 = vpop.xlane.xlu1 %10870  ;;  %10933 = vadd.xlane.f32.xlu0 %v10932_v41 }
0x28c1   : > { %v10894_v43 = vsub.f32 %v17147_v55, %v10874_v11  ;;  %v10893_v39 = vsub.f32 %v17144_v29, %v10871_v14 }
0x28c3   : > { %v10913_v57 = vmul.f32 1.442695, %v10894_v43  ;;  %v10911_v25 = vmul.f32 1.442695, %v10893_v39  ;;  %v17205_v13 = vpop.eup %14581 }
0x28c4   : > { %v17207_v30 = vpop.eup %14583  ;;  %v10935_v3 = vsel %vm2375_vm4, %v17205_v13, 0.0 }
0x28c5   : > { %14585 = vpow2.f32 %v10913_v57  ;;  %v10938_v1 = vsel %vm2375_vm4, %v17207_v30, 0.0  ;;  %10936 = vadd.xlane.f32.xlu0 %v10935_v3 }
0x28c6   : > { %14587 = vpow2.f32 %v10911_v25  ;;  %10939 = vadd.xlane.f32.xlu1 %v10938_v1 }
0x28c8   : > { %v10880_v35 = vpop.xlane.xlu0 %10879  ;;  %v10877_v55 = vpop.xlane.xlu1 %10876 }
0x28c9   : > { %v10896_v29 = vsub.f32 %v17157_v27, %v10880_v35  ;;  %v10895_v19 = vsub.f32 %v17154_v54, %v10877_v55 }
0x28cb   : > { %v10915_v32 = vmul.f32 1.442695, %v10895_v19  ;;  %v10917_v60 = vmul.f32 1.442695, %v10896_v29 }
0x28cd   : > { %14589 = vpow2.f32 %v10915_v32 }
0x28ce   : > { %14591 = vpow2.f32 %v10917_v60 }
0x28cf   : > { %v17215_v6 = vpop.eup %14585 }
0x28d0   : > { %v17217_v56 = vpop.eup %14587  ;;  %v10944_v10 = vsel %vm2375_vm4, %v17215_v6, 0.0  ;;  %v10883_v5 = vpop.xlane.xlu1 %10882 }
0x28d1   : > { %10945 = vadd.xlane.f32.xlu0 %v10944_v10  ;;  %v10941_v8 = vsel %vm2375_vm4, %v17217_v56, 0.0  ;;  %v10897_v23 = vsub.f32 %v17164_v45, %v10883_v5  ;;  %v10886_v20 = vpop.xlane.xlu0 %10885  ;;  %v10290_v5 = vpack.c.bf16 %v17087_v15, %v17087_v15 }
0x28d2   : > { %10942 = vadd.xlane.f32.xlu1 %v10941_v8  ;;  %v10898_v42 = vsub.f32 %v17167_v40, %v10886_v20 }
0x28d3   : > { %v10919_v53 = vmul.f32 1.442695, %v10897_v23 }
0x28d4   : > { %v10921_v59 = vmul.f32 1.442695, %v10898_v42  ;;  %v9864_v0 = vpop.permute.xlu1 %9863  ;;  %v10289_v42 = vpack.c.bf16 %v17089_v33, %v17089_v33 }
0x28d5   : > { %14593 = vpow2.f32 %v10919_v53  ;;  %v9855_v49 = vpop.permute.xlu0 %9854  ;;  %v9947_v40 = vcombine.low %v16734_v52, %v9864_v0  ;;  %v9948_v46 = vcombine.high %v16734_v52, %v9864_v0  ;;  %v11137_v0 = vsel %vm2611_vm6, %v10290_v5, 0 }
0x28d6   : > { %14595 = vpow2.f32 %v10921_v59  ;;  %v11091_v15 = vsel %vm2611_vm6, %v10289_v42, 0 }
0x28d7   : > { %v17223_v17 = vpop.eup %14589  ;;  %v9955_v36 = vrot.slane %v9947_v40, %v15439_v24  ;;  %v9962_v51 = vrot.slane %v9948_v46, %v15439_v24 }
0x28d8   : > { %v10947_v54 = vsel %vm2375_vm4, %v17223_v17, 0.0  ;;  %v17227_v27 = vpop.eup %14591  ;;  %v9873_v26 = vpop.permute.xlu1 %9872 }
0x28d9   : > { %10948 = vadd.xlane.f32.xlu0 %v10947_v54  ;;  %v10950_v48 = vsel %vm2375_vm4, %v17227_v27, 0.0  ;;  %v9963_v37 = vcombine.low %v9855_v49, %v9873_v26  ;;  %v9964_v9 = vcombine.high %v9855_v49, %v9873_v26 }
0x28db   : > { %v9971_v44 = vrot.slane %v9963_v37, %v15439_v24  ;;  %v9978_v62 = vrot.slane %v9964_v9, %v15439_v24 }
0x28dc   : > { %v17251_v11 = vpop.permute.xlu1 %9856 }
0x28dd   : > { %10951 = vadd.xlane.f32.xlu0 %v10950_v48  ;;  %v9979_v38 = vcombine.low %v9955_v36, %v9971_v44  ;;  %v9980_v50 = vcombine.high %v9955_v36, %v9971_v44  ;;  %v9995_v12 = vcombine.low %v9962_v51, %v9978_v62  ;;  %v9996_v41 = vcombine.high %v9962_v51, %v9978_v62 }
0x28df   : > { %v17237_v16 = vpop.eup %14593  ;;  %v9987_v14 = vrot.slane %v9979_v38, %v15442_v31  ;;  %v9994_v43 = vrot.slane %v9980_v50, %v15442_v31  ;;  %v10003_v52 = vrot.slane %v9995_v12, %v15442_v31  ;;  %v10010_v39 = vrot.slane %v9996_v41, %v15442_v31 }
0x28e0   : > { %v10953_v22 = vsel %vm2375_vm4, %v17237_v16, 0.0  ;;  %v17241_v61 = vpop.eup %14595 }
0x28e1   : > { %v10956_v45 = vsel %vm2375_vm4, %v17241_v61, 0.0  ;;  %v10151_v3 = vcombine.low %v9987_v14, %v9994_v43  ;;  %v13151_v1 = vcombine.high %v9987_v14, %v9994_v43  ;;  %v10167_v35 = vcombine.low %v10003_v52, %v10010_v39 }
0x28e2   : > { %v13152_v55 = vcombine.high %v10003_v52, %v10010_v39 }
0x28e3   : > { %9874 = vrot.lane.b32.xlu1 %v16730_v2, %s17715_s9  ;;  %v10158_v29 = vrot.slane %v10151_v3, %v15439_v24  ;;  %v10166_v19 = vrot.slane %v13151_v1, %v15439_v24  ;;  %v10174_v32 = vrot.slane %v10167_v35, %v15439_v24  ;;  %s17739_s9 = sld [smem:[#allocation22_spill]] }
0x28e4   : > { %v10182_v60 = vrot.slane %v13152_v55, %v15439_v24 }
0x28e5   : > { %v10183_v23 = vcombine.low %v10158_v29, %v10166_v19  ;;  %v10184_v49 = vcombine.high %v10158_v29, %v10166_v19 }
0x28e6   : > { %v10199_v53 = vcombine.low %v10174_v32, %v10182_v60  ;;  %v10200_v37 = vcombine.high %v10174_v32, %v10182_v60 }
0x28e7   : > { %v10198_v51 = vrot.slane %v10184_v49, %v15442_v31 }
0x28e8   : > { %v10207_v26 = vrot.slane %v10199_v53, %v15442_v31  ;;  %v10214_v38 = vrot.slane %v10200_v37, %v15442_v31 }
0x28ea   : > { %v10217_v43 = vcombine.low %v10198_v51, %v10214_v38  ;;  %v10218_v39 = vcombine.high %v10198_v51, %v10214_v38 }
0x28ec   : > { %v10293_v35 = vpack.c.bf16 %v10217_v43, %v10217_v43  ;;  %v10294_v19 = vpack.c.bf16 %v10218_v39, %v10218_v39 }
0x28ee   : > { %v11275_v32 = vsel %vm2611_vm6, %v10293_v35, 0 }
0x28f3   : > { %9865 = vrot.lane.b32.xlu0 %v16730_v2, %s17713_s2 }
0x2907   : > { %10954 = vadd.xlane.f32.xlu1 %v10953_v22 }
0x2912   : > { %10957 = vadd.xlane.f32.xlu0 %v10956_v45 }
0x293c   : > { %v10928_v57 = vpop.xlane.xlu0 %10927 }
0x293d   : > { %14597 = vrcp.f32 %v10928_v57  ;;  %v10925_v25 = vpop.xlane.xlu1 %10924 }
0x293e   : > { %14599 = vrcp.f32 %v10925_v25 }
0x2947   : > { %v14598_v10 = vpop.eup %14597 }
0x2948   : > { %v14600_v8 = vpop.eup %14599  ;;  %v10962_v54 = vmul.f32 %v14598_v10, %v17184_v63  ;;  %v10191_v63 = vrot.slane %v10183_v23, %v15442_v31 }
0x2949   : > { %v10931_v48 = vpop.xlane.xlu1 %10930  ;;  %v10960_v20 = vmul.f32 %v14600_v8, %v17186_v58 }
0x294a   : > { %14601 = vrcp.f32 %v10931_v48  ;;  %v10984_v59 = vpack.c.bf16 %v10962_v54, %v10962_v54  ;;  %v10215_v33 = vcombine.low %v10191_v63, %v10207_v26  ;;  %v10216_v62 = vcombine.high %v10191_v63, %v10207_v26 }
0x294b   : > { %v10983_v22 = vpack.c.bf16 %v10960_v20, %v10960_v20 }
0x294c   : > { %14045 = vmatmul.mubr.msk.bf16.vlgmr.msra.gmra.mrb[160].mxu1 %vm2375_vm4, %v10984_v59  ;;  %v10291_v44 = vpack.c.bf16 %v10215_v33, %v10215_v33  ;;  %v10292_v14 = vpack.c.bf16 %v10216_v62, %v10216_v62 }
0x294d   : > { %v10934_v45 = vpop.xlane.xlu0 %10933  ;;  %14055 = vmatpush3.bf16.msra.mxu1 %v11137_v0  ;;  %14039 = vmatmul.mubr.msk.bf16.vlgmr.msra.gmra.mrb[144].mxu0 %vm2375_vm4, %v10983_v22 }
0x294e   : > { %14603 = vrcp.f32 %v10934_v45  ;;  %14049 = vmatpush3.bf16.msra.mxu0 %v11091_v15  ;;  %14050 = vmatprep.mubr.msk.bf16.mxu0 %vm14949_vm3, %v14948_v47  ;;  %v11183_v41 = vsel %vm2611_vm6, %v10291_v44, 0  ;;  %v11229_v52 = vsel %vm2611_vm6, %v10292_v14, 0 }
0x294f   : > { %14060 = vmatprep.subr.bf16.mxu0 %v14948_v47  ;;  %14056 = vmatprep.mubr.msk.bf16.mxu1 %vm14949_vm3, %v14948_v47 }
0x2950   : > { %14066 = vmatprep.subr.bf16.mxu1 %v14948_v47 }
0x2952   : > { %v10937_v58 = vpop.xlane.xlu0 %10936 }
0x2953   : > { %14605 = vrcp.f32 %v10937_v58  ;;  %v10940_v40 = vpop.xlane.xlu1 %10939 }
0x2954   : > { %v14602_v9 = vpop.eup %14601  ;;  %14607 = vrcp.f32 %v10940_v40 }
0x2955   : > { %v10964_v46 = vmul.f32 %v14602_v9, %v17195_v4 }
0x2957   : > { %v10985_v36 = vpack.c.bf16 %v10964_v46, %v10964_v46 }
0x2958   : > { %v14604_v50 = vpop.eup %14603 }
0x2959   : > { %v10966_v12 = vmul.f32 %v14604_v50, %v17199_v34  ;;  %14051 = vmatmul.mubr.msk.bf16.vlgmr.msra.gmra.mrb[148].mxu0 %vm2375_vm4, %v10985_v36 }
0x295a   : > { %14061 = vmatpush3.bf16.msra.mxu0 %v11183_v41  ;;  %14062 = vmatprep.mubr.msk.bf16.mxu0 %vm14949_vm3, %v14948_v47 }
0x295b   : > { %v10986_v4 = vpack.c.bf16 %v10966_v12, %v10966_v12  ;;  %14072 = vmatprep.subr.bf16.mxu0 %v14948_v47 }
0x295d   : > { %14057 = vmatmul.mubr.msk.bf16.vlgmr.msra.gmra.mrb[164].mxu1 %vm2375_vm4, %v10986_v4  ;;  %v14606_v57 = vpop.eup %14605 }
0x295e   : > { %v10946_v34 = vpop.xlane.xlu0 %10945  ;;  %14067 = vmatpush3.bf16.msra.mxu1 %v11229_v52  ;;  %14068 = vmatprep.mubr.msk.bf16.mxu1 %vm14949_vm3, %v14948_v47  ;;  %v14608_v25 = vpop.eup %14607  ;;  %v10968_v3 = vmul.f32 %v14606_v57, %v17205_v13  ;;  %v11321_v13 = vsel %vm2611_vm6, %v10294_v19, 0 }
0x295f   : > { %14609 = vrcp.f32 %v10946_v34  ;;  %v10943_v1 = vpop.xlane.xlu1 %10942  ;;  %14078 = vmatprep.subr.bf16.mxu1 %v14948_v47  ;;  %v10970_v55 = vmul.f32 %v14608_v25, %v17207_v30 }
0x2960   : > { %14611 = vrcp.f32 %v10943_v1  ;;  %v10987_v29 = vpack.c.bf16 %v10968_v3, %v10968_v3 }
0x2961   : > { %v10988_v60 = vpack.c.bf16 %v10970_v55, %v10970_v55 }
0x2962   : > { %14063 = vmatmul.mubr.msk.bf16.vlgmr.msra.gmra.mrb[152].mxu0 %vm2375_vm4, %v10987_v29 }
0x2963   : > { %14073 = vmatpush3.bf16.msra.mxu0 %v11275_v32  ;;  %14074 = vmatprep.mubr.msk.bf16.mxu0 %vm14949_vm3, %v14948_v47  ;;  %v9875_v5 = vpop.permute.xlu1 %9874 }
0x2964   : > { %14084 = vmatprep.subr.bf16.mxu0 %v14948_v47  ;;  %v10031_v42 = vcombine.low %v17251_v11, %v9875_v5  ;;  %v10032_v59 = vcombine.high %v17251_v11, %v9875_v5 }
0x2965   : > { %14069 = vmatmul.mubr.msk.bf16.vlgmr.msra.gmra.mrb[168].mxu1 %vm2375_vm4, %v10988_v60 }
0x2966   : > { %14079 = vmatpush3.bf16.msra.mxu1 %v11321_v13  ;;  %14080 = vmatprep.mubr.msk.bf16.mxu1 %vm14949_vm3, %v14948_v47  ;;  %v10949_v30 = vpop.xlane.xlu0 %10948  ;;  %v10039_v45 = vrot.slane %v10031_v42, %v15439_v24  ;;  %v10046_v0 = vrot.slane %v10032_v59, %v15439_v24 }
0x2967   : > { %14090 = vmatprep.subr.bf16.mxu1 %v14948_v47  ;;  %14613 = vrcp.f32 %v10949_v30 }
0x2969   : > { %v14610_v10 = vpop.eup %14609 }
0x296a   : > { %v14612_v8 = vpop.eup %14611  ;;  %v10974_v54 = vmul.f32 %v14610_v10, %v17215_v6  ;;  %v10952_v23 = vpop.xlane.xlu0 %10951 }
0x296b   : > { %v10972_v48 = vmul.f32 %v14612_v8, %v17217_v56  ;;  %14615 = vrcp.f32 %v10952_v23 }
0x296c   : > { %v10990_v53 = vpack.c.bf16 %v10974_v54, %v10974_v54 }
0x296d   : > { %v10989_v20 = vpack.c.bf16 %v10972_v48, %v10972_v48 }
0x296e   : > { %14081 = vmatmul.mubr.msk.bf16.vlgmr.msra.gmra.mrb[172].mxu1 %vm2375_vm4, %v10990_v53  ;;  %v9866_v22 = vpop.permute.xlu0 %9865 }
0x296f   : > { %14075 = vmatmul.mubr.msk.bf16.vlgmr.msra.gmra.mrb[156].mxu0 %vm2375_vm4, %v10989_v20  ;;  %14092 = vmatprep.mubr.msk.bf16.mxu1 %vm14949_vm3, %v14948_v47  ;;  %v10015_v6 = vcombine.low %v16730_v2, %v9866_v22  ;;  %v10016_v56 = vcombine.high %v16730_v2, %v9866_v22 }
0x2970   : > { %14086 = vmatprep.mubr.msk.bf16.mxu0 %vm14949_vm3, %v14948_v47 }
0x2971   : > { %v10023_v11 = vrot.slane %v10015_v6, %v15439_v24  ;;  %v10030_v63 = vrot.slane %v10016_v56, %v15439_v24  ;;  %v14614_v43 = vpop.eup %14613 }
0x2972   : > { %v10976_v29 = vmul.f32 %v14614_v43, %v17223_v17 }
0x2973   : > { %v10047_v26 = vcombine.low %v10023_v11, %v10039_v45  ;;  %v10048_v15 = vcombine.high %v10023_v11, %v10039_v45  ;;  %v10063_v33 = vcombine.low %v10030_v63, %v10046_v0  ;;  %v10064_v58 = vcombine.high %v10030_v63, %v10046_v0 }
0x2974   : > { %v10991_v54 = vpack.c.bf16 %v10976_v29, %v10976_v29 }
0x2975   : > { %v10055_v49 = vrot.slane %v10047_v26, %v15442_v31  ;;  %v10062_v2 = vrot.slane %v10048_v15, %v15442_v31  ;;  %v10071_v37 = vrot.slane %v10063_v33, %v15442_v31  ;;  %v10078_v9 = vrot.slane %v10064_v58, %v15442_v31  ;;  %v14616_v25 = vpop.eup %14615 }
0x2976   : > { %v10978_v19 = vmul.f32 %v14616_v25, %v17227_v27 }
0x2977   : > { %v10219_v40 = vcombine.low %v10055_v49, %v10062_v2  ;;  %v13153_v46 = vcombine.high %v10055_v49, %v10062_v2  ;;  %v10235_v44 = vcombine.low %v10071_v37, %v10078_v9  ;;  %v13154_v62 = vcombine.high %v10071_v37, %v10078_v9 }
0x2978   : > { %v10992_v48 = vpack.c.bf16 %v10978_v19, %v10978_v19 }
0x2979   : > { %v10226_v36 = vrot.slane %v10219_v40, %v15439_v24  ;;  %v10234_v51 = vrot.slane %v13153_v46, %v15439_v24  ;;  %v10242_v38 = vrot.slane %v10235_v44, %v15439_v24  ;;  %v10250_v50 = vrot.slane %v13154_v62, %v15439_v24 }
0x297b   : > { %v10251_v12 = vcombine.low %v10226_v36, %v10234_v51  ;;  %v10267_v41 = vcombine.low %v10242_v38, %v10250_v50  ;;  %v10252_v14 = vcombine.high %v10226_v36, %v10234_v51  ;;  %v10268_v4 = vcombine.high %v10242_v38, %v10250_v50 }
0x297d   : > { %v10259_v52 = vrot.slane %v10251_v12, %v15442_v31  ;;  %v10275_v39 = vrot.slane %v10267_v41, %v15442_v31  ;;  %v10266_v57 = vrot.slane %v10252_v14, %v15442_v31  ;;  %v10282_v34 = vrot.slane %v10268_v4, %v15442_v31 }
0x297f   : > { %v10283_v3 = vcombine.low %v10259_v52, %v10275_v39  ;;  %v10284_v1 = vcombine.high %v10259_v52, %v10275_v39  ;;  %v10285_v35 = vcombine.low %v10266_v57, %v10282_v34  ;;  %v10286_v55 = vcombine.high %v10266_v57, %v10282_v34 }
0x2981   : > { %v10295_v32 = vpack.c.bf16 %v10283_v3, %v10283_v3  ;;  %v10296_v60 = vpack.c.bf16 %v10284_v1, %v10284_v1  ;;  %v10297_v10 = vpack.c.bf16 %v10285_v35, %v10285_v35  ;;  %v10298_v8 = vpack.c.bf16 %v10286_v55, %v10286_v55 }
0x2983   : > { %v11367_v13 = vsel %vm2611_vm6, %v10295_v32, 0  ;;  %v11413_v30 = vsel %vm2611_vm6, %v10296_v60, 0  ;;  %v11459_v17 = vsel %vm2611_vm6, %v10297_v10, 0  ;;  %v11505_v27 = vsel %vm2611_vm6, %v10298_v8, 0 }
0x2984   : > { %14085 = vmatpush3.bf16.msra.mxu0 %v11367_v13  ;;  %14091 = vmatpush3.bf16.msra.mxu1 %v11413_v30 }
0x2985   : > { %14096 = vmatprep.subr.bf16.mxu0 %v14948_v47  ;;  %14102 = vmatprep.subr.bf16.mxu1 %v14948_v47 }
0x2987   : > { %14087 = vmatmul.mubr.msk.bf16.vlgmr.msra.gmra.mrb[160].mxu0 %vm2375_vm4, %v10991_v54  ;;  %14093 = vmatmul.mubr.msk.bf16.vlgmr.msra.gmra.mrb[176].mxu1 %vm2375_vm4, %v10992_v48 }
0x2988   : > { %14097 = vmatpush3.bf16.msra.mxu0 %v11459_v17  ;;  %14103 = vmatpush3.bf16.msra.mxu1 %v11505_v27 }
0x2989   : > { %14098 = vmatprep.mubr.msk.bf16.mxu0 %vm14949_vm3, %v14948_v47  ;;  %14104 = vmatprep.mubr.msk.bf16.mxu1 %vm14949_vm3, %v14948_v47 }
0x2994   : > { %v10955_v5 = vpop.xlane.xlu1 %10954 }
0x2995   : > { %14617 = vrcp.f32 %v10955_v5 }
0x299f   : > { %v14618_v23 = vpop.eup %14617  ;;  %v10958_v20 = vpop.xlane.xlu0 %10957 }
0x29a0   : > { %v10980_v53 = vmul.f32 %v14618_v23, %v17237_v16  ;;  %14619 = vrcp.f32 %v10958_v20 }
0x29a2   : > { %v10993_v42 = vpack.c.bf16 %v10980_v53, %v10980_v53 }
0x29a4   : > { %14099 = vmatmul.mubr.msk.bf16.vlgmr.msra.gmra.mrb[164].mxu0 %vm2375_vm4, %v10993_v42 }
0x29aa   : > { %v14620_v59 = vpop.eup %14619 }
0x29ab   : > { %v10982_v22 = vmul.f32 %v14620_v59, %v17241_v61 }
0x29ad   : > { %v10994_v6 = vpack.c.bf16 %v10982_v22, %v10982_v22 }
0x29af   : > { %14105 = vmatmul.mubr.msk.bf16.vlgmr.msra.gmra.mrb[180].mxu1 %vm2375_vm4, %v10994_v6 }
0x2a1f   : > { %v11081_v56 = vpop.f32.mrb[160].mxu1 }
0x2a20   : > { %v11035_v45 = vpop.f32.mrb[144].mxu0  ;;  %v14046_v0 = vpop.f32.mrb[161].mxu1 }
0x2a21   : > { %v14040_v11 = vpop.f32.mrb[145].mxu0  ;;  %v11084_v63 = vpop.f32.mrb[162].mxu1 }
0x2a22   : > { %v11038_v26 = vpop.f32.mrb[146].mxu0  ;;  %v14047_v15 = vpop.f32.mrb[163].mxu1 }
0x2a23   : > { %v14041_v33 = vpop.f32.mrb[147].mxu0 }
0x2a2c   : > { %v11127_v16 = vpop.f32.mrb[148].mxu0 }
0x2a2d   : > { %v11547_v58 = vcombine.low %v11035_v45, %v11127_v16  ;;  %v11548_v49 = vcombine.high %v11035_v45, %v11127_v16  ;;  %v14052_v2 = vpop.f32.mrb[149].mxu0 }
0x2a2e   : > { %v11130_v37 = vpop.f32.mrb[150].mxu0 }
0x2a2f   : > { %v14053_v9 = vpop.f32.mrb[151].mxu0  ;;  %v11555_v36 = vrot.slane %v11547_v58, %v15439_v24  ;;  %v11562_v51 = vrot.slane %v11548_v49, %v15439_v24 }
0x2a30   : > { %v11173_v40 = vpop.f32.mrb[164].mxu1 }
0x2a31   : > { %v11563_v46 = vcombine.low %v11081_v56, %v11173_v40  ;;  %v11564_v61 = vcombine.high %v11081_v56, %v11173_v40  ;;  %v14058_v44 = vpop.f32.mrb[165].mxu1 }
0x2a32   : > { %v11176_v62 = vpop.f32.mrb[166].mxu1 }
0x2a33   : > { %v11571_v38 = vrot.slane %v11563_v46, %v15439_v24  ;;  %v11578_v50 = vrot.slane %v11564_v61, %v15439_v24  ;;  %v14059_v12 = vpop.f32.mrb[167].mxu1 }
0x2a35   : > { %v11579_v41 = vcombine.low %v11555_v36, %v11571_v38  ;;  %v11580_v14 = vcombine.high %v11555_v36, %v11571_v38  ;;  %v11595_v4 = vcombine.low %v11562_v51, %v11578_v50  ;;  %v11596_v43 = vcombine.high %v11562_v51, %v11578_v50  ;;  %v11219_v52 = vpop.f32.mrb[152].mxu0 }
0x2a36   : > { %v14064_v3 = vpop.f32.mrb[153].mxu0 }
0x2a37   : > { %v11587_v39 = vrot.slane %v11579_v41, %v15442_v31  ;;  %v11594_v57 = vrot.slane %v11580_v14, %v15442_v31  ;;  %v11603_v34 = vrot.slane %v11595_v4, %v15442_v31  ;;  %v11610_v25 = vrot.slane %v11596_v43, %v15442_v31  ;;  %v11222_v1 = vpop.f32.mrb[154].mxu0 }
0x2a38   : > { %v11265_v35 = vpop.f32.mrb[168].mxu1  ;;  %v14065_v60 = vpop.f32.mrb[155].mxu0 }
0x2a39   : > { %v11751_v55 = vcombine.low %v11587_v39, %v11594_v57  ;;  %v13179_v29 = vcombine.high %v11587_v39, %v11594_v57  ;;  %v11767_v19 = vcombine.low %v11603_v34, %v11610_v25  ;;  %v13180_v32 = vcombine.high %v11603_v34, %v11610_v25  ;;  %v14070_v13 = vpop.f32.mrb[169].mxu1 }
0x2a3a   : > { %v11268_v30 = vpop.f32.mrb[170].mxu1 }
0x2a3b   : > { %v11758_v10 = vrot.slane %v11751_v55, %v15439_v24  ;;  %v11766_v8 = vrot.slane %v13179_v29, %v15439_v24  ;;  %v11774_v54 = vrot.slane %v11767_v19, %v15439_v24  ;;  %v11782_v48 = vrot.slane %v13180_v32, %v15439_v24  ;;  %v14071_v17 = vpop.f32.mrb[171].mxu1 }
0x2a3d   : > { %v11784_v27 = vcombine.high %v11758_v10, %v11766_v8  ;;  %v11800_v5 = vcombine.high %v11774_v54, %v11782_v48  ;;  %v11783_v23 = vcombine.low %v11758_v10, %v11766_v8  ;;  %v11799_v53 = vcombine.low %v11774_v54, %v11782_v48 }
0x2a3f   : > { %v11798_v20 = vrot.slane %v11784_v27, %v15442_v31  ;;  %v11814_v42 = vrot.slane %v11800_v5, %v15442_v31  ;;  %v17366_v59 = vrot.slane %v11783_v23, %v15442_v31  ;;  %v17369_v22 = vrot.slane %v11799_v53, %v15442_v31 }
0x2a41   : > { %v11357_v6 = vpop.f32.mrb[172].mxu1  ;;  %v11817_v56 = vcombine.low %v11798_v20, %v11814_v42  ;;  %v11816_v45 = vcombine.high %v17366_v59, %v17369_v22  ;;  %v11818_v0 = vcombine.high %v11798_v20, %v11814_v42  ;;  %v11815_v11 = vcombine.low %v17366_v59, %v17369_v22 }
0x2a42   : > { %v11311_v63 = vpop.f32.mrb[156].mxu0  ;;  %v11631_v26 = vcombine.low %v11265_v35, %v11357_v6  ;;  %v11632_v15 = vcombine.high %v11265_v35, %v11357_v6  ;;  %v14082_v33 = vpop.f32.mrb[173].mxu1 }
0x2a43   : > { %v11615_v16 = vcombine.low %v11219_v52, %v11311_v63  ;;  %v11616_v58 = vcombine.high %v11219_v52, %v11311_v63  ;;  %v14076_v49 = vpop.f32.mrb[157].mxu0  ;;  %v11360_v2 = vpop.f32.mrb[174].mxu1 }
0x2a44   : > { %v11314_v37 = vpop.f32.mrb[158].mxu0  ;;  %v11639_v9 = vrot.slane %v11631_v26, %v15439_v24  ;;  %v11646_v40 = vrot.slane %v11632_v15, %v15439_v24  ;;  %v14083_v46 = vpop.f32.mrb[175].mxu1 }
0x2a45   : > { %v11623_v61 = vrot.slane %v11615_v16, %v15439_v24  ;;  %v11630_v44 = vrot.slane %v11616_v58, %v15439_v24  ;;  %v14077_v62 = vpop.f32.mrb[159].mxu0 }
0x2a47   : > { %v11647_v36 = vcombine.low %v11623_v61, %v11639_v9  ;;  %v11648_v51 = vcombine.high %v11623_v61, %v11639_v9  ;;  %v11663_v38 = vcombine.low %v11630_v44, %v11646_v40  ;;  %v11664_v50 = vcombine.high %v11630_v44, %v11646_v40 }
0x2a49   : > { %v11655_v12 = vrot.slane %v11647_v36, %v15442_v31  ;;  %v11662_v41 = vrot.slane %v11648_v51, %v15442_v31  ;;  %v11671_v14 = vrot.slane %v11663_v38, %v15442_v31  ;;  %v11678_v4 = vrot.slane %v11664_v50, %v15442_v31 }
0x2a4b   : > { %v11819_v43 = vcombine.low %v11655_v12, %v11662_v41  ;;  %v13181_v52 = vcombine.high %v11655_v12, %v11662_v41  ;;  %v11835_v39 = vcombine.low %v11671_v14, %v11678_v4  ;;  %v13182_v57 = vcombine.high %v11671_v14, %v11678_v4  ;;  %v14439_v41 = vld [vmem:[%s17731_s19 + $0x10] sm:$0xff]  }
0x2a4c   : > { %14108 = vmatprep.subr.bf16.mxu0 %v14439_v41 }
0x2a4d   : > { %v11826_v34 = vrot.slane %v11819_v43, %v15439_v24  ;;  %v11834_v25 = vrot.slane %v13181_v52, %v15439_v24  ;;  %v11842_v3 = vrot.slane %v11835_v39, %v15439_v24  ;;  %v11850_v1 = vrot.slane %v13182_v57, %v15439_v24  ;;  %14109 = vmatpush3.bf16.msra.mxu0 %v14439_v41 }
0x2a4f   : > { %v11852_v35 = vcombine.high %v11826_v34, %v11834_v25  ;;  %v11868_v55 = vcombine.high %v11842_v3, %v11850_v1  ;;  %v11851_v29 = vcombine.low %v11826_v34, %v11834_v25  ;;  %v11867_v19 = vcombine.low %v11842_v3, %v11850_v1  ;;  %v14440_v3 = vld [vmem:[%s17731_s19 + $0x18] sm:$0xff]  }
0x2a50   : > { %14110 = vmatprep.subr.bf16.mxu0 %v14440_v3 }
0x2a51   : > { %v11866_v32 = vrot.slane %v11852_v35, %v15442_v31  ;;  %v11882_v60 = vrot.slane %v11868_v55, %v15442_v31  ;;  %v17390_v13 = vrot.slane %v11851_v29, %v15442_v31  ;;  %v17393_v30 = vrot.slane %v11867_v19, %v15442_v31  ;;  %14111 = vmatpush3.bf16.msra.mxu0 %v14440_v3 }
0x2a53   : > { %v11885_v10 = vcombine.low %v11866_v32, %v11882_v60  ;;  %v11884_v8 = vcombine.high %v17390_v13, %v17393_v30  ;;  %v11886_v54 = vcombine.high %v11866_v32, %v11882_v60  ;;  %v11883_v48 = vcombine.low %v17390_v13, %v17393_v30 }
0x2a55   : > { %v14346_v17 = vpack.i.bf16 %v11885_v10, %v11817_v56  ;;  %v14341_v27 = vpack.i.bf16 %v11884_v8, %v11816_v45  ;;  %v14351_v5 = vpack.i.bf16 %v11886_v54, %v11818_v0 }
0x2a57   : > { %14347 = vrot.lane.b32.xlu1 %v14346_v17, %s17716_s5  ;;  %14342 = vrot.lane.b32.xlu0 %v14341_v27, %s17717_s6 }
0x2a5a   : > { %v11403_v23 = vpop.f32.mrb[160].mxu0  ;;  %v11449_v53 = vpop.f32.mrb[176].mxu1 }
0x2a5b   : > { %14352 = vrot.lane.b32.xlu0 %v14351_v5, %s17718_s12  ;;  %v14088_v20 = vpop.f32.mrb[161].mxu0  ;;  %v14094_v42 = vpop.f32.mrb[177].mxu1 }
0x2a5c   : > { %v11406_v6 = vpop.f32.mrb[162].mxu0  ;;  %v11452_v63 = vpop.f32.mrb[178].mxu1 }
0x2a5d   : > { %v14089_v26 = vpop.f32.mrb[163].mxu0  ;;  %v14095_v15 = vpop.f32.mrb[179].mxu1 }
0x2a77   : > { %v11495_v33 = vpop.f32.mrb[164].mxu0 }
0x2a78   : > { %v11683_v16 = vcombine.low %v11403_v23, %v11495_v33  ;;  %v11684_v58 = vcombine.high %v11403_v23, %v11495_v33  ;;  %v14100_v56 = vpop.f32.mrb[165].mxu0 }
0x2a79   : > { %v11498_v45 = vpop.f32.mrb[166].mxu0 }
0x2a7a   : > { %v14101_v0 = vpop.f32.mrb[167].mxu0  ;;  %v11691_v46 = vrot.slane %v11683_v16, %v15439_v24  ;;  %v11698_v61 = vrot.slane %v11684_v58, %v15439_v24 }
0x2a82   : > { %v11541_v49 = vpop.f32.mrb[180].mxu1 }
0x2a83   : > { %v11699_v2 = vcombine.low %v11449_v53, %v11541_v49  ;;  %v11700_v37 = vcombine.high %v11449_v53, %v11541_v49  ;;  %v14106_v9 = vpop.f32.mrb[181].mxu1 }
0x2a84   : > { %v11544_v40 = vpop.f32.mrb[182].mxu1 }
0x2a85   : > { %v11707_v44 = vrot.slane %v11699_v2, %v15439_v24  ;;  %v11714_v62 = vrot.slane %v11700_v37, %v15439_v24  ;;  %v14107_v36 = vpop.f32.mrb[183].mxu1 }
0x2a87   : > { %v11715_v51 = vcombine.low %v11691_v46, %v11707_v44  ;;  %v11716_v38 = vcombine.high %v11691_v46, %v11707_v44  ;;  %v11731_v50 = vcombine.low %v11698_v61, %v11714_v62  ;;  %v11732_v12 = vcombine.high %v11698_v61, %v11714_v62  ;;  %v13194_v46 = vld [vmem:[%s17732_s20 + $0x1] ss:$0 sm:$0xff] }
0x2a89   : > { %v11723_v14 = vrot.slane %v11715_v51, %v15442_v31  ;;  %v11730_v4 = vrot.slane %v11716_v38, %v15442_v31  ;;  %v11739_v43 = vrot.slane %v11731_v50, %v15442_v31  ;;  %v11746_v52 = vrot.slane %v11732_v12, %v15442_v31 }
0x2a8b   : > { %v11887_v39 = vcombine.low %v11723_v14, %v11730_v4  ;;  %v13183_v57 = vcombine.high %v11723_v14, %v11730_v4  ;;  %v11903_v34 = vcombine.low %v11739_v43, %v11746_v52  ;;  %v13184_v25 = vcombine.high %v11739_v43, %v11746_v52 }
0x2a8d   : > { %v11894_v1 = vrot.slane %v11887_v39, %v15439_v24  ;;  %v11902_v35 = vrot.slane %v13183_v57, %v15439_v24  ;;  %v11910_v55 = vrot.slane %v11903_v34, %v15439_v24  ;;  %v11918_v29 = vrot.slane %v13184_v25, %v15439_v24 }
0x2a8f   : > { %v11919_v19 = vcombine.low %v11894_v1, %v11902_v35  ;;  %v11935_v32 = vcombine.low %v11910_v55, %v11918_v29  ;;  %v11920_v60 = vcombine.high %v11894_v1, %v11902_v35  ;;  %v11936_v10 = vcombine.high %v11910_v55, %v11918_v29 }
0x2a91   : > { %v11927_v8 = vrot.slane %v11919_v19, %v15442_v31  ;;  %v11943_v54 = vrot.slane %v11935_v32, %v15442_v31  ;;  %v11934_v17 = vrot.slane %v11920_v60, %v15442_v31  ;;  %v11950_v27 = vrot.slane %v11936_v10, %v15442_v31  ;;  %v14441_v60 = vld [vmem:[%s17733_s21 + $0x10] sm:$0xff]   ;;  %v14442_v10 = vld [vmem:[%s17733_s21 + $0x18] sm:$0xff]  }
0x2a92   : > { %14116 = vmatprep.subr.bf16.mxu1 %v14441_v60 }
0x2a93   : > { %v11952_v5 = vcombine.high %v11927_v8, %v11943_v54  ;;  %v11953_v23 = vcombine.low %v11934_v17, %v11950_v27  ;;  %v11954_v53 = vcombine.high %v11934_v17, %v11950_v27  ;;  %v11951_v20 = vcombine.low %v11927_v8, %v11943_v54  ;;  %14117 = vmatpush3.bf16.msra.mxu1 %v14441_v60 }
0x2a94   : > { %14118 = vmatprep.subr.bf16.mxu1 %v14442_v10 }
0x2a95   : > { %11962 = vrot.lane.b32.xlu1 %v11952_v5, %s17717_s6  ;;  %s1502_s6 = sand.u32 1, %s14883_s28  }
0x2a96   : > { %s1503_s2 = scalar_lea.vmem [#allocation14], %s1502_s6  ;;  %s12651_s3 = scalar_lea.sflag [#allocation5], %s1502_s6 }
0x2a97   : > { %14119 = vmatpush3.bf16.msra.mxu1 %v14442_v10 }
0x2a98   : > { %14144 = vmatprep.subr.bf16.mxu1 %v14948_v47 }
0x2a99   : > { %11974 = vrot.lane.b32.xlu1 %v11953_v23, %s17716_s5  ;;  %s13243_s5 = sshll.u32 %s15231_s0, 4  ;;  %s14958_s0 = smov [#allocation14]  }
0x2a9d   : > { %11986 = vrot.lane.b32.xlu1 %v11954_v53, %s17718_s12 }
0x2ac9   : > { %v14343_v24 = vpop.permute.xlu0 %14342  ;;  %v14348_v42 = vpop.permute.xlu1 %14347 }
0x2aca   : > { %v14345_v6 = vunpack.i.h.bf16 %v14343_v24  ;;  %v14344_v63 = vunpack.i.l.bf16 %v14343_v24  ;;  %v14350_v26 = vunpack.i.h.bf16 %v14348_v42  ;;  %v14349_v15 = vunpack.i.l.bf16 %v14348_v42 }
0x2acc   : > { %v11991_v31 = vsel %vm2375_vm4, %v11815_v11, %v14344_v63  ;;  %v11992_v33 = vsel %vm2375_vm4, %v11883_v48, %v14345_v6  ;;  %v13197_v63 = vld [vmem:[%s17734_s22 + $0x1] ss:$0 sm:$0xff] }
0x2acd   : > { %v14353_v16 = vpop.permute.xlu0 %14352  ;;  %v11995_v45 = vsel %vm2942_vm7, %v11992_v33, %v14350_v26  ;;  %v11994_v0 = vsel %vm2942_vm7, %v11991_v31, %v14349_v15 }
0x2ace   : > { %v14355_v58 = vunpack.i.h.bf16 %v14353_v16  ;;  %v14354_v56 = vunpack.i.l.bf16 %v14353_v16 }
0x2ad0   : > { %v11997_v49 = vsel %vm2944_vm8, %v11994_v0, %v14354_v56  ;;  %v11998_v2 = vsel %vm2944_vm8, %v11995_v45, %v14355_v58  ;;  %v13198_v58 = vld [vmem:[%s17735_s24 + $0x1] ss:$0 sm:$0xff] }
0x2ad1   : > { %v12000_v59 = vpack.c.bf16 %v11998_v2, %v11997_v49 }
0x2ad3   : > { %14112 = vmatprep.mubr.msk.bf16.mxu0 %vm1670_vm2, %v12000_v59 }
0x2b07   : > { %v11963_v22 = vpop.permute.xlu1 %11962 }
0x2b08   : > { %v11993_v13 = vsel %vm2375_vm4, %v11951_v20, %v11963_v22 }
0x2b0b   : > { %v11975_v11 = vpop.permute.xlu1 %11974 }
0x2b0c   : > { %v11996_v30 = vsel %vm2942_vm7, %v11993_v13, %v11975_v11  ;;  %v14443_v11 = vld [vmem:[%s17736_s25 + $0x40] sm:$0xff]   ;;  %v14444_v13 = vld [vmem:[%s17736_s25 + $0x48] sm:$0xff]  }
0x2b0d   : > { %14124 = vmatprep.subr.bf16.mxu0 %v14443_v11 }
0x2b0f   : > { %v11987_v48 = vpop.permute.xlu1 %11986 }
0x2b10   : > { %v11999_v37 = vsel %vm2944_vm8, %v11996_v30, %v11987_v48  ;;  %v14445_v30 = vld [vmem:[%s17736_s25 + $0x50] sm:$0xff]   ;;  %v14446_v48 = vld [vmem:[%s17736_s25 + $0x58] sm:$0xff]  }
0x2b11   : > { %v12001_v9 = vpack.c.bf16 %v11999_v37, %v11999_v37  ;;  %v14447_v37 = vld [vmem:[%s17736_s25 + $0x60] sm:$0xff]  }
0x2b13   : > { %14113 = vmatmul.mubr.msk.bf16.vlgmr.msra.gmra.mrb[168].mxu0 %vm1670_vm2, %v12001_v9  ;;  %v14448_v9 = vld [vmem:[%s17736_s25 + $0x68] sm:$0xff]  }
0x2b14   : > { %14125 = vmatpush3.bf16.msra.mxu0 %v14443_v11 }
0x2b15   : > { %14126 = vmatprep.subr.bf16.mxu0 %v14444_v13 }
0x2b18   : > { %14127 = vmatpush3.bf16.msra.mxu0 %v14444_v13 }
0x2b19   : > { %14128 = vmatprep.subr.bf16.mxu0 %v14445_v30 }
0x2b1c   : > { %14129 = vmatpush3.bf16.msra.mxu0 %v14445_v30 }
0x2b1d   : > { %14130 = vmatprep.subr.bf16.mxu0 %v14446_v48 }
0x2b20   : > { %14131 = vmatpush3.bf16.msra.mxu0 %v14446_v48 }
0x2b21   : > { %14132 = vmatprep.subr.bf16.mxu0 %v14447_v37 }
0x2b24   : > { %14133 = vmatpush3.bf16.msra.mxu0 %v14447_v37 }
0x2b25   : > { %14134 = vmatprep.subr.bf16.mxu0 %v14448_v9 }
0x2b28   : > { %14135 = vmatpush3.bf16.msra.mxu0 %v14448_v9 }
0x2be6   : > { %v14114_v40 = vpop.f32.mrb[168].mxu0 }
0x2be7   : > { %v12059_v61 = vpop.f32.mrb[169].mxu0  ;;  %v12075_v44 = vadd.f32 %v14114_v40, %v16686_v21  ;;  %v14449_v40 = vld [vmem:[%s17736_s25 + $0x70] sm:$0xff]  }
0x2be8   : > { %v12073_v62 = vadd.f32 %v12059_v61, %v16683_v7  ;;  %v14115_v36 = vpop.f32.mrb[170].mxu0  ;;  %14136 = vmatprep.subr.bf16.mxu0 %v14449_v40  ;;  %v13204_v61 = vld [vmem:[%s17737_s26 + $0x1] ss:$0 sm:$0xff] }
0x2be9   : > { %v12062_v51 = vpop.f32.mrb[171].mxu0  ;;  %v17446_v12 = vadd.f32 %v13194_v46, %v12075_v44  ;;  %14137 = vmatpush3.bf16.msra.mxu0 %v14449_v40 }
0x2bea   : > { %v17443_v38 = vadd.f32 %v13194_v46, %v12073_v62  ;;  %v12074_v50 = vadd.f32 %v12062_v51, %v16689_v18 }
0x2beb   : > { %v12097_v7 = vsel %vm1670_vm2, %v17446_v12, 0.0 }
0x2bec   : > { %v17448_v41 = vadd.f32 %v13194_v46, %v12074_v50  ;;  %v12091_v14 = vsel %vm1670_vm2, %v17443_v38, 0.0  ;;  %v14450_v46 = vld [vmem:[%s17736_s25 + $0x78] sm:$0xff]  }
0x2bed   : > { %12092 = vadd.xlane.f32.xlu0 %v12091_v14  ;;  %14138 = vmatprep.subr.bf16.mxu0 %v14450_v46 }
0x2bee   : > { %v12094_v4 = vsel %vm1670_vm2, %v17448_v41, 0.0  ;;  %14139 = vmatpush3.bf16.msra.mxu0 %v14450_v46 }
0x2bef   : > { %12095 = vadd.xlane.f32.xlu1 %v12094_v4 }
0x2bf1   : > { %12098 = vadd.xlane.f32.xlu0 %v12097_v7 }
0x2c7a   : > { %v12093_v21 = vpop.xlane.xlu0 %12092 }
0x2c7b   : > { %v12100_v43 = vmul.f32 0.03125, %v12093_v21 }
0x2c7c   : > { %v12096_v52 = vpop.xlane.xlu1 %12095 }
0x2c7d   : > { %v12103_v18 = vsub.f32 %v17443_v38, %v12100_v43  ;;  %v12101_v39 = vmul.f32 0.03125, %v12096_v52 }
0x2c7e   : > { %v12099_v57 = vpop.xlane.xlu0 %12098 }
0x2c7f   : > { %v12104_v34 = vsub.f32 %v17448_v41, %v12101_v39  ;;  %v12102_v25 = vmul.f32 0.03125, %v12099_v57  ;;  %v12106_v3 = vmul.f32 %v12103_v18, %v12103_v18 }
0x2c81   : > { %v12105_v1 = vsub.f32 %v17446_v12, %v12102_v25  ;;  %v12109_v35 = vsel %vm1670_vm2, %v12106_v3, 0.0  ;;  %v12107_v55 = vmul.f32 %v12104_v34, %v12104_v34 }
0x2c82   : > { %12110 = vadd.xlane.f32.xlu0 %v12109_v35 }
0x2c83   : > { %v12108_v29 = vmul.f32 %v12105_v1, %v12105_v1  ;;  %v12112_v32 = vsel %vm1670_vm2, %v12107_v55, 0.0 }
0x2c85   : > { %v12115_v19 = vsel %vm1670_vm2, %v12108_v29, 0.0 }
0x2c86   : > { %12116 = vadd.xlane.f32.xlu1 %v12115_v19  ;;  %12113 = vadd.xlane.f32.xlu0 %v12112_v32 }
0x2d0f   : > { %v12111_v8 = vpop.xlane.xlu0 %12110 }
0x2d10   : > { %v12118_v54 = vmul.f32 0.03125, %v12111_v8 }
0x2d12   : > { %v12121_v17 = vadd.f32 1e-05, %v12118_v54 }
0x2d13   : > { %v12114_v27 = vpop.xlane.xlu0 %12113  ;;  %v12117_v5 = vpop.xlane.xlu1 %12116 }
0x2d14   : > { %14621 = vrsqrt.f32 %v12121_v17  ;;  %v12119_v23 = vmul.f32 0.03125, %v12114_v27  ;;  %v12120_v53 = vmul.f32 0.03125, %v12117_v5 }
0x2d16   : > { %v12122_v20 = vadd.f32 1e-05, %v12119_v23  ;;  %v12123_v24 = vadd.f32 1e-05, %v12120_v53 }
0x2d18   : > { %14623 = vrsqrt.f32 %v12122_v20 }
0x2d19   : > { %14625 = vrsqrt.f32 %v12123_v24 }
0x2d1e   : > { %v14622_v42 = vpop.eup %14621 }
0x2d1f   : > { %v12127_v6 = vmul.f32 %v14622_v42, %v12103_v18 }
0x2d21   : > { %v12136_v33 = vmul.f32 %v13197_v63, %v12127_v6 }
0x2d22   : > { %v14624_v26 = vpop.eup %14623 }
0x2d23   : > { %v14626_v15 = vpop.eup %14625  ;;  %v12128_v31 = vmul.f32 %v14624_v26, %v12104_v34  ;;  %v12145_v0 = vadd.f32 %v13198_v58, %v12136_v33 }
0x2d24   : > { %v12129_v16 = vmul.f32 %v14626_v15, %v12105_v1 }
0x2d25   : > { %v12137_v56 = vmul.f32 %v13197_v63, %v12128_v31 }
0x2d26   : > { %v12138_v45 = vmul.f32 %v13197_v63, %v12129_v16  ;;  %v13226_v63 = vld [vmem:[%s17738_s27 + $0x1] ss:$0 sm:$0xff] }
0x2d27   : > { %v12146_v49 = vadd.f32 %v13198_v58, %v12137_v56 }
0x2d28   : > { %v12147_v2 = vadd.f32 %v13198_v58, %v12138_v45 }
0x2d29   : > { %v12148_v59 = vpack.c.bf16 %v12146_v49, %v12145_v0 }
0x2d2a   : > { %v12149_v22 = vpack.c.bf16 %v12147_v2, %v12147_v2 }
0x2d2b   : > { %14120 = vmatprep.mubr.msk.bf16.mxu1 %vm1670_vm2, %v12148_v59 }
0x2d2c   : > { %14121 = vmatmul.mubr.msk.bf16.vlgmr.msra.gmra.mrb[184].mxu1 %vm1670_vm2, %v12149_v22 }
0x2d2d   : > { %14148 = vmatprep.mubr.msk.bf16.mxu1 %vm14949_vm3, %v14948_v47 }
0x2dff   : > { %v14122_v44 = vpop.f32.mrb[184].mxu1 }
0x2e00   : > { %v12224_v62 = vadd.f32 %v14122_v44, %v13204_v61  ;;  %v12215_v36 = vpop.f32.mrb[185].mxu1 }
0x2e01   : > { %v12216_v51 = vadd.f32 %v13204_v61, %v12215_v36  ;;  %v14123_v50 = vpop.f32.mrb[186].mxu1  ;;  %v12550_v36 = vmul.f32 %v15875_v28, %v15875_v28 }
0x2e02   : > { %v12234_v14 = vmul.f32 0.044715, %v12224_v62  ;;  %v12218_v4 = vpop.f32.mrb[187].mxu1  ;;  %v12231_v17 = vmul.f32 0.5, %v12224_v62 }
0x2e03   : > { %v12232_v7 = vmul.f32 0.044715, %v12216_v51  ;;  %v12219_v21 = vadd.f32 %v13204_v61, %v12218_v4  ;;  %v12229_v27 = vmul.f32 0.5, %v12216_v51  ;;  %v12551_v50 = vsel %vm4777_vm9, %v12550_v36, 0.0 }
0x2e04   : > { %v12237_v43 = vmul.f32 %v12234_v14, %v12224_v62 }
0x2e05   : > { %v12235_v52 = vmul.f32 %v12232_v7, %v12216_v51  ;;  %v12233_v18 = vmul.f32 0.044715, %v12219_v21  ;;  %v12230_v5 = vmul.f32 0.5, %v12219_v21 }
0x2e06   : > { %v12240_v39 = vmul.f32 %v12237_v43, %v12224_v62 }
0x2e07   : > { %v12238_v57 = vmul.f32 %v12235_v52, %v12216_v51  ;;  %v12236_v34 = vmul.f32 %v12233_v18, %v12219_v21 }
0x2e08   : > { %v12243_v25 = vadd.f32 %v12240_v39, %v12224_v62 }
0x2e09   : > { %v12239_v3 = vmul.f32 %v12236_v34, %v12219_v21  ;;  %v12241_v1 = vadd.f32 %v12238_v57, %v12216_v51 }
0x2e0a   : > { %v12246_v35 = vmul.f32 0.7978846, %v12243_v25  ;;  %v13235_v25 = vld [vmem:[#allocation11] ss:$0 sm:$0xff] }
0x2e0b   : > { %v12242_v55 = vadd.f32 %v12239_v3, %v12219_v21  ;;  %v12244_v29 = vmul.f32 0.7978846, %v12241_v1 }
0x2e0c   : > { %14627 = vtanh.f32 %v12246_v35 }
0x2e0d   : > { %v12245_v19 = vmul.f32 0.7978846, %v12242_v55  ;;  %14629 = vtanh.f32 %v12244_v29 }
0x2e0f   : > { %14631 = vtanh.f32 %v12245_v19  ;;  %v13236_v19 = vld [vmem:[#allocation12] ss:$0 sm:$0xff] }
0x2e16   : > { %v14628_v32 = vpop.eup %14627 }
0x2e17   : > { %v14630_v60 = vpop.eup %14629  ;;  %v12252_v10 = vadd.f32 1.0, %v14628_v32 }
0x2e18   : > { %v12250_v8 = vadd.f32 1.0, %v14630_v60 }
0x2e19   : > { %v14632_v54 = vpop.eup %14631  ;;  %v12255_v53 = vmul.f32 %v12252_v10, %v12231_v17 }
0x2e1a   : > { %v12251_v23 = vadd.f32 1.0, %v14632_v54  ;;  %v12253_v20 = vmul.f32 %v12250_v8, %v12229_v27 }
0x2e1b   : > { %v12257_v6 = vpack.c.bf16 %v12255_v53, %v12255_v53  ;;  %v12441_v53 = vld [vmem:[%s17739_s9] sm:$0x3]  ;;  %s12663_s9 = sshll.u32 %s1503_s2, 4  ;;  %s17515_s9 = int_to_ptr.vmem [resolvable:$true] %s12663_s9 }
0x2e1c   : > { %v12254_v24 = vmul.f32 %v12251_v23, %v12230_v5  ;;  %s14813_s4 = scalar_lea.vmem %s17515_s9, 16 }
0x2e1d   : > { %p14814_p10 = scmp.ne.s32.totalorder %s17515_s9, %s14813_s4 }
0x2e1e   : > { %v12256_v42 = vpack.c.bf16 %v12254_v24, %v12253_v20  ;;  %v14451_v20 = vld [vmem:[%s15202_s23] sm:$0xff]   ;;  %v14452_v24 = vld [vmem:[%s15202_s23 + $0x8] sm:$0xff]  }
0x2e1f   : > { %p14815_p8 = pnand %p14814_p10, %p17740_p7 }
0x2e20   : > { %14140 = vmatprep.mubr.bf16.mxu0 %v12256_v42 }
0x2e21   : > { %14141 = vmatmul.mubr.bf16.vlgmr.msra.gmra.mrb[172].mxu0 %v12257_v6  ;;  %p14816_p11 = pneg %p14815_p8 }
0x2ef4   : > { %v14142_v26 = vpop.f32.mrb[172].mxu0 }
0x2ef5   : > { %v12365_v15 = vpop.f32.mrb[173].mxu0  ;;  %v12374_v31 = vadd.f32 %v14142_v26, %v13226_v63 }
0x2ef6   : > { %v12366_v33 = vadd.f32 %v13226_v63, %v12365_v15  ;;  %v14143_v16 = vpop.f32.mrb[174].mxu0 }
0x2ef7   : > { %v12368_v58 = vpop.f32.mrb[175].mxu0  ;;  %v12381_v0 = vadd.f32 %v12374_v31, %v17446_v12 }
0x2ef8   : > { %v12379_v56 = vadd.f32 %v12366_v33, %v17443_v38  ;;  %v12369_v45 = vadd.f32 %v13226_v63, %v12368_v58 }
0x2ef9   : > { %v12390_v22 = vsel %vm1670_vm2, %v12381_v0, 0.0 }
0x2efa   : > { %v12380_v49 = vadd.f32 %v12369_v45, %v17448_v41  ;;  %v12384_v2 = vsel %vm1670_vm2, %v12379_v56, 0.0 }
0x2efb   : > { %12385 = vadd.xlane.f32.xlu0 %v12384_v2 }
0x2efc   : > { %v12387_v59 = vsel %vm1670_vm2, %v12380_v49, 0.0 }
0x2efd   : > { %12388 = vadd.xlane.f32.xlu1 %v12387_v59 }
0x2eff   : > { %12391 = vadd.xlane.f32.xlu0 %v12390_v22 }
0x2f88   : > { %v12386_v11 = vpop.xlane.xlu0 %12385 }
0x2f89   : > { %v12393_v13 = vmul.f32 0.03125, %v12386_v11 }
0x2f8a   : > { %v12389_v30 = vpop.xlane.xlu1 %12388 }
0x2f8b   : > { %v12396_v48 = vsub.f32 %v12379_v56, %v12393_v13  ;;  %v12394_v37 = vmul.f32 0.03125, %v12389_v30 }
0x2f8c   : > { %v12392_v38 = vpop.xlane.xlu0 %12391 }
0x2f8d   : > { %v12397_v9 = vsub.f32 %v12380_v49, %v12394_v37  ;;  %v12395_v40 = vmul.f32 0.03125, %v12392_v38  ;;  %v12399_v12 = vmul.f32 %v12396_v48, %v12396_v48 }
0x2f8f   : > { %v12398_v46 = vsub.f32 %v12381_v0, %v12395_v40  ;;  %v12402_v41 = vsel %vm1670_vm2, %v12399_v12, 0.0  ;;  %v12400_v61 = vmul.f32 %v12397_v9, %v12397_v9  ;;  %v12642_v0 = vstv %s12641_s8  ;;  %s17513_s8 = scalar_lea.hbm %s15207_s1, %s13243_s5 }
0x2f90   : > { %12403 = vadd.xlane.f32.xlu1 %v12402_v41  ;;  %v12643_v49 = vmul.f32 1.442695, %v12642_v0 }
0x2f91   : > { %v12405_v44 = vsel %vm1670_vm2, %v12400_v61, 0.0  ;;  %v12401_v62 = vmul.f32 %v12398_v46, %v12398_v46 }
0x2f92   : > { %12406 = vadd.xlane.f32.xlu0 %v12405_v44 }
0x2f93   : > { %v12408_v51 = vsel %vm1670_vm2, %v12401_v62, 0.0 }
0x2f94   : > { %12409 = vadd.xlane.f32.xlu1 %v12408_v51 }
0x2f98   : > { %12552 = vadd.xlane.f32.xlu1 %v12551_v50 }
0x301d   : > { %v12404_v14 = vpop.xlane.xlu1 %12403 }
0x301e   : > { %v12411_v4 = vmul.f32 0.03125, %v12404_v14 }
0x301f   : > { %v12407_v7 = vpop.xlane.xlu0 %12406 }
0x3020   : > { %v12414_v21 = vadd.f32 1e-05, %v12411_v4  ;;  %v12412_v43 = vmul.f32 0.03125, %v12407_v7 }
0x3021   : > { %v12410_v52 = vpop.xlane.xlu1 %12409 }
0x3022   : > { %14633 = vrsqrt.f32 %v12414_v21  ;;  %v12415_v18 = vadd.f32 1e-05, %v12412_v43  ;;  %v12413_v39 = vmul.f32 0.03125, %v12410_v52 }
0x3024   : > { %14635 = vrsqrt.f32 %v12415_v18  ;;  %v12416_v57 = vadd.f32 1e-05, %v12413_v39 }
0x3025   : > { %v12553_v59 = vpop.xlane.xlu1 %12552 }
0x3026   : > { %14637 = vrsqrt.f32 %v12416_v57  ;;  %v12554_v22 = vmax.f32 %v12553_v59, 1e-24 }
0x3027   : > { %14639 = vpow2.f32 %v12643_v49 }
0x302c   : > { %v14634_v34 = vpop.eup %14633 }
0x302d   : > { %v12420_v3 = vmul.f32 %v14634_v34, %v12396_v48 }
0x302e   : > { %v14636_v1 = vpop.eup %14635 }
0x302f   : > { %v12421_v35 = vmul.f32 %v14636_v1, %v12397_v9  ;;  %v12429_v55 = vmul.f32 %v13235_v25, %v12420_v3 }
0x3030   : > { %v14638_v29 = vpop.eup %14637 }
0x3031   : > { %v12430_v32 = vmul.f32 %v13235_v25, %v12421_v35  ;;  %v12422_v60 = vmul.f32 %v14638_v29, %v12398_v46  ;;  %v12438_v10 = vadd.f32 %v13236_v19, %v12429_v55  ;;  %v14640_v2 = vpop.eup %14639 }
0x3032   : > { %14165 = vpush %v14640_v2 }
0x3033   : > { %v12439_v8 = vadd.f32 %v13236_v19, %v12430_v32  ;;  %v12431_v54 = vmul.f32 %v13235_v25, %v12422_v60 }
0x3035   : > { %v12442_v17 = vpack.c.bf16 %v12439_v8, %v12438_v10  ;;  %v12440_v27 = vadd.f32 %v13236_v19, %v12431_v54 }
0x3037   : > { %14145 = vmatpush3.bf16.msra.mxu1 %v12442_v17  ;;  %v12443_v5 = vpack.c.bf16 %v12440_v27, %v12440_v27 }
0x3038   : > { %14146 = vmatprep.subr.bf16.mxu1 %v14948_v47 }
0x3039   : > { %v12448_v23 = vsel %vm2611_vm6, %v12443_v5, 0 }
0x303b   : > { %14147 = vmatpush3.bf16.msra.mxu1 %v12448_v23 }
0x303c   : > { %14152 = vmatprep.subr.bf16.mxu1 %v14948_v47 }
0x303e   : > { %14149 = vmatmul.mubr.msk.bf16.vlgmr.msra.gmra.mrb[188].mxu1 %vm2944_vm8, %v12441_v53 }
0x303f   : > { %14153 = vmatpush3.bf16.msra.mxu1 %v14451_v20  ;;  %14156 = vmatprep.mubr.msk.bf16.mxu1 %vm14949_vm3, %v14948_v47 }
0x3040   : > { %14154 = vmatprep.subr.bf16.mxu1 %v14948_v47 }
0x3043   : > { %14155 = vmatpush3.bf16.msra.mxu1 %v14452_v24 }
0x3044   : > { %14160 = vmatprep.subr.mxu1 %v14948_v47 }
0x3063   : > { %s14166_s12 = spop %14165 }
0x3064   : > { %v12646_v38 = vstv %s14166_s12  ;;  %s14817_s12 = sshll.u32 %s14958_s0, 4  ;;  %s14818_s12 = int_to_ptr.vmem [resolvable:$false] %s14817_s12 }
0x3065   : > { %s14819_s7 = scalar_lea.vmem %s14818_s12, 32  ;;  %p14820_p13 = scmp.lt.s32.totalorder %s17515_s9, %s14818_s12 }
0x3066   : > { %p14821_p1 = scmp.lt.s32.totalorder %s14819_s7, %s14813_s4 }
0x3068   : > { %p14822_p2 = por %p14821_p1, %p14820_p13 }
0x306a   : > { %p14823_p0 = pnand %p14822_p2, %p14816_p11 }
0x3111   : > { %v12484_v42 = vpop.f32.mrb[188].mxu1 }
0x3112   : > { %v12490_v6 = vpack.c.bf16 %v12484_v42, %v12484_v42  ;;  %v14150_v63 = vpop.f32.mrb[189].mxu1 }
0x3113   : > { %v12487_v26 = vpop.f32.mrb[190].mxu1 }
0x3114   : > { %v14151_v15 = vpop.f32.mrb[191].mxu1  ;;  %14157 = vmatmul.mubr.msk.bf16.vlgmr.msra.gmra.mrb[192].mxu1 %vm1670_vm2, %v12490_v6 }
0x3115   : > { %14162 = vmatprep.mubr.msk.f32.mxu1 %vm14949_vm3, %v14948_v47 }
0x31e7   : > { %v12544_v31 = vpop.f32.mrb[192].mxu1 }
0x31e8   : > { %v12557_v33 = vmul.f32 %v12544_v31, %v12544_v31  ;;  %v14158_v16 = vpop.f32.mrb[193].mxu1 }
0x31e9   : > { %v12547_v58 = vpop.f32.mrb[194].mxu1 }
0x31ea   : > { %v14159_v56 = vpop.f32.mrb[195].mxu1  ;;  %v12559_v45 = vsel %vm12558_vm12, %v12557_v33, 0.0 }
0x31eb   : > { %12560 = vadd.xlane.f32.xlu0 %v12559_v45 }
0x3278   : > { %v12561_v11 = vpop.xlane.xlu0 %12560 }
0x3279   : > { %v12562_v47 = vmax.f32 %v12561_v11, 1e-24 }
0x327b   : > { %14641 = vrsqrt.f32 %v12562_v47 }
0x327c   : > { %14643 = vrsqrt.f32 %v12554_v22 }
0x3285   : > { %v14642_v13 = vpop.eup %14641 }
0x3286   : > { %v14644_v30 = vpop.eup %14643  ;;  %v12564_v48 = vmul.f32 %v14642_v13, %v12544_v31 }
0x3287   : > { %v12556_v37 = vmul.f32 %v14644_v30, %v15875_v28 }
0x3288   : > { %14161 = vmatpush3.xpose.msk.msra.mxu1 %vm1670_vm2, %v12564_v48 }
0x328b   : > { %14163 = vmatmul.mubr.msk.f32.vlgmr.msra.gmra.mrb[196].mxu1 %vm1670_vm2, %v12556_v37 }
0x335e   : > { %v12637_v9 = vpop.f32.mrb[196].mxu1 }
0x335f   : > { %v12647_v40 = vmul.f32 %v12646_v38, %v12637_v9  ;;  %v14164_v12 = vpop.f32.mrb[197].mxu1 }
0x3361   : > { %12649 = vst.msk [vmem:[%s1503_s2] sm:$0x1] %vm12648_vm13, %v12647_v40 }
0x3362   : > { %14826 = shalt.err (!%p14823_p0)
}
0x3363   : > { %s14827_s6 = scalar_lea.hbm %s17513_s8, 16  ;;  %s14831_s5 = scalar_lea.hbm %s15207_s1, 32 }
0x3364   : > { %p14828_p3 = scmp.ne.s32.totalorder %s17513_s8, %s14827_s6  ;;  %p14832_p5 = scmp.lt.u32.totalorder %s17513_s8, %s15207_s1 }
0x3365   : > { %p14833_p6 = scmp.lt.u32.totalorder %s14831_s5, %s14827_s6  ;;  %p14835_p10 = scmp.lt.u32.totalorder %s14827_s6, %s17513_s8 }
0x3366   : > { %p14829_p4 = pnand %p14828_p3, %p17740_p7 }
0x3367   : > { %p14834_p9 = por %p14833_p6, %p14832_p5 }
0x3368   : > { %p14830_p12 = pneg %p14829_p4 }
0x3369   : > { %p14836_p8 = por %p14835_p10, %p14834_p9 }
0x336b   : > { %p14837_p11 = pnand %p14836_p8, %p14830_p12 }
0x336d   : > { %14840 = shalt.err (!%p14837_p11)
}
0x336e   : > { %14191 = dma.vmem_to_hbm [thread:$0]  (%p17740_p7), %s17515_s9, 16, %s17513_s8, %s12651_s3  }
0x336f PF: > { %s17741_s7 = sld [smem:[#allocation67_spill]]  ;;  %p14228_p13 = scmp.ge.s32.totalorder %s14891_s17, 2 }
0x3370   : > { %s12675_s4 = sand.u32 1, %s14879_s10  }
0x3371   : > { %s12676_s2 = scalar_lea.sflag [#allocation5], %s12675_s4 }
0x3375   : > { %p17742_p1 = scmp.ne.s32.totalorder %s17741_s7, 0 }
0x3377   : > { %p14213_p2 = pnand %p14228_p13, %p17742_p1 }
0x3379   : > { %14874 = dma.done.wait (!%p14213_p2), %s12676_s2, 16  }
0x337a   : > { %14876 = vsyncadd (!%p14213_p2), %s12676_s2, 4294967280  ;;  %s17743_s17 = sld [smem:[#allocation65_spill]]  ;;  %s17744_s0 = sld [smem:[#allocation64_spill]] }
0x337b   : > { %s17745_s2 = sld [smem:[#allocation66_spill]]  ;;  %s17746_s10 = smov %s14883_s28 }
0x3380   : > { %p112_p0 = scmp.ge.s32.totalorder %s17743_s17, 4   ;;  %s17747_s28 = smov %s17744_s0 }
0x3382   :  { %114 = sbr.rel (!%p112_p0) target bundleno = 105 (0x69), region = 352 }
0x3389   :  { %12680 = vsyncpa [#allocation4], 1 }
0x338a   :  { %12682 = vsyncpa [#allocation4 + $0x1], 1 }
0x338b   :  { %12683 = vsyncpa [#allocation7], 1 }
0x338c   :  { %12684 = vsyncpa [#allocation10], 1 }
0x338d   :  { %12685 = vsyncpa [#allocation13], 1 }
0x338e   :  { %12686 = vsyncpa [#allocation5], 1 }
0x338f   :  { %12688 = vsyncpa [#allocation5 + $0x1], 1 }

</bundles_post_ra>
